<compile_context>
chip_gen: v7x
topology: tpu7x:2x2x1
jax: 0.10.0
libtpu: 0.0.40
codegen_flags: <defaults>
</compile_context>

<pallas_src>
import jax
import jax.numpy as jnp
from jax.experimental import pallas as pl
from jax.experimental.pallas import tpu as pltpu


def _linear_kernel(x_ref, w_ref, b_ref, o_ref, x_bf_ref):
    """One grid step: full-K contraction for one 128-wide N-tile.

    Grid is (n_chunks, tiles_per_chunk).  The first axis is `parallel`, so on
    megacore parts (v7x) each TensorCore owns one contiguous chunk of N-tiles
    (balanced 3 + 3 weight-DMA / matmul split); the second axis is
    `arbitrary`.  The f32 activation is cast to bf16 into a persistent VMEM
    scratch on the first arbitrary-step of each chunk -- i.e. exactly once per
    core -- so the VPU cast is paid once instead of once per weight tile and
    is hidden under the prologue DMA.
    """
    @pl.when(pl.program_id(1) == 0)
    def _():
        x_bf_ref[...] = x_ref[...].astype(jnp.bfloat16)

    acc = jnp.dot(x_bf_ref[...], w_ref[...], preferred_element_type=jnp.float32)
    o_ref[...] = (acc + b_ref[...]).astype(o_ref.dtype)


def pallas_linear(x2d, w_bf, bias2d, *, tn=128):
    """x2d: (M, K) f32, w_bf: (K, N) bf16 (pre-cast), bias2d: (1, N) f32 -> (M, N) f32.

    x stays resident across the whole grid (constant block index -> fetched
    once per core); weight streams over N in tn-wide tiles.  tn=128 gives 6
    grid steps: smaller exposed prologue DMA and an even 2-core split on v7x,
    while per-step overhead stays negligible on v5e/v6e.
    """
    M, K = x2d.shape
    K2, N = w_bf.shape
    assert K == K2 and N % tn == 0 and tn % 128 == 0
    n_tiles = N // tn
    n_chunks = 2 if n_tiles % 2 == 0 else 1      # balanced TensorCore split on v7x
    tiles_per_chunk = n_tiles // n_chunks

    def stream_map(i, j):                        # block index along N for this step
        return (0, i * tiles_per_chunk + j)

    return pl.pallas_call(
        _linear_kernel,
        out_shape=jax.ShapeDtypeStruct((M, N), jnp.float32),
        grid_spec=pltpu.PrefetchScalarGridSpec(
            num_scalar_prefetch=0,
            grid=(n_chunks, tiles_per_chunk),
            in_specs=[
                # Full-dim (196, 3072) block is legal (equals the array dims);
                # no host-side pad / slice needed -- Mosaic masks ragged rows.
                pl.BlockSpec((M, K), lambda i, j: (0, 0)),   # x resident, f32
                pl.BlockSpec((K, tn), stream_map),           # bf16 weight streams over N
                pl.BlockSpec((1, tn), stream_map),           # bias tile
            ],
            out_specs=pl.BlockSpec((M, tn), stream_map),     # lane-dense (128) output tile
            scratch_shapes=[pltpu.VMEM((M, K), jnp.bfloat16)],  # once-cast activation
        ),
        compiler_params=pltpu.CompilerParams(
            dimension_semantics=("parallel", "arbitrary"),
            # ~8 MB footprint incl. double-buffering; 32 MB is safe on every
            # generation (v5e/v6e 128 MiB, v7x 64 MiB physical VMEM).
            vmem_limit_bytes=32 * 1024 * 1024,
        ),
    )(x2d, w_bf, bias2d)


def module_m_forward(x, w_bf, bias2d):
    """Reproduces M.forward:
        x267 = Linear(3072 -> 768)(x266)      # [B, H, W, 3072] -> [B, H, W, 768]
        x268 = permute(x267, [0, 3, 1, 2])    # -> [B, 768, H, W]
    w_bf is the pre-transposed (in, out) weight already cast to bf16;
    bias2d is the (1, out) f32 bias.
    """
    B, H, W, Cin = x.shape
    Cout = w_bf.shape[1]
    y2d = pallas_linear(x.reshape(B * H * W, Cin), w_bf, bias2d)
    y = y2d.reshape(B, H, W, Cout)
    # Final NCHW permute: 0.6 MB layout glue, left to XLA.
    return jnp.transpose(y, (0, 3, 1, 2))


if __name__ == "__main__":
    B, H, W = 1, 14, 14
    IN_FEATURES, OUT_FEATURES = 3072, 768

    key = jax.random.PRNGKey(0)
    kx, kw, kb = jax.random.split(key, 3)

    # Deterministic synthetic parameters (PyTorch Linear weight is (out, in)).
    x = jax.random.normal(kx, (B, H, W, IN_FEATURES), dtype=jnp.float32)
    weight = jax.random.normal(kw, (OUT_FEATURES, IN_FEATURES), dtype=jnp.float32) * 0.02
    bias = jax.random.normal(kb, (OUT_FEATURES,), dtype=jnp.float32) * 0.02

    # One-time parameter prep OUTSIDE the jitted hot path: transpose to
    # (in, out) and pre-cast the weight to bf16 so each forward only reads the
    # 4.7 MB bf16 weight instead of re-converting 9.4 MB of f32 per call.
    w_bf = jnp.asarray(weight.T, dtype=jnp.bfloat16)          # (IN, OUT) bf16
    bias2d = bias.reshape(1, OUT_FEATURES).astype(jnp.float32)
    w_bf, bias2d = jax.block_until_ready((w_bf, bias2d))

    fwd = jax.jit(module_m_forward)
    out = jax.block_until_ready(fwd(x, w_bf, bias2d))

    # Shape/dtype checks.
    assert out.shape == (B, OUT_FEATURES, H, W), out.shape
    assert out.dtype == jnp.float32

    # Tight check against a bf16-input / f32-accumulation reference
    # (matches the kernel's compute precision).
    x2d = x.reshape(B * H * W, IN_FEATURES)
    x_q = x2d.astype(jnp.bfloat16).astype(jnp.float32)
    w_q = w_bf.astype(jnp.float32)
    ref_bf = (jnp.dot(x_q, w_q, preferred_element_type=jnp.float32) + bias)
    ref_bf = jnp.transpose(ref_bf.reshape(B, H, W, OUT_FEATURES), (0, 3, 1, 2))
    assert jnp.allclose(out, ref_bf, atol=2e-3, rtol=2e-3), \
        float(jnp.max(jnp.abs(out - ref_bf)))

    # Loose check against the full-f32 reference (bf16 input rounding only).
    ref_f32 = jnp.transpose(
        jnp.einsum("bhwc,co->bhwo", x, weight.T) + bias, (0, 3, 1, 2)
    )
    assert jnp.allclose(out, ref_f32, atol=6e-2, rtol=6e-2)

    print("KERNEL_OK")
</pallas_src>

<mosaic_0001>
module attributes {stable_mosaic.version = 11 : i64} {
  func.func @_linear_kernel(%arg0: i32, %arg1: i32, %arg2: memref<196x3072xf32, #tpu.memory_space<vmem>>, %arg3: memref<3072x128xbf16, #tpu.memory_space<vmem>>, %arg4: memref<1x128xf32, #tpu.memory_space<vmem>>, %arg5: memref<196x128xf32, #tpu.memory_space<vmem>>, %arg6: memref<196x3072xbf16, #tpu.memory_space<vmem>>) attributes {dimension_semantics = [#tpu.dimension_semantics<parallel>, #tpu.dimension_semantics<arbitrary>], iteration_bounds = array<i64: 2, 3>, scalar_prefetch = 0 : i64, scratch_operands = 1 : i64, tpu.core_type = #tpu.core_type<tc>, window_params = [{pipeline_mode = #tpu.pipeline_mode<synchronous>, transform_indices = @transform_0, window_bounds = array<i64: 196, 3072>}, {transform_indices = @transform_1, window_bounds = array<i64: 3072, 128>}, {transform_indices = @transform_2, window_bounds = array<i64: 1, 128>}, {transform_indices = @transform_3, window_bounds = array<i64: 196, 128>}]} {
    %c0_i32 = arith.constant 0 : i32
    %0 = arith.cmpi eq, %arg1, %c0_i32 : i32
    %1 = arith.extui %0 : i1 to i32
    %c0_i32_0 = arith.constant 0 : i32
    %2 = arith.cmpi ne, %1, %c0_i32_0 : i32
    scf.if %2 {
      %c0_8 = arith.constant 0 : index
      %c0_9 = arith.constant 0 : index
      %10 = vector.load %arg2[%c0_8, %c0_9] : memref<196x3072xf32, #tpu.memory_space<vmem>>, vector<196x3072xf32>
      %11 = arith.truncf %10 : vector<196x3072xf32> to vector<196x3072xbf16>
      %c0_10 = arith.constant 0 : index
      %c0_11 = arith.constant 0 : index
      %12 = vector.load %arg6[%c0_10, %c0_11] : memref<196x3072xbf16, #tpu.memory_space<vmem>>, vector<196x3072xbf16>
      tpu.vector_store %arg6[%c0_10, %c0_11], %11 {strides = array<i32>} : memref<196x3072xbf16, #tpu.memory_space<vmem>>, vector<196x3072xbf16>,
    } else {
    }
    %c0 = arith.constant 0 : index
    %c0_1 = arith.constant 0 : index
    %3 = vector.load %arg6[%c0, %c0_1] : memref<196x3072xbf16, #tpu.memory_space<vmem>>, vector<196x3072xbf16>
    %c0_2 = arith.constant 0 : index
    %c0_3 = arith.constant 0 : index
    %4 = vector.load %arg3[%c0_2, %c0_3] : memref<3072x128xbf16, #tpu.memory_space<vmem>>, vector<3072x128xbf16>
    %cst = arith.constant dense<0.000000e+00> : vector<196x128xf32>
    %5 = tpu.matmul %3, %4, %cst {dimension_numbers = #tpu.dot_dimension_numbers<[1], [0], [0], [1], [0, 0, 1, 1], [], []>} : vector<196x3072xbf16>, vector<3072x128xbf16>, vector<196x128xf32> -> vector<196x128xf32>
    %c0_4 = arith.constant 0 : index
    %c0_5 = arith.constant 0 : index
    %6 = vector.load %arg4[%c0_4, %c0_5] : memref<1x128xf32, #tpu.memory_space<vmem>>, vector<1x128xf32>
    %7 = vector.broadcast %6 : vector<1x128xf32> to vector<196x128xf32>
    %8 = arith.addf %5, %7 : vector<196x128xf32>
    %c0_6 = arith.constant 0 : index
    %c0_7 = arith.constant 0 : index
    %9 = vector.load %arg5[%c0_6, %c0_7] : memref<196x128xf32, #tpu.memory_space<vmem>>, vector<196x128xf32>
    tpu.vector_store %arg5[%c0_6, %c0_7], %8 {strides = array<i32>} : memref<196x128xf32, #tpu.memory_space<vmem>>, vector<196x128xf32>,
    return
  }
  func.func @transform_0(%arg0: i32, %arg1: i32) -> (i32, i32) {
    %c0_i32 = arith.constant 0 : i32
    %c0_i32_0 = arith.constant 0 : i32
    %c0_i32_1 = arith.constant 0 : i32
    return %c0_i32, %c0_i32_0 : i32, i32
  }
  func.func @transform_1(%arg0: i32, %arg1: i32) -> (i32, i32) {
    %c3_i32 = arith.constant 3 : i32
    %0 = arith.muli %arg0, %c3_i32 : i32
    %1 = arith.addi %0, %arg1 : i32
    %c0_i32 = arith.constant 0 : i32
    %c0_i32_0 = arith.constant 0 : i32
    return %c0_i32, %1 : i32, i32
  }
  func.func @transform_2(%arg0: i32, %arg1: i32) -> (i32, i32) {
    %c3_i32 = arith.constant 3 : i32
    %0 = arith.muli %arg0, %c3_i32 : i32
    %1 = arith.addi %0, %arg1 : i32
    %c0_i32 = arith.constant 0 : i32
    %c0_i32_0 = arith.constant 0 : i32
    return %c0_i32, %1 : i32, i32
  }
  func.func @transform_3(%arg0: i32, %arg1: i32) -> (i32, i32) {
    %c3_i32 = arith.constant 3 : i32
    %0 = arith.muli %arg0, %c3_i32 : i32
    %1 = arith.addi %0, %arg1 : i32
    %c0_i32 = arith.constant 0 : i32
    %c0_i32_0 = arith.constant 0 : i32
    return %c0_i32, %1 : i32, i32
  }
}

</mosaic_0001>

<bundles_post_ra>
// kernel: module_m_forward.1
= control target key start
LH: loop header
LB: loop body
LE: loop exit
PB: predicated region body
PF: predicated region fallthrough
CT: control target
= control target key end

     0   :  { %s12359_s12 = smov 0   ;;  %s12361_s13 = smov 0   ;;  %s15885_s0 = inlined_call_operand.vmem [shape: f32[196,3072], index: 0, kind: input, shape index: {}]   ;;  %s15886_s1 = inlined_call_operand.vmem [shape: bf16[3072,768], index: 1, kind: input, shape index: {}]   ;;  %s15887_s2 = inlined_call_operand.vmem [shape: f32[1,768], index: 2, kind: input, shape index: {}]   ;;  %s15888_s3 = inlined_call_operand.vmem [shape: f32[196,768], index: 3, kind: output, shape index: {}]  }
   0x1   :  { %s12363_s14 = smov 0   ;;  %s12365_s15 = smov 0  }
   0x2   :  { %s12367_s16 = smov 0   ;;  %s12369_s17 = smov 0  }
   0x3   :  { %s12371_s18 = smov 0  }
   0x4 LB: > { %s22_s19 = sadd.s32 1, %s12329_s16  ;;  %s25_s20 = sadd.s32 1, %s12333_s17  ;;  %s12337_s18 = sphi %s12371_s18, %s13_s18   ;;  %s12333_s17 = sphi %s12369_s17, %s15895_s17   ;;  %s12329_s16 = sphi %s12367_s16, %s15894_s16   ;;  %s12325_s15 = sphi %s12365_s15, %s15893_s15   ;;  %s12321_s14 = sphi %s12363_s14, %s15892_s14   ;;  %s12317_s13 = sphi %s12361_s13, %s15891_s13   ;;  %s12313_s12 = sphi %s12359_s12, %s15890_s12  }
   0x5   : > { %p23_p0 = scmp.ge.s32.totalorder %s22_s19, 3  ;;  %s9765_s21 = sadd.s32 4294967295, %s12337_s18  }
   0x6   : > { %s50_s22 = smul.u32 3, %s12333_s17  ;;  %p64_p1 = scmp.ne.s32.totalorder %s12317_s13, %s12313_s12 }
   0x7   : > { %s15897_s19 = smov (%p23_p0, %s22_s19), 0  ;;  %s15899_s20 = smov (!%p23_p0, %s25_s20), %s12333_s17 }
   0x8   : > { %p27_p2 = scmp.ge.s32.totalorder %s15899_s20, 2  ;;  %p65_p3 = scmp.eq.s32.totalorder %s12337_s18, 0 }
   0x9   : > { %p128_p4 = scmp.eq.s32.totalorder %s9765_s21, 5  ;;  %s51_s24 = sadd.s32 %s12329_s16, %s50_s22 }
   0xa   : > { %s15901_s20 = smov (%p27_p2, %s15899_s20), 0  ;;  %p66_p5 = por %p65_p3, %p64_p1 }
   0xb   : > { %p12406_p6 = por %p128_p4, %p64_p1  ;;  %s52_s25 = smul.u32 3, %s15901_s20 }
   0xc   : > { %s57_s28 = sadd.s32 1, %s12317_s13  ;;  %p9768_p8 = scmp.ge.s32.totalorder %s12337_s18, 6 }
   0xd   : > { %s53_s26 = sadd.s32 %s52_s25, %s15897_s19 }
   0xe   : > { %s54_s27 = ssub.s32 %s51_s24, %s53_s26  ;;  %153 = sbr.rel (%p9768_p8) target bundleno = 281 (0x119), region = 20 }
   0xf   : > { %p55_p7 = scmp.eq.s32.totalorder %s54_s27, 0 }
  0x11   : > { %s12415_s29 = scalar_select %p55_p7, %s12317_s13, %s57_s28  }
  0x15   : > { %156 = sbr.rel (!%p66_p5) target bundleno = 281 (0x119), region = 24  ;;  %s158_s30 = sand.u32 (%p66_p5), 1, %s12317_s13  }
  0x16   : > { %s9769_s4 = sshll.u32 (%p66_p5), %s51_s24, 2  ;;  %s12008_s5 = smul.u32 (%p66_p5), 1536, %s158_s30 }
  0x17   : > { %s12422_s8 = scalar_lea.vmem (%p66_p5), %s15886_s1, %s9769_s4 }
  0x18   : > { %v180_v0 = vld [vmem:[%s12422_s8] sm:$0xf] (%p66_p5)  ;;  %v182_v1 = vld [vmem:[%s12422_s8 + $0x18] sm:$0xf] (%p66_p5)  ;;  %v184_v2 = vld [vmem:[%s12422_s8 + $0x30] sm:$0xf] (%p66_p5) }
  0x19   : > { %v186_v3 = vld [vmem:[%s12422_s8 + $0x48] sm:$0xf] (%p66_p5)  ;;  %v188_v4 = vld [vmem:[%s12422_s8 + $0x60] sm:$0xf] (%p66_p5)  ;;  %s12429_s9 = scalar_lea.vmem (%p66_p5), [#allocation3], %s12008_s5 }
  0x1a   : > { %181 = vst [vmem:[%s12429_s9] sm:$0xf] (%p66_p5), %v180_v0  ;;  %183 = vst [vmem:[%s12429_s9 + $0x4] sm:$0xf] (%p66_p5), %v182_v1  ;;  %v190_v5 = vld [vmem:[%s12422_s8 + $0x78] sm:$0xf] (%p66_p5) }
  0x1b   : > { %185 = vst [vmem:[%s12429_s9 + $0x8] sm:$0xf] (%p66_p5), %v184_v2  ;;  %187 = vst [vmem:[%s12429_s9 + $0xc] sm:$0xf] (%p66_p5), %v186_v3  ;;  %v192_v6 = vld [vmem:[%s12422_s8 + $0x90] sm:$0xf] (%p66_p5) }
  0x1c   : > { %189 = vst [vmem:[%s12429_s9 + $0x10] sm:$0xf] %v188_v4  ;;  %v194_v7 = vld [vmem:[%s12422_s8 + $0xa8] sm:$0xf]  ;;  %191 = vst [vmem:[%s12429_s9 + $0x14] sm:$0xf] %v190_v5 }
  0x1d   : > { %193 = vst [vmem:[%s12429_s9 + $0x18] sm:$0xf] %v192_v6  ;;  %195 = vst [vmem:[%s12429_s9 + $0x1c] sm:$0xf] %v194_v7  ;;  %v196_v8 = vld [vmem:[%s12422_s8 + $0xc0] sm:$0xf] }
  0x1e   : > { %v198_v9 = vld [vmem:[%s12422_s8 + $0xd8] sm:$0xf]  ;;  %v200_v10 = vld [vmem:[%s12422_s8 + $0xf0] sm:$0xf]  ;;  %197 = vst [vmem:[%s12429_s9 + $0x20] sm:$0xf] %v196_v8 }
  0x1f   : > { %199 = vst [vmem:[%s12429_s9 + $0x24] sm:$0xf] %v198_v9  ;;  %201 = vst [vmem:[%s12429_s9 + $0x28] sm:$0xf] %v200_v10  ;;  %v202_v11 = vld [vmem:[%s12422_s8 + $0x108] sm:$0xf] }
  0x20   : > { %v204_v12 = vld [vmem:[%s12422_s8 + $0x120] sm:$0xf]  ;;  %v206_v13 = vld [vmem:[%s12422_s8 + $0x138] sm:$0xf]  ;;  %203 = vst [vmem:[%s12429_s9 + $0x2c] sm:$0xf] %v202_v11 }
  0x21   : > { %205 = vst [vmem:[%s12429_s9 + $0x30] sm:$0xf] %v204_v12  ;;  %207 = vst [vmem:[%s12429_s9 + $0x34] sm:$0xf] %v206_v13  ;;  %v208_v14 = vld [vmem:[%s12422_s8 + $0x150] sm:$0xf] }
  0x22   : > { %v210_v15 = vld [vmem:[%s12422_s8 + $0x168] sm:$0xf]  ;;  %v212_v16 = vld [vmem:[%s12422_s8 + $0x180] sm:$0xf]  ;;  %209 = vst [vmem:[%s12429_s9 + $0x38] sm:$0xf] %v208_v14 }
  0x23   : > { %211 = vst [vmem:[%s12429_s9 + $0x3c] sm:$0xf] %v210_v15  ;;  %213 = vst [vmem:[%s12429_s9 + $0x40] sm:$0xf] %v212_v16  ;;  %v214_v17 = vld [vmem:[%s12422_s8 + $0x198] sm:$0xf] }
  0x24   : > { %v216_v18 = vld [vmem:[%s12422_s8 + $0x1b0] sm:$0xf]  ;;  %v218_v19 = vld [vmem:[%s12422_s8 + $0x1c8] sm:$0xf]  ;;  %215 = vst [vmem:[%s12429_s9 + $0x44] sm:$0xf] %v214_v17 }
  0x25   : > { %217 = vst [vmem:[%s12429_s9 + $0x48] sm:$0xf] %v216_v18  ;;  %219 = vst [vmem:[%s12429_s9 + $0x4c] sm:$0xf] %v218_v19  ;;  %v220_v20 = vld [vmem:[%s12422_s8 + $0x1e0] sm:$0xf] }
  0x26   : > { %v222_v21 = vld [vmem:[%s12422_s8 + $0x1f8] sm:$0xf]  ;;  %v224_v22 = vld [vmem:[%s12422_s8 + $0x210] sm:$0xf]  ;;  %221 = vst [vmem:[%s12429_s9 + $0x50] sm:$0xf] %v220_v20 }
  0x27   : > { %223 = vst [vmem:[%s12429_s9 + $0x54] sm:$0xf] %v222_v21  ;;  %225 = vst [vmem:[%s12429_s9 + $0x58] sm:$0xf] %v224_v22  ;;  %v226_v23 = vld [vmem:[%s12422_s8 + $0x228] sm:$0xf] }
  0x28   : > { %v228_v24 = vld [vmem:[%s12422_s8 + $0x240] sm:$0xf]  ;;  %v230_v25 = vld [vmem:[%s12422_s8 + $0x258] sm:$0xf]  ;;  %227 = vst [vmem:[%s12429_s9 + $0x5c] sm:$0xf] %v226_v23 }
  0x29   : > { %229 = vst [vmem:[%s12429_s9 + $0x60] sm:$0xf] %v228_v24  ;;  %231 = vst [vmem:[%s12429_s9 + $0x64] sm:$0xf] %v230_v25  ;;  %v232_v26 = vld [vmem:[%s12422_s8 + $0x270] sm:$0xf] }
  0x2a   : > { %v234_v27 = vld [vmem:[%s12422_s8 + $0x288] sm:$0xf]  ;;  %v236_v28 = vld [vmem:[%s12422_s8 + $0x2a0] sm:$0xf]  ;;  %233 = vst [vmem:[%s12429_s9 + $0x68] sm:$0xf] %v232_v26 }
  0x2b   : > { %235 = vst [vmem:[%s12429_s9 + $0x6c] sm:$0xf] %v234_v27  ;;  %237 = vst [vmem:[%s12429_s9 + $0x70] sm:$0xf] %v236_v28  ;;  %v238_v29 = vld [vmem:[%s12422_s8 + $0x2b8] sm:$0xf] }
  0x2c   : > { %v240_v30 = vld [vmem:[%s12422_s8 + $0x2d0] sm:$0xf]  ;;  %v242_v31 = vld [vmem:[%s12422_s8 + $0x2e8] sm:$0xf]  ;;  %239 = vst [vmem:[%s12429_s9 + $0x74] sm:$0xf] %v238_v29 }
  0x2d   : > { %241 = vst [vmem:[%s12429_s9 + $0x78] sm:$0xf] %v240_v30  ;;  %243 = vst [vmem:[%s12429_s9 + $0x7c] sm:$0xf] %v242_v31  ;;  %v244_v32 = vld [vmem:[%s12422_s8 + $0x300] sm:$0xf] }
  0x2e   : > { %v246_v33 = vld [vmem:[%s12422_s8 + $0x318] sm:$0xf]  ;;  %v248_v34 = vld [vmem:[%s12422_s8 + $0x330] sm:$0xf]  ;;  %245 = vst [vmem:[%s12429_s9 + $0x80] sm:$0xf] %v244_v32 }
  0x2f   : > { %247 = vst [vmem:[%s12429_s9 + $0x84] sm:$0xf] %v246_v33  ;;  %249 = vst [vmem:[%s12429_s9 + $0x88] sm:$0xf] %v248_v34  ;;  %v250_v35 = vld [vmem:[%s12422_s8 + $0x348] sm:$0xf] }
  0x30   : > { %v252_v36 = vld [vmem:[%s12422_s8 + $0x360] sm:$0xf]  ;;  %v254_v37 = vld [vmem:[%s12422_s8 + $0x378] sm:$0xf]  ;;  %251 = vst [vmem:[%s12429_s9 + $0x8c] sm:$0xf] %v250_v35 }
  0x31   : > { %253 = vst [vmem:[%s12429_s9 + $0x90] sm:$0xf] %v252_v36  ;;  %255 = vst [vmem:[%s12429_s9 + $0x94] sm:$0xf] %v254_v37  ;;  %v256_v38 = vld [vmem:[%s12422_s8 + $0x390] sm:$0xf] }
  0x32   : > { %v258_v39 = vld [vmem:[%s12422_s8 + $0x3a8] sm:$0xf]  ;;  %v260_v40 = vld [vmem:[%s12422_s8 + $0x3c0] sm:$0xf]  ;;  %257 = vst [vmem:[%s12429_s9 + $0x98] sm:$0xf] %v256_v38 }
  0x33   : > { %259 = vst [vmem:[%s12429_s9 + $0x9c] sm:$0xf] %v258_v39  ;;  %261 = vst [vmem:[%s12429_s9 + $0xa0] sm:$0xf] %v260_v40  ;;  %v262_v41 = vld [vmem:[%s12422_s8 + $0x3d8] sm:$0xf] }
  0x34   : > { %v264_v42 = vld [vmem:[%s12422_s8 + $0x3f0] sm:$0xf]  ;;  %v266_v43 = vld [vmem:[%s12422_s8 + $0x408] sm:$0xf]  ;;  %263 = vst [vmem:[%s12429_s9 + $0xa4] sm:$0xf] %v262_v41 }
  0x35   : > { %265 = vst [vmem:[%s12429_s9 + $0xa8] sm:$0xf] %v264_v42  ;;  %267 = vst [vmem:[%s12429_s9 + $0xac] sm:$0xf] %v266_v43  ;;  %v268_v44 = vld [vmem:[%s12422_s8 + $0x420] sm:$0xf] }
  0x36   : > { %v270_v45 = vld [vmem:[%s12422_s8 + $0x438] sm:$0xf]  ;;  %v272_v46 = vld [vmem:[%s12422_s8 + $0x450] sm:$0xf]  ;;  %269 = vst [vmem:[%s12429_s9 + $0xb0] sm:$0xf] %v268_v44 }
  0x37   : > { %271 = vst [vmem:[%s12429_s9 + $0xb4] sm:$0xf] %v270_v45  ;;  %273 = vst [vmem:[%s12429_s9 + $0xb8] sm:$0xf] %v272_v46  ;;  %v274_v47 = vld [vmem:[%s12422_s8 + $0x468] sm:$0xf] }
  0x38   : > { %v276_v48 = vld [vmem:[%s12422_s8 + $0x480] sm:$0xf]  ;;  %v278_v49 = vld [vmem:[%s12422_s8 + $0x498] sm:$0xf]  ;;  %275 = vst [vmem:[%s12429_s9 + $0xbc] sm:$0xf] %v274_v47 }
  0x39   : > { %277 = vst [vmem:[%s12429_s9 + $0xc0] sm:$0xf] %v276_v48  ;;  %279 = vst [vmem:[%s12429_s9 + $0xc4] sm:$0xf] %v278_v49  ;;  %v280_v50 = vld [vmem:[%s12422_s8 + $0x4b0] sm:$0xf] }
  0x3a   : > { %v282_v51 = vld [vmem:[%s12422_s8 + $0x4c8] sm:$0xf]  ;;  %v284_v52 = vld [vmem:[%s12422_s8 + $0x4e0] sm:$0xf]  ;;  %281 = vst [vmem:[%s12429_s9 + $0xc8] sm:$0xf] %v280_v50 }
  0x3b   : > { %283 = vst [vmem:[%s12429_s9 + $0xcc] sm:$0xf] %v282_v51  ;;  %285 = vst [vmem:[%s12429_s9 + $0xd0] sm:$0xf] %v284_v52  ;;  %v286_v53 = vld [vmem:[%s12422_s8 + $0x4f8] sm:$0xf] }
  0x3c   : > { %v288_v54 = vld [vmem:[%s12422_s8 + $0x510] sm:$0xf]  ;;  %v290_v55 = vld [vmem:[%s12422_s8 + $0x528] sm:$0xf]  ;;  %287 = vst [vmem:[%s12429_s9 + $0xd4] sm:$0xf] %v286_v53 }
  0x3d   : > { %289 = vst [vmem:[%s12429_s9 + $0xd8] sm:$0xf] %v288_v54  ;;  %291 = vst [vmem:[%s12429_s9 + $0xdc] sm:$0xf] %v290_v55  ;;  %v292_v56 = vld [vmem:[%s12422_s8 + $0x540] sm:$0xf] }
  0x3e   : > { %v294_v57 = vld [vmem:[%s12422_s8 + $0x558] sm:$0xf]  ;;  %v296_v58 = vld [vmem:[%s12422_s8 + $0x570] sm:$0xf]  ;;  %293 = vst [vmem:[%s12429_s9 + $0xe0] sm:$0xf] %v292_v56 }
  0x3f   : > { %295 = vst [vmem:[%s12429_s9 + $0xe4] sm:$0xf] %v294_v57  ;;  %297 = vst [vmem:[%s12429_s9 + $0xe8] sm:$0xf] %v296_v58  ;;  %v298_v59 = vld [vmem:[%s12422_s8 + $0x588] sm:$0xf] }
  0x40   : > { %v300_v60 = vld [vmem:[%s12422_s8 + $0x5a0] sm:$0xf]  ;;  %v302_v61 = vld [vmem:[%s12422_s8 + $0x5b8] sm:$0xf]  ;;  %299 = vst [vmem:[%s12429_s9 + $0xec] sm:$0xf] %v298_v59 }
  0x41   : > { %301 = vst [vmem:[%s12429_s9 + $0xf0] sm:$0xf] %v300_v60  ;;  %303 = vst [vmem:[%s12429_s9 + $0xf4] sm:$0xf] %v302_v61  ;;  %v304_v62 = vld [vmem:[%s12422_s8 + $0x5d0] sm:$0xf] }
  0x42   : > { %v306_v63 = vld [vmem:[%s12422_s8 + $0x5e8] sm:$0xf]  ;;  %v308_v0 = vld [vmem:[%s12422_s8 + $0x600] sm:$0xf]  ;;  %305 = vst [vmem:[%s12429_s9 + $0xf8] sm:$0xf] %v304_v62 }
  0x43   : > { %307 = vst [vmem:[%s12429_s9 + $0xfc] sm:$0xf] %v306_v63  ;;  %309 = vst [vmem:[%s12429_s9 + $0x100] sm:$0xf] %v308_v0  ;;  %v310_v1 = vld [vmem:[%s12422_s8 + $0x618] sm:$0xf] }
  0x44   : > { %v312_v2 = vld [vmem:[%s12422_s8 + $0x630] sm:$0xf]  ;;  %v314_v3 = vld [vmem:[%s12422_s8 + $0x648] sm:$0xf]  ;;  %311 = vst [vmem:[%s12429_s9 + $0x104] sm:$0xf] %v310_v1 }
  0x45   : > { %313 = vst [vmem:[%s12429_s9 + $0x108] sm:$0xf] %v312_v2  ;;  %315 = vst [vmem:[%s12429_s9 + $0x10c] sm:$0xf] %v314_v3  ;;  %v316_v4 = vld [vmem:[%s12422_s8 + $0x660] sm:$0xf] }
  0x46   : > { %v318_v5 = vld [vmem:[%s12422_s8 + $0x678] sm:$0xf]  ;;  %v320_v6 = vld [vmem:[%s12422_s8 + $0x690] sm:$0xf]  ;;  %317 = vst [vmem:[%s12429_s9 + $0x110] sm:$0xf] %v316_v4 }
  0x47   : > { %319 = vst [vmem:[%s12429_s9 + $0x114] sm:$0xf] %v318_v5  ;;  %321 = vst [vmem:[%s12429_s9 + $0x118] sm:$0xf] %v320_v6  ;;  %v322_v7 = vld [vmem:[%s12422_s8 + $0x6a8] sm:$0xf] }
  0x48   : > { %v324_v8 = vld [vmem:[%s12422_s8 + $0x6c0] sm:$0xf]  ;;  %v326_v9 = vld [vmem:[%s12422_s8 + $0x6d8] sm:$0xf]  ;;  %323 = vst [vmem:[%s12429_s9 + $0x11c] sm:$0xf] %v322_v7 }
  0x49   : > { %325 = vst [vmem:[%s12429_s9 + $0x120] sm:$0xf] %v324_v8  ;;  %327 = vst [vmem:[%s12429_s9 + $0x124] sm:$0xf] %v326_v9  ;;  %v328_v10 = vld [vmem:[%s12422_s8 + $0x6f0] sm:$0xf] }
  0x4a   : > { %v330_v11 = vld [vmem:[%s12422_s8 + $0x708] sm:$0xf]  ;;  %v332_v12 = vld [vmem:[%s12422_s8 + $0x720] sm:$0xf]  ;;  %329 = vst [vmem:[%s12429_s9 + $0x128] sm:$0xf] %v328_v10 }
  0x4b   : > { %331 = vst [vmem:[%s12429_s9 + $0x12c] sm:$0xf] %v330_v11  ;;  %333 = vst [vmem:[%s12429_s9 + $0x130] sm:$0xf] %v332_v12  ;;  %v334_v13 = vld [vmem:[%s12422_s8 + $0x738] sm:$0xf] }
  0x4c   : > { %v336_v14 = vld [vmem:[%s12422_s8 + $0x750] sm:$0xf]  ;;  %v338_v15 = vld [vmem:[%s12422_s8 + $0x768] sm:$0xf]  ;;  %335 = vst [vmem:[%s12429_s9 + $0x134] sm:$0xf] %v334_v13 }
  0x4d   : > { %337 = vst [vmem:[%s12429_s9 + $0x138] sm:$0xf] %v336_v14  ;;  %339 = vst [vmem:[%s12429_s9 + $0x13c] sm:$0xf] %v338_v15  ;;  %v340_v16 = vld [vmem:[%s12422_s8 + $0x780] sm:$0xf] }
  0x4e   : > { %v342_v17 = vld [vmem:[%s12422_s8 + $0x798] sm:$0xf]  ;;  %v344_v18 = vld [vmem:[%s12422_s8 + $0x7b0] sm:$0xf]  ;;  %341 = vst [vmem:[%s12429_s9 + $0x140] sm:$0xf] %v340_v16 }
  0x4f   : > { %343 = vst [vmem:[%s12429_s9 + $0x144] sm:$0xf] %v342_v17  ;;  %345 = vst [vmem:[%s12429_s9 + $0x148] sm:$0xf] %v344_v18  ;;  %v346_v19 = vld [vmem:[%s12422_s8 + $0x7c8] sm:$0xf] }
  0x50   : > { %v348_v20 = vld [vmem:[%s12422_s8 + $0x7e0] sm:$0xf]  ;;  %v350_v21 = vld [vmem:[%s12422_s8 + $0x7f8] sm:$0xf]  ;;  %347 = vst [vmem:[%s12429_s9 + $0x14c] sm:$0xf] %v346_v19 }
  0x51   : > { %349 = vst [vmem:[%s12429_s9 + $0x150] sm:$0xf] %v348_v20  ;;  %351 = vst [vmem:[%s12429_s9 + $0x154] sm:$0xf] %v350_v21  ;;  %v352_v22 = vld [vmem:[%s12422_s8 + $0x810] sm:$0xf] }
  0x52   : > { %v354_v23 = vld [vmem:[%s12422_s8 + $0x828] sm:$0xf]  ;;  %v356_v24 = vld [vmem:[%s12422_s8 + $0x840] sm:$0xf]  ;;  %353 = vst [vmem:[%s12429_s9 + $0x158] sm:$0xf] %v352_v22 }
  0x53   : > { %355 = vst [vmem:[%s12429_s9 + $0x15c] sm:$0xf] %v354_v23  ;;  %357 = vst [vmem:[%s12429_s9 + $0x160] sm:$0xf] %v356_v24  ;;  %v358_v25 = vld [vmem:[%s12422_s8 + $0x858] sm:$0xf] }
  0x54   : > { %v360_v26 = vld [vmem:[%s12422_s8 + $0x870] sm:$0xf]  ;;  %v362_v27 = vld [vmem:[%s12422_s8 + $0x888] sm:$0xf]  ;;  %359 = vst [vmem:[%s12429_s9 + $0x164] sm:$0xf] %v358_v25 }
  0x55   : > { %361 = vst [vmem:[%s12429_s9 + $0x168] sm:$0xf] %v360_v26  ;;  %363 = vst [vmem:[%s12429_s9 + $0x16c] sm:$0xf] %v362_v27  ;;  %v364_v28 = vld [vmem:[%s12422_s8 + $0x8a0] sm:$0xf] }
  0x56   : > { %v366_v29 = vld [vmem:[%s12422_s8 + $0x8b8] sm:$0xf]  ;;  %v368_v30 = vld [vmem:[%s12422_s8 + $0x8d0] sm:$0xf]  ;;  %365 = vst [vmem:[%s12429_s9 + $0x170] sm:$0xf] %v364_v28 }
  0x57   : > { %367 = vst [vmem:[%s12429_s9 + $0x174] sm:$0xf] %v366_v29  ;;  %369 = vst [vmem:[%s12429_s9 + $0x178] sm:$0xf] %v368_v30  ;;  %v370_v31 = vld [vmem:[%s12422_s8 + $0x8e8] sm:$0xf] }
  0x58   : > { %v372_v32 = vld [vmem:[%s12422_s8 + $0x900] sm:$0xf]  ;;  %v374_v33 = vld [vmem:[%s12422_s8 + $0x918] sm:$0xf]  ;;  %371 = vst [vmem:[%s12429_s9 + $0x17c] sm:$0xf] %v370_v31 }
  0x59   : > { %373 = vst [vmem:[%s12429_s9 + $0x180] sm:$0xf] %v372_v32  ;;  %375 = vst [vmem:[%s12429_s9 + $0x184] sm:$0xf] %v374_v33  ;;  %v376_v34 = vld [vmem:[%s12422_s8 + $0x930] sm:$0xf] }
  0x5a   : > { %v378_v35 = vld [vmem:[%s12422_s8 + $0x948] sm:$0xf]  ;;  %v380_v36 = vld [vmem:[%s12422_s8 + $0x960] sm:$0xf]  ;;  %377 = vst [vmem:[%s12429_s9 + $0x188] sm:$0xf] %v376_v34 }
  0x5b   : > { %379 = vst [vmem:[%s12429_s9 + $0x18c] sm:$0xf] %v378_v35  ;;  %381 = vst [vmem:[%s12429_s9 + $0x190] sm:$0xf] %v380_v36  ;;  %v382_v37 = vld [vmem:[%s12422_s8 + $0x978] sm:$0xf] }
  0x5c   : > { %v384_v38 = vld [vmem:[%s12422_s8 + $0x990] sm:$0xf]  ;;  %v386_v39 = vld [vmem:[%s12422_s8 + $0x9a8] sm:$0xf]  ;;  %383 = vst [vmem:[%s12429_s9 + $0x194] sm:$0xf] %v382_v37 }
  0x5d   : > { %385 = vst [vmem:[%s12429_s9 + $0x198] sm:$0xf] %v384_v38  ;;  %387 = vst [vmem:[%s12429_s9 + $0x19c] sm:$0xf] %v386_v39  ;;  %v388_v40 = vld [vmem:[%s12422_s8 + $0x9c0] sm:$0xf] }
  0x5e   : > { %v390_v41 = vld [vmem:[%s12422_s8 + $0x9d8] sm:$0xf]  ;;  %v392_v42 = vld [vmem:[%s12422_s8 + $0x9f0] sm:$0xf]  ;;  %389 = vst [vmem:[%s12429_s9 + $0x1a0] sm:$0xf] %v388_v40 }
  0x5f   : > { %391 = vst [vmem:[%s12429_s9 + $0x1a4] sm:$0xf] %v390_v41  ;;  %393 = vst [vmem:[%s12429_s9 + $0x1a8] sm:$0xf] %v392_v42  ;;  %v394_v43 = vld [vmem:[%s12422_s8 + $0xa08] sm:$0xf] }
  0x60   : > { %v396_v44 = vld [vmem:[%s12422_s8 + $0xa20] sm:$0xf]  ;;  %v398_v45 = vld [vmem:[%s12422_s8 + $0xa38] sm:$0xf]  ;;  %395 = vst [vmem:[%s12429_s9 + $0x1ac] sm:$0xf] %v394_v43 }
  0x61   : > { %397 = vst [vmem:[%s12429_s9 + $0x1b0] sm:$0xf] %v396_v44  ;;  %399 = vst [vmem:[%s12429_s9 + $0x1b4] sm:$0xf] %v398_v45  ;;  %v400_v46 = vld [vmem:[%s12422_s8 + $0xa50] sm:$0xf] }
  0x62   : > { %v402_v47 = vld [vmem:[%s12422_s8 + $0xa68] sm:$0xf]  ;;  %v404_v48 = vld [vmem:[%s12422_s8 + $0xa80] sm:$0xf]  ;;  %401 = vst [vmem:[%s12429_s9 + $0x1b8] sm:$0xf] %v400_v46 }
  0x63   : > { %403 = vst [vmem:[%s12429_s9 + $0x1bc] sm:$0xf] %v402_v47  ;;  %405 = vst [vmem:[%s12429_s9 + $0x1c0] sm:$0xf] %v404_v48  ;;  %v406_v49 = vld [vmem:[%s12422_s8 + $0xa98] sm:$0xf] }
  0x64   : > { %v408_v50 = vld [vmem:[%s12422_s8 + $0xab0] sm:$0xf]  ;;  %v410_v51 = vld [vmem:[%s12422_s8 + $0xac8] sm:$0xf]  ;;  %407 = vst [vmem:[%s12429_s9 + $0x1c4] sm:$0xf] %v406_v49 }
  0x65   : > { %409 = vst [vmem:[%s12429_s9 + $0x1c8] sm:$0xf] %v408_v50  ;;  %411 = vst [vmem:[%s12429_s9 + $0x1cc] sm:$0xf] %v410_v51  ;;  %v412_v52 = vld [vmem:[%s12422_s8 + $0xae0] sm:$0xf] }
  0x66   : > { %v414_v53 = vld [vmem:[%s12422_s8 + $0xaf8] sm:$0xf]  ;;  %v416_v54 = vld [vmem:[%s12422_s8 + $0xb10] sm:$0xf]  ;;  %413 = vst [vmem:[%s12429_s9 + $0x1d0] sm:$0xf] %v412_v52 }
  0x67   : > { %415 = vst [vmem:[%s12429_s9 + $0x1d4] sm:$0xf] %v414_v53  ;;  %417 = vst [vmem:[%s12429_s9 + $0x1d8] sm:$0xf] %v416_v54  ;;  %v418_v55 = vld [vmem:[%s12422_s8 + $0xb28] sm:$0xf] }
  0x68   : > { %v420_v56 = vld [vmem:[%s12422_s8 + $0xb40] sm:$0xf]  ;;  %v422_v57 = vld [vmem:[%s12422_s8 + $0xb58] sm:$0xf]  ;;  %419 = vst [vmem:[%s12429_s9 + $0x1dc] sm:$0xf] %v418_v55 }
  0x69   : > { %421 = vst [vmem:[%s12429_s9 + $0x1e0] sm:$0xf] %v420_v56  ;;  %423 = vst [vmem:[%s12429_s9 + $0x1e4] sm:$0xf] %v422_v57  ;;  %v424_v58 = vld [vmem:[%s12422_s8 + $0xb70] sm:$0xf] }
  0x6a   : > { %v426_v59 = vld [vmem:[%s12422_s8 + $0xb88] sm:$0xf]  ;;  %v428_v60 = vld [vmem:[%s12422_s8 + $0xba0] sm:$0xf]  ;;  %425 = vst [vmem:[%s12429_s9 + $0x1e8] sm:$0xf] %v424_v58 }
  0x6b   : > { %427 = vst [vmem:[%s12429_s9 + $0x1ec] sm:$0xf] %v426_v59  ;;  %429 = vst [vmem:[%s12429_s9 + $0x1f0] sm:$0xf] %v428_v60  ;;  %v430_v61 = vld [vmem:[%s12422_s8 + $0xbb8] sm:$0xf] }
  0x6c   : > { %v432_v62 = vld [vmem:[%s12422_s8 + $0xbd0] sm:$0xf]  ;;  %v434_v63 = vld [vmem:[%s12422_s8 + $0xbe8] sm:$0xf]  ;;  %431 = vst [vmem:[%s12429_s9 + $0x1f4] sm:$0xf] %v430_v61 }
  0x6d   : > { %433 = vst [vmem:[%s12429_s9 + $0x1f8] sm:$0xf] %v432_v62  ;;  %435 = vst [vmem:[%s12429_s9 + $0x1fc] sm:$0xf] %v434_v63  ;;  %v436_v0 = vld [vmem:[%s12422_s8 + $0xc00] sm:$0xf] }
  0x6e   : > { %v438_v1 = vld [vmem:[%s12422_s8 + $0xc18] sm:$0xf]  ;;  %v440_v2 = vld [vmem:[%s12422_s8 + $0xc30] sm:$0xf]  ;;  %437 = vst [vmem:[%s12429_s9 + $0x200] sm:$0xf] %v436_v0 }
  0x6f   : > { %439 = vst [vmem:[%s12429_s9 + $0x204] sm:$0xf] %v438_v1  ;;  %441 = vst [vmem:[%s12429_s9 + $0x208] sm:$0xf] %v440_v2  ;;  %v442_v3 = vld [vmem:[%s12422_s8 + $0xc48] sm:$0xf] }
  0x70   : > { %v444_v4 = vld [vmem:[%s12422_s8 + $0xc60] sm:$0xf]  ;;  %v446_v5 = vld [vmem:[%s12422_s8 + $0xc78] sm:$0xf]  ;;  %443 = vst [vmem:[%s12429_s9 + $0x20c] sm:$0xf] %v442_v3 }
  0x71   : > { %445 = vst [vmem:[%s12429_s9 + $0x210] sm:$0xf] %v444_v4  ;;  %447 = vst [vmem:[%s12429_s9 + $0x214] sm:$0xf] %v446_v5  ;;  %v448_v6 = vld [vmem:[%s12422_s8 + $0xc90] sm:$0xf] }
  0x72   : > { %v450_v7 = vld [vmem:[%s12422_s8 + $0xca8] sm:$0xf]  ;;  %v452_v8 = vld [vmem:[%s12422_s8 + $0xcc0] sm:$0xf]  ;;  %449 = vst [vmem:[%s12429_s9 + $0x218] sm:$0xf] %v448_v6 }
  0x73   : > { %451 = vst [vmem:[%s12429_s9 + $0x21c] sm:$0xf] %v450_v7  ;;  %453 = vst [vmem:[%s12429_s9 + $0x220] sm:$0xf] %v452_v8  ;;  %v454_v9 = vld [vmem:[%s12422_s8 + $0xcd8] sm:$0xf] }
  0x74   : > { %v456_v10 = vld [vmem:[%s12422_s8 + $0xcf0] sm:$0xf]  ;;  %v458_v11 = vld [vmem:[%s12422_s8 + $0xd08] sm:$0xf]  ;;  %455 = vst [vmem:[%s12429_s9 + $0x224] sm:$0xf] %v454_v9 }
  0x75   : > { %457 = vst [vmem:[%s12429_s9 + $0x228] sm:$0xf] %v456_v10  ;;  %459 = vst [vmem:[%s12429_s9 + $0x22c] sm:$0xf] %v458_v11  ;;  %v460_v12 = vld [vmem:[%s12422_s8 + $0xd20] sm:$0xf] }
  0x76   : > { %v462_v13 = vld [vmem:[%s12422_s8 + $0xd38] sm:$0xf]  ;;  %v464_v14 = vld [vmem:[%s12422_s8 + $0xd50] sm:$0xf]  ;;  %461 = vst [vmem:[%s12429_s9 + $0x230] sm:$0xf] %v460_v12 }
  0x77   : > { %463 = vst [vmem:[%s12429_s9 + $0x234] sm:$0xf] %v462_v13  ;;  %465 = vst [vmem:[%s12429_s9 + $0x238] sm:$0xf] %v464_v14  ;;  %v466_v15 = vld [vmem:[%s12422_s8 + $0xd68] sm:$0xf] }
  0x78   : > { %v468_v16 = vld [vmem:[%s12422_s8 + $0xd80] sm:$0xf]  ;;  %v470_v17 = vld [vmem:[%s12422_s8 + $0xd98] sm:$0xf]  ;;  %467 = vst [vmem:[%s12429_s9 + $0x23c] sm:$0xf] %v466_v15 }
  0x79   : > { %469 = vst [vmem:[%s12429_s9 + $0x240] sm:$0xf] %v468_v16  ;;  %471 = vst [vmem:[%s12429_s9 + $0x244] sm:$0xf] %v470_v17  ;;  %v472_v18 = vld [vmem:[%s12422_s8 + $0xdb0] sm:$0xf] }
  0x7a   : > { %v474_v19 = vld [vmem:[%s12422_s8 + $0xdc8] sm:$0xf]  ;;  %v476_v20 = vld [vmem:[%s12422_s8 + $0xde0] sm:$0xf]  ;;  %473 = vst [vmem:[%s12429_s9 + $0x248] sm:$0xf] %v472_v18 }
  0x7b   : > { %475 = vst [vmem:[%s12429_s9 + $0x24c] sm:$0xf] %v474_v19  ;;  %477 = vst [vmem:[%s12429_s9 + $0x250] sm:$0xf] %v476_v20  ;;  %v478_v21 = vld [vmem:[%s12422_s8 + $0xdf8] sm:$0xf] }
  0x7c   : > { %v480_v22 = vld [vmem:[%s12422_s8 + $0xe10] sm:$0xf]  ;;  %v482_v23 = vld [vmem:[%s12422_s8 + $0xe28] sm:$0xf]  ;;  %479 = vst [vmem:[%s12429_s9 + $0x254] sm:$0xf] %v478_v21 }
  0x7d   : > { %481 = vst [vmem:[%s12429_s9 + $0x258] sm:$0xf] %v480_v22  ;;  %483 = vst [vmem:[%s12429_s9 + $0x25c] sm:$0xf] %v482_v23  ;;  %v484_v24 = vld [vmem:[%s12422_s8 + $0xe40] sm:$0xf] }
  0x7e   : > { %v486_v25 = vld [vmem:[%s12422_s8 + $0xe58] sm:$0xf]  ;;  %v488_v26 = vld [vmem:[%s12422_s8 + $0xe70] sm:$0xf]  ;;  %485 = vst [vmem:[%s12429_s9 + $0x260] sm:$0xf] %v484_v24 }
  0x7f   : > { %487 = vst [vmem:[%s12429_s9 + $0x264] sm:$0xf] %v486_v25  ;;  %489 = vst [vmem:[%s12429_s9 + $0x268] sm:$0xf] %v488_v26  ;;  %v490_v27 = vld [vmem:[%s12422_s8 + $0xe88] sm:$0xf] }
  0x80   : > { %v492_v28 = vld [vmem:[%s12422_s8 + $0xea0] sm:$0xf]  ;;  %v494_v29 = vld [vmem:[%s12422_s8 + $0xeb8] sm:$0xf]  ;;  %491 = vst [vmem:[%s12429_s9 + $0x26c] sm:$0xf] %v490_v27 }
  0x81   : > { %493 = vst [vmem:[%s12429_s9 + $0x270] sm:$0xf] %v492_v28  ;;  %495 = vst [vmem:[%s12429_s9 + $0x274] sm:$0xf] %v494_v29  ;;  %v496_v30 = vld [vmem:[%s12422_s8 + $0xed0] sm:$0xf] }
  0x82   : > { %v498_v31 = vld [vmem:[%s12422_s8 + $0xee8] sm:$0xf]  ;;  %v500_v32 = vld [vmem:[%s12422_s8 + $0xf00] sm:$0xf]  ;;  %497 = vst [vmem:[%s12429_s9 + $0x278] sm:$0xf] %v496_v30 }
  0x83   : > { %499 = vst [vmem:[%s12429_s9 + $0x27c] sm:$0xf] %v498_v31  ;;  %501 = vst [vmem:[%s12429_s9 + $0x280] sm:$0xf] %v500_v32  ;;  %v502_v33 = vld [vmem:[%s12422_s8 + $0xf18] sm:$0xf] }
  0x84   : > { %v504_v34 = vld [vmem:[%s12422_s8 + $0xf30] sm:$0xf]  ;;  %v506_v35 = vld [vmem:[%s12422_s8 + $0xf48] sm:$0xf]  ;;  %503 = vst [vmem:[%s12429_s9 + $0x284] sm:$0xf] %v502_v33 }
  0x85   : > { %505 = vst [vmem:[%s12429_s9 + $0x288] sm:$0xf] %v504_v34  ;;  %507 = vst [vmem:[%s12429_s9 + $0x28c] sm:$0xf] %v506_v35  ;;  %v508_v36 = vld [vmem:[%s12422_s8 + $0xf60] sm:$0xf] }
  0x86   : > { %v510_v37 = vld [vmem:[%s12422_s8 + $0xf78] sm:$0xf]  ;;  %v512_v38 = vld [vmem:[%s12422_s8 + $0xf90] sm:$0xf]  ;;  %509 = vst [vmem:[%s12429_s9 + $0x290] sm:$0xf] %v508_v36 }
  0x87   : > { %511 = vst [vmem:[%s12429_s9 + $0x294] sm:$0xf] %v510_v37  ;;  %513 = vst [vmem:[%s12429_s9 + $0x298] sm:$0xf] %v512_v38  ;;  %v514_v39 = vld [vmem:[%s12422_s8 + $0xfa8] sm:$0xf] }
  0x88   : > { %v516_v40 = vld [vmem:[%s12422_s8 + $0xfc0] sm:$0xf]  ;;  %v518_v41 = vld [vmem:[%s12422_s8 + $0xfd8] sm:$0xf]  ;;  %515 = vst [vmem:[%s12429_s9 + $0x29c] sm:$0xf] %v514_v39 }
  0x89   : > { %517 = vst [vmem:[%s12429_s9 + $0x2a0] sm:$0xf] %v516_v40  ;;  %519 = vst [vmem:[%s12429_s9 + $0x2a4] sm:$0xf] %v518_v41  ;;  %v520_v42 = vld [vmem:[%s12422_s8 + $0xff0] sm:$0xf] }
  0x8a   : > { %v522_v43 = vld [vmem:[%s12422_s8 + $0x1008] sm:$0xf]  ;;  %v524_v44 = vld [vmem:[%s12422_s8 + $0x1020] sm:$0xf]  ;;  %521 = vst [vmem:[%s12429_s9 + $0x2a8] sm:$0xf] %v520_v42 }
  0x8b   : > { %523 = vst [vmem:[%s12429_s9 + $0x2ac] sm:$0xf] %v522_v43  ;;  %525 = vst [vmem:[%s12429_s9 + $0x2b0] sm:$0xf] %v524_v44  ;;  %v526_v45 = vld [vmem:[%s12422_s8 + $0x1038] sm:$0xf] }
  0x8c   : > { %v528_v46 = vld [vmem:[%s12422_s8 + $0x1050] sm:$0xf]  ;;  %v530_v47 = vld [vmem:[%s12422_s8 + $0x1068] sm:$0xf]  ;;  %527 = vst [vmem:[%s12429_s9 + $0x2b4] sm:$0xf] %v526_v45 }
  0x8d   : > { %529 = vst [vmem:[%s12429_s9 + $0x2b8] sm:$0xf] %v528_v46  ;;  %531 = vst [vmem:[%s12429_s9 + $0x2bc] sm:$0xf] %v530_v47  ;;  %v532_v48 = vld [vmem:[%s12422_s8 + $0x1080] sm:$0xf] }
  0x8e   : > { %v534_v49 = vld [vmem:[%s12422_s8 + $0x1098] sm:$0xf]  ;;  %v536_v50 = vld [vmem:[%s12422_s8 + $0x10b0] sm:$0xf]  ;;  %533 = vst [vmem:[%s12429_s9 + $0x2c0] sm:$0xf] %v532_v48 }
  0x8f   : > { %535 = vst [vmem:[%s12429_s9 + $0x2c4] sm:$0xf] %v534_v49  ;;  %537 = vst [vmem:[%s12429_s9 + $0x2c8] sm:$0xf] %v536_v50  ;;  %v538_v51 = vld [vmem:[%s12422_s8 + $0x10c8] sm:$0xf] }
  0x90   : > { %v540_v52 = vld [vmem:[%s12422_s8 + $0x10e0] sm:$0xf]  ;;  %v542_v53 = vld [vmem:[%s12422_s8 + $0x10f8] sm:$0xf]  ;;  %539 = vst [vmem:[%s12429_s9 + $0x2cc] sm:$0xf] %v538_v51 }
  0x91   : > { %541 = vst [vmem:[%s12429_s9 + $0x2d0] sm:$0xf] %v540_v52  ;;  %543 = vst [vmem:[%s12429_s9 + $0x2d4] sm:$0xf] %v542_v53  ;;  %v544_v54 = vld [vmem:[%s12422_s8 + $0x1110] sm:$0xf] }
  0x92   : > { %v546_v55 = vld [vmem:[%s12422_s8 + $0x1128] sm:$0xf]  ;;  %v548_v56 = vld [vmem:[%s12422_s8 + $0x1140] sm:$0xf]  ;;  %545 = vst [vmem:[%s12429_s9 + $0x2d8] sm:$0xf] %v544_v54 }
  0x93   : > { %547 = vst [vmem:[%s12429_s9 + $0x2dc] sm:$0xf] %v546_v55  ;;  %549 = vst [vmem:[%s12429_s9 + $0x2e0] sm:$0xf] %v548_v56  ;;  %v550_v57 = vld [vmem:[%s12422_s8 + $0x1158] sm:$0xf] }
  0x94   : > { %v552_v58 = vld [vmem:[%s12422_s8 + $0x1170] sm:$0xf]  ;;  %v554_v59 = vld [vmem:[%s12422_s8 + $0x1188] sm:$0xf]  ;;  %551 = vst [vmem:[%s12429_s9 + $0x2e4] sm:$0xf] %v550_v57 }
  0x95   : > { %553 = vst [vmem:[%s12429_s9 + $0x2e8] sm:$0xf] %v552_v58  ;;  %555 = vst [vmem:[%s12429_s9 + $0x2ec] sm:$0xf] %v554_v59  ;;  %v556_v60 = vld [vmem:[%s12422_s8 + $0x11a0] sm:$0xf] }
  0x96   : > { %v558_v61 = vld [vmem:[%s12422_s8 + $0x11b8] sm:$0xf]  ;;  %v560_v62 = vld [vmem:[%s12422_s8 + $0x11d0] sm:$0xf]  ;;  %557 = vst [vmem:[%s12429_s9 + $0x2f0] sm:$0xf] %v556_v60 }
  0x97   : > { %559 = vst [vmem:[%s12429_s9 + $0x2f4] sm:$0xf] %v558_v61  ;;  %561 = vst [vmem:[%s12429_s9 + $0x2f8] sm:$0xf] %v560_v62  ;;  %v562_v63 = vld [vmem:[%s12422_s8 + $0x11e8] sm:$0xf] }
  0x98   : > { %v564_v0 = vld [vmem:[%s12422_s8 + $0x1200] sm:$0xf]  ;;  %v566_v1 = vld [vmem:[%s12422_s8 + $0x1218] sm:$0xf]  ;;  %563 = vst [vmem:[%s12429_s9 + $0x2fc] sm:$0xf] %v562_v63 }
  0x99   : > { %565 = vst [vmem:[%s12429_s9 + $0x300] sm:$0xf] %v564_v0  ;;  %567 = vst [vmem:[%s12429_s9 + $0x304] sm:$0xf] %v566_v1  ;;  %v568_v2 = vld [vmem:[%s12422_s8 + $0x1230] sm:$0xf] }
  0x9a   : > { %v570_v3 = vld [vmem:[%s12422_s8 + $0x1248] sm:$0xf]  ;;  %v572_v4 = vld [vmem:[%s12422_s8 + $0x1260] sm:$0xf]  ;;  %569 = vst [vmem:[%s12429_s9 + $0x308] sm:$0xf] %v568_v2 }
  0x9b   : > { %571 = vst [vmem:[%s12429_s9 + $0x30c] sm:$0xf] %v570_v3  ;;  %573 = vst [vmem:[%s12429_s9 + $0x310] sm:$0xf] %v572_v4  ;;  %v574_v5 = vld [vmem:[%s12422_s8 + $0x1278] sm:$0xf] }
  0x9c   : > { %v576_v6 = vld [vmem:[%s12422_s8 + $0x1290] sm:$0xf]  ;;  %v578_v7 = vld [vmem:[%s12422_s8 + $0x12a8] sm:$0xf]  ;;  %575 = vst [vmem:[%s12429_s9 + $0x314] sm:$0xf] %v574_v5 }
  0x9d   : > { %577 = vst [vmem:[%s12429_s9 + $0x318] sm:$0xf] %v576_v6  ;;  %579 = vst [vmem:[%s12429_s9 + $0x31c] sm:$0xf] %v578_v7  ;;  %v580_v8 = vld [vmem:[%s12422_s8 + $0x12c0] sm:$0xf] }
  0x9e   : > { %v582_v9 = vld [vmem:[%s12422_s8 + $0x12d8] sm:$0xf]  ;;  %v584_v10 = vld [vmem:[%s12422_s8 + $0x12f0] sm:$0xf]  ;;  %581 = vst [vmem:[%s12429_s9 + $0x320] sm:$0xf] %v580_v8 }
  0x9f   : > { %583 = vst [vmem:[%s12429_s9 + $0x324] sm:$0xf] %v582_v9  ;;  %585 = vst [vmem:[%s12429_s9 + $0x328] sm:$0xf] %v584_v10  ;;  %v586_v11 = vld [vmem:[%s12422_s8 + $0x1308] sm:$0xf] }
  0xa0   : > { %v588_v12 = vld [vmem:[%s12422_s8 + $0x1320] sm:$0xf]  ;;  %v590_v13 = vld [vmem:[%s12422_s8 + $0x1338] sm:$0xf]  ;;  %587 = vst [vmem:[%s12429_s9 + $0x32c] sm:$0xf] %v586_v11 }
  0xa1   : > { %589 = vst [vmem:[%s12429_s9 + $0x330] sm:$0xf] %v588_v12  ;;  %591 = vst [vmem:[%s12429_s9 + $0x334] sm:$0xf] %v590_v13  ;;  %v592_v14 = vld [vmem:[%s12422_s8 + $0x1350] sm:$0xf] }
  0xa2   : > { %v594_v15 = vld [vmem:[%s12422_s8 + $0x1368] sm:$0xf]  ;;  %v596_v16 = vld [vmem:[%s12422_s8 + $0x1380] sm:$0xf]  ;;  %593 = vst [vmem:[%s12429_s9 + $0x338] sm:$0xf] %v592_v14 }
  0xa3   : > { %595 = vst [vmem:[%s12429_s9 + $0x33c] sm:$0xf] %v594_v15  ;;  %597 = vst [vmem:[%s12429_s9 + $0x340] sm:$0xf] %v596_v16  ;;  %v598_v17 = vld [vmem:[%s12422_s8 + $0x1398] sm:$0xf] }
  0xa4   : > { %v600_v18 = vld [vmem:[%s12422_s8 + $0x13b0] sm:$0xf]  ;;  %v602_v19 = vld [vmem:[%s12422_s8 + $0x13c8] sm:$0xf]  ;;  %599 = vst [vmem:[%s12429_s9 + $0x344] sm:$0xf] %v598_v17 }
  0xa5   : > { %601 = vst [vmem:[%s12429_s9 + $0x348] sm:$0xf] %v600_v18  ;;  %603 = vst [vmem:[%s12429_s9 + $0x34c] sm:$0xf] %v602_v19  ;;  %v604_v20 = vld [vmem:[%s12422_s8 + $0x13e0] sm:$0xf] }
  0xa6   : > { %v606_v21 = vld [vmem:[%s12422_s8 + $0x13f8] sm:$0xf]  ;;  %v608_v22 = vld [vmem:[%s12422_s8 + $0x1410] sm:$0xf]  ;;  %605 = vst [vmem:[%s12429_s9 + $0x350] sm:$0xf] %v604_v20 }
  0xa7   : > { %607 = vst [vmem:[%s12429_s9 + $0x354] sm:$0xf] %v606_v21  ;;  %609 = vst [vmem:[%s12429_s9 + $0x358] sm:$0xf] %v608_v22  ;;  %v610_v23 = vld [vmem:[%s12422_s8 + $0x1428] sm:$0xf] }
  0xa8   : > { %v612_v24 = vld [vmem:[%s12422_s8 + $0x1440] sm:$0xf]  ;;  %v614_v25 = vld [vmem:[%s12422_s8 + $0x1458] sm:$0xf]  ;;  %611 = vst [vmem:[%s12429_s9 + $0x35c] sm:$0xf] %v610_v23 }
  0xa9   : > { %613 = vst [vmem:[%s12429_s9 + $0x360] sm:$0xf] %v612_v24  ;;  %615 = vst [vmem:[%s12429_s9 + $0x364] sm:$0xf] %v614_v25  ;;  %v616_v26 = vld [vmem:[%s12422_s8 + $0x1470] sm:$0xf] }
  0xaa   : > { %v618_v27 = vld [vmem:[%s12422_s8 + $0x1488] sm:$0xf]  ;;  %v620_v28 = vld [vmem:[%s12422_s8 + $0x14a0] sm:$0xf]  ;;  %617 = vst [vmem:[%s12429_s9 + $0x368] sm:$0xf] %v616_v26 }
  0xab   : > { %619 = vst [vmem:[%s12429_s9 + $0x36c] sm:$0xf] %v618_v27  ;;  %621 = vst [vmem:[%s12429_s9 + $0x370] sm:$0xf] %v620_v28  ;;  %v622_v29 = vld [vmem:[%s12422_s8 + $0x14b8] sm:$0xf] }
  0xac   : > { %v624_v30 = vld [vmem:[%s12422_s8 + $0x14d0] sm:$0xf]  ;;  %v626_v31 = vld [vmem:[%s12422_s8 + $0x14e8] sm:$0xf]  ;;  %623 = vst [vmem:[%s12429_s9 + $0x374] sm:$0xf] %v622_v29 }
  0xad   : > { %625 = vst [vmem:[%s12429_s9 + $0x378] sm:$0xf] %v624_v30  ;;  %627 = vst [vmem:[%s12429_s9 + $0x37c] sm:$0xf] %v626_v31  ;;  %v628_v32 = vld [vmem:[%s12422_s8 + $0x1500] sm:$0xf] }
  0xae   : > { %v630_v33 = vld [vmem:[%s12422_s8 + $0x1518] sm:$0xf]  ;;  %v632_v34 = vld [vmem:[%s12422_s8 + $0x1530] sm:$0xf]  ;;  %629 = vst [vmem:[%s12429_s9 + $0x380] sm:$0xf] %v628_v32 }
  0xaf   : > { %631 = vst [vmem:[%s12429_s9 + $0x384] sm:$0xf] %v630_v33  ;;  %633 = vst [vmem:[%s12429_s9 + $0x388] sm:$0xf] %v632_v34  ;;  %v634_v35 = vld [vmem:[%s12422_s8 + $0x1548] sm:$0xf] }
  0xb0   : > { %v636_v36 = vld [vmem:[%s12422_s8 + $0x1560] sm:$0xf]  ;;  %v638_v37 = vld [vmem:[%s12422_s8 + $0x1578] sm:$0xf]  ;;  %635 = vst [vmem:[%s12429_s9 + $0x38c] sm:$0xf] %v634_v35 }
  0xb1   : > { %637 = vst [vmem:[%s12429_s9 + $0x390] sm:$0xf] %v636_v36  ;;  %639 = vst [vmem:[%s12429_s9 + $0x394] sm:$0xf] %v638_v37  ;;  %v640_v38 = vld [vmem:[%s12422_s8 + $0x1590] sm:$0xf] }
  0xb2   : > { %v642_v39 = vld [vmem:[%s12422_s8 + $0x15a8] sm:$0xf]  ;;  %v644_v40 = vld [vmem:[%s12422_s8 + $0x15c0] sm:$0xf]  ;;  %641 = vst [vmem:[%s12429_s9 + $0x398] sm:$0xf] %v640_v38 }
  0xb3   : > { %643 = vst [vmem:[%s12429_s9 + $0x39c] sm:$0xf] %v642_v39  ;;  %645 = vst [vmem:[%s12429_s9 + $0x3a0] sm:$0xf] %v644_v40  ;;  %v646_v41 = vld [vmem:[%s12422_s8 + $0x15d8] sm:$0xf] }
  0xb4   : > { %v648_v42 = vld [vmem:[%s12422_s8 + $0x15f0] sm:$0xf]  ;;  %v650_v43 = vld [vmem:[%s12422_s8 + $0x1608] sm:$0xf]  ;;  %647 = vst [vmem:[%s12429_s9 + $0x3a4] sm:$0xf] %v646_v41 }
  0xb5   : > { %649 = vst [vmem:[%s12429_s9 + $0x3a8] sm:$0xf] %v648_v42  ;;  %651 = vst [vmem:[%s12429_s9 + $0x3ac] sm:$0xf] %v650_v43  ;;  %v652_v44 = vld [vmem:[%s12422_s8 + $0x1620] sm:$0xf] }
  0xb6   : > { %v654_v45 = vld [vmem:[%s12422_s8 + $0x1638] sm:$0xf]  ;;  %v656_v46 = vld [vmem:[%s12422_s8 + $0x1650] sm:$0xf]  ;;  %653 = vst [vmem:[%s12429_s9 + $0x3b0] sm:$0xf] %v652_v44 }
  0xb7   : > { %655 = vst [vmem:[%s12429_s9 + $0x3b4] sm:$0xf] %v654_v45  ;;  %657 = vst [vmem:[%s12429_s9 + $0x3b8] sm:$0xf] %v656_v46  ;;  %v658_v47 = vld [vmem:[%s12422_s8 + $0x1668] sm:$0xf] }
  0xb8   : > { %v660_v48 = vld [vmem:[%s12422_s8 + $0x1680] sm:$0xf]  ;;  %v662_v49 = vld [vmem:[%s12422_s8 + $0x1698] sm:$0xf]  ;;  %659 = vst [vmem:[%s12429_s9 + $0x3bc] sm:$0xf] %v658_v47 }
  0xb9   : > { %661 = vst [vmem:[%s12429_s9 + $0x3c0] sm:$0xf] %v660_v48  ;;  %663 = vst [vmem:[%s12429_s9 + $0x3c4] sm:$0xf] %v662_v49  ;;  %v664_v50 = vld [vmem:[%s12422_s8 + $0x16b0] sm:$0xf] }
  0xba   : > { %v666_v51 = vld [vmem:[%s12422_s8 + $0x16c8] sm:$0xf]  ;;  %v668_v52 = vld [vmem:[%s12422_s8 + $0x16e0] sm:$0xf]  ;;  %665 = vst [vmem:[%s12429_s9 + $0x3c8] sm:$0xf] %v664_v50 }
  0xbb   : > { %667 = vst [vmem:[%s12429_s9 + $0x3cc] sm:$0xf] %v666_v51  ;;  %669 = vst [vmem:[%s12429_s9 + $0x3d0] sm:$0xf] %v668_v52  ;;  %v670_v53 = vld [vmem:[%s12422_s8 + $0x16f8] sm:$0xf] }
  0xbc   : > { %v672_v54 = vld [vmem:[%s12422_s8 + $0x1710] sm:$0xf]  ;;  %v674_v55 = vld [vmem:[%s12422_s8 + $0x1728] sm:$0xf]  ;;  %671 = vst [vmem:[%s12429_s9 + $0x3d4] sm:$0xf] %v670_v53 }
  0xbd   : > { %673 = vst [vmem:[%s12429_s9 + $0x3d8] sm:$0xf] %v672_v54  ;;  %675 = vst [vmem:[%s12429_s9 + $0x3dc] sm:$0xf] %v674_v55  ;;  %v676_v56 = vld [vmem:[%s12422_s8 + $0x1740] sm:$0xf] }
  0xbe   : > { %v678_v57 = vld [vmem:[%s12422_s8 + $0x1758] sm:$0xf]  ;;  %v680_v58 = vld [vmem:[%s12422_s8 + $0x1770] sm:$0xf]  ;;  %677 = vst [vmem:[%s12429_s9 + $0x3e0] sm:$0xf] %v676_v56 }
  0xbf   : > { %679 = vst [vmem:[%s12429_s9 + $0x3e4] sm:$0xf] %v678_v57  ;;  %681 = vst [vmem:[%s12429_s9 + $0x3e8] sm:$0xf] %v680_v58  ;;  %v682_v59 = vld [vmem:[%s12422_s8 + $0x1788] sm:$0xf] }
  0xc0   : > { %v684_v60 = vld [vmem:[%s12422_s8 + $0x17a0] sm:$0xf]  ;;  %v686_v61 = vld [vmem:[%s12422_s8 + $0x17b8] sm:$0xf]  ;;  %683 = vst [vmem:[%s12429_s9 + $0x3ec] sm:$0xf] %v682_v59 }
  0xc1   : > { %685 = vst [vmem:[%s12429_s9 + $0x3f0] sm:$0xf] %v684_v60  ;;  %687 = vst [vmem:[%s12429_s9 + $0x3f4] sm:$0xf] %v686_v61  ;;  %v688_v62 = vld [vmem:[%s12422_s8 + $0x17d0] sm:$0xf] }
  0xc2   : > { %v690_v63 = vld [vmem:[%s12422_s8 + $0x17e8] sm:$0xf]  ;;  %v692_v0 = vld [vmem:[%s12422_s8 + $0x1800] sm:$0xf]  ;;  %689 = vst [vmem:[%s12429_s9 + $0x3f8] sm:$0xf] %v688_v62 }
  0xc3   : > { %691 = vst [vmem:[%s12429_s9 + $0x3fc] sm:$0xf] %v690_v63  ;;  %693 = vst [vmem:[%s12429_s9 + $0x400] sm:$0xf] %v692_v0  ;;  %v694_v1 = vld [vmem:[%s12422_s8 + $0x1818] sm:$0xf] }
  0xc4   : > { %v696_v2 = vld [vmem:[%s12422_s8 + $0x1830] sm:$0xf]  ;;  %v698_v3 = vld [vmem:[%s12422_s8 + $0x1848] sm:$0xf]  ;;  %695 = vst [vmem:[%s12429_s9 + $0x404] sm:$0xf] %v694_v1 }
  0xc5   : > { %697 = vst [vmem:[%s12429_s9 + $0x408] sm:$0xf] %v696_v2  ;;  %699 = vst [vmem:[%s12429_s9 + $0x40c] sm:$0xf] %v698_v3  ;;  %v700_v4 = vld [vmem:[%s12422_s8 + $0x1860] sm:$0xf] }
  0xc6   : > { %v702_v5 = vld [vmem:[%s12422_s8 + $0x1878] sm:$0xf]  ;;  %v704_v6 = vld [vmem:[%s12422_s8 + $0x1890] sm:$0xf]  ;;  %701 = vst [vmem:[%s12429_s9 + $0x410] sm:$0xf] %v700_v4 }
  0xc7   : > { %703 = vst [vmem:[%s12429_s9 + $0x414] sm:$0xf] %v702_v5  ;;  %705 = vst [vmem:[%s12429_s9 + $0x418] sm:$0xf] %v704_v6  ;;  %v706_v7 = vld [vmem:[%s12422_s8 + $0x18a8] sm:$0xf] }
  0xc8   : > { %v708_v8 = vld [vmem:[%s12422_s8 + $0x18c0] sm:$0xf]  ;;  %v710_v9 = vld [vmem:[%s12422_s8 + $0x18d8] sm:$0xf]  ;;  %707 = vst [vmem:[%s12429_s9 + $0x41c] sm:$0xf] %v706_v7 }
  0xc9   : > { %709 = vst [vmem:[%s12429_s9 + $0x420] sm:$0xf] %v708_v8  ;;  %711 = vst [vmem:[%s12429_s9 + $0x424] sm:$0xf] %v710_v9  ;;  %v712_v10 = vld [vmem:[%s12422_s8 + $0x18f0] sm:$0xf] }
  0xca   : > { %v714_v11 = vld [vmem:[%s12422_s8 + $0x1908] sm:$0xf]  ;;  %v716_v12 = vld [vmem:[%s12422_s8 + $0x1920] sm:$0xf]  ;;  %713 = vst [vmem:[%s12429_s9 + $0x428] sm:$0xf] %v712_v10 }
  0xcb   : > { %715 = vst [vmem:[%s12429_s9 + $0x42c] sm:$0xf] %v714_v11  ;;  %717 = vst [vmem:[%s12429_s9 + $0x430] sm:$0xf] %v716_v12  ;;  %v718_v13 = vld [vmem:[%s12422_s8 + $0x1938] sm:$0xf] }
  0xcc   : > { %v720_v14 = vld [vmem:[%s12422_s8 + $0x1950] sm:$0xf]  ;;  %v722_v15 = vld [vmem:[%s12422_s8 + $0x1968] sm:$0xf]  ;;  %719 = vst [vmem:[%s12429_s9 + $0x434] sm:$0xf] %v718_v13 }
  0xcd   : > { %721 = vst [vmem:[%s12429_s9 + $0x438] sm:$0xf] %v720_v14  ;;  %723 = vst [vmem:[%s12429_s9 + $0x43c] sm:$0xf] %v722_v15  ;;  %v724_v16 = vld [vmem:[%s12422_s8 + $0x1980] sm:$0xf] }
  0xce   : > { %v726_v17 = vld [vmem:[%s12422_s8 + $0x1998] sm:$0xf]  ;;  %v728_v18 = vld [vmem:[%s12422_s8 + $0x19b0] sm:$0xf]  ;;  %725 = vst [vmem:[%s12429_s9 + $0x440] sm:$0xf] %v724_v16 }
  0xcf   : > { %727 = vst [vmem:[%s12429_s9 + $0x444] sm:$0xf] %v726_v17  ;;  %729 = vst [vmem:[%s12429_s9 + $0x448] sm:$0xf] %v728_v18  ;;  %v730_v19 = vld [vmem:[%s12422_s8 + $0x19c8] sm:$0xf] }
  0xd0   : > { %v732_v20 = vld [vmem:[%s12422_s8 + $0x19e0] sm:$0xf]  ;;  %v734_v21 = vld [vmem:[%s12422_s8 + $0x19f8] sm:$0xf]  ;;  %731 = vst [vmem:[%s12429_s9 + $0x44c] sm:$0xf] %v730_v19 }
  0xd1   : > { %733 = vst [vmem:[%s12429_s9 + $0x450] sm:$0xf] %v732_v20  ;;  %735 = vst [vmem:[%s12429_s9 + $0x454] sm:$0xf] %v734_v21  ;;  %v736_v22 = vld [vmem:[%s12422_s8 + $0x1a10] sm:$0xf] }
  0xd2   : > { %v738_v23 = vld [vmem:[%s12422_s8 + $0x1a28] sm:$0xf]  ;;  %v740_v24 = vld [vmem:[%s12422_s8 + $0x1a40] sm:$0xf]  ;;  %737 = vst [vmem:[%s12429_s9 + $0x458] sm:$0xf] %v736_v22 }
  0xd3   : > { %739 = vst [vmem:[%s12429_s9 + $0x45c] sm:$0xf] %v738_v23  ;;  %741 = vst [vmem:[%s12429_s9 + $0x460] sm:$0xf] %v740_v24  ;;  %v742_v25 = vld [vmem:[%s12422_s8 + $0x1a58] sm:$0xf] }
  0xd4   : > { %v744_v26 = vld [vmem:[%s12422_s8 + $0x1a70] sm:$0xf]  ;;  %v746_v27 = vld [vmem:[%s12422_s8 + $0x1a88] sm:$0xf]  ;;  %743 = vst [vmem:[%s12429_s9 + $0x464] sm:$0xf] %v742_v25 }
  0xd5   : > { %745 = vst [vmem:[%s12429_s9 + $0x468] sm:$0xf] %v744_v26  ;;  %747 = vst [vmem:[%s12429_s9 + $0x46c] sm:$0xf] %v746_v27  ;;  %v748_v28 = vld [vmem:[%s12422_s8 + $0x1aa0] sm:$0xf] }
  0xd6   : > { %v750_v29 = vld [vmem:[%s12422_s8 + $0x1ab8] sm:$0xf]  ;;  %v752_v30 = vld [vmem:[%s12422_s8 + $0x1ad0] sm:$0xf]  ;;  %749 = vst [vmem:[%s12429_s9 + $0x470] sm:$0xf] %v748_v28 }
  0xd7   : > { %751 = vst [vmem:[%s12429_s9 + $0x474] sm:$0xf] %v750_v29  ;;  %753 = vst [vmem:[%s12429_s9 + $0x478] sm:$0xf] %v752_v30  ;;  %v754_v31 = vld [vmem:[%s12422_s8 + $0x1ae8] sm:$0xf] }
  0xd8   : > { %v756_v32 = vld [vmem:[%s12422_s8 + $0x1b00] sm:$0xf]  ;;  %v758_v33 = vld [vmem:[%s12422_s8 + $0x1b18] sm:$0xf]  ;;  %755 = vst [vmem:[%s12429_s9 + $0x47c] sm:$0xf] %v754_v31 }
  0xd9   : > { %757 = vst [vmem:[%s12429_s9 + $0x480] sm:$0xf] %v756_v32  ;;  %759 = vst [vmem:[%s12429_s9 + $0x484] sm:$0xf] %v758_v33  ;;  %v760_v34 = vld [vmem:[%s12422_s8 + $0x1b30] sm:$0xf] }
  0xda   : > { %v762_v35 = vld [vmem:[%s12422_s8 + $0x1b48] sm:$0xf]  ;;  %v764_v36 = vld [vmem:[%s12422_s8 + $0x1b60] sm:$0xf]  ;;  %761 = vst [vmem:[%s12429_s9 + $0x488] sm:$0xf] %v760_v34 }
  0xdb   : > { %763 = vst [vmem:[%s12429_s9 + $0x48c] sm:$0xf] %v762_v35  ;;  %765 = vst [vmem:[%s12429_s9 + $0x490] sm:$0xf] %v764_v36  ;;  %v766_v37 = vld [vmem:[%s12422_s8 + $0x1b78] sm:$0xf] }
  0xdc   : > { %v768_v38 = vld [vmem:[%s12422_s8 + $0x1b90] sm:$0xf]  ;;  %v770_v39 = vld [vmem:[%s12422_s8 + $0x1ba8] sm:$0xf]  ;;  %767 = vst [vmem:[%s12429_s9 + $0x494] sm:$0xf] %v766_v37 }
  0xdd   : > { %769 = vst [vmem:[%s12429_s9 + $0x498] sm:$0xf] %v768_v38  ;;  %771 = vst [vmem:[%s12429_s9 + $0x49c] sm:$0xf] %v770_v39  ;;  %v772_v40 = vld [vmem:[%s12422_s8 + $0x1bc0] sm:$0xf] }
  0xde   : > { %v774_v41 = vld [vmem:[%s12422_s8 + $0x1bd8] sm:$0xf]  ;;  %v776_v42 = vld [vmem:[%s12422_s8 + $0x1bf0] sm:$0xf]  ;;  %773 = vst [vmem:[%s12429_s9 + $0x4a0] sm:$0xf] %v772_v40 }
  0xdf   : > { %775 = vst [vmem:[%s12429_s9 + $0x4a4] sm:$0xf] %v774_v41  ;;  %777 = vst [vmem:[%s12429_s9 + $0x4a8] sm:$0xf] %v776_v42  ;;  %v778_v43 = vld [vmem:[%s12422_s8 + $0x1c08] sm:$0xf] }
  0xe0   : > { %v780_v44 = vld [vmem:[%s12422_s8 + $0x1c20] sm:$0xf]  ;;  %v782_v45 = vld [vmem:[%s12422_s8 + $0x1c38] sm:$0xf]  ;;  %779 = vst [vmem:[%s12429_s9 + $0x4ac] sm:$0xf] %v778_v43 }
  0xe1   : > { %781 = vst [vmem:[%s12429_s9 + $0x4b0] sm:$0xf] %v780_v44  ;;  %783 = vst [vmem:[%s12429_s9 + $0x4b4] sm:$0xf] %v782_v45  ;;  %v784_v46 = vld [vmem:[%s12422_s8 + $0x1c50] sm:$0xf] }
  0xe2   : > { %v786_v47 = vld [vmem:[%s12422_s8 + $0x1c68] sm:$0xf]  ;;  %v788_v48 = vld [vmem:[%s12422_s8 + $0x1c80] sm:$0xf]  ;;  %785 = vst [vmem:[%s12429_s9 + $0x4b8] sm:$0xf] %v784_v46 }
  0xe3   : > { %787 = vst [vmem:[%s12429_s9 + $0x4bc] sm:$0xf] %v786_v47  ;;  %789 = vst [vmem:[%s12429_s9 + $0x4c0] sm:$0xf] %v788_v48  ;;  %v790_v49 = vld [vmem:[%s12422_s8 + $0x1c98] sm:$0xf] }
  0xe4   : > { %v792_v50 = vld [vmem:[%s12422_s8 + $0x1cb0] sm:$0xf]  ;;  %v794_v51 = vld [vmem:[%s12422_s8 + $0x1cc8] sm:$0xf]  ;;  %791 = vst [vmem:[%s12429_s9 + $0x4c4] sm:$0xf] %v790_v49 }
  0xe5   : > { %793 = vst [vmem:[%s12429_s9 + $0x4c8] sm:$0xf] %v792_v50  ;;  %795 = vst [vmem:[%s12429_s9 + $0x4cc] sm:$0xf] %v794_v51  ;;  %v796_v52 = vld [vmem:[%s12422_s8 + $0x1ce0] sm:$0xf] }
  0xe6   : > { %v798_v53 = vld [vmem:[%s12422_s8 + $0x1cf8] sm:$0xf]  ;;  %v800_v54 = vld [vmem:[%s12422_s8 + $0x1d10] sm:$0xf]  ;;  %797 = vst [vmem:[%s12429_s9 + $0x4d0] sm:$0xf] %v796_v52 }
  0xe7   : > { %799 = vst [vmem:[%s12429_s9 + $0x4d4] sm:$0xf] %v798_v53  ;;  %801 = vst [vmem:[%s12429_s9 + $0x4d8] sm:$0xf] %v800_v54  ;;  %v802_v55 = vld [vmem:[%s12422_s8 + $0x1d28] sm:$0xf] }
  0xe8   : > { %v804_v56 = vld [vmem:[%s12422_s8 + $0x1d40] sm:$0xf]  ;;  %v806_v57 = vld [vmem:[%s12422_s8 + $0x1d58] sm:$0xf]  ;;  %803 = vst [vmem:[%s12429_s9 + $0x4dc] sm:$0xf] %v802_v55 }
  0xe9   : > { %805 = vst [vmem:[%s12429_s9 + $0x4e0] sm:$0xf] %v804_v56  ;;  %807 = vst [vmem:[%s12429_s9 + $0x4e4] sm:$0xf] %v806_v57  ;;  %v808_v58 = vld [vmem:[%s12422_s8 + $0x1d70] sm:$0xf] }
  0xea   : > { %v810_v59 = vld [vmem:[%s12422_s8 + $0x1d88] sm:$0xf]  ;;  %v812_v60 = vld [vmem:[%s12422_s8 + $0x1da0] sm:$0xf]  ;;  %809 = vst [vmem:[%s12429_s9 + $0x4e8] sm:$0xf] %v808_v58 }
  0xeb   : > { %811 = vst [vmem:[%s12429_s9 + $0x4ec] sm:$0xf] %v810_v59  ;;  %813 = vst [vmem:[%s12429_s9 + $0x4f0] sm:$0xf] %v812_v60  ;;  %v814_v61 = vld [vmem:[%s12422_s8 + $0x1db8] sm:$0xf] }
  0xec   : > { %v816_v62 = vld [vmem:[%s12422_s8 + $0x1dd0] sm:$0xf]  ;;  %v818_v63 = vld [vmem:[%s12422_s8 + $0x1de8] sm:$0xf]  ;;  %815 = vst [vmem:[%s12429_s9 + $0x4f4] sm:$0xf] %v814_v61 }
  0xed   : > { %817 = vst [vmem:[%s12429_s9 + $0x4f8] sm:$0xf] %v816_v62  ;;  %819 = vst [vmem:[%s12429_s9 + $0x4fc] sm:$0xf] %v818_v63  ;;  %v820_v0 = vld [vmem:[%s12422_s8 + $0x1e00] sm:$0xf] }
  0xee   : > { %v822_v1 = vld [vmem:[%s12422_s8 + $0x1e18] sm:$0xf]  ;;  %v824_v2 = vld [vmem:[%s12422_s8 + $0x1e30] sm:$0xf]  ;;  %821 = vst [vmem:[%s12429_s9 + $0x500] sm:$0xf] %v820_v0 }
  0xef   : > { %823 = vst [vmem:[%s12429_s9 + $0x504] sm:$0xf] %v822_v1  ;;  %825 = vst [vmem:[%s12429_s9 + $0x508] sm:$0xf] %v824_v2  ;;  %v826_v3 = vld [vmem:[%s12422_s8 + $0x1e48] sm:$0xf] }
  0xf0   : > { %v828_v4 = vld [vmem:[%s12422_s8 + $0x1e60] sm:$0xf]  ;;  %v830_v5 = vld [vmem:[%s12422_s8 + $0x1e78] sm:$0xf]  ;;  %827 = vst [vmem:[%s12429_s9 + $0x50c] sm:$0xf] %v826_v3 }
  0xf1   : > { %829 = vst [vmem:[%s12429_s9 + $0x510] sm:$0xf] %v828_v4  ;;  %831 = vst [vmem:[%s12429_s9 + $0x514] sm:$0xf] %v830_v5  ;;  %v832_v6 = vld [vmem:[%s12422_s8 + $0x1e90] sm:$0xf] }
  0xf2   : > { %v834_v7 = vld [vmem:[%s12422_s8 + $0x1ea8] sm:$0xf]  ;;  %v836_v8 = vld [vmem:[%s12422_s8 + $0x1ec0] sm:$0xf]  ;;  %833 = vst [vmem:[%s12429_s9 + $0x518] sm:$0xf] %v832_v6 }
  0xf3   : > { %835 = vst [vmem:[%s12429_s9 + $0x51c] sm:$0xf] %v834_v7  ;;  %837 = vst [vmem:[%s12429_s9 + $0x520] sm:$0xf] %v836_v8  ;;  %v838_v9 = vld [vmem:[%s12422_s8 + $0x1ed8] sm:$0xf] }
  0xf4   : > { %v840_v10 = vld [vmem:[%s12422_s8 + $0x1ef0] sm:$0xf]  ;;  %v842_v11 = vld [vmem:[%s12422_s8 + $0x1f08] sm:$0xf]  ;;  %839 = vst [vmem:[%s12429_s9 + $0x524] sm:$0xf] %v838_v9 }
  0xf5   : > { %841 = vst [vmem:[%s12429_s9 + $0x528] sm:$0xf] %v840_v10  ;;  %843 = vst [vmem:[%s12429_s9 + $0x52c] sm:$0xf] %v842_v11  ;;  %v844_v12 = vld [vmem:[%s12422_s8 + $0x1f20] sm:$0xf] }
  0xf6   : > { %v846_v13 = vld [vmem:[%s12422_s8 + $0x1f38] sm:$0xf]  ;;  %v848_v14 = vld [vmem:[%s12422_s8 + $0x1f50] sm:$0xf]  ;;  %845 = vst [vmem:[%s12429_s9 + $0x530] sm:$0xf] %v844_v12 }
  0xf7   : > { %847 = vst [vmem:[%s12429_s9 + $0x534] sm:$0xf] %v846_v13  ;;  %849 = vst [vmem:[%s12429_s9 + $0x538] sm:$0xf] %v848_v14  ;;  %v850_v15 = vld [vmem:[%s12422_s8 + $0x1f68] sm:$0xf] }
  0xf8   : > { %v852_v16 = vld [vmem:[%s12422_s8 + $0x1f80] sm:$0xf]  ;;  %v854_v17 = vld [vmem:[%s12422_s8 + $0x1f98] sm:$0xf]  ;;  %851 = vst [vmem:[%s12429_s9 + $0x53c] sm:$0xf] %v850_v15 }
  0xf9   : > { %853 = vst [vmem:[%s12429_s9 + $0x540] sm:$0xf] %v852_v16  ;;  %855 = vst [vmem:[%s12429_s9 + $0x544] sm:$0xf] %v854_v17  ;;  %v856_v18 = vld [vmem:[%s12422_s8 + $0x1fb0] sm:$0xf] }
  0xfa   : > { %v858_v19 = vld [vmem:[%s12422_s8 + $0x1fc8] sm:$0xf]  ;;  %v860_v20 = vld [vmem:[%s12422_s8 + $0x1fe0] sm:$0xf]  ;;  %857 = vst [vmem:[%s12429_s9 + $0x548] sm:$0xf] %v856_v18 }
  0xfb   : > { %859 = vst [vmem:[%s12429_s9 + $0x54c] sm:$0xf] %v858_v19  ;;  %861 = vst [vmem:[%s12429_s9 + $0x550] sm:$0xf] %v860_v20  ;;  %v862_v21 = vld [vmem:[%s12422_s8 + $0x1ff8] sm:$0xf] }
  0xfc   : > { %v864_v22 = vld [vmem:[%s12422_s8 + $0x2010] sm:$0xf]  ;;  %v866_v23 = vld [vmem:[%s12422_s8 + $0x2028] sm:$0xf]  ;;  %863 = vst [vmem:[%s12429_s9 + $0x554] sm:$0xf] %v862_v21 }
  0xfd   : > { %865 = vst [vmem:[%s12429_s9 + $0x558] sm:$0xf] %v864_v22  ;;  %867 = vst [vmem:[%s12429_s9 + $0x55c] sm:$0xf] %v866_v23  ;;  %v868_v24 = vld [vmem:[%s12422_s8 + $0x2040] sm:$0xf] }
  0xfe   : > { %v870_v25 = vld [vmem:[%s12422_s8 + $0x2058] sm:$0xf]  ;;  %v872_v26 = vld [vmem:[%s12422_s8 + $0x2070] sm:$0xf]  ;;  %869 = vst [vmem:[%s12429_s9 + $0x560] sm:$0xf] %v868_v24 }
  0xff   : > { %871 = vst [vmem:[%s12429_s9 + $0x564] sm:$0xf] %v870_v25  ;;  %873 = vst [vmem:[%s12429_s9 + $0x568] sm:$0xf] %v872_v26  ;;  %v874_v27 = vld [vmem:[%s12422_s8 + $0x2088] sm:$0xf] }
 0x100   : > { %v876_v28 = vld [vmem:[%s12422_s8 + $0x20a0] sm:$0xf]  ;;  %v878_v29 = vld [vmem:[%s12422_s8 + $0x20b8] sm:$0xf]  ;;  %875 = vst [vmem:[%s12429_s9 + $0x56c] sm:$0xf] %v874_v27 }
 0x101   : > { %877 = vst [vmem:[%s12429_s9 + $0x570] sm:$0xf] %v876_v28  ;;  %879 = vst [vmem:[%s12429_s9 + $0x574] sm:$0xf] %v878_v29  ;;  %v880_v30 = vld [vmem:[%s12422_s8 + $0x20d0] sm:$0xf] }
 0x102   : > { %v882_v31 = vld [vmem:[%s12422_s8 + $0x20e8] sm:$0xf]  ;;  %v884_v32 = vld [vmem:[%s12422_s8 + $0x2100] sm:$0xf]  ;;  %881 = vst [vmem:[%s12429_s9 + $0x578] sm:$0xf] %v880_v30 }
 0x103   : > { %883 = vst [vmem:[%s12429_s9 + $0x57c] sm:$0xf] %v882_v31  ;;  %885 = vst [vmem:[%s12429_s9 + $0x580] sm:$0xf] %v884_v32  ;;  %v886_v33 = vld [vmem:[%s12422_s8 + $0x2118] sm:$0xf] }
 0x104   : > { %v888_v34 = vld [vmem:[%s12422_s8 + $0x2130] sm:$0xf]  ;;  %v890_v35 = vld [vmem:[%s12422_s8 + $0x2148] sm:$0xf]  ;;  %887 = vst [vmem:[%s12429_s9 + $0x584] sm:$0xf] %v886_v33 }
 0x105   : > { %889 = vst [vmem:[%s12429_s9 + $0x588] sm:$0xf] %v888_v34  ;;  %891 = vst [vmem:[%s12429_s9 + $0x58c] sm:$0xf] %v890_v35  ;;  %v892_v36 = vld [vmem:[%s12422_s8 + $0x2160] sm:$0xf] }
 0x106   : > { %v894_v37 = vld [vmem:[%s12422_s8 + $0x2178] sm:$0xf]  ;;  %v896_v38 = vld [vmem:[%s12422_s8 + $0x2190] sm:$0xf]  ;;  %893 = vst [vmem:[%s12429_s9 + $0x590] sm:$0xf] %v892_v36 }
 0x107   : > { %895 = vst [vmem:[%s12429_s9 + $0x594] sm:$0xf] %v894_v37  ;;  %897 = vst [vmem:[%s12429_s9 + $0x598] sm:$0xf] %v896_v38  ;;  %v898_v39 = vld [vmem:[%s12422_s8 + $0x21a8] sm:$0xf] }
 0x108   : > { %v900_v40 = vld [vmem:[%s12422_s8 + $0x21c0] sm:$0xf]  ;;  %v902_v41 = vld [vmem:[%s12422_s8 + $0x21d8] sm:$0xf]  ;;  %899 = vst [vmem:[%s12429_s9 + $0x59c] sm:$0xf] %v898_v39 }
 0x109   : > { %901 = vst [vmem:[%s12429_s9 + $0x5a0] sm:$0xf] %v900_v40  ;;  %903 = vst [vmem:[%s12429_s9 + $0x5a4] sm:$0xf] %v902_v41  ;;  %v904_v42 = vld [vmem:[%s12422_s8 + $0x21f0] sm:$0xf] }
 0x10a   : > { %v906_v43 = vld [vmem:[%s12422_s8 + $0x2208] sm:$0xf]  ;;  %v908_v44 = vld [vmem:[%s12422_s8 + $0x2220] sm:$0xf]  ;;  %905 = vst [vmem:[%s12429_s9 + $0x5a8] sm:$0xf] %v904_v42 }
 0x10b   : > { %907 = vst [vmem:[%s12429_s9 + $0x5ac] sm:$0xf] %v906_v43  ;;  %909 = vst [vmem:[%s12429_s9 + $0x5b0] sm:$0xf] %v908_v44  ;;  %v910_v45 = vld [vmem:[%s12422_s8 + $0x2238] sm:$0xf] }
 0x10c   : > { %v912_v46 = vld [vmem:[%s12422_s8 + $0x2250] sm:$0xf]  ;;  %v914_v47 = vld [vmem:[%s12422_s8 + $0x2268] sm:$0xf]  ;;  %911 = vst [vmem:[%s12429_s9 + $0x5b4] sm:$0xf] %v910_v45 }
 0x10d   : > { %913 = vst [vmem:[%s12429_s9 + $0x5b8] sm:$0xf] %v912_v46  ;;  %915 = vst [vmem:[%s12429_s9 + $0x5bc] sm:$0xf] %v914_v47  ;;  %v916_v48 = vld [vmem:[%s12422_s8 + $0x2280] sm:$0xf] }
 0x10e   : > { %v918_v49 = vld [vmem:[%s12422_s8 + $0x2298] sm:$0xf]  ;;  %v920_v50 = vld [vmem:[%s12422_s8 + $0x22b0] sm:$0xf]  ;;  %917 = vst [vmem:[%s12429_s9 + $0x5c0] sm:$0xf] %v916_v48 }
 0x10f   : > { %919 = vst [vmem:[%s12429_s9 + $0x5c4] sm:$0xf] %v918_v49  ;;  %921 = vst [vmem:[%s12429_s9 + $0x5c8] sm:$0xf] %v920_v50  ;;  %v922_v51 = vld [vmem:[%s12422_s8 + $0x22c8] sm:$0xf] }
 0x110   : > { %v924_v52 = vld [vmem:[%s12422_s8 + $0x22e0] sm:$0xf]  ;;  %v926_v53 = vld [vmem:[%s12422_s8 + $0x22f8] sm:$0xf]  ;;  %923 = vst [vmem:[%s12429_s9 + $0x5cc] sm:$0xf] %v922_v51 }
 0x111   : > { %925 = vst [vmem:[%s12429_s9 + $0x5d0] sm:$0xf] %v924_v52  ;;  %927 = vst [vmem:[%s12429_s9 + $0x5d4] sm:$0xf] %v926_v53  ;;  %v928_v54 = vld [vmem:[%s12422_s8 + $0x2310] sm:$0xf] }
 0x112   : > { %v930_v55 = vld [vmem:[%s12422_s8 + $0x2328] sm:$0xf]  ;;  %v932_v56 = vld [vmem:[%s12422_s8 + $0x2340] sm:$0xf]  ;;  %929 = vst [vmem:[%s12429_s9 + $0x5d8] sm:$0xf] %v928_v54 }
 0x113   : > { %931 = vst [vmem:[%s12429_s9 + $0x5dc] sm:$0xf] %v930_v55  ;;  %933 = vst [vmem:[%s12429_s9 + $0x5e0] sm:$0xf] %v932_v56  ;;  %v934_v57 = vld [vmem:[%s12422_s8 + $0x2358] sm:$0xf] }
 0x114   : > { %v936_v58 = vld [vmem:[%s12422_s8 + $0x2370] sm:$0xf]  ;;  %v938_v59 = vld [vmem:[%s12422_s8 + $0x2388] sm:$0xf]  ;;  %935 = vst [vmem:[%s12429_s9 + $0x5e4] sm:$0xf] %v934_v57 }
 0x115   : > { %937 = vst [vmem:[%s12429_s9 + $0x5e8] sm:$0xf] %v936_v58  ;;  %939 = vst [vmem:[%s12429_s9 + $0x5ec] sm:$0xf] %v938_v59  ;;  %v940_v60 = vld [vmem:[%s12422_s8 + $0x23a0] sm:$0xf] }
 0x116   : > { %v942_v61 = vld [vmem:[%s12422_s8 + $0x23b8] sm:$0xf]  ;;  %v944_v62 = vld [vmem:[%s12422_s8 + $0x23d0] sm:$0xf]  ;;  %941 = vst [vmem:[%s12429_s9 + $0x5f0] sm:$0xf] %v940_v60 }
 0x117   : > { %943 = vst [vmem:[%s12429_s9 + $0x5f4] sm:$0xf] %v942_v61  ;;  %945 = vst [vmem:[%s12429_s9 + $0x5f8] sm:$0xf] %v944_v62  ;;  %v946_v63 = vld [vmem:[%s12422_s8 + $0x23e8] sm:$0xf] }
 0x118   : > { %947 = vst [vmem:[%s12429_s9 + $0x5fc] sm:$0xf] %v946_v63 }
 0x119 PF: > { %p9770_p9 = scmp.ge.s32.totalorder %s12337_s18, 1  ;;  %p1747_p10 = scmp.lt.s32.totalorder %s12337_s18, 7 }
 0x11b   : > { %p1748_p11 = pnand %p9770_p9, %p1747_p10 }
 0x11c   : > { %s1754_s10 = sand.u32 (!%p1748_p11), 1, %s12313_s12   ;;  %s1783_s11 = smul.u32 (!%p1748_p11), 3, %s12325_s15 }
 0x11d   : > { %1751 = sbr.rel (%p1748_p11) target bundleno = 1401 (0x579), region = 69  ;;  %p9771_p13 = scmp.ne.s32.totalorder (!%p1748_p11), %s12321_s14, 0 }
 0x11e   : > { %s12009_s21 = smul.u32 (!%p1748_p11), 1536, %s1754_s10  ;;  %s13199_s24 = sadd.s32 (!%p1748_p11), %s12321_s14, %s1783_s11 }
 0x11f   : > { %s12010_s22 = smul.u32 (!%p1748_p11), 200, %s1754_s10  ;;  %p1785_p12 = scmp.lt.s32.totalorder (!%p1748_p11), %s13199_s24, 5 }
 0x120   : > { %s13209_s30 = scalar_lea.vmem (!%p1748_p11), [#allocation3], %s12009_s21 }
 0x121   : > { %s13211_s4 = scalar_lea.vmem (!%p1748_p11), [#allocation4], %s12010_s22 }
 0x124   : > { %s13203_s25 = scalar_select %p1785_p12, %s13199_s24, 5 }
 0x125   : > { %1796 = sbr.rel (%p9771_p13) target bundleno = 523 (0x20b), region = 77  ;;  %v1797_v0 = vld [vmem:[%s15885_s0] sm:$0xff] (!%p9771_p13)  ;;  %v1798_v1 = vld [vmem:[%s15885_s0 + $0x8] sm:$0xff] (!%p9771_p13)  ;;  %v1799_v2 = vld [vmem:[%s15885_s0 + $0x10] sm:$0xff] (!%p9771_p13) }
 0x126   : > { %s1787_s28 = scalar_lea.vmem %s15887_s2, %s13203_s25  ;;  %v10580_v3 = vpack.c.bf16 (!%p9771_p13), %v1798_v1, %v1797_v0  ;;  %v1800_v4 = vld [vmem:[%s15885_s0 + $0x18] sm:$0xff] (!%p9771_p13)  ;;  %v1801_v5 = vld [vmem:[%s15885_s0 + $0x20] sm:$0xff] (!%p9771_p13)  ;;  %v1802_v6 = vld [vmem:[%s15885_s0 + $0x28] sm:$0xff] (!%p9771_p13) }
 0x127   : > { %v10581_v7 = vpack.c.bf16 (!%p9771_p13), %v1800_v4, %v1799_v2  ;;  %v10582_v8 = vpack.c.bf16 (!%p9771_p13), %v1802_v6, %v1801_v5  ;;  %v1803_v9 = vld [vmem:[%s15885_s0 + $0x30] sm:$0xff] (!%p9771_p13)  ;;  %v1804_v10 = vld [vmem:[%s15885_s0 + $0x38] sm:$0xff] (!%p9771_p13)  ;;  %v1805_v11 = vld [vmem:[%s15885_s0 + $0x40] sm:$0xff] (!%p9771_p13) }
 0x128   : > { %4221 = vst [vmem:[#allocation2] sm:$0xff] (!%p9771_p13), %v10580_v3  ;;  %v10583_v12 = vpack.c.bf16 (!%p9771_p13), %v1804_v10, %v1803_v9  ;;  %v1806_v13 = vld [vmem:[%s15885_s0 + $0x48] sm:$0xff] (!%p9771_p13)  ;;  %v1807_v14 = vld [vmem:[%s15885_s0 + $0x50] sm:$0xff] (!%p9771_p13)  ;;  %v1808_v15 = vld [vmem:[%s15885_s0 + $0x58] sm:$0xff] (!%p9771_p13) }
 0x129   : > { %4222 = vst [vmem:[#allocation2 + $0x8] sm:$0xff] (!%p9771_p13), %v10581_v7  ;;  %4223 = vst [vmem:[#allocation2 + $0x10] sm:$0xff] (!%p9771_p13), %v10582_v8  ;;  %v10584_v16 = vpack.c.bf16 (!%p9771_p13), %v1806_v13, %v1805_v11  ;;  %v10585_v17 = vpack.c.bf16 (!%p9771_p13), %v1808_v15, %v1807_v14  ;;  %v1809_v18 = vld [vmem:[%s15885_s0 + $0x60] sm:$0xff] (!%p9771_p13)  ;;  %v1810_v19 = vld [vmem:[%s15885_s0 + $0x68] sm:$0xff] (!%p9771_p13) }
 0x12a   : > { %v1811_v20 = vld [vmem:[%s15885_s0 + $0x70] sm:$0xff] (!%p9771_p13)  ;;  %4224 = vst [vmem:[#allocation2 + $0x18] sm:$0xff] (!%p9771_p13), %v10583_v12  ;;  %v10586_v21 = vpack.c.bf16 (!%p9771_p13), %v1810_v19, %v1809_v18  ;;  %v1812_v22 = vld [vmem:[%s15885_s0 + $0x78] sm:$0xff] (!%p9771_p13)  ;;  %v1813_v23 = vld [vmem:[%s15885_s0 + $0x80] sm:$0xff] (!%p9771_p13) }
 0x12b   : > { %v1814_v24 = vld [vmem:[%s15885_s0 + $0x88] sm:$0xff] (!%p9771_p13)  ;;  %4225 = vst [vmem:[#allocation2 + $0x20] sm:$0xff] (!%p9771_p13), %v10584_v16  ;;  %4226 = vst [vmem:[#allocation2 + $0x28] sm:$0xff] (!%p9771_p13), %v10585_v17  ;;  %v10587_v25 = vpack.c.bf16 (!%p9771_p13), %v1812_v22, %v1811_v20  ;;  %v1815_v27 = vld [vmem:[%s15885_s0 + $0x90] sm:$0xff] (!%p9771_p13) }
 0x12c   : > { %v10588_v26 = vpack.c.bf16 %v1814_v24, %v1813_v23  ;;  %v1816_v28 = vld [vmem:[%s15885_s0 + $0x98] sm:$0xff]  ;;  %v1817_v29 = vld [vmem:[%s15885_s0 + $0xa0] sm:$0xff]  ;;  %4227 = vst [vmem:[#allocation2 + $0x30] sm:$0xff] %v10586_v21  ;;  %v1818_v31 = vld [vmem:[%s15885_s0 + $0xa8] sm:$0xff] }
 0x12d   : > { %v10589_v30 = vpack.c.bf16 %v1816_v28, %v1815_v27  ;;  %v1819_v32 = vld [vmem:[%s15885_s0 + $0xb0] sm:$0xff]  ;;  %v1820_v33 = vld [vmem:[%s15885_s0 + $0xb8] sm:$0xff]  ;;  %4228 = vst [vmem:[#allocation2 + $0x38] sm:$0xff] %v10587_v25  ;;  %v10590_v34 = vpack.c.bf16 %v1818_v31, %v1817_v29  ;;  %v1821_v36 = vld [vmem:[%s15885_s0 + $0xc0] sm:$0xff] }
 0x12e   : > { %4229 = vst [vmem:[#allocation2 + $0x40] sm:$0xff] %v10588_v26  ;;  %v10591_v35 = vpack.c.bf16 %v1820_v33, %v1819_v32  ;;  %v1822_v37 = vld [vmem:[%s15885_s0 + $0xc8] sm:$0xff]  ;;  %v1823_v38 = vld [vmem:[%s15885_s0 + $0xd0] sm:$0xff]  ;;  %v1824_v40 = vld [vmem:[%s15885_s0 + $0xd8] sm:$0xff] }
 0x12f   : > { %4230 = vst [vmem:[#allocation2 + $0x48] sm:$0xff] %v10589_v30  ;;  %v10592_v39 = vpack.c.bf16 %v1822_v37, %v1821_v36  ;;  %v1825_v41 = vld [vmem:[%s15885_s0 + $0xe0] sm:$0xff]  ;;  %v1826_v42 = vld [vmem:[%s15885_s0 + $0xe8] sm:$0xff]  ;;  %4231 = vst [vmem:[#allocation2 + $0x50] sm:$0xff] %v10590_v34  ;;  %v10593_v43 = vpack.c.bf16 %v1824_v40, %v1823_v38 }
 0x130   : > { %4232 = vst [vmem:[#allocation2 + $0x58] sm:$0xff] %v10591_v35  ;;  %v10594_v44 = vpack.c.bf16 %v1826_v42, %v1825_v41  ;;  %v1827_v45 = vld [vmem:[%s15885_s0 + $0xf0] sm:$0xff]  ;;  %v1828_v46 = vld [vmem:[%s15885_s0 + $0xf8] sm:$0xff]  ;;  %v1829_v47 = vld [vmem:[%s15885_s0 + $0x100] sm:$0xff] }
 0x131   : > { %4233 = vst [vmem:[#allocation2 + $0x60] sm:$0xff] %v10592_v39  ;;  %v10595_v48 = vpack.c.bf16 %v1828_v46, %v1827_v45  ;;  %v1830_v49 = vld [vmem:[%s15885_s0 + $0x108] sm:$0xff]  ;;  %v1831_v50 = vld [vmem:[%s15885_s0 + $0x110] sm:$0xff]  ;;  %v1832_v51 = vld [vmem:[%s15885_s0 + $0x118] sm:$0xff] }
 0x132   : > { %4234 = vst [vmem:[#allocation2 + $0x68] sm:$0xff] %v10593_v43  ;;  %4235 = vst [vmem:[#allocation2 + $0x70] sm:$0xff] %v10594_v44  ;;  %v10596_v52 = vpack.c.bf16 %v1830_v49, %v1829_v47  ;;  %v10597_v53 = vpack.c.bf16 %v1832_v51, %v1831_v50  ;;  %v1833_v54 = vld [vmem:[%s15885_s0 + $0x120] sm:$0xff]  ;;  %v1834_v55 = vld [vmem:[%s15885_s0 + $0x128] sm:$0xff] }
 0x133   : > { %v1835_v56 = vld [vmem:[%s15885_s0 + $0x130] sm:$0xff]  ;;  %4236 = vst [vmem:[#allocation2 + $0x78] sm:$0xff] %v10595_v48  ;;  %v10598_v57 = vpack.c.bf16 %v1834_v55, %v1833_v54  ;;  %v1836_v58 = vld [vmem:[%s15885_s0 + $0x138] sm:$0xff]  ;;  %v1837_v59 = vld [vmem:[%s15885_s0 + $0x140] sm:$0xff] }
 0x134   : > { %v1838_v60 = vld [vmem:[%s15885_s0 + $0x148] sm:$0xff]  ;;  %4237 = vst [vmem:[#allocation2 + $0x80] sm:$0xff] %v10596_v52  ;;  %4238 = vst [vmem:[#allocation2 + $0x88] sm:$0xff] %v10597_v53  ;;  %v10599_v61 = vpack.c.bf16 %v1836_v58, %v1835_v56  ;;  %v1839_v63 = vld [vmem:[%s15885_s0 + $0x150] sm:$0xff] }
 0x135   : > { %v10600_v62 = vpack.c.bf16 %v1838_v60, %v1837_v59  ;;  %v1840_v0 = vld [vmem:[%s15885_s0 + $0x158] sm:$0xff]  ;;  %v1841_v1 = vld [vmem:[%s15885_s0 + $0x160] sm:$0xff]  ;;  %4239 = vst [vmem:[#allocation2 + $0x90] sm:$0xff] %v10598_v57  ;;  %v1842_v3 = vld [vmem:[%s15885_s0 + $0x168] sm:$0xff] }
 0x136   : > { %v10601_v2 = vpack.c.bf16 %v1840_v0, %v1839_v63  ;;  %v1843_v4 = vld [vmem:[%s15885_s0 + $0x170] sm:$0xff]  ;;  %v1844_v5 = vld [vmem:[%s15885_s0 + $0x178] sm:$0xff]  ;;  %4240 = vst [vmem:[#allocation2 + $0x98] sm:$0xff] %v10599_v61  ;;  %v10602_v6 = vpack.c.bf16 %v1842_v3, %v1841_v1  ;;  %v1845_v8 = vld [vmem:[%s15885_s0 + $0x180] sm:$0xff] }
 0x137   : > { %4241 = vst [vmem:[#allocation2 + $0xa0] sm:$0xff] %v10600_v62  ;;  %v10603_v7 = vpack.c.bf16 %v1844_v5, %v1843_v4  ;;  %v1846_v9 = vld [vmem:[%s15885_s0 + $0x188] sm:$0xff]  ;;  %v1847_v10 = vld [vmem:[%s15885_s0 + $0x190] sm:$0xff]  ;;  %v1848_v12 = vld [vmem:[%s15885_s0 + $0x198] sm:$0xff] }
 0x138   : > { %4242 = vst [vmem:[#allocation2 + $0xa8] sm:$0xff] %v10601_v2  ;;  %v10604_v11 = vpack.c.bf16 %v1846_v9, %v1845_v8  ;;  %v1849_v13 = vld [vmem:[%s15885_s0 + $0x1a0] sm:$0xff]  ;;  %v1850_v14 = vld [vmem:[%s15885_s0 + $0x1a8] sm:$0xff]  ;;  %4243 = vst [vmem:[#allocation2 + $0xb0] sm:$0xff] %v10602_v6  ;;  %v10605_v15 = vpack.c.bf16 %v1848_v12, %v1847_v10 }
 0x139   : > { %4244 = vst [vmem:[#allocation2 + $0xb8] sm:$0xff] %v10603_v7  ;;  %v10606_v16 = vpack.c.bf16 %v1850_v14, %v1849_v13  ;;  %v1851_v17 = vld [vmem:[%s15885_s0 + $0x1b0] sm:$0xff]  ;;  %v1852_v18 = vld [vmem:[%s15885_s0 + $0x1b8] sm:$0xff]  ;;  %v1853_v19 = vld [vmem:[%s15885_s0 + $0x1c0] sm:$0xff] }
 0x13a   : > { %4245 = vst [vmem:[#allocation2 + $0xc0] sm:$0xff] %v10604_v11  ;;  %v10607_v20 = vpack.c.bf16 %v1852_v18, %v1851_v17  ;;  %v1854_v21 = vld [vmem:[%s15885_s0 + $0x1c8] sm:$0xff]  ;;  %v1855_v22 = vld [vmem:[%s15885_s0 + $0x1d0] sm:$0xff]  ;;  %v1856_v23 = vld [vmem:[%s15885_s0 + $0x1d8] sm:$0xff] }
 0x13b   : > { %4246 = vst [vmem:[#allocation2 + $0xc8] sm:$0xff] %v10605_v15  ;;  %4247 = vst [vmem:[#allocation2 + $0xd0] sm:$0xff] %v10606_v16  ;;  %v10608_v24 = vpack.c.bf16 %v1854_v21, %v1853_v19  ;;  %v10609_v25 = vpack.c.bf16 %v1856_v23, %v1855_v22  ;;  %v1857_v26 = vld [vmem:[%s15885_s0 + $0x1e0] sm:$0xff]  ;;  %v1858_v27 = vld [vmem:[%s15885_s0 + $0x1e8] sm:$0xff] }
 0x13c   : > { %v1859_v28 = vld [vmem:[%s15885_s0 + $0x1f0] sm:$0xff]  ;;  %4248 = vst [vmem:[#allocation2 + $0xd8] sm:$0xff] %v10607_v20  ;;  %v10610_v29 = vpack.c.bf16 %v1858_v27, %v1857_v26  ;;  %v1860_v30 = vld [vmem:[%s15885_s0 + $0x1f8] sm:$0xff]  ;;  %v1861_v31 = vld [vmem:[%s15885_s0 + $0x200] sm:$0xff] }
 0x13d   : > { %v1862_v32 = vld [vmem:[%s15885_s0 + $0x208] sm:$0xff]  ;;  %4249 = vst [vmem:[#allocation2 + $0xe0] sm:$0xff] %v10608_v24  ;;  %4250 = vst [vmem:[#allocation2 + $0xe8] sm:$0xff] %v10609_v25  ;;  %v10611_v33 = vpack.c.bf16 %v1860_v30, %v1859_v28  ;;  %v1863_v35 = vld [vmem:[%s15885_s0 + $0x210] sm:$0xff] }
 0x13e   : > { %v10612_v34 = vpack.c.bf16 %v1862_v32, %v1861_v31  ;;  %v1864_v36 = vld [vmem:[%s15885_s0 + $0x218] sm:$0xff]  ;;  %v1865_v37 = vld [vmem:[%s15885_s0 + $0x220] sm:$0xff]  ;;  %4251 = vst [vmem:[#allocation2 + $0xf0] sm:$0xff] %v10610_v29  ;;  %v1866_v39 = vld [vmem:[%s15885_s0 + $0x228] sm:$0xff] }
 0x13f   : > { %v10613_v38 = vpack.c.bf16 %v1864_v36, %v1863_v35  ;;  %v1867_v40 = vld [vmem:[%s15885_s0 + $0x230] sm:$0xff]  ;;  %v1868_v41 = vld [vmem:[%s15885_s0 + $0x238] sm:$0xff]  ;;  %4252 = vst [vmem:[#allocation2 + $0xf8] sm:$0xff] %v10611_v33  ;;  %v10614_v42 = vpack.c.bf16 %v1866_v39, %v1865_v37  ;;  %v1869_v44 = vld [vmem:[%s15885_s0 + $0x240] sm:$0xff] }
 0x140   : > { %4253 = vst [vmem:[#allocation2 + $0x100] sm:$0xff] %v10612_v34  ;;  %v10615_v43 = vpack.c.bf16 %v1868_v41, %v1867_v40  ;;  %v1870_v45 = vld [vmem:[%s15885_s0 + $0x248] sm:$0xff]  ;;  %v1871_v46 = vld [vmem:[%s15885_s0 + $0x250] sm:$0xff]  ;;  %v1872_v48 = vld [vmem:[%s15885_s0 + $0x258] sm:$0xff] }
 0x141   : > { %4254 = vst [vmem:[#allocation2 + $0x108] sm:$0xff] %v10613_v38  ;;  %v10616_v47 = vpack.c.bf16 %v1870_v45, %v1869_v44  ;;  %v1873_v49 = vld [vmem:[%s15885_s0 + $0x260] sm:$0xff]  ;;  %v1874_v50 = vld [vmem:[%s15885_s0 + $0x268] sm:$0xff]  ;;  %4255 = vst [vmem:[#allocation2 + $0x110] sm:$0xff] %v10614_v42  ;;  %v10617_v51 = vpack.c.bf16 %v1872_v48, %v1871_v46 }
 0x142   : > { %4256 = vst [vmem:[#allocation2 + $0x118] sm:$0xff] %v10615_v43  ;;  %v10618_v52 = vpack.c.bf16 %v1874_v50, %v1873_v49  ;;  %v1875_v53 = vld [vmem:[%s15885_s0 + $0x270] sm:$0xff]  ;;  %v1876_v54 = vld [vmem:[%s15885_s0 + $0x278] sm:$0xff]  ;;  %v1877_v55 = vld [vmem:[%s15885_s0 + $0x280] sm:$0xff] }
 0x143   : > { %4257 = vst [vmem:[#allocation2 + $0x120] sm:$0xff] %v10616_v47  ;;  %v10619_v56 = vpack.c.bf16 %v1876_v54, %v1875_v53  ;;  %v1878_v57 = vld [vmem:[%s15885_s0 + $0x288] sm:$0xff]  ;;  %v1879_v58 = vld [vmem:[%s15885_s0 + $0x290] sm:$0xff]  ;;  %v1880_v59 = vld [vmem:[%s15885_s0 + $0x298] sm:$0xff] }
 0x144   : > { %4258 = vst [vmem:[#allocation2 + $0x128] sm:$0xff] %v10617_v51  ;;  %4259 = vst [vmem:[#allocation2 + $0x130] sm:$0xff] %v10618_v52  ;;  %v10620_v60 = vpack.c.bf16 %v1878_v57, %v1877_v55  ;;  %v10621_v61 = vpack.c.bf16 %v1880_v59, %v1879_v58  ;;  %v1881_v62 = vld [vmem:[%s15885_s0 + $0x2a0] sm:$0xff]  ;;  %v1882_v63 = vld [vmem:[%s15885_s0 + $0x2a8] sm:$0xff] }
 0x145   : > { %v1883_v0 = vld [vmem:[%s15885_s0 + $0x2b0] sm:$0xff]  ;;  %4260 = vst [vmem:[#allocation2 + $0x138] sm:$0xff] %v10619_v56  ;;  %v10622_v1 = vpack.c.bf16 %v1882_v63, %v1881_v62  ;;  %v1884_v2 = vld [vmem:[%s15885_s0 + $0x2b8] sm:$0xff]  ;;  %v1885_v3 = vld [vmem:[%s15885_s0 + $0x2c0] sm:$0xff] }
 0x146   : > { %v1886_v4 = vld [vmem:[%s15885_s0 + $0x2c8] sm:$0xff]  ;;  %4261 = vst [vmem:[#allocation2 + $0x140] sm:$0xff] %v10620_v60  ;;  %4262 = vst [vmem:[#allocation2 + $0x148] sm:$0xff] %v10621_v61  ;;  %v10623_v5 = vpack.c.bf16 %v1884_v2, %v1883_v0  ;;  %v1887_v7 = vld [vmem:[%s15885_s0 + $0x2d0] sm:$0xff] }
 0x147   : > { %v10624_v6 = vpack.c.bf16 %v1886_v4, %v1885_v3  ;;  %v1888_v8 = vld [vmem:[%s15885_s0 + $0x2d8] sm:$0xff]  ;;  %v1889_v9 = vld [vmem:[%s15885_s0 + $0x2e0] sm:$0xff]  ;;  %4263 = vst [vmem:[#allocation2 + $0x150] sm:$0xff] %v10622_v1  ;;  %v1890_v11 = vld [vmem:[%s15885_s0 + $0x2e8] sm:$0xff] }
 0x148   : > { %v10625_v10 = vpack.c.bf16 %v1888_v8, %v1887_v7  ;;  %v1891_v12 = vld [vmem:[%s15885_s0 + $0x2f0] sm:$0xff]  ;;  %v1892_v13 = vld [vmem:[%s15885_s0 + $0x2f8] sm:$0xff]  ;;  %4264 = vst [vmem:[#allocation2 + $0x158] sm:$0xff] %v10623_v5  ;;  %v10626_v14 = vpack.c.bf16 %v1890_v11, %v1889_v9  ;;  %v1893_v16 = vld [vmem:[%s15885_s0 + $0x300] sm:$0xff] }
 0x149   : > { %4265 = vst [vmem:[#allocation2 + $0x160] sm:$0xff] %v10624_v6  ;;  %v10627_v15 = vpack.c.bf16 %v1892_v13, %v1891_v12  ;;  %v1894_v17 = vld [vmem:[%s15885_s0 + $0x308] sm:$0xff]  ;;  %v1895_v18 = vld [vmem:[%s15885_s0 + $0x310] sm:$0xff]  ;;  %v1896_v20 = vld [vmem:[%s15885_s0 + $0x318] sm:$0xff] }
 0x14a   : > { %4266 = vst [vmem:[#allocation2 + $0x168] sm:$0xff] %v10625_v10  ;;  %v10628_v19 = vpack.c.bf16 %v1894_v17, %v1893_v16  ;;  %v1897_v21 = vld [vmem:[%s15885_s0 + $0x320] sm:$0xff]  ;;  %v1898_v22 = vld [vmem:[%s15885_s0 + $0x328] sm:$0xff]  ;;  %4267 = vst [vmem:[#allocation2 + $0x170] sm:$0xff] %v10626_v14  ;;  %v10629_v23 = vpack.c.bf16 %v1896_v20, %v1895_v18 }
 0x14b   : > { %4268 = vst [vmem:[#allocation2 + $0x178] sm:$0xff] %v10627_v15  ;;  %v10630_v24 = vpack.c.bf16 %v1898_v22, %v1897_v21  ;;  %v1899_v25 = vld [vmem:[%s15885_s0 + $0x330] sm:$0xff]  ;;  %v1900_v26 = vld [vmem:[%s15885_s0 + $0x338] sm:$0xff]  ;;  %v1901_v27 = vld [vmem:[%s15885_s0 + $0x340] sm:$0xff] }
 0x14c   : > { %4269 = vst [vmem:[#allocation2 + $0x180] sm:$0xff] %v10628_v19  ;;  %v10631_v28 = vpack.c.bf16 %v1900_v26, %v1899_v25  ;;  %v1902_v29 = vld [vmem:[%s15885_s0 + $0x348] sm:$0xff]  ;;  %v1903_v30 = vld [vmem:[%s15885_s0 + $0x350] sm:$0xff]  ;;  %v1904_v31 = vld [vmem:[%s15885_s0 + $0x358] sm:$0xff] }
 0x14d   : > { %4270 = vst [vmem:[#allocation2 + $0x188] sm:$0xff] %v10629_v23  ;;  %4271 = vst [vmem:[#allocation2 + $0x190] sm:$0xff] %v10630_v24  ;;  %v10632_v32 = vpack.c.bf16 %v1902_v29, %v1901_v27  ;;  %v10633_v33 = vpack.c.bf16 %v1904_v31, %v1903_v30  ;;  %v1905_v34 = vld [vmem:[%s15885_s0 + $0x360] sm:$0xff]  ;;  %v1906_v35 = vld [vmem:[%s15885_s0 + $0x368] sm:$0xff] }
 0x14e   : > { %v1907_v36 = vld [vmem:[%s15885_s0 + $0x370] sm:$0xff]  ;;  %4272 = vst [vmem:[#allocation2 + $0x198] sm:$0xff] %v10631_v28  ;;  %v10634_v37 = vpack.c.bf16 %v1906_v35, %v1905_v34  ;;  %v1908_v38 = vld [vmem:[%s15885_s0 + $0x378] sm:$0xff]  ;;  %v1909_v39 = vld [vmem:[%s15885_s0 + $0x380] sm:$0xff] }
 0x14f   : > { %v1910_v40 = vld [vmem:[%s15885_s0 + $0x388] sm:$0xff]  ;;  %4273 = vst [vmem:[#allocation2 + $0x1a0] sm:$0xff] %v10632_v32  ;;  %4274 = vst [vmem:[#allocation2 + $0x1a8] sm:$0xff] %v10633_v33  ;;  %v10635_v41 = vpack.c.bf16 %v1908_v38, %v1907_v36  ;;  %v1911_v43 = vld [vmem:[%s15885_s0 + $0x390] sm:$0xff] }
 0x150   : > { %v10636_v42 = vpack.c.bf16 %v1910_v40, %v1909_v39  ;;  %v1912_v44 = vld [vmem:[%s15885_s0 + $0x398] sm:$0xff]  ;;  %v1913_v45 = vld [vmem:[%s15885_s0 + $0x3a0] sm:$0xff]  ;;  %4275 = vst [vmem:[#allocation2 + $0x1b0] sm:$0xff] %v10634_v37  ;;  %v1914_v47 = vld [vmem:[%s15885_s0 + $0x3a8] sm:$0xff] }
 0x151   : > { %v10637_v46 = vpack.c.bf16 %v1912_v44, %v1911_v43  ;;  %v1915_v48 = vld [vmem:[%s15885_s0 + $0x3b0] sm:$0xff]  ;;  %v1916_v49 = vld [vmem:[%s15885_s0 + $0x3b8] sm:$0xff]  ;;  %4276 = vst [vmem:[#allocation2 + $0x1b8] sm:$0xff] %v10635_v41  ;;  %v10638_v50 = vpack.c.bf16 %v1914_v47, %v1913_v45  ;;  %v1917_v52 = vld [vmem:[%s15885_s0 + $0x3c0] sm:$0xff] }
 0x152   : > { %4277 = vst [vmem:[#allocation2 + $0x1c0] sm:$0xff] %v10636_v42  ;;  %v10639_v51 = vpack.c.bf16 %v1916_v49, %v1915_v48  ;;  %v1918_v53 = vld [vmem:[%s15885_s0 + $0x3c8] sm:$0xff]  ;;  %v1919_v54 = vld [vmem:[%s15885_s0 + $0x3d0] sm:$0xff]  ;;  %v1920_v56 = vld [vmem:[%s15885_s0 + $0x3d8] sm:$0xff] }
 0x153   : > { %4278 = vst [vmem:[#allocation2 + $0x1c8] sm:$0xff] %v10637_v46  ;;  %v10640_v55 = vpack.c.bf16 %v1918_v53, %v1917_v52  ;;  %v1921_v57 = vld [vmem:[%s15885_s0 + $0x3e0] sm:$0xff]  ;;  %v1922_v58 = vld [vmem:[%s15885_s0 + $0x3e8] sm:$0xff]  ;;  %4279 = vst [vmem:[#allocation2 + $0x1d0] sm:$0xff] %v10638_v50  ;;  %v10641_v59 = vpack.c.bf16 %v1920_v56, %v1919_v54 }
 0x154   : > { %4280 = vst [vmem:[#allocation2 + $0x1d8] sm:$0xff] %v10639_v51  ;;  %v10642_v60 = vpack.c.bf16 %v1922_v58, %v1921_v57  ;;  %v1923_v61 = vld [vmem:[%s15885_s0 + $0x3f0] sm:$0xff]  ;;  %v1924_v62 = vld [vmem:[%s15885_s0 + $0x3f8] sm:$0xff]  ;;  %v1925_v63 = vld [vmem:[%s15885_s0 + $0x400] sm:$0xff] }
 0x155   : > { %4281 = vst [vmem:[#allocation2 + $0x1e0] sm:$0xff] %v10640_v55  ;;  %v10643_v0 = vpack.c.bf16 %v1924_v62, %v1923_v61  ;;  %v1926_v1 = vld [vmem:[%s15885_s0 + $0x408] sm:$0xff]  ;;  %v1927_v2 = vld [vmem:[%s15885_s0 + $0x410] sm:$0xff]  ;;  %v1928_v3 = vld [vmem:[%s15885_s0 + $0x418] sm:$0xff] }
 0x156   : > { %4282 = vst [vmem:[#allocation2 + $0x1e8] sm:$0xff] %v10641_v59  ;;  %4283 = vst [vmem:[#allocation2 + $0x1f0] sm:$0xff] %v10642_v60  ;;  %v10644_v4 = vpack.c.bf16 %v1926_v1, %v1925_v63  ;;  %v10645_v5 = vpack.c.bf16 %v1928_v3, %v1927_v2  ;;  %v1929_v6 = vld [vmem:[%s15885_s0 + $0x420] sm:$0xff]  ;;  %v1930_v7 = vld [vmem:[%s15885_s0 + $0x428] sm:$0xff] }
 0x157   : > { %v1931_v8 = vld [vmem:[%s15885_s0 + $0x430] sm:$0xff]  ;;  %4284 = vst [vmem:[#allocation2 + $0x1f8] sm:$0xff] %v10643_v0  ;;  %v10646_v9 = vpack.c.bf16 %v1930_v7, %v1929_v6  ;;  %v1932_v10 = vld [vmem:[%s15885_s0 + $0x438] sm:$0xff]  ;;  %v1933_v11 = vld [vmem:[%s15885_s0 + $0x440] sm:$0xff] }
 0x158   : > { %v1934_v12 = vld [vmem:[%s15885_s0 + $0x448] sm:$0xff]  ;;  %4285 = vst [vmem:[#allocation2 + $0x200] sm:$0xff] %v10644_v4  ;;  %4286 = vst [vmem:[#allocation2 + $0x208] sm:$0xff] %v10645_v5  ;;  %v10647_v13 = vpack.c.bf16 %v1932_v10, %v1931_v8  ;;  %v1935_v15 = vld [vmem:[%s15885_s0 + $0x450] sm:$0xff] }
 0x159   : > { %v10648_v14 = vpack.c.bf16 %v1934_v12, %v1933_v11  ;;  %v1936_v16 = vld [vmem:[%s15885_s0 + $0x458] sm:$0xff]  ;;  %v1937_v17 = vld [vmem:[%s15885_s0 + $0x460] sm:$0xff]  ;;  %4287 = vst [vmem:[#allocation2 + $0x210] sm:$0xff] %v10646_v9  ;;  %v1938_v19 = vld [vmem:[%s15885_s0 + $0x468] sm:$0xff] }
 0x15a   : > { %v10649_v18 = vpack.c.bf16 %v1936_v16, %v1935_v15  ;;  %v1939_v20 = vld [vmem:[%s15885_s0 + $0x470] sm:$0xff]  ;;  %v1940_v21 = vld [vmem:[%s15885_s0 + $0x478] sm:$0xff]  ;;  %4288 = vst [vmem:[#allocation2 + $0x218] sm:$0xff] %v10647_v13  ;;  %v10650_v22 = vpack.c.bf16 %v1938_v19, %v1937_v17  ;;  %v1941_v24 = vld [vmem:[%s15885_s0 + $0x480] sm:$0xff] }
 0x15b   : > { %4289 = vst [vmem:[#allocation2 + $0x220] sm:$0xff] %v10648_v14  ;;  %v10651_v23 = vpack.c.bf16 %v1940_v21, %v1939_v20  ;;  %v1942_v25 = vld [vmem:[%s15885_s0 + $0x488] sm:$0xff]  ;;  %v1943_v26 = vld [vmem:[%s15885_s0 + $0x490] sm:$0xff]  ;;  %v1944_v28 = vld [vmem:[%s15885_s0 + $0x498] sm:$0xff] }
 0x15c   : > { %4290 = vst [vmem:[#allocation2 + $0x228] sm:$0xff] %v10649_v18  ;;  %v10652_v27 = vpack.c.bf16 %v1942_v25, %v1941_v24  ;;  %v1945_v29 = vld [vmem:[%s15885_s0 + $0x4a0] sm:$0xff]  ;;  %v1946_v30 = vld [vmem:[%s15885_s0 + $0x4a8] sm:$0xff]  ;;  %4291 = vst [vmem:[#allocation2 + $0x230] sm:$0xff] %v10650_v22  ;;  %v10653_v31 = vpack.c.bf16 %v1944_v28, %v1943_v26 }
 0x15d   : > { %4292 = vst [vmem:[#allocation2 + $0x238] sm:$0xff] %v10651_v23  ;;  %v10654_v32 = vpack.c.bf16 %v1946_v30, %v1945_v29  ;;  %v1947_v33 = vld [vmem:[%s15885_s0 + $0x4b0] sm:$0xff]  ;;  %v1948_v34 = vld [vmem:[%s15885_s0 + $0x4b8] sm:$0xff]  ;;  %v1949_v35 = vld [vmem:[%s15885_s0 + $0x4c0] sm:$0xff] }
 0x15e   : > { %4293 = vst [vmem:[#allocation2 + $0x240] sm:$0xff] %v10652_v27  ;;  %v10655_v36 = vpack.c.bf16 %v1948_v34, %v1947_v33  ;;  %v1950_v37 = vld [vmem:[%s15885_s0 + $0x4c8] sm:$0xff]  ;;  %v1951_v38 = vld [vmem:[%s15885_s0 + $0x4d0] sm:$0xff]  ;;  %v1952_v39 = vld [vmem:[%s15885_s0 + $0x4d8] sm:$0xff] }
 0x15f   : > { %4294 = vst [vmem:[#allocation2 + $0x248] sm:$0xff] %v10653_v31  ;;  %4295 = vst [vmem:[#allocation2 + $0x250] sm:$0xff] %v10654_v32  ;;  %v10656_v40 = vpack.c.bf16 %v1950_v37, %v1949_v35  ;;  %v10657_v41 = vpack.c.bf16 %v1952_v39, %v1951_v38  ;;  %v1953_v42 = vld [vmem:[%s15885_s0 + $0x4e0] sm:$0xff]  ;;  %v1954_v43 = vld [vmem:[%s15885_s0 + $0x4e8] sm:$0xff] }
 0x160   : > { %v1955_v44 = vld [vmem:[%s15885_s0 + $0x4f0] sm:$0xff]  ;;  %4296 = vst [vmem:[#allocation2 + $0x258] sm:$0xff] %v10655_v36  ;;  %v10658_v45 = vpack.c.bf16 %v1954_v43, %v1953_v42  ;;  %v1956_v46 = vld [vmem:[%s15885_s0 + $0x4f8] sm:$0xff]  ;;  %v1957_v47 = vld [vmem:[%s15885_s0 + $0x500] sm:$0xff] }
 0x161   : > { %v1958_v48 = vld [vmem:[%s15885_s0 + $0x508] sm:$0xff]  ;;  %4297 = vst [vmem:[#allocation2 + $0x260] sm:$0xff] %v10656_v40  ;;  %4298 = vst [vmem:[#allocation2 + $0x268] sm:$0xff] %v10657_v41  ;;  %v10659_v49 = vpack.c.bf16 %v1956_v46, %v1955_v44  ;;  %v1959_v51 = vld [vmem:[%s15885_s0 + $0x510] sm:$0xff] }
 0x162   : > { %v10660_v50 = vpack.c.bf16 %v1958_v48, %v1957_v47  ;;  %v1960_v52 = vld [vmem:[%s15885_s0 + $0x518] sm:$0xff]  ;;  %v1961_v53 = vld [vmem:[%s15885_s0 + $0x520] sm:$0xff]  ;;  %4299 = vst [vmem:[#allocation2 + $0x270] sm:$0xff] %v10658_v45  ;;  %v1962_v55 = vld [vmem:[%s15885_s0 + $0x528] sm:$0xff] }
 0x163   : > { %v10661_v54 = vpack.c.bf16 %v1960_v52, %v1959_v51  ;;  %v1963_v56 = vld [vmem:[%s15885_s0 + $0x530] sm:$0xff]  ;;  %v1964_v57 = vld [vmem:[%s15885_s0 + $0x538] sm:$0xff]  ;;  %4300 = vst [vmem:[#allocation2 + $0x278] sm:$0xff] %v10659_v49  ;;  %v10662_v58 = vpack.c.bf16 %v1962_v55, %v1961_v53  ;;  %v1965_v60 = vld [vmem:[%s15885_s0 + $0x540] sm:$0xff] }
 0x164   : > { %4301 = vst [vmem:[#allocation2 + $0x280] sm:$0xff] %v10660_v50  ;;  %v10663_v59 = vpack.c.bf16 %v1964_v57, %v1963_v56  ;;  %v1966_v61 = vld [vmem:[%s15885_s0 + $0x548] sm:$0xff]  ;;  %v1967_v62 = vld [vmem:[%s15885_s0 + $0x550] sm:$0xff]  ;;  %v1968_v0 = vld [vmem:[%s15885_s0 + $0x558] sm:$0xff] }
 0x165   : > { %4302 = vst [vmem:[#allocation2 + $0x288] sm:$0xff] %v10661_v54  ;;  %v10664_v63 = vpack.c.bf16 %v1966_v61, %v1965_v60  ;;  %v1969_v1 = vld [vmem:[%s15885_s0 + $0x560] sm:$0xff]  ;;  %v1970_v2 = vld [vmem:[%s15885_s0 + $0x568] sm:$0xff]  ;;  %4303 = vst [vmem:[#allocation2 + $0x290] sm:$0xff] %v10662_v58  ;;  %v10665_v3 = vpack.c.bf16 %v1968_v0, %v1967_v62 }
 0x166   : > { %4304 = vst [vmem:[#allocation2 + $0x298] sm:$0xff] %v10663_v59  ;;  %v10666_v4 = vpack.c.bf16 %v1970_v2, %v1969_v1  ;;  %v1971_v5 = vld [vmem:[%s15885_s0 + $0x570] sm:$0xff]  ;;  %v1972_v6 = vld [vmem:[%s15885_s0 + $0x578] sm:$0xff]  ;;  %v1973_v7 = vld [vmem:[%s15885_s0 + $0x580] sm:$0xff] }
 0x167   : > { %4305 = vst [vmem:[#allocation2 + $0x2a0] sm:$0xff] %v10664_v63  ;;  %v10667_v8 = vpack.c.bf16 %v1972_v6, %v1971_v5  ;;  %v1974_v9 = vld [vmem:[%s15885_s0 + $0x588] sm:$0xff]  ;;  %v1975_v10 = vld [vmem:[%s15885_s0 + $0x590] sm:$0xff]  ;;  %v1976_v11 = vld [vmem:[%s15885_s0 + $0x598] sm:$0xff] }
 0x168   : > { %4306 = vst [vmem:[#allocation2 + $0x2a8] sm:$0xff] %v10665_v3  ;;  %4307 = vst [vmem:[#allocation2 + $0x2b0] sm:$0xff] %v10666_v4  ;;  %v10668_v12 = vpack.c.bf16 %v1974_v9, %v1973_v7  ;;  %v10669_v13 = vpack.c.bf16 %v1976_v11, %v1975_v10  ;;  %v1977_v14 = vld [vmem:[%s15885_s0 + $0x5a0] sm:$0xff]  ;;  %v1978_v15 = vld [vmem:[%s15885_s0 + $0x5a8] sm:$0xff] }
 0x169   : > { %v1979_v16 = vld [vmem:[%s15885_s0 + $0x5b0] sm:$0xff]  ;;  %4308 = vst [vmem:[#allocation2 + $0x2b8] sm:$0xff] %v10667_v8  ;;  %v10670_v17 = vpack.c.bf16 %v1978_v15, %v1977_v14  ;;  %v1980_v18 = vld [vmem:[%s15885_s0 + $0x5b8] sm:$0xff]  ;;  %v1981_v19 = vld [vmem:[%s15885_s0 + $0x5c0] sm:$0xff] }
 0x16a   : > { %v1982_v20 = vld [vmem:[%s15885_s0 + $0x5c8] sm:$0xff]  ;;  %4309 = vst [vmem:[#allocation2 + $0x2c0] sm:$0xff] %v10668_v12  ;;  %4310 = vst [vmem:[#allocation2 + $0x2c8] sm:$0xff] %v10669_v13  ;;  %v10671_v21 = vpack.c.bf16 %v1980_v18, %v1979_v16  ;;  %v1983_v23 = vld [vmem:[%s15885_s0 + $0x5d0] sm:$0xff] }
 0x16b   : > { %v10672_v22 = vpack.c.bf16 %v1982_v20, %v1981_v19  ;;  %v1984_v24 = vld [vmem:[%s15885_s0 + $0x5d8] sm:$0xff]  ;;  %v1985_v25 = vld [vmem:[%s15885_s0 + $0x5e0] sm:$0xff]  ;;  %4311 = vst [vmem:[#allocation2 + $0x2d0] sm:$0xff] %v10670_v17  ;;  %v1986_v27 = vld [vmem:[%s15885_s0 + $0x5e8] sm:$0xff] }
 0x16c   : > { %v10673_v26 = vpack.c.bf16 %v1984_v24, %v1983_v23  ;;  %v1987_v28 = vld [vmem:[%s15885_s0 + $0x5f0] sm:$0xff]  ;;  %v1988_v29 = vld [vmem:[%s15885_s0 + $0x5f8] sm:$0xff]  ;;  %4312 = vst [vmem:[#allocation2 + $0x2d8] sm:$0xff] %v10671_v21  ;;  %v10674_v30 = vpack.c.bf16 %v1986_v27, %v1985_v25  ;;  %v1989_v32 = vld [vmem:[%s15885_s0 + $0x600] sm:$0xff] }
 0x16d   : > { %4313 = vst [vmem:[#allocation2 + $0x2e0] sm:$0xff] %v10672_v22  ;;  %v10675_v31 = vpack.c.bf16 %v1988_v29, %v1987_v28  ;;  %v1990_v33 = vld [vmem:[%s15885_s0 + $0x608] sm:$0xff]  ;;  %v1991_v34 = vld [vmem:[%s15885_s0 + $0x610] sm:$0xff]  ;;  %v1992_v36 = vld [vmem:[%s15885_s0 + $0x618] sm:$0xff] }
 0x16e   : > { %4314 = vst [vmem:[#allocation2 + $0x2e8] sm:$0xff] %v10673_v26  ;;  %v10676_v35 = vpack.c.bf16 %v1990_v33, %v1989_v32  ;;  %v1993_v37 = vld [vmem:[%s15885_s0 + $0x620] sm:$0xff]  ;;  %v1994_v38 = vld [vmem:[%s15885_s0 + $0x628] sm:$0xff]  ;;  %4315 = vst [vmem:[#allocation2 + $0x2f0] sm:$0xff] %v10674_v30  ;;  %v10677_v39 = vpack.c.bf16 %v1992_v36, %v1991_v34 }
 0x16f   : > { %4316 = vst [vmem:[#allocation2 + $0x2f8] sm:$0xff] %v10675_v31  ;;  %v10678_v40 = vpack.c.bf16 %v1994_v38, %v1993_v37  ;;  %v1995_v41 = vld [vmem:[%s15885_s0 + $0x630] sm:$0xff]  ;;  %v1996_v42 = vld [vmem:[%s15885_s0 + $0x638] sm:$0xff]  ;;  %v1997_v43 = vld [vmem:[%s15885_s0 + $0x640] sm:$0xff] }
 0x170   : > { %4317 = vst [vmem:[#allocation2 + $0x300] sm:$0xff] %v10676_v35  ;;  %v10679_v44 = vpack.c.bf16 %v1996_v42, %v1995_v41  ;;  %v1998_v45 = vld [vmem:[%s15885_s0 + $0x648] sm:$0xff]  ;;  %v1999_v46 = vld [vmem:[%s15885_s0 + $0x650] sm:$0xff]  ;;  %v2000_v47 = vld [vmem:[%s15885_s0 + $0x658] sm:$0xff] }
 0x171   : > { %4318 = vst [vmem:[#allocation2 + $0x308] sm:$0xff] %v10677_v39  ;;  %4319 = vst [vmem:[#allocation2 + $0x310] sm:$0xff] %v10678_v40  ;;  %v10680_v48 = vpack.c.bf16 %v1998_v45, %v1997_v43  ;;  %v10681_v49 = vpack.c.bf16 %v2000_v47, %v1999_v46  ;;  %v2001_v50 = vld [vmem:[%s15885_s0 + $0x660] sm:$0xff]  ;;  %v2002_v51 = vld [vmem:[%s15885_s0 + $0x668] sm:$0xff] }
 0x172   : > { %v2003_v52 = vld [vmem:[%s15885_s0 + $0x670] sm:$0xff]  ;;  %4320 = vst [vmem:[#allocation2 + $0x318] sm:$0xff] %v10679_v44  ;;  %v10682_v53 = vpack.c.bf16 %v2002_v51, %v2001_v50  ;;  %v2004_v54 = vld [vmem:[%s15885_s0 + $0x678] sm:$0xff]  ;;  %v2005_v55 = vld [vmem:[%s15885_s0 + $0x680] sm:$0xff] }
 0x173   : > { %v2006_v56 = vld [vmem:[%s15885_s0 + $0x688] sm:$0xff]  ;;  %4321 = vst [vmem:[#allocation2 + $0x320] sm:$0xff] %v10680_v48  ;;  %4322 = vst [vmem:[#allocation2 + $0x328] sm:$0xff] %v10681_v49  ;;  %v10683_v57 = vpack.c.bf16 %v2004_v54, %v2003_v52  ;;  %v2007_v59 = vld [vmem:[%s15885_s0 + $0x690] sm:$0xff] }
 0x174   : > { %v10684_v58 = vpack.c.bf16 %v2006_v56, %v2005_v55  ;;  %v2008_v60 = vld [vmem:[%s15885_s0 + $0x698] sm:$0xff]  ;;  %v2009_v61 = vld [vmem:[%s15885_s0 + $0x6a0] sm:$0xff]  ;;  %4323 = vst [vmem:[#allocation2 + $0x330] sm:$0xff] %v10682_v53  ;;  %v2010_v63 = vld [vmem:[%s15885_s0 + $0x6a8] sm:$0xff] }
 0x175   : > { %v10685_v62 = vpack.c.bf16 %v2008_v60, %v2007_v59  ;;  %v2011_v0 = vld [vmem:[%s15885_s0 + $0x6b0] sm:$0xff]  ;;  %v2012_v1 = vld [vmem:[%s15885_s0 + $0x6b8] sm:$0xff]  ;;  %4324 = vst [vmem:[#allocation2 + $0x338] sm:$0xff] %v10683_v57  ;;  %v10686_v2 = vpack.c.bf16 %v2010_v63, %v2009_v61  ;;  %v2013_v4 = vld [vmem:[%s15885_s0 + $0x6c0] sm:$0xff] }
 0x176   : > { %4325 = vst [vmem:[#allocation2 + $0x340] sm:$0xff] %v10684_v58  ;;  %v10687_v3 = vpack.c.bf16 %v2012_v1, %v2011_v0  ;;  %v2014_v5 = vld [vmem:[%s15885_s0 + $0x6c8] sm:$0xff]  ;;  %v2015_v6 = vld [vmem:[%s15885_s0 + $0x6d0] sm:$0xff]  ;;  %v2016_v8 = vld [vmem:[%s15885_s0 + $0x6d8] sm:$0xff] }
 0x177   : > { %4326 = vst [vmem:[#allocation2 + $0x348] sm:$0xff] %v10685_v62  ;;  %v10688_v7 = vpack.c.bf16 %v2014_v5, %v2013_v4  ;;  %v2017_v9 = vld [vmem:[%s15885_s0 + $0x6e0] sm:$0xff]  ;;  %v2018_v10 = vld [vmem:[%s15885_s0 + $0x6e8] sm:$0xff]  ;;  %4327 = vst [vmem:[#allocation2 + $0x350] sm:$0xff] %v10686_v2  ;;  %v10689_v11 = vpack.c.bf16 %v2016_v8, %v2015_v6 }
 0x178   : > { %4328 = vst [vmem:[#allocation2 + $0x358] sm:$0xff] %v10687_v3  ;;  %v10690_v12 = vpack.c.bf16 %v2018_v10, %v2017_v9  ;;  %v2019_v13 = vld [vmem:[%s15885_s0 + $0x6f0] sm:$0xff]  ;;  %v2020_v14 = vld [vmem:[%s15885_s0 + $0x6f8] sm:$0xff]  ;;  %v2021_v15 = vld [vmem:[%s15885_s0 + $0x700] sm:$0xff] }
 0x179   : > { %4329 = vst [vmem:[#allocation2 + $0x360] sm:$0xff] %v10688_v7  ;;  %v10691_v16 = vpack.c.bf16 %v2020_v14, %v2019_v13  ;;  %v2022_v17 = vld [vmem:[%s15885_s0 + $0x708] sm:$0xff]  ;;  %v2023_v18 = vld [vmem:[%s15885_s0 + $0x710] sm:$0xff]  ;;  %v2024_v19 = vld [vmem:[%s15885_s0 + $0x718] sm:$0xff] }
 0x17a   : > { %4330 = vst [vmem:[#allocation2 + $0x368] sm:$0xff] %v10689_v11  ;;  %4331 = vst [vmem:[#allocation2 + $0x370] sm:$0xff] %v10690_v12  ;;  %v10692_v20 = vpack.c.bf16 %v2022_v17, %v2021_v15  ;;  %v10693_v21 = vpack.c.bf16 %v2024_v19, %v2023_v18  ;;  %v2025_v22 = vld [vmem:[%s15885_s0 + $0x720] sm:$0xff]  ;;  %v2026_v23 = vld [vmem:[%s15885_s0 + $0x728] sm:$0xff] }
 0x17b   : > { %v2027_v24 = vld [vmem:[%s15885_s0 + $0x730] sm:$0xff]  ;;  %4332 = vst [vmem:[#allocation2 + $0x378] sm:$0xff] %v10691_v16  ;;  %v10694_v25 = vpack.c.bf16 %v2026_v23, %v2025_v22  ;;  %v2028_v26 = vld [vmem:[%s15885_s0 + $0x738] sm:$0xff]  ;;  %v2029_v27 = vld [vmem:[%s15885_s0 + $0x740] sm:$0xff] }
 0x17c   : > { %v2030_v28 = vld [vmem:[%s15885_s0 + $0x748] sm:$0xff]  ;;  %4333 = vst [vmem:[#allocation2 + $0x380] sm:$0xff] %v10692_v20  ;;  %4334 = vst [vmem:[#allocation2 + $0x388] sm:$0xff] %v10693_v21  ;;  %v10695_v29 = vpack.c.bf16 %v2028_v26, %v2027_v24  ;;  %v2031_v31 = vld [vmem:[%s15885_s0 + $0x750] sm:$0xff] }
 0x17d   : > { %v10696_v30 = vpack.c.bf16 %v2030_v28, %v2029_v27  ;;  %v2032_v32 = vld [vmem:[%s15885_s0 + $0x758] sm:$0xff]  ;;  %v2033_v33 = vld [vmem:[%s15885_s0 + $0x760] sm:$0xff]  ;;  %4335 = vst [vmem:[#allocation2 + $0x390] sm:$0xff] %v10694_v25  ;;  %v2034_v35 = vld [vmem:[%s15885_s0 + $0x768] sm:$0xff] }
 0x17e   : > { %v10697_v34 = vpack.c.bf16 %v2032_v32, %v2031_v31  ;;  %v2035_v36 = vld [vmem:[%s15885_s0 + $0x770] sm:$0xff]  ;;  %v2036_v37 = vld [vmem:[%s15885_s0 + $0x778] sm:$0xff]  ;;  %4336 = vst [vmem:[#allocation2 + $0x398] sm:$0xff] %v10695_v29  ;;  %v10698_v38 = vpack.c.bf16 %v2034_v35, %v2033_v33  ;;  %v2037_v40 = vld [vmem:[%s15885_s0 + $0x780] sm:$0xff] }
 0x17f   : > { %4337 = vst [vmem:[#allocation2 + $0x3a0] sm:$0xff] %v10696_v30  ;;  %v10699_v39 = vpack.c.bf16 %v2036_v37, %v2035_v36  ;;  %v2038_v41 = vld [vmem:[%s15885_s0 + $0x788] sm:$0xff]  ;;  %v2039_v42 = vld [vmem:[%s15885_s0 + $0x790] sm:$0xff]  ;;  %v2040_v44 = vld [vmem:[%s15885_s0 + $0x798] sm:$0xff] }
 0x180   : > { %4338 = vst [vmem:[#allocation2 + $0x3a8] sm:$0xff] %v10697_v34  ;;  %v10700_v43 = vpack.c.bf16 %v2038_v41, %v2037_v40  ;;  %v2041_v45 = vld [vmem:[%s15885_s0 + $0x7a0] sm:$0xff]  ;;  %v2042_v46 = vld [vmem:[%s15885_s0 + $0x7a8] sm:$0xff]  ;;  %4339 = vst [vmem:[#allocation2 + $0x3b0] sm:$0xff] %v10698_v38  ;;  %v10701_v47 = vpack.c.bf16 %v2040_v44, %v2039_v42 }
 0x181   : > { %4340 = vst [vmem:[#allocation2 + $0x3b8] sm:$0xff] %v10699_v39  ;;  %v10702_v48 = vpack.c.bf16 %v2042_v46, %v2041_v45  ;;  %v2043_v49 = vld [vmem:[%s15885_s0 + $0x7b0] sm:$0xff]  ;;  %v2044_v50 = vld [vmem:[%s15885_s0 + $0x7b8] sm:$0xff]  ;;  %v2045_v51 = vld [vmem:[%s15885_s0 + $0x7c0] sm:$0xff] }
 0x182   : > { %4341 = vst [vmem:[#allocation2 + $0x3c0] sm:$0xff] %v10700_v43  ;;  %v10703_v52 = vpack.c.bf16 %v2044_v50, %v2043_v49  ;;  %v2046_v53 = vld [vmem:[%s15885_s0 + $0x7c8] sm:$0xff]  ;;  %v2047_v54 = vld [vmem:[%s15885_s0 + $0x7d0] sm:$0xff]  ;;  %v2048_v55 = vld [vmem:[%s15885_s0 + $0x7d8] sm:$0xff] }
 0x183   : > { %4342 = vst [vmem:[#allocation2 + $0x3c8] sm:$0xff] %v10701_v47  ;;  %4343 = vst [vmem:[#allocation2 + $0x3d0] sm:$0xff] %v10702_v48  ;;  %v10704_v56 = vpack.c.bf16 %v2046_v53, %v2045_v51  ;;  %v10705_v57 = vpack.c.bf16 %v2048_v55, %v2047_v54  ;;  %v2049_v58 = vld [vmem:[%s15885_s0 + $0x7e0] sm:$0xff]  ;;  %v2050_v59 = vld [vmem:[%s15885_s0 + $0x7e8] sm:$0xff] }
 0x184   : > { %v2051_v60 = vld [vmem:[%s15885_s0 + $0x7f0] sm:$0xff]  ;;  %4344 = vst [vmem:[#allocation2 + $0x3d8] sm:$0xff] %v10703_v52  ;;  %v10706_v61 = vpack.c.bf16 %v2050_v59, %v2049_v58  ;;  %v2052_v62 = vld [vmem:[%s15885_s0 + $0x7f8] sm:$0xff]  ;;  %v2053_v63 = vld [vmem:[%s15885_s0 + $0x800] sm:$0xff] }
 0x185   : > { %v2054_v0 = vld [vmem:[%s15885_s0 + $0x808] sm:$0xff]  ;;  %4345 = vst [vmem:[#allocation2 + $0x3e0] sm:$0xff] %v10704_v56  ;;  %4346 = vst [vmem:[#allocation2 + $0x3e8] sm:$0xff] %v10705_v57  ;;  %v10707_v1 = vpack.c.bf16 %v2052_v62, %v2051_v60  ;;  %v2055_v3 = vld [vmem:[%s15885_s0 + $0x810] sm:$0xff] }
 0x186   : > { %v10708_v2 = vpack.c.bf16 %v2054_v0, %v2053_v63  ;;  %v2056_v4 = vld [vmem:[%s15885_s0 + $0x818] sm:$0xff]  ;;  %v2057_v5 = vld [vmem:[%s15885_s0 + $0x820] sm:$0xff]  ;;  %4347 = vst [vmem:[#allocation2 + $0x3f0] sm:$0xff] %v10706_v61  ;;  %v2058_v7 = vld [vmem:[%s15885_s0 + $0x828] sm:$0xff] }
 0x187   : > { %v10709_v6 = vpack.c.bf16 %v2056_v4, %v2055_v3  ;;  %v2059_v8 = vld [vmem:[%s15885_s0 + $0x830] sm:$0xff]  ;;  %v2060_v9 = vld [vmem:[%s15885_s0 + $0x838] sm:$0xff]  ;;  %4348 = vst [vmem:[#allocation2 + $0x3f8] sm:$0xff] %v10707_v1  ;;  %v10710_v10 = vpack.c.bf16 %v2058_v7, %v2057_v5  ;;  %v2061_v12 = vld [vmem:[%s15885_s0 + $0x840] sm:$0xff] }
 0x188   : > { %4349 = vst [vmem:[#allocation2 + $0x400] sm:$0xff] %v10708_v2  ;;  %v10711_v11 = vpack.c.bf16 %v2060_v9, %v2059_v8  ;;  %v2062_v13 = vld [vmem:[%s15885_s0 + $0x848] sm:$0xff]  ;;  %v2063_v14 = vld [vmem:[%s15885_s0 + $0x850] sm:$0xff]  ;;  %v2064_v16 = vld [vmem:[%s15885_s0 + $0x858] sm:$0xff] }
 0x189   : > { %4350 = vst [vmem:[#allocation2 + $0x408] sm:$0xff] %v10709_v6  ;;  %v10712_v15 = vpack.c.bf16 %v2062_v13, %v2061_v12  ;;  %v2065_v17 = vld [vmem:[%s15885_s0 + $0x860] sm:$0xff]  ;;  %v2066_v18 = vld [vmem:[%s15885_s0 + $0x868] sm:$0xff]  ;;  %4351 = vst [vmem:[#allocation2 + $0x410] sm:$0xff] %v10710_v10  ;;  %v10713_v19 = vpack.c.bf16 %v2064_v16, %v2063_v14 }
 0x18a   : > { %4352 = vst [vmem:[#allocation2 + $0x418] sm:$0xff] %v10711_v11  ;;  %v10714_v20 = vpack.c.bf16 %v2066_v18, %v2065_v17  ;;  %v2067_v21 = vld [vmem:[%s15885_s0 + $0x870] sm:$0xff]  ;;  %v2068_v22 = vld [vmem:[%s15885_s0 + $0x878] sm:$0xff]  ;;  %v2069_v23 = vld [vmem:[%s15885_s0 + $0x880] sm:$0xff] }
 0x18b   : > { %4353 = vst [vmem:[#allocation2 + $0x420] sm:$0xff] %v10712_v15  ;;  %v10715_v24 = vpack.c.bf16 %v2068_v22, %v2067_v21  ;;  %v2070_v25 = vld [vmem:[%s15885_s0 + $0x888] sm:$0xff]  ;;  %v2071_v26 = vld [vmem:[%s15885_s0 + $0x890] sm:$0xff]  ;;  %v2072_v27 = vld [vmem:[%s15885_s0 + $0x898] sm:$0xff] }
 0x18c   : > { %4354 = vst [vmem:[#allocation2 + $0x428] sm:$0xff] %v10713_v19  ;;  %4355 = vst [vmem:[#allocation2 + $0x430] sm:$0xff] %v10714_v20  ;;  %v10716_v28 = vpack.c.bf16 %v2070_v25, %v2069_v23  ;;  %v10717_v29 = vpack.c.bf16 %v2072_v27, %v2071_v26  ;;  %v2073_v30 = vld [vmem:[%s15885_s0 + $0x8a0] sm:$0xff]  ;;  %v2074_v31 = vld [vmem:[%s15885_s0 + $0x8a8] sm:$0xff] }
 0x18d   : > { %v2075_v32 = vld [vmem:[%s15885_s0 + $0x8b0] sm:$0xff]  ;;  %4356 = vst [vmem:[#allocation2 + $0x438] sm:$0xff] %v10715_v24  ;;  %v10718_v33 = vpack.c.bf16 %v2074_v31, %v2073_v30  ;;  %v2076_v34 = vld [vmem:[%s15885_s0 + $0x8b8] sm:$0xff]  ;;  %v2077_v35 = vld [vmem:[%s15885_s0 + $0x8c0] sm:$0xff] }
 0x18e   : > { %v2078_v36 = vld [vmem:[%s15885_s0 + $0x8c8] sm:$0xff]  ;;  %4357 = vst [vmem:[#allocation2 + $0x440] sm:$0xff] %v10716_v28  ;;  %4358 = vst [vmem:[#allocation2 + $0x448] sm:$0xff] %v10717_v29  ;;  %v10719_v37 = vpack.c.bf16 %v2076_v34, %v2075_v32  ;;  %v2079_v39 = vld [vmem:[%s15885_s0 + $0x8d0] sm:$0xff] }
 0x18f   : > { %v10720_v38 = vpack.c.bf16 %v2078_v36, %v2077_v35  ;;  %v2080_v40 = vld [vmem:[%s15885_s0 + $0x8d8] sm:$0xff]  ;;  %v2081_v41 = vld [vmem:[%s15885_s0 + $0x8e0] sm:$0xff]  ;;  %4359 = vst [vmem:[#allocation2 + $0x450] sm:$0xff] %v10718_v33  ;;  %v2082_v43 = vld [vmem:[%s15885_s0 + $0x8e8] sm:$0xff] }
 0x190   : > { %v10721_v42 = vpack.c.bf16 %v2080_v40, %v2079_v39  ;;  %v2083_v44 = vld [vmem:[%s15885_s0 + $0x8f0] sm:$0xff]  ;;  %v2084_v45 = vld [vmem:[%s15885_s0 + $0x8f8] sm:$0xff]  ;;  %4360 = vst [vmem:[#allocation2 + $0x458] sm:$0xff] %v10719_v37  ;;  %v10722_v46 = vpack.c.bf16 %v2082_v43, %v2081_v41  ;;  %v2085_v48 = vld [vmem:[%s15885_s0 + $0x900] sm:$0xff] }
 0x191   : > { %4361 = vst [vmem:[#allocation2 + $0x460] sm:$0xff] %v10720_v38  ;;  %v10723_v47 = vpack.c.bf16 %v2084_v45, %v2083_v44  ;;  %v2086_v49 = vld [vmem:[%s15885_s0 + $0x908] sm:$0xff]  ;;  %v2087_v50 = vld [vmem:[%s15885_s0 + $0x910] sm:$0xff]  ;;  %v2088_v52 = vld [vmem:[%s15885_s0 + $0x918] sm:$0xff] }
 0x192   : > { %4362 = vst [vmem:[#allocation2 + $0x468] sm:$0xff] %v10721_v42  ;;  %v10724_v51 = vpack.c.bf16 %v2086_v49, %v2085_v48  ;;  %v2089_v53 = vld [vmem:[%s15885_s0 + $0x920] sm:$0xff]  ;;  %v2090_v54 = vld [vmem:[%s15885_s0 + $0x928] sm:$0xff]  ;;  %4363 = vst [vmem:[#allocation2 + $0x470] sm:$0xff] %v10722_v46  ;;  %v10725_v55 = vpack.c.bf16 %v2088_v52, %v2087_v50 }
 0x193   : > { %4364 = vst [vmem:[#allocation2 + $0x478] sm:$0xff] %v10723_v47  ;;  %v10726_v56 = vpack.c.bf16 %v2090_v54, %v2089_v53  ;;  %v2091_v57 = vld [vmem:[%s15885_s0 + $0x930] sm:$0xff]  ;;  %v2092_v58 = vld [vmem:[%s15885_s0 + $0x938] sm:$0xff]  ;;  %v2093_v59 = vld [vmem:[%s15885_s0 + $0x940] sm:$0xff] }
 0x194   : > { %4365 = vst [vmem:[#allocation2 + $0x480] sm:$0xff] %v10724_v51  ;;  %v10727_v60 = vpack.c.bf16 %v2092_v58, %v2091_v57  ;;  %v2094_v61 = vld [vmem:[%s15885_s0 + $0x948] sm:$0xff]  ;;  %v2095_v62 = vld [vmem:[%s15885_s0 + $0x950] sm:$0xff]  ;;  %v2096_v63 = vld [vmem:[%s15885_s0 + $0x958] sm:$0xff] }
 0x195   : > { %4366 = vst [vmem:[#allocation2 + $0x488] sm:$0xff] %v10725_v55  ;;  %4367 = vst [vmem:[#allocation2 + $0x490] sm:$0xff] %v10726_v56  ;;  %v10728_v0 = vpack.c.bf16 %v2094_v61, %v2093_v59  ;;  %v10729_v1 = vpack.c.bf16 %v2096_v63, %v2095_v62  ;;  %v2097_v2 = vld [vmem:[%s15885_s0 + $0x960] sm:$0xff]  ;;  %v2098_v3 = vld [vmem:[%s15885_s0 + $0x968] sm:$0xff] }
 0x196   : > { %v2099_v4 = vld [vmem:[%s15885_s0 + $0x970] sm:$0xff]  ;;  %4368 = vst [vmem:[#allocation2 + $0x498] sm:$0xff] %v10727_v60  ;;  %v10730_v5 = vpack.c.bf16 %v2098_v3, %v2097_v2  ;;  %v2100_v6 = vld [vmem:[%s15885_s0 + $0x978] sm:$0xff]  ;;  %v2101_v7 = vld [vmem:[%s15885_s0 + $0x980] sm:$0xff] }
 0x197   : > { %v2102_v8 = vld [vmem:[%s15885_s0 + $0x988] sm:$0xff]  ;;  %4369 = vst [vmem:[#allocation2 + $0x4a0] sm:$0xff] %v10728_v0  ;;  %4370 = vst [vmem:[#allocation2 + $0x4a8] sm:$0xff] %v10729_v1  ;;  %v10731_v9 = vpack.c.bf16 %v2100_v6, %v2099_v4  ;;  %v2103_v11 = vld [vmem:[%s15885_s0 + $0x990] sm:$0xff] }
 0x198   : > { %v10732_v10 = vpack.c.bf16 %v2102_v8, %v2101_v7  ;;  %v2104_v12 = vld [vmem:[%s15885_s0 + $0x998] sm:$0xff]  ;;  %v2105_v13 = vld [vmem:[%s15885_s0 + $0x9a0] sm:$0xff]  ;;  %4371 = vst [vmem:[#allocation2 + $0x4b0] sm:$0xff] %v10730_v5  ;;  %v2106_v15 = vld [vmem:[%s15885_s0 + $0x9a8] sm:$0xff] }
 0x199   : > { %v10733_v14 = vpack.c.bf16 %v2104_v12, %v2103_v11  ;;  %v2107_v16 = vld [vmem:[%s15885_s0 + $0x9b0] sm:$0xff]  ;;  %v2108_v17 = vld [vmem:[%s15885_s0 + $0x9b8] sm:$0xff]  ;;  %4372 = vst [vmem:[#allocation2 + $0x4b8] sm:$0xff] %v10731_v9  ;;  %v10734_v18 = vpack.c.bf16 %v2106_v15, %v2105_v13  ;;  %v2109_v20 = vld [vmem:[%s15885_s0 + $0x9c0] sm:$0xff] }
 0x19a   : > { %4373 = vst [vmem:[#allocation2 + $0x4c0] sm:$0xff] %v10732_v10  ;;  %v10735_v19 = vpack.c.bf16 %v2108_v17, %v2107_v16  ;;  %v2110_v21 = vld [vmem:[%s15885_s0 + $0x9c8] sm:$0xff]  ;;  %v2111_v22 = vld [vmem:[%s15885_s0 + $0x9d0] sm:$0xff]  ;;  %v2112_v24 = vld [vmem:[%s15885_s0 + $0x9d8] sm:$0xff] }
 0x19b   : > { %4374 = vst [vmem:[#allocation2 + $0x4c8] sm:$0xff] %v10733_v14  ;;  %v10736_v23 = vpack.c.bf16 %v2110_v21, %v2109_v20  ;;  %v2113_v25 = vld [vmem:[%s15885_s0 + $0x9e0] sm:$0xff]  ;;  %v2114_v26 = vld [vmem:[%s15885_s0 + $0x9e8] sm:$0xff]  ;;  %4375 = vst [vmem:[#allocation2 + $0x4d0] sm:$0xff] %v10734_v18  ;;  %v10737_v27 = vpack.c.bf16 %v2112_v24, %v2111_v22 }
 0x19c   : > { %4376 = vst [vmem:[#allocation2 + $0x4d8] sm:$0xff] %v10735_v19  ;;  %v10738_v28 = vpack.c.bf16 %v2114_v26, %v2113_v25  ;;  %v2115_v29 = vld [vmem:[%s15885_s0 + $0x9f0] sm:$0xff]  ;;  %v2116_v30 = vld [vmem:[%s15885_s0 + $0x9f8] sm:$0xff]  ;;  %v2117_v31 = vld [vmem:[%s15885_s0 + $0xa00] sm:$0xff] }
 0x19d   : > { %4377 = vst [vmem:[#allocation2 + $0x4e0] sm:$0xff] %v10736_v23  ;;  %v10739_v32 = vpack.c.bf16 %v2116_v30, %v2115_v29  ;;  %v2118_v33 = vld [vmem:[%s15885_s0 + $0xa08] sm:$0xff]  ;;  %v2119_v34 = vld [vmem:[%s15885_s0 + $0xa10] sm:$0xff]  ;;  %v2120_v35 = vld [vmem:[%s15885_s0 + $0xa18] sm:$0xff] }
 0x19e   : > { %4378 = vst [vmem:[#allocation2 + $0x4e8] sm:$0xff] %v10737_v27  ;;  %4379 = vst [vmem:[#allocation2 + $0x4f0] sm:$0xff] %v10738_v28  ;;  %v10740_v36 = vpack.c.bf16 %v2118_v33, %v2117_v31  ;;  %v10741_v37 = vpack.c.bf16 %v2120_v35, %v2119_v34  ;;  %v2121_v38 = vld [vmem:[%s15885_s0 + $0xa20] sm:$0xff]  ;;  %v2122_v39 = vld [vmem:[%s15885_s0 + $0xa28] sm:$0xff] }
 0x19f   : > { %v2123_v40 = vld [vmem:[%s15885_s0 + $0xa30] sm:$0xff]  ;;  %4380 = vst [vmem:[#allocation2 + $0x4f8] sm:$0xff] %v10739_v32  ;;  %v10742_v41 = vpack.c.bf16 %v2122_v39, %v2121_v38  ;;  %v2124_v42 = vld [vmem:[%s15885_s0 + $0xa38] sm:$0xff]  ;;  %v2125_v43 = vld [vmem:[%s15885_s0 + $0xa40] sm:$0xff] }
 0x1a0   : > { %v2126_v44 = vld [vmem:[%s15885_s0 + $0xa48] sm:$0xff]  ;;  %4381 = vst [vmem:[#allocation2 + $0x500] sm:$0xff] %v10740_v36  ;;  %4382 = vst [vmem:[#allocation2 + $0x508] sm:$0xff] %v10741_v37  ;;  %v10743_v45 = vpack.c.bf16 %v2124_v42, %v2123_v40  ;;  %v2127_v47 = vld [vmem:[%s15885_s0 + $0xa50] sm:$0xff] }
 0x1a1   : > { %v10744_v46 = vpack.c.bf16 %v2126_v44, %v2125_v43  ;;  %v2128_v48 = vld [vmem:[%s15885_s0 + $0xa58] sm:$0xff]  ;;  %v2129_v49 = vld [vmem:[%s15885_s0 + $0xa60] sm:$0xff]  ;;  %4383 = vst [vmem:[#allocation2 + $0x510] sm:$0xff] %v10742_v41  ;;  %v2130_v51 = vld [vmem:[%s15885_s0 + $0xa68] sm:$0xff] }
 0x1a2   : > { %v10745_v50 = vpack.c.bf16 %v2128_v48, %v2127_v47  ;;  %v2131_v52 = vld [vmem:[%s15885_s0 + $0xa70] sm:$0xff]  ;;  %v2132_v53 = vld [vmem:[%s15885_s0 + $0xa78] sm:$0xff]  ;;  %4384 = vst [vmem:[#allocation2 + $0x518] sm:$0xff] %v10743_v45  ;;  %v10746_v54 = vpack.c.bf16 %v2130_v51, %v2129_v49  ;;  %v2133_v56 = vld [vmem:[%s15885_s0 + $0xa80] sm:$0xff] }
 0x1a3   : > { %4385 = vst [vmem:[#allocation2 + $0x520] sm:$0xff] %v10744_v46  ;;  %v10747_v55 = vpack.c.bf16 %v2132_v53, %v2131_v52  ;;  %v2134_v57 = vld [vmem:[%s15885_s0 + $0xa88] sm:$0xff]  ;;  %v2135_v58 = vld [vmem:[%s15885_s0 + $0xa90] sm:$0xff]  ;;  %v2136_v60 = vld [vmem:[%s15885_s0 + $0xa98] sm:$0xff] }
 0x1a4   : > { %4386 = vst [vmem:[#allocation2 + $0x528] sm:$0xff] %v10745_v50  ;;  %v10748_v59 = vpack.c.bf16 %v2134_v57, %v2133_v56  ;;  %v2137_v61 = vld [vmem:[%s15885_s0 + $0xaa0] sm:$0xff]  ;;  %v2138_v62 = vld [vmem:[%s15885_s0 + $0xaa8] sm:$0xff]  ;;  %4387 = vst [vmem:[#allocation2 + $0x530] sm:$0xff] %v10746_v54  ;;  %v10749_v63 = vpack.c.bf16 %v2136_v60, %v2135_v58 }
 0x1a5   : > { %4388 = vst [vmem:[#allocation2 + $0x538] sm:$0xff] %v10747_v55  ;;  %v10750_v0 = vpack.c.bf16 %v2138_v62, %v2137_v61  ;;  %v2139_v1 = vld [vmem:[%s15885_s0 + $0xab0] sm:$0xff]  ;;  %v2140_v2 = vld [vmem:[%s15885_s0 + $0xab8] sm:$0xff]  ;;  %v2141_v3 = vld [vmem:[%s15885_s0 + $0xac0] sm:$0xff] }
 0x1a6   : > { %4389 = vst [vmem:[#allocation2 + $0x540] sm:$0xff] %v10748_v59  ;;  %v10751_v4 = vpack.c.bf16 %v2140_v2, %v2139_v1  ;;  %v2142_v5 = vld [vmem:[%s15885_s0 + $0xac8] sm:$0xff]  ;;  %v2143_v6 = vld [vmem:[%s15885_s0 + $0xad0] sm:$0xff]  ;;  %v2144_v7 = vld [vmem:[%s15885_s0 + $0xad8] sm:$0xff] }
 0x1a7   : > { %4390 = vst [vmem:[#allocation2 + $0x548] sm:$0xff] %v10749_v63  ;;  %4391 = vst [vmem:[#allocation2 + $0x550] sm:$0xff] %v10750_v0  ;;  %v10752_v8 = vpack.c.bf16 %v2142_v5, %v2141_v3  ;;  %v10753_v9 = vpack.c.bf16 %v2144_v7, %v2143_v6  ;;  %v2145_v10 = vld [vmem:[%s15885_s0 + $0xae0] sm:$0xff]  ;;  %v2146_v11 = vld [vmem:[%s15885_s0 + $0xae8] sm:$0xff] }
 0x1a8   : > { %v2147_v12 = vld [vmem:[%s15885_s0 + $0xaf0] sm:$0xff]  ;;  %4392 = vst [vmem:[#allocation2 + $0x558] sm:$0xff] %v10751_v4  ;;  %v10754_v13 = vpack.c.bf16 %v2146_v11, %v2145_v10  ;;  %v2148_v14 = vld [vmem:[%s15885_s0 + $0xaf8] sm:$0xff]  ;;  %v2149_v15 = vld [vmem:[%s15885_s0 + $0xb00] sm:$0xff] }
 0x1a9   : > { %v2150_v16 = vld [vmem:[%s15885_s0 + $0xb08] sm:$0xff]  ;;  %4393 = vst [vmem:[#allocation2 + $0x560] sm:$0xff] %v10752_v8  ;;  %4394 = vst [vmem:[#allocation2 + $0x568] sm:$0xff] %v10753_v9  ;;  %v10755_v17 = vpack.c.bf16 %v2148_v14, %v2147_v12  ;;  %v2151_v19 = vld [vmem:[%s15885_s0 + $0xb10] sm:$0xff] }
 0x1aa   : > { %v10756_v18 = vpack.c.bf16 %v2150_v16, %v2149_v15  ;;  %v2152_v20 = vld [vmem:[%s15885_s0 + $0xb18] sm:$0xff]  ;;  %v2153_v21 = vld [vmem:[%s15885_s0 + $0xb20] sm:$0xff]  ;;  %4395 = vst [vmem:[#allocation2 + $0x570] sm:$0xff] %v10754_v13  ;;  %v2154_v23 = vld [vmem:[%s15885_s0 + $0xb28] sm:$0xff] }
 0x1ab   : > { %v10757_v22 = vpack.c.bf16 %v2152_v20, %v2151_v19  ;;  %v2155_v24 = vld [vmem:[%s15885_s0 + $0xb30] sm:$0xff]  ;;  %v2156_v25 = vld [vmem:[%s15885_s0 + $0xb38] sm:$0xff]  ;;  %4396 = vst [vmem:[#allocation2 + $0x578] sm:$0xff] %v10755_v17  ;;  %v10758_v26 = vpack.c.bf16 %v2154_v23, %v2153_v21  ;;  %v2157_v28 = vld [vmem:[%s15885_s0 + $0xb40] sm:$0xff] }
 0x1ac   : > { %4397 = vst [vmem:[#allocation2 + $0x580] sm:$0xff] %v10756_v18  ;;  %v10759_v27 = vpack.c.bf16 %v2156_v25, %v2155_v24  ;;  %v2158_v29 = vld [vmem:[%s15885_s0 + $0xb48] sm:$0xff]  ;;  %v2159_v30 = vld [vmem:[%s15885_s0 + $0xb50] sm:$0xff]  ;;  %v2160_v32 = vld [vmem:[%s15885_s0 + $0xb58] sm:$0xff] }
 0x1ad   : > { %4398 = vst [vmem:[#allocation2 + $0x588] sm:$0xff] %v10757_v22  ;;  %v10760_v31 = vpack.c.bf16 %v2158_v29, %v2157_v28  ;;  %v2161_v33 = vld [vmem:[%s15885_s0 + $0xb60] sm:$0xff]  ;;  %v2162_v34 = vld [vmem:[%s15885_s0 + $0xb68] sm:$0xff]  ;;  %4399 = vst [vmem:[#allocation2 + $0x590] sm:$0xff] %v10758_v26  ;;  %v10761_v35 = vpack.c.bf16 %v2160_v32, %v2159_v30 }
 0x1ae   : > { %4400 = vst [vmem:[#allocation2 + $0x598] sm:$0xff] %v10759_v27  ;;  %v10762_v36 = vpack.c.bf16 %v2162_v34, %v2161_v33  ;;  %v2163_v37 = vld [vmem:[%s15885_s0 + $0xb70] sm:$0xff]  ;;  %v2164_v38 = vld [vmem:[%s15885_s0 + $0xb78] sm:$0xff]  ;;  %v2165_v39 = vld [vmem:[%s15885_s0 + $0xb80] sm:$0xff] }
 0x1af   : > { %4401 = vst [vmem:[#allocation2 + $0x5a0] sm:$0xff] %v10760_v31  ;;  %v10763_v40 = vpack.c.bf16 %v2164_v38, %v2163_v37  ;;  %v2166_v41 = vld [vmem:[%s15885_s0 + $0xb88] sm:$0xff]  ;;  %v2167_v42 = vld [vmem:[%s15885_s0 + $0xb90] sm:$0xff]  ;;  %v2168_v43 = vld [vmem:[%s15885_s0 + $0xb98] sm:$0xff] }
 0x1b0   : > { %4402 = vst [vmem:[#allocation2 + $0x5a8] sm:$0xff] %v10761_v35  ;;  %4403 = vst [vmem:[#allocation2 + $0x5b0] sm:$0xff] %v10762_v36  ;;  %v10764_v44 = vpack.c.bf16 %v2166_v41, %v2165_v39  ;;  %v10765_v45 = vpack.c.bf16 %v2168_v43, %v2167_v42  ;;  %v2169_v46 = vld [vmem:[%s15885_s0 + $0xba0] sm:$0xff]  ;;  %v2170_v47 = vld [vmem:[%s15885_s0 + $0xba8] sm:$0xff] }
 0x1b1   : > { %v2171_v48 = vld [vmem:[%s15885_s0 + $0xbb0] sm:$0xff]  ;;  %4404 = vst [vmem:[#allocation2 + $0x5b8] sm:$0xff] %v10763_v40  ;;  %v10766_v49 = vpack.c.bf16 %v2170_v47, %v2169_v46  ;;  %v2172_v50 = vld [vmem:[%s15885_s0 + $0xbb8] sm:$0xff]  ;;  %v2173_v51 = vld [vmem:[%s15885_s0 + $0xbc0] sm:$0xff] }
 0x1b2   : > { %v2174_v52 = vld [vmem:[%s15885_s0 + $0xbc8] sm:$0xff]  ;;  %4405 = vst [vmem:[#allocation2 + $0x5c0] sm:$0xff] %v10764_v44  ;;  %4406 = vst [vmem:[#allocation2 + $0x5c8] sm:$0xff] %v10765_v45  ;;  %v10767_v53 = vpack.c.bf16 %v2172_v50, %v2171_v48  ;;  %v2175_v55 = vld [vmem:[%s15885_s0 + $0xbd0] sm:$0xff] }
 0x1b3   : > { %v10768_v54 = vpack.c.bf16 %v2174_v52, %v2173_v51  ;;  %v2176_v56 = vld [vmem:[%s15885_s0 + $0xbd8] sm:$0xff]  ;;  %v2177_v57 = vld [vmem:[%s15885_s0 + $0xbe0] sm:$0xff]  ;;  %4407 = vst [vmem:[#allocation2 + $0x5d0] sm:$0xff] %v10766_v49  ;;  %v2178_v59 = vld [vmem:[%s15885_s0 + $0xbe8] sm:$0xff] }
 0x1b4   : > { %v10769_v58 = vpack.c.bf16 %v2176_v56, %v2175_v55  ;;  %v2179_v60 = vld [vmem:[%s15885_s0 + $0xbf0] sm:$0xff]  ;;  %v2180_v61 = vld [vmem:[%s15885_s0 + $0xbf8] sm:$0xff]  ;;  %4408 = vst [vmem:[#allocation2 + $0x5d8] sm:$0xff] %v10767_v53  ;;  %v10770_v62 = vpack.c.bf16 %v2178_v59, %v2177_v57  ;;  %v2181_v0 = vld [vmem:[%s15885_s0 + $0xc00] sm:$0xff] }
 0x1b5   : > { %4409 = vst [vmem:[#allocation2 + $0x5e0] sm:$0xff] %v10768_v54  ;;  %v10771_v63 = vpack.c.bf16 %v2180_v61, %v2179_v60  ;;  %v2182_v1 = vld [vmem:[%s15885_s0 + $0xc08] sm:$0xff]  ;;  %v2183_v2 = vld [vmem:[%s15885_s0 + $0xc10] sm:$0xff]  ;;  %v2184_v4 = vld [vmem:[%s15885_s0 + $0xc18] sm:$0xff] }
 0x1b6   : > { %4410 = vst [vmem:[#allocation2 + $0x5e8] sm:$0xff] %v10769_v58  ;;  %v10772_v3 = vpack.c.bf16 %v2182_v1, %v2181_v0  ;;  %v2185_v5 = vld [vmem:[%s15885_s0 + $0xc20] sm:$0xff]  ;;  %v2186_v6 = vld [vmem:[%s15885_s0 + $0xc28] sm:$0xff]  ;;  %4411 = vst [vmem:[#allocation2 + $0x5f0] sm:$0xff] %v10770_v62  ;;  %v10773_v7 = vpack.c.bf16 %v2184_v4, %v2183_v2 }
 0x1b7   : > { %4412 = vst [vmem:[#allocation2 + $0x5f8] sm:$0xff] %v10771_v63  ;;  %v10774_v8 = vpack.c.bf16 %v2186_v6, %v2185_v5  ;;  %v2187_v9 = vld [vmem:[%s15885_s0 + $0xc30] sm:$0xff]  ;;  %v2188_v10 = vld [vmem:[%s15885_s0 + $0xc38] sm:$0xff]  ;;  %v2189_v11 = vld [vmem:[%s15885_s0 + $0xc40] sm:$0xff] }
 0x1b8   : > { %4413 = vst [vmem:[#allocation2 + $0x600] sm:$0xff] %v10772_v3  ;;  %v10775_v12 = vpack.c.bf16 %v2188_v10, %v2187_v9  ;;  %v2190_v13 = vld [vmem:[%s15885_s0 + $0xc48] sm:$0xff]  ;;  %v2191_v14 = vld [vmem:[%s15885_s0 + $0xc50] sm:$0xff]  ;;  %v2192_v15 = vld [vmem:[%s15885_s0 + $0xc58] sm:$0xff] }
 0x1b9   : > { %4414 = vst [vmem:[#allocation2 + $0x608] sm:$0xff] %v10773_v7  ;;  %4415 = vst [vmem:[#allocation2 + $0x610] sm:$0xff] %v10774_v8  ;;  %v10776_v16 = vpack.c.bf16 %v2190_v13, %v2189_v11  ;;  %v10777_v17 = vpack.c.bf16 %v2192_v15, %v2191_v14  ;;  %v2193_v18 = vld [vmem:[%s15885_s0 + $0xc60] sm:$0xff]  ;;  %v2194_v19 = vld [vmem:[%s15885_s0 + $0xc68] sm:$0xff] }
 0x1ba   : > { %v2195_v20 = vld [vmem:[%s15885_s0 + $0xc70] sm:$0xff]  ;;  %4416 = vst [vmem:[#allocation2 + $0x618] sm:$0xff] %v10775_v12  ;;  %v10778_v21 = vpack.c.bf16 %v2194_v19, %v2193_v18  ;;  %v2196_v22 = vld [vmem:[%s15885_s0 + $0xc78] sm:$0xff]  ;;  %v2197_v23 = vld [vmem:[%s15885_s0 + $0xc80] sm:$0xff] }
 0x1bb   : > { %v2198_v24 = vld [vmem:[%s15885_s0 + $0xc88] sm:$0xff]  ;;  %4417 = vst [vmem:[#allocation2 + $0x620] sm:$0xff] %v10776_v16  ;;  %4418 = vst [vmem:[#allocation2 + $0x628] sm:$0xff] %v10777_v17  ;;  %v10779_v25 = vpack.c.bf16 %v2196_v22, %v2195_v20  ;;  %v2199_v27 = vld [vmem:[%s15885_s0 + $0xc90] sm:$0xff] }
 0x1bc   : > { %v10780_v26 = vpack.c.bf16 %v2198_v24, %v2197_v23  ;;  %v2200_v28 = vld [vmem:[%s15885_s0 + $0xc98] sm:$0xff]  ;;  %v2201_v29 = vld [vmem:[%s15885_s0 + $0xca0] sm:$0xff]  ;;  %4419 = vst [vmem:[#allocation2 + $0x630] sm:$0xff] %v10778_v21  ;;  %v2202_v31 = vld [vmem:[%s15885_s0 + $0xca8] sm:$0xff] }
 0x1bd   : > { %v10781_v30 = vpack.c.bf16 %v2200_v28, %v2199_v27  ;;  %v2203_v32 = vld [vmem:[%s15885_s0 + $0xcb0] sm:$0xff]  ;;  %v2204_v33 = vld [vmem:[%s15885_s0 + $0xcb8] sm:$0xff]  ;;  %4420 = vst [vmem:[#allocation2 + $0x638] sm:$0xff] %v10779_v25  ;;  %v10782_v34 = vpack.c.bf16 %v2202_v31, %v2201_v29  ;;  %v2205_v36 = vld [vmem:[%s15885_s0 + $0xcc0] sm:$0xff] }
 0x1be   : > { %4421 = vst [vmem:[#allocation2 + $0x640] sm:$0xff] %v10780_v26  ;;  %v10783_v35 = vpack.c.bf16 %v2204_v33, %v2203_v32  ;;  %v2206_v37 = vld [vmem:[%s15885_s0 + $0xcc8] sm:$0xff]  ;;  %v2207_v38 = vld [vmem:[%s15885_s0 + $0xcd0] sm:$0xff]  ;;  %v2208_v40 = vld [vmem:[%s15885_s0 + $0xcd8] sm:$0xff] }
 0x1bf   : > { %4422 = vst [vmem:[#allocation2 + $0x648] sm:$0xff] %v10781_v30  ;;  %v10784_v39 = vpack.c.bf16 %v2206_v37, %v2205_v36  ;;  %v2209_v41 = vld [vmem:[%s15885_s0 + $0xce0] sm:$0xff]  ;;  %v2210_v42 = vld [vmem:[%s15885_s0 + $0xce8] sm:$0xff]  ;;  %4423 = vst [vmem:[#allocation2 + $0x650] sm:$0xff] %v10782_v34  ;;  %v10785_v43 = vpack.c.bf16 %v2208_v40, %v2207_v38 }
 0x1c0   : > { %4424 = vst [vmem:[#allocation2 + $0x658] sm:$0xff] %v10783_v35  ;;  %v10786_v44 = vpack.c.bf16 %v2210_v42, %v2209_v41  ;;  %v2211_v45 = vld [vmem:[%s15885_s0 + $0xcf0] sm:$0xff]  ;;  %v2212_v46 = vld [vmem:[%s15885_s0 + $0xcf8] sm:$0xff]  ;;  %v2213_v47 = vld [vmem:[%s15885_s0 + $0xd00] sm:$0xff] }
 0x1c1   : > { %4425 = vst [vmem:[#allocation2 + $0x660] sm:$0xff] %v10784_v39  ;;  %v10787_v48 = vpack.c.bf16 %v2212_v46, %v2211_v45  ;;  %v2214_v49 = vld [vmem:[%s15885_s0 + $0xd08] sm:$0xff]  ;;  %v2215_v50 = vld [vmem:[%s15885_s0 + $0xd10] sm:$0xff]  ;;  %v2216_v51 = vld [vmem:[%s15885_s0 + $0xd18] sm:$0xff] }
 0x1c2   : > { %4426 = vst [vmem:[#allocation2 + $0x668] sm:$0xff] %v10785_v43  ;;  %4427 = vst [vmem:[#allocation2 + $0x670] sm:$0xff] %v10786_v44  ;;  %v10788_v52 = vpack.c.bf16 %v2214_v49, %v2213_v47  ;;  %v10789_v53 = vpack.c.bf16 %v2216_v51, %v2215_v50  ;;  %v2217_v54 = vld [vmem:[%s15885_s0 + $0xd20] sm:$0xff]  ;;  %v2218_v55 = vld [vmem:[%s15885_s0 + $0xd28] sm:$0xff] }
 0x1c3   : > { %v2219_v56 = vld [vmem:[%s15885_s0 + $0xd30] sm:$0xff]  ;;  %4428 = vst [vmem:[#allocation2 + $0x678] sm:$0xff] %v10787_v48  ;;  %v10790_v57 = vpack.c.bf16 %v2218_v55, %v2217_v54  ;;  %v2220_v58 = vld [vmem:[%s15885_s0 + $0xd38] sm:$0xff]  ;;  %v2221_v59 = vld [vmem:[%s15885_s0 + $0xd40] sm:$0xff] }
 0x1c4   : > { %v2222_v60 = vld [vmem:[%s15885_s0 + $0xd48] sm:$0xff]  ;;  %4429 = vst [vmem:[#allocation2 + $0x680] sm:$0xff] %v10788_v52  ;;  %4430 = vst [vmem:[#allocation2 + $0x688] sm:$0xff] %v10789_v53  ;;  %v10791_v61 = vpack.c.bf16 %v2220_v58, %v2219_v56  ;;  %v2223_v63 = vld [vmem:[%s15885_s0 + $0xd50] sm:$0xff] }
 0x1c5   : > { %v10792_v62 = vpack.c.bf16 %v2222_v60, %v2221_v59  ;;  %v2224_v0 = vld [vmem:[%s15885_s0 + $0xd58] sm:$0xff]  ;;  %v2225_v1 = vld [vmem:[%s15885_s0 + $0xd60] sm:$0xff]  ;;  %4431 = vst [vmem:[#allocation2 + $0x690] sm:$0xff] %v10790_v57  ;;  %v2226_v3 = vld [vmem:[%s15885_s0 + $0xd68] sm:$0xff] }
 0x1c6   : > { %v10793_v2 = vpack.c.bf16 %v2224_v0, %v2223_v63  ;;  %v2227_v4 = vld [vmem:[%s15885_s0 + $0xd70] sm:$0xff]  ;;  %v2228_v5 = vld [vmem:[%s15885_s0 + $0xd78] sm:$0xff]  ;;  %4432 = vst [vmem:[#allocation2 + $0x698] sm:$0xff] %v10791_v61  ;;  %v10794_v6 = vpack.c.bf16 %v2226_v3, %v2225_v1  ;;  %v2229_v8 = vld [vmem:[%s15885_s0 + $0xd80] sm:$0xff] }
 0x1c7   : > { %4433 = vst [vmem:[#allocation2 + $0x6a0] sm:$0xff] %v10792_v62  ;;  %v10795_v7 = vpack.c.bf16 %v2228_v5, %v2227_v4  ;;  %v2230_v9 = vld [vmem:[%s15885_s0 + $0xd88] sm:$0xff]  ;;  %v2231_v10 = vld [vmem:[%s15885_s0 + $0xd90] sm:$0xff]  ;;  %v2232_v12 = vld [vmem:[%s15885_s0 + $0xd98] sm:$0xff] }
 0x1c8   : > { %4434 = vst [vmem:[#allocation2 + $0x6a8] sm:$0xff] %v10793_v2  ;;  %v10796_v11 = vpack.c.bf16 %v2230_v9, %v2229_v8  ;;  %v2233_v13 = vld [vmem:[%s15885_s0 + $0xda0] sm:$0xff]  ;;  %v2234_v14 = vld [vmem:[%s15885_s0 + $0xda8] sm:$0xff]  ;;  %4435 = vst [vmem:[#allocation2 + $0x6b0] sm:$0xff] %v10794_v6  ;;  %v10797_v15 = vpack.c.bf16 %v2232_v12, %v2231_v10 }
 0x1c9   : > { %4436 = vst [vmem:[#allocation2 + $0x6b8] sm:$0xff] %v10795_v7  ;;  %v10798_v16 = vpack.c.bf16 %v2234_v14, %v2233_v13  ;;  %v2235_v17 = vld [vmem:[%s15885_s0 + $0xdb0] sm:$0xff]  ;;  %v2236_v18 = vld [vmem:[%s15885_s0 + $0xdb8] sm:$0xff]  ;;  %v2237_v19 = vld [vmem:[%s15885_s0 + $0xdc0] sm:$0xff] }
 0x1ca   : > { %4437 = vst [vmem:[#allocation2 + $0x6c0] sm:$0xff] %v10796_v11  ;;  %v10799_v20 = vpack.c.bf16 %v2236_v18, %v2235_v17  ;;  %v2238_v21 = vld [vmem:[%s15885_s0 + $0xdc8] sm:$0xff]  ;;  %v2239_v22 = vld [vmem:[%s15885_s0 + $0xdd0] sm:$0xff]  ;;  %v2240_v23 = vld [vmem:[%s15885_s0 + $0xdd8] sm:$0xff] }
 0x1cb   : > { %4438 = vst [vmem:[#allocation2 + $0x6c8] sm:$0xff] %v10797_v15  ;;  %4439 = vst [vmem:[#allocation2 + $0x6d0] sm:$0xff] %v10798_v16  ;;  %v10800_v24 = vpack.c.bf16 %v2238_v21, %v2237_v19  ;;  %v10801_v25 = vpack.c.bf16 %v2240_v23, %v2239_v22  ;;  %v2241_v26 = vld [vmem:[%s15885_s0 + $0xde0] sm:$0xff]  ;;  %v2242_v27 = vld [vmem:[%s15885_s0 + $0xde8] sm:$0xff] }
 0x1cc   : > { %v2243_v28 = vld [vmem:[%s15885_s0 + $0xdf0] sm:$0xff]  ;;  %4440 = vst [vmem:[#allocation2 + $0x6d8] sm:$0xff] %v10799_v20  ;;  %v10802_v29 = vpack.c.bf16 %v2242_v27, %v2241_v26  ;;  %v2244_v30 = vld [vmem:[%s15885_s0 + $0xdf8] sm:$0xff]  ;;  %v2245_v31 = vld [vmem:[%s15885_s0 + $0xe00] sm:$0xff] }
 0x1cd   : > { %v2246_v32 = vld [vmem:[%s15885_s0 + $0xe08] sm:$0xff]  ;;  %4441 = vst [vmem:[#allocation2 + $0x6e0] sm:$0xff] %v10800_v24  ;;  %4442 = vst [vmem:[#allocation2 + $0x6e8] sm:$0xff] %v10801_v25  ;;  %v10803_v33 = vpack.c.bf16 %v2244_v30, %v2243_v28  ;;  %v2247_v35 = vld [vmem:[%s15885_s0 + $0xe10] sm:$0xff] }
 0x1ce   : > { %v10804_v34 = vpack.c.bf16 %v2246_v32, %v2245_v31  ;;  %v2248_v36 = vld [vmem:[%s15885_s0 + $0xe18] sm:$0xff]  ;;  %v2249_v37 = vld [vmem:[%s15885_s0 + $0xe20] sm:$0xff]  ;;  %4443 = vst [vmem:[#allocation2 + $0x6f0] sm:$0xff] %v10802_v29  ;;  %v2250_v39 = vld [vmem:[%s15885_s0 + $0xe28] sm:$0xff] }
 0x1cf   : > { %v10805_v38 = vpack.c.bf16 %v2248_v36, %v2247_v35  ;;  %v2251_v40 = vld [vmem:[%s15885_s0 + $0xe30] sm:$0xff]  ;;  %v2252_v41 = vld [vmem:[%s15885_s0 + $0xe38] sm:$0xff]  ;;  %4444 = vst [vmem:[#allocation2 + $0x6f8] sm:$0xff] %v10803_v33  ;;  %v10806_v42 = vpack.c.bf16 %v2250_v39, %v2249_v37  ;;  %v2253_v44 = vld [vmem:[%s15885_s0 + $0xe40] sm:$0xff] }
 0x1d0   : > { %4445 = vst [vmem:[#allocation2 + $0x700] sm:$0xff] %v10804_v34  ;;  %v10807_v43 = vpack.c.bf16 %v2252_v41, %v2251_v40  ;;  %v2254_v45 = vld [vmem:[%s15885_s0 + $0xe48] sm:$0xff]  ;;  %v2255_v46 = vld [vmem:[%s15885_s0 + $0xe50] sm:$0xff]  ;;  %v2256_v48 = vld [vmem:[%s15885_s0 + $0xe58] sm:$0xff] }
 0x1d1   : > { %4446 = vst [vmem:[#allocation2 + $0x708] sm:$0xff] %v10805_v38  ;;  %v10808_v47 = vpack.c.bf16 %v2254_v45, %v2253_v44  ;;  %v2257_v49 = vld [vmem:[%s15885_s0 + $0xe60] sm:$0xff]  ;;  %v2258_v50 = vld [vmem:[%s15885_s0 + $0xe68] sm:$0xff]  ;;  %4447 = vst [vmem:[#allocation2 + $0x710] sm:$0xff] %v10806_v42  ;;  %v10809_v51 = vpack.c.bf16 %v2256_v48, %v2255_v46 }
 0x1d2   : > { %4448 = vst [vmem:[#allocation2 + $0x718] sm:$0xff] %v10807_v43  ;;  %v10810_v52 = vpack.c.bf16 %v2258_v50, %v2257_v49  ;;  %v2259_v53 = vld [vmem:[%s15885_s0 + $0xe70] sm:$0xff]  ;;  %v2260_v54 = vld [vmem:[%s15885_s0 + $0xe78] sm:$0xff]  ;;  %v2261_v55 = vld [vmem:[%s15885_s0 + $0xe80] sm:$0xff] }
 0x1d3   : > { %4449 = vst [vmem:[#allocation2 + $0x720] sm:$0xff] %v10808_v47  ;;  %v10811_v56 = vpack.c.bf16 %v2260_v54, %v2259_v53  ;;  %v2262_v57 = vld [vmem:[%s15885_s0 + $0xe88] sm:$0xff]  ;;  %v2263_v58 = vld [vmem:[%s15885_s0 + $0xe90] sm:$0xff]  ;;  %v2264_v59 = vld [vmem:[%s15885_s0 + $0xe98] sm:$0xff] }
 0x1d4   : > { %4450 = vst [vmem:[#allocation2 + $0x728] sm:$0xff] %v10809_v51  ;;  %4451 = vst [vmem:[#allocation2 + $0x730] sm:$0xff] %v10810_v52  ;;  %v10812_v60 = vpack.c.bf16 %v2262_v57, %v2261_v55  ;;  %v10813_v61 = vpack.c.bf16 %v2264_v59, %v2263_v58  ;;  %v2265_v62 = vld [vmem:[%s15885_s0 + $0xea0] sm:$0xff]  ;;  %v2266_v63 = vld [vmem:[%s15885_s0 + $0xea8] sm:$0xff] }
 0x1d5   : > { %v2267_v0 = vld [vmem:[%s15885_s0 + $0xeb0] sm:$0xff]  ;;  %4452 = vst [vmem:[#allocation2 + $0x738] sm:$0xff] %v10811_v56  ;;  %v10814_v1 = vpack.c.bf16 %v2266_v63, %v2265_v62  ;;  %v2268_v2 = vld [vmem:[%s15885_s0 + $0xeb8] sm:$0xff]  ;;  %v2269_v3 = vld [vmem:[%s15885_s0 + $0xec0] sm:$0xff] }
 0x1d6   : > { %v2270_v4 = vld [vmem:[%s15885_s0 + $0xec8] sm:$0xff]  ;;  %4453 = vst [vmem:[#allocation2 + $0x740] sm:$0xff] %v10812_v60  ;;  %4454 = vst [vmem:[#allocation2 + $0x748] sm:$0xff] %v10813_v61  ;;  %v10815_v5 = vpack.c.bf16 %v2268_v2, %v2267_v0  ;;  %v2271_v7 = vld [vmem:[%s15885_s0 + $0xed0] sm:$0xff] }
 0x1d7   : > { %v10816_v6 = vpack.c.bf16 %v2270_v4, %v2269_v3  ;;  %v2272_v8 = vld [vmem:[%s15885_s0 + $0xed8] sm:$0xff]  ;;  %v2273_v9 = vld [vmem:[%s15885_s0 + $0xee0] sm:$0xff]  ;;  %4455 = vst [vmem:[#allocation2 + $0x750] sm:$0xff] %v10814_v1  ;;  %v2274_v11 = vld [vmem:[%s15885_s0 + $0xee8] sm:$0xff] }
 0x1d8   : > { %v10817_v10 = vpack.c.bf16 %v2272_v8, %v2271_v7  ;;  %v2275_v12 = vld [vmem:[%s15885_s0 + $0xef0] sm:$0xff]  ;;  %v2276_v13 = vld [vmem:[%s15885_s0 + $0xef8] sm:$0xff]  ;;  %4456 = vst [vmem:[#allocation2 + $0x758] sm:$0xff] %v10815_v5  ;;  %v10818_v14 = vpack.c.bf16 %v2274_v11, %v2273_v9  ;;  %v2277_v16 = vld [vmem:[%s15885_s0 + $0xf00] sm:$0xff] }
 0x1d9   : > { %4457 = vst [vmem:[#allocation2 + $0x760] sm:$0xff] %v10816_v6  ;;  %v10819_v15 = vpack.c.bf16 %v2276_v13, %v2275_v12  ;;  %v2278_v17 = vld [vmem:[%s15885_s0 + $0xf08] sm:$0xff]  ;;  %v2279_v18 = vld [vmem:[%s15885_s0 + $0xf10] sm:$0xff]  ;;  %v2280_v20 = vld [vmem:[%s15885_s0 + $0xf18] sm:$0xff] }
 0x1da   : > { %4458 = vst [vmem:[#allocation2 + $0x768] sm:$0xff] %v10817_v10  ;;  %v10820_v19 = vpack.c.bf16 %v2278_v17, %v2277_v16  ;;  %v2281_v21 = vld [vmem:[%s15885_s0 + $0xf20] sm:$0xff]  ;;  %v2282_v22 = vld [vmem:[%s15885_s0 + $0xf28] sm:$0xff]  ;;  %4459 = vst [vmem:[#allocation2 + $0x770] sm:$0xff] %v10818_v14  ;;  %v10821_v23 = vpack.c.bf16 %v2280_v20, %v2279_v18 }
 0x1db   : > { %4460 = vst [vmem:[#allocation2 + $0x778] sm:$0xff] %v10819_v15  ;;  %v10822_v24 = vpack.c.bf16 %v2282_v22, %v2281_v21  ;;  %v2283_v25 = vld [vmem:[%s15885_s0 + $0xf30] sm:$0xff]  ;;  %v2284_v26 = vld [vmem:[%s15885_s0 + $0xf38] sm:$0xff]  ;;  %v2285_v27 = vld [vmem:[%s15885_s0 + $0xf40] sm:$0xff] }
 0x1dc   : > { %4461 = vst [vmem:[#allocation2 + $0x780] sm:$0xff] %v10820_v19  ;;  %v10823_v28 = vpack.c.bf16 %v2284_v26, %v2283_v25  ;;  %v2286_v29 = vld [vmem:[%s15885_s0 + $0xf48] sm:$0xff]  ;;  %v2287_v30 = vld [vmem:[%s15885_s0 + $0xf50] sm:$0xff]  ;;  %v2288_v31 = vld [vmem:[%s15885_s0 + $0xf58] sm:$0xff] }
 0x1dd   : > { %4462 = vst [vmem:[#allocation2 + $0x788] sm:$0xff] %v10821_v23  ;;  %4463 = vst [vmem:[#allocation2 + $0x790] sm:$0xff] %v10822_v24  ;;  %v10824_v32 = vpack.c.bf16 %v2286_v29, %v2285_v27  ;;  %v10825_v33 = vpack.c.bf16 %v2288_v31, %v2287_v30  ;;  %v2289_v34 = vld [vmem:[%s15885_s0 + $0xf60] sm:$0xff]  ;;  %v2290_v35 = vld [vmem:[%s15885_s0 + $0xf68] sm:$0xff] }
 0x1de   : > { %v2291_v36 = vld [vmem:[%s15885_s0 + $0xf70] sm:$0xff]  ;;  %4464 = vst [vmem:[#allocation2 + $0x798] sm:$0xff] %v10823_v28  ;;  %v10826_v37 = vpack.c.bf16 %v2290_v35, %v2289_v34  ;;  %v2292_v38 = vld [vmem:[%s15885_s0 + $0xf78] sm:$0xff]  ;;  %v2293_v39 = vld [vmem:[%s15885_s0 + $0xf80] sm:$0xff] }
 0x1df   : > { %v2294_v40 = vld [vmem:[%s15885_s0 + $0xf88] sm:$0xff]  ;;  %4465 = vst [vmem:[#allocation2 + $0x7a0] sm:$0xff] %v10824_v32  ;;  %4466 = vst [vmem:[#allocation2 + $0x7a8] sm:$0xff] %v10825_v33  ;;  %v10827_v41 = vpack.c.bf16 %v2292_v38, %v2291_v36  ;;  %v2295_v43 = vld [vmem:[%s15885_s0 + $0xf90] sm:$0xff] }
 0x1e0   : > { %v10828_v42 = vpack.c.bf16 %v2294_v40, %v2293_v39  ;;  %v2296_v44 = vld [vmem:[%s15885_s0 + $0xf98] sm:$0xff]  ;;  %v2297_v45 = vld [vmem:[%s15885_s0 + $0xfa0] sm:$0xff]  ;;  %4467 = vst [vmem:[#allocation2 + $0x7b0] sm:$0xff] %v10826_v37  ;;  %v2298_v47 = vld [vmem:[%s15885_s0 + $0xfa8] sm:$0xff] }
 0x1e1   : > { %v10829_v46 = vpack.c.bf16 %v2296_v44, %v2295_v43  ;;  %v2299_v48 = vld [vmem:[%s15885_s0 + $0xfb0] sm:$0xff]  ;;  %v2300_v49 = vld [vmem:[%s15885_s0 + $0xfb8] sm:$0xff]  ;;  %4468 = vst [vmem:[#allocation2 + $0x7b8] sm:$0xff] %v10827_v41  ;;  %v10830_v50 = vpack.c.bf16 %v2298_v47, %v2297_v45  ;;  %v2301_v52 = vld [vmem:[%s15885_s0 + $0xfc0] sm:$0xff] }
 0x1e2   : > { %4469 = vst [vmem:[#allocation2 + $0x7c0] sm:$0xff] %v10828_v42  ;;  %v10831_v51 = vpack.c.bf16 %v2300_v49, %v2299_v48  ;;  %v2302_v53 = vld [vmem:[%s15885_s0 + $0xfc8] sm:$0xff]  ;;  %v2303_v54 = vld [vmem:[%s15885_s0 + $0xfd0] sm:$0xff]  ;;  %v2304_v56 = vld [vmem:[%s15885_s0 + $0xfd8] sm:$0xff] }
 0x1e3   : > { %4470 = vst [vmem:[#allocation2 + $0x7c8] sm:$0xff] %v10829_v46  ;;  %v10832_v55 = vpack.c.bf16 %v2302_v53, %v2301_v52  ;;  %v2305_v57 = vld [vmem:[%s15885_s0 + $0xfe0] sm:$0xff]  ;;  %v2306_v58 = vld [vmem:[%s15885_s0 + $0xfe8] sm:$0xff]  ;;  %4471 = vst [vmem:[#allocation2 + $0x7d0] sm:$0xff] %v10830_v50  ;;  %v10833_v59 = vpack.c.bf16 %v2304_v56, %v2303_v54 }
 0x1e4   : > { %4472 = vst [vmem:[#allocation2 + $0x7d8] sm:$0xff] %v10831_v51  ;;  %v10834_v60 = vpack.c.bf16 %v2306_v58, %v2305_v57  ;;  %v2307_v61 = vld [vmem:[%s15885_s0 + $0xff0] sm:$0xff]  ;;  %v2308_v62 = vld [vmem:[%s15885_s0 + $0xff8] sm:$0xff]  ;;  %v2309_v63 = vld [vmem:[%s15885_s0 + $0x1000] sm:$0xff] }
 0x1e5   : > { %4473 = vst [vmem:[#allocation2 + $0x7e0] sm:$0xff] %v10832_v55  ;;  %v10835_v0 = vpack.c.bf16 %v2308_v62, %v2307_v61  ;;  %v2310_v1 = vld [vmem:[%s15885_s0 + $0x1008] sm:$0xff]  ;;  %v2311_v2 = vld [vmem:[%s15885_s0 + $0x1010] sm:$0xff]  ;;  %v2312_v3 = vld [vmem:[%s15885_s0 + $0x1018] sm:$0xff] }
 0x1e6   : > { %4474 = vst [vmem:[#allocation2 + $0x7e8] sm:$0xff] %v10833_v59  ;;  %4475 = vst [vmem:[#allocation2 + $0x7f0] sm:$0xff] %v10834_v60  ;;  %v10836_v4 = vpack.c.bf16 %v2310_v1, %v2309_v63  ;;  %v10837_v5 = vpack.c.bf16 %v2312_v3, %v2311_v2  ;;  %v2313_v6 = vld [vmem:[%s15885_s0 + $0x1020] sm:$0xff]  ;;  %v2314_v7 = vld [vmem:[%s15885_s0 + $0x1028] sm:$0xff] }
 0x1e7   : > { %v2315_v8 = vld [vmem:[%s15885_s0 + $0x1030] sm:$0xff]  ;;  %4476 = vst [vmem:[#allocation2 + $0x7f8] sm:$0xff] %v10835_v0  ;;  %v10838_v9 = vpack.c.bf16 %v2314_v7, %v2313_v6  ;;  %v2316_v10 = vld [vmem:[%s15885_s0 + $0x1038] sm:$0xff]  ;;  %v2317_v11 = vld [vmem:[%s15885_s0 + $0x1040] sm:$0xff] }
 0x1e8   : > { %v2318_v12 = vld [vmem:[%s15885_s0 + $0x1048] sm:$0xff]  ;;  %4477 = vst [vmem:[#allocation2 + $0x800] sm:$0xff] %v10836_v4  ;;  %4478 = vst [vmem:[#allocation2 + $0x808] sm:$0xff] %v10837_v5  ;;  %v10839_v13 = vpack.c.bf16 %v2316_v10, %v2315_v8  ;;  %v2319_v15 = vld [vmem:[%s15885_s0 + $0x1050] sm:$0xff] }
 0x1e9   : > { %v10840_v14 = vpack.c.bf16 %v2318_v12, %v2317_v11  ;;  %v2320_v16 = vld [vmem:[%s15885_s0 + $0x1058] sm:$0xff]  ;;  %v2321_v17 = vld [vmem:[%s15885_s0 + $0x1060] sm:$0xff]  ;;  %4479 = vst [vmem:[#allocation2 + $0x810] sm:$0xff] %v10838_v9  ;;  %v2322_v19 = vld [vmem:[%s15885_s0 + $0x1068] sm:$0xff] }
 0x1ea   : > { %v10841_v18 = vpack.c.bf16 %v2320_v16, %v2319_v15  ;;  %v2323_v20 = vld [vmem:[%s15885_s0 + $0x1070] sm:$0xff]  ;;  %v2324_v21 = vld [vmem:[%s15885_s0 + $0x1078] sm:$0xff]  ;;  %4480 = vst [vmem:[#allocation2 + $0x818] sm:$0xff] %v10839_v13  ;;  %v10842_v22 = vpack.c.bf16 %v2322_v19, %v2321_v17  ;;  %v2325_v24 = vld [vmem:[%s15885_s0 + $0x1080] sm:$0xff] }
 0x1eb   : > { %4481 = vst [vmem:[#allocation2 + $0x820] sm:$0xff] %v10840_v14  ;;  %v10843_v23 = vpack.c.bf16 %v2324_v21, %v2323_v20  ;;  %v2326_v25 = vld [vmem:[%s15885_s0 + $0x1088] sm:$0xff]  ;;  %v2327_v26 = vld [vmem:[%s15885_s0 + $0x1090] sm:$0xff]  ;;  %v2328_v28 = vld [vmem:[%s15885_s0 + $0x1098] sm:$0xff] }
 0x1ec   : > { %4482 = vst [vmem:[#allocation2 + $0x828] sm:$0xff] %v10841_v18  ;;  %v10844_v27 = vpack.c.bf16 %v2326_v25, %v2325_v24  ;;  %v2329_v29 = vld [vmem:[%s15885_s0 + $0x10a0] sm:$0xff]  ;;  %v2330_v30 = vld [vmem:[%s15885_s0 + $0x10a8] sm:$0xff]  ;;  %4483 = vst [vmem:[#allocation2 + $0x830] sm:$0xff] %v10842_v22  ;;  %v10845_v31 = vpack.c.bf16 %v2328_v28, %v2327_v26 }
 0x1ed   : > { %4484 = vst [vmem:[#allocation2 + $0x838] sm:$0xff] %v10843_v23  ;;  %v10846_v32 = vpack.c.bf16 %v2330_v30, %v2329_v29  ;;  %v2331_v33 = vld [vmem:[%s15885_s0 + $0x10b0] sm:$0xff]  ;;  %v2332_v34 = vld [vmem:[%s15885_s0 + $0x10b8] sm:$0xff]  ;;  %v2333_v35 = vld [vmem:[%s15885_s0 + $0x10c0] sm:$0xff] }
 0x1ee   : > { %4485 = vst [vmem:[#allocation2 + $0x840] sm:$0xff] %v10844_v27  ;;  %v10847_v36 = vpack.c.bf16 %v2332_v34, %v2331_v33  ;;  %v2334_v37 = vld [vmem:[%s15885_s0 + $0x10c8] sm:$0xff]  ;;  %v2335_v38 = vld [vmem:[%s15885_s0 + $0x10d0] sm:$0xff]  ;;  %v2336_v39 = vld [vmem:[%s15885_s0 + $0x10d8] sm:$0xff] }
 0x1ef   : > { %4486 = vst [vmem:[#allocation2 + $0x848] sm:$0xff] %v10845_v31  ;;  %4487 = vst [vmem:[#allocation2 + $0x850] sm:$0xff] %v10846_v32  ;;  %v10848_v40 = vpack.c.bf16 %v2334_v37, %v2333_v35  ;;  %v10849_v41 = vpack.c.bf16 %v2336_v39, %v2335_v38  ;;  %v2337_v42 = vld [vmem:[%s15885_s0 + $0x10e0] sm:$0xff]  ;;  %v2338_v43 = vld [vmem:[%s15885_s0 + $0x10e8] sm:$0xff] }
 0x1f0   : > { %v2339_v44 = vld [vmem:[%s15885_s0 + $0x10f0] sm:$0xff]  ;;  %4488 = vst [vmem:[#allocation2 + $0x858] sm:$0xff] %v10847_v36  ;;  %v10850_v45 = vpack.c.bf16 %v2338_v43, %v2337_v42  ;;  %v2340_v46 = vld [vmem:[%s15885_s0 + $0x10f8] sm:$0xff]  ;;  %v2341_v47 = vld [vmem:[%s15885_s0 + $0x1100] sm:$0xff] }
 0x1f1   : > { %v2342_v48 = vld [vmem:[%s15885_s0 + $0x1108] sm:$0xff]  ;;  %4489 = vst [vmem:[#allocation2 + $0x860] sm:$0xff] %v10848_v40  ;;  %4490 = vst [vmem:[#allocation2 + $0x868] sm:$0xff] %v10849_v41  ;;  %v10851_v49 = vpack.c.bf16 %v2340_v46, %v2339_v44  ;;  %v2343_v51 = vld [vmem:[%s15885_s0 + $0x1110] sm:$0xff] }
 0x1f2   : > { %v10852_v50 = vpack.c.bf16 %v2342_v48, %v2341_v47  ;;  %v2344_v52 = vld [vmem:[%s15885_s0 + $0x1118] sm:$0xff]  ;;  %v2345_v53 = vld [vmem:[%s15885_s0 + $0x1120] sm:$0xff]  ;;  %4491 = vst [vmem:[#allocation2 + $0x870] sm:$0xff] %v10850_v45  ;;  %v2346_v55 = vld [vmem:[%s15885_s0 + $0x1128] sm:$0xff] }
 0x1f3   : > { %v10853_v54 = vpack.c.bf16 %v2344_v52, %v2343_v51  ;;  %v2347_v56 = vld [vmem:[%s15885_s0 + $0x1130] sm:$0xff]  ;;  %v2348_v57 = vld [vmem:[%s15885_s0 + $0x1138] sm:$0xff]  ;;  %4492 = vst [vmem:[#allocation2 + $0x878] sm:$0xff] %v10851_v49  ;;  %v10854_v58 = vpack.c.bf16 %v2346_v55, %v2345_v53  ;;  %v2349_v60 = vld [vmem:[%s15885_s0 + $0x1140] sm:$0xff] }
 0x1f4   : > { %4493 = vst [vmem:[#allocation2 + $0x880] sm:$0xff] %v10852_v50  ;;  %v10855_v59 = vpack.c.bf16 %v2348_v57, %v2347_v56  ;;  %v2350_v61 = vld [vmem:[%s15885_s0 + $0x1148] sm:$0xff]  ;;  %v2351_v62 = vld [vmem:[%s15885_s0 + $0x1150] sm:$0xff]  ;;  %v2352_v0 = vld [vmem:[%s15885_s0 + $0x1158] sm:$0xff] }
 0x1f5   : > { %4494 = vst [vmem:[#allocation2 + $0x888] sm:$0xff] %v10853_v54  ;;  %v10856_v63 = vpack.c.bf16 %v2350_v61, %v2349_v60  ;;  %v2353_v1 = vld [vmem:[%s15885_s0 + $0x1160] sm:$0xff]  ;;  %v2354_v2 = vld [vmem:[%s15885_s0 + $0x1168] sm:$0xff]  ;;  %4495 = vst [vmem:[#allocation2 + $0x890] sm:$0xff] %v10854_v58  ;;  %v10857_v3 = vpack.c.bf16 %v2352_v0, %v2351_v62 }
 0x1f6   : > { %4496 = vst [vmem:[#allocation2 + $0x898] sm:$0xff] %v10855_v59  ;;  %v10858_v4 = vpack.c.bf16 %v2354_v2, %v2353_v1  ;;  %v2355_v5 = vld [vmem:[%s15885_s0 + $0x1170] sm:$0xff]  ;;  %v2356_v6 = vld [vmem:[%s15885_s0 + $0x1178] sm:$0xff]  ;;  %v2357_v7 = vld [vmem:[%s15885_s0 + $0x1180] sm:$0xff] }
 0x1f7   : > { %4497 = vst [vmem:[#allocation2 + $0x8a0] sm:$0xff] %v10856_v63  ;;  %v10859_v8 = vpack.c.bf16 %v2356_v6, %v2355_v5  ;;  %v2358_v9 = vld [vmem:[%s15885_s0 + $0x1188] sm:$0xff]  ;;  %v2359_v10 = vld [vmem:[%s15885_s0 + $0x1190] sm:$0xff]  ;;  %v2360_v11 = vld [vmem:[%s15885_s0 + $0x1198] sm:$0xff] }
 0x1f8   : > { %4498 = vst [vmem:[#allocation2 + $0x8a8] sm:$0xff] %v10857_v3  ;;  %4499 = vst [vmem:[#allocation2 + $0x8b0] sm:$0xff] %v10858_v4  ;;  %v10860_v12 = vpack.c.bf16 %v2358_v9, %v2357_v7  ;;  %v10861_v13 = vpack.c.bf16 %v2360_v11, %v2359_v10  ;;  %v2361_v14 = vld [vmem:[%s15885_s0 + $0x11a0] sm:$0xff]  ;;  %v2362_v15 = vld [vmem:[%s15885_s0 + $0x11a8] sm:$0xff] }
 0x1f9   : > { %v2363_v16 = vld [vmem:[%s15885_s0 + $0x11b0] sm:$0xff]  ;;  %4500 = vst [vmem:[#allocation2 + $0x8b8] sm:$0xff] %v10859_v8  ;;  %v10862_v17 = vpack.c.bf16 %v2362_v15, %v2361_v14  ;;  %v2364_v18 = vld [vmem:[%s15885_s0 + $0x11b8] sm:$0xff]  ;;  %v2365_v19 = vld [vmem:[%s15885_s0 + $0x11c0] sm:$0xff] }
 0x1fa   : > { %v2366_v20 = vld [vmem:[%s15885_s0 + $0x11c8] sm:$0xff]  ;;  %4501 = vst [vmem:[#allocation2 + $0x8c0] sm:$0xff] %v10860_v12  ;;  %4502 = vst [vmem:[#allocation2 + $0x8c8] sm:$0xff] %v10861_v13  ;;  %v10863_v21 = vpack.c.bf16 %v2364_v18, %v2363_v16  ;;  %v2367_v23 = vld [vmem:[%s15885_s0 + $0x11d0] sm:$0xff] }
 0x1fb   : > { %v10864_v22 = vpack.c.bf16 %v2366_v20, %v2365_v19  ;;  %v2368_v24 = vld [vmem:[%s15885_s0 + $0x11d8] sm:$0xff]  ;;  %v2369_v25 = vld [vmem:[%s15885_s0 + $0x11e0] sm:$0xff]  ;;  %4503 = vst [vmem:[#allocation2 + $0x8d0] sm:$0xff] %v10862_v17  ;;  %v2370_v27 = vld [vmem:[%s15885_s0 + $0x11e8] sm:$0xff] }
 0x1fc   : > { %v10865_v26 = vpack.c.bf16 %v2368_v24, %v2367_v23  ;;  %v2371_v28 = vld [vmem:[%s15885_s0 + $0x11f0] sm:$0xff]  ;;  %v2372_v29 = vld [vmem:[%s15885_s0 + $0x11f8] sm:$0xff]  ;;  %4504 = vst [vmem:[#allocation2 + $0x8d8] sm:$0xff] %v10863_v21  ;;  %v10866_v30 = vpack.c.bf16 %v2370_v27, %v2369_v25  ;;  %v2373_v32 = vld [vmem:[%s15885_s0 + $0x1200] sm:$0xf] }
 0x1fd   : > { %4505 = vst [vmem:[#allocation2 + $0x8e0] sm:$0xff] %v10864_v22  ;;  %v10867_v31 = vpack.c.bf16 %v2372_v29, %v2371_v28  ;;  %v2374_v33 = vld [vmem:[%s15885_s0 + $0x1208] sm:$0xf]  ;;  %v2375_v34 = vld [vmem:[%s15885_s0 + $0x1210] sm:$0xf] }
 0x1fe   : > { %4506 = vst [vmem:[#allocation2 + $0x8e8] sm:$0xff] %v10865_v26  ;;  %v10868_v35 = vpack.c.bf16 %v2374_v33, %v2373_v32  ;;  %v2376_v36 = vld [vmem:[%s15885_s0 + $0x1218] sm:$0xf]  ;;  %v2377_v37 = vld [vmem:[%s15885_s0 + $0x1220] sm:$0xf]  ;;  %4507 = vst [vmem:[#allocation2 + $0x8f0] sm:$0xff] %v10866_v30 }
 0x1ff   : > { %v2378_v38 = vld [vmem:[%s15885_s0 + $0x1228] sm:$0xf]  ;;  %4508 = vst [vmem:[#allocation2 + $0x8f8] sm:$0xff] %v10867_v31  ;;  %v10869_v39 = vpack.c.bf16 %v2376_v36, %v2375_v34  ;;  %v2379_v41 = vld [vmem:[%s15885_s0 + $0x1230] sm:$0xf] }
 0x200   : > { %v10870_v40 = vpack.c.bf16 %v2378_v38, %v2377_v37  ;;  %v2380_v42 = vld [vmem:[%s15885_s0 + $0x1238] sm:$0xf]  ;;  %v2381_v43 = vld [vmem:[%s15885_s0 + $0x1240] sm:$0xf]  ;;  %4509 = vst [vmem:[#allocation2 + $0x900] sm:$0x33] %v10868_v35 }
 0x201   : > { %v10871_v44 = vpack.c.bf16 %v2380_v42, %v2379_v41  ;;  %v2382_v45 = vld [vmem:[%s15885_s0 + $0x1248] sm:$0xf]  ;;  %v2383_v46 = vld [vmem:[%s15885_s0 + $0x1250] sm:$0xf]  ;;  %v2384_v47 = vld [vmem:[%s15885_s0 + $0x1258] sm:$0xf] }
 0x202   : > { %4510 = vst [vmem:[#allocation2 + $0x908] sm:$0x33] %v10869_v39  ;;  %4511 = vst [vmem:[#allocation2 + $0x910] sm:$0x33] %v10870_v40  ;;  %v10872_v48 = vpack.c.bf16 %v2382_v45, %v2381_v43  ;;  %v10873_v49 = vpack.c.bf16 %v2384_v47, %v2383_v46  ;;  %v2385_v50 = vld [vmem:[%s15885_s0 + $0x1260] sm:$0xf] }
 0x203   : > { %v2386_v51 = vld [vmem:[%s15885_s0 + $0x1268] sm:$0xf]  ;;  %v2387_v52 = vld [vmem:[%s15885_s0 + $0x1270] sm:$0xf]  ;;  %4512 = vst [vmem:[#allocation2 + $0x918] sm:$0x33] %v10871_v44 }
 0x204   : > { %v10874_v53 = vpack.c.bf16 %v2386_v51, %v2385_v50  ;;  %v2388_v54 = vld [vmem:[%s15885_s0 + $0x1278] sm:$0xf]  ;;  %v2389_v55 = vld [vmem:[%s15885_s0 + $0x1280] sm:$0xf]  ;;  %v2390_v56 = vld [vmem:[%s15885_s0 + $0x1288] sm:$0xf] }
 0x205   : > { %4513 = vst [vmem:[#allocation2 + $0x920] sm:$0x33] %v10872_v48  ;;  %4514 = vst [vmem:[#allocation2 + $0x928] sm:$0x33] %v10873_v49  ;;  %v10875_v57 = vpack.c.bf16 %v2388_v54, %v2387_v52  ;;  %v10876_v58 = vpack.c.bf16 %v2390_v56, %v2389_v55  ;;  %v2391_v59 = vld [vmem:[%s15885_s0 + $0x1290] sm:$0xf] }
 0x206   : > { %v2392_v60 = vld [vmem:[%s15885_s0 + $0x1298] sm:$0xf]  ;;  %v2393_v61 = vld [vmem:[%s15885_s0 + $0x12a0] sm:$0xf]  ;;  %4515 = vst [vmem:[#allocation2 + $0x930] sm:$0x33] %v10874_v53 }
 0x207   : > { %v10877_v62 = vpack.c.bf16 %v2392_v60, %v2391_v59  ;;  %v2394_v63 = vld [vmem:[%s15885_s0 + $0x12a8] sm:$0xf]  ;;  %v2395_v0 = vld [vmem:[%s15885_s0 + $0x12b0] sm:$0xf]  ;;  %v2396_v1 = vld [vmem:[%s15885_s0 + $0x12b8] sm:$0xf] }
 0x208   : > { %4516 = vst [vmem:[#allocation2 + $0x938] sm:$0x33] %v10875_v57  ;;  %4517 = vst [vmem:[#allocation2 + $0x940] sm:$0x33] %v10876_v58  ;;  %v10878_v2 = vpack.c.bf16 %v2394_v63, %v2393_v61  ;;  %v10879_v3 = vpack.c.bf16 %v2396_v1, %v2395_v0 }
 0x209   : > { %4518 = vst [vmem:[#allocation2 + $0x948] sm:$0x33] %v10877_v62 }
 0x20a   : > { %4519 = vst [vmem:[#allocation2 + $0x950] sm:$0x33] %v10878_v2  ;;  %4520 = vst [vmem:[#allocation2 + $0x958] sm:$0x33] %v10879_v3 }
 0x20b PF: > { %v12067_v4 = vld [vmem:[%s13209_s30 + $0x40] sm:$0xff]   ;;  %v12071_v8 = vld [vmem:[%s13209_s30 + $0x48] sm:$0xff]   ;;  %v12075_v12 = vld [vmem:[%s13209_s30 + $0x50] sm:$0xff]   ;;  %s10577_s25 = sshll.u32 (%p12406_p6), %s13199_s24, 3 }
 0x20c   : > { %v12068_v5 = vld [vmem:[%s13209_s30 + $0xc0] sm:$0xff]   ;;  %10880 = vmatprep.subr.bf16.mxu0 %v12067_v4  ;;  %v12072_v9 = vld [vmem:[%s13209_s30 + $0xc8] sm:$0xff]   ;;  %v12076_v13 = vld [vmem:[%s13209_s30 + $0xd0] sm:$0xff]   ;;  %s15815_s26 = scalar_lea.vmem (%p12406_p6), %s15888_s3, %s10577_s25 }
 0x20d   : > { %v12069_v6 = vld [vmem:[%s13209_s30] sm:$0xff]   ;;  %10974 = vmatprep.subr.bf16.mxu1 %v12068_v5  ;;  %v12073_v10 = vld [vmem:[%s13209_s30 + $0x8] sm:$0xff]   ;;  %v12077_v14 = vld [vmem:[%s13209_s30 + $0x10] sm:$0xff]  }
 0x20e   : > { %v12070_v7 = vld [vmem:[%s13209_s30 + $0x80] sm:$0xff]   ;;  %10881 = vmatpush3.bf16.msra.mxu0 %v12069_v6  ;;  %v12074_v11 = vld [vmem:[%s13209_s30 + $0x88] sm:$0xff]   ;;  %v12078_v15 = vld [vmem:[%s13209_s30 + $0x90] sm:$0xff]  }
 0x20f   : > { %10975 = vmatpush3.bf16.msra.mxu1 %v12070_v7  ;;  %10882 = vmatprep.subr.bf16.mxu0 %v12071_v8  ;;  %v12079_v16 = vld [vmem:[%s13209_s30 + $0x58] sm:$0xff]   ;;  %v12083_v20 = vld [vmem:[%s13209_s30 + $0x60] sm:$0xff]   ;;  %v12087_v24 = vld [vmem:[%s13209_s30 + $0x68] sm:$0xff]  }
 0x210   : > { %10976 = vmatprep.subr.bf16.mxu1 %v12072_v9  ;;  %v12080_v17 = vld [vmem:[%s13209_s30 + $0xd8] sm:$0xff]   ;;  %v12084_v21 = vld [vmem:[%s13209_s30 + $0xe0] sm:$0xff]   ;;  %v12088_v25 = vld [vmem:[%s13209_s30 + $0xe8] sm:$0xff]  }
 0x211   : > { %v12081_v18 = vld [vmem:[%s13209_s30 + $0x18] sm:$0xff]   ;;  %v12085_v22 = vld [vmem:[%s13209_s30 + $0x20] sm:$0xff]   ;;  %v12089_v26 = vld [vmem:[%s13209_s30 + $0x28] sm:$0xff]  }
 0x212   : > { %10883 = vmatpush3.bf16.msra.mxu0 %v12073_v10  ;;  %v12082_v19 = vld [vmem:[%s13209_s30 + $0x98] sm:$0xff]   ;;  %v12086_v23 = vld [vmem:[%s13209_s30 + $0xa0] sm:$0xff]   ;;  %v12090_v27 = vld [vmem:[%s13209_s30 + $0xa8] sm:$0xff]  }
 0x213   : > { %10977 = vmatpush3.bf16.msra.mxu1 %v12074_v11  ;;  %10884 = vmatprep.subr.bf16.mxu0 %v12075_v12  ;;  %v12091_v28 = vld [vmem:[%s13209_s30 + $0x70] sm:$0xff]   ;;  %v12095_v32 = vld [vmem:[%s13209_s30 + $0x78] sm:$0xff]   ;;  %v4521_v36 = vld [vmem:[#allocation2] sm:$0xff] }
 0x214   : > { %10978 = vmatprep.subr.bf16.mxu1 %v12076_v13  ;;  %v12092_v29 = vld [vmem:[%s13209_s30 + $0xf0] sm:$0xff]   ;;  %v12096_v33 = vld [vmem:[%s13209_s30 + $0xf8] sm:$0xff]   ;;  %v4533_v37 = vld [vmem:[#allocation2 + $0x60] sm:$0xff] }
 0x215   : > { %v12093_v30 = vld [vmem:[%s13209_s30 + $0x30] sm:$0xff]   ;;  %v12097_v34 = vld [vmem:[%s13209_s30 + $0x38] sm:$0xff]   ;;  %v4522_v38 = vld [vmem:[#allocation2 + $0x8] sm:$0xff]  ;;  %v10073_v39 = vcombine.low %v4521_v36, %v4533_v37  ;;  %v10074_v40 = vcombine.high %v4521_v36, %v4533_v37 }
 0x216   : > { %10885 = vmatpush3.bf16.msra.mxu0 %v12077_v14  ;;  %v12094_v31 = vld [vmem:[%s13209_s30 + $0xb0] sm:$0xff]   ;;  %v12098_v35 = vld [vmem:[%s13209_s30 + $0xb8] sm:$0xff]   ;;  %v4534_v41 = vld [vmem:[#allocation2 + $0x68] sm:$0xff] }
 0x217   : > { %10979 = vmatpush3.bf16.msra.mxu1 %v12078_v15  ;;  %10886 = vmatprep.subr.bf16.mxu0 %v12079_v16  ;;  %v10075_v42 = vcombine.low %v4522_v38, %v4534_v41  ;;  %v10076_v43 = vcombine.high %v4522_v38, %v4534_v41  ;;  %v12099_v44 = vld [vmem:[%s13209_s30 + $0x140] sm:$0xff]   ;;  %v4546_v51 = vld [vmem:[#allocation2 + $0xc8] sm:$0xff]  ;;  %v12107_v6 = vld [vmem:[%s13209_s30 + $0x150] sm:$0xff]  }
 0x218   : > { %10980 = vmatprep.subr.bf16.mxu1 %v12080_v17  ;;  %7920 = vmatprep.mubr.bf16.mxu0 %v10074_v40  ;;  %v12100_v45 = vld [vmem:[%s13209_s30 + $0x100] sm:$0xff]   ;;  %v4558_v52 = vld [vmem:[#allocation2 + $0x128] sm:$0xff]  ;;  %v12108_v7 = vld [vmem:[%s13209_s30 + $0x110] sm:$0xff]  }
 0x219   : > { %8056 = vmatprep.mubr.bf16.mxu1 %v10076_v43  ;;  %v12101_v46 = vld [vmem:[%s13209_s30 + $0x1c0] sm:$0xff]   ;;  %v10100_v53 = vcombine.high %v4546_v51, %v4558_v52  ;;  %v12103_v54 = vld [vmem:[%s13209_s30 + $0x148] sm:$0xff]   ;;  %v10099_v58 = vcombine.low %v4546_v51, %v4558_v52  ;;  %v12109_v9 = vld [vmem:[%s13209_s30 + $0x1d0] sm:$0xff]  }
 0x21a   : > { %10887 = vmatpush3.bf16.msra.mxu0 %v12081_v18  ;;  %v12102_v47 = vld [vmem:[%s13209_s30 + $0x180] sm:$0xff]   ;;  %v12104_v56 = vld [vmem:[%s13209_s30 + $0x108] sm:$0xff]   ;;  %v12110_v12 = vld [vmem:[%s13209_s30 + $0x190] sm:$0xff]  }
 0x21b   : > { %10981 = vmatpush3.bf16.msra.mxu1 %v12082_v19  ;;  %10888 = vmatprep.subr.bf16.mxu0 %v12083_v20  ;;  %v4545_v48 = vld [vmem:[#allocation2 + $0xc0] sm:$0xff]  ;;  %v4570_v60 = vld [vmem:[#allocation2 + $0x188] sm:$0xff]  ;;  %v12111_v16 = vld [vmem:[%s13209_s30 + $0x158] sm:$0xff]  }
 0x21c   : > { %10982 = vmatprep.subr.bf16.mxu1 %v12084_v21  ;;  %v4557_v49 = vld [vmem:[#allocation2 + $0x120] sm:$0xff]  ;;  %v4582_v61 = vld [vmem:[#allocation2 + $0x1e8] sm:$0xff]  ;;  %v12112_v19 = vld [vmem:[%s13209_s30 + $0x118] sm:$0xff]  }
 0x21d   : > { %v10098_v50 = vcombine.high %v4545_v48, %v4557_v49  ;;  %v10097_v55 = vcombine.low %v4545_v48, %v4557_v49  ;;  %v4569_v57 = vld [vmem:[#allocation2 + $0x180] sm:$0xff]  ;;  %v10124_v63 = vcombine.high %v4570_v60, %v4582_v61  ;;  %v12105_v0 = vld [vmem:[%s13209_s30 + $0x1c8] sm:$0xff]   ;;  %v10123_v10 = vcombine.low %v4570_v60, %v4582_v61  ;;  %v12113_v20 = vld [vmem:[%s13209_s30 + $0x1d8] sm:$0xff]  }
 0x21e   : > { %10889 = vmatpush3.bf16.msra.mxu0 %v12085_v22  ;;  %v4581_v59 = vld [vmem:[#allocation2 + $0x1e0] sm:$0xff]  ;;  %v12106_v1 = vld [vmem:[%s13209_s30 + $0x188] sm:$0xff]   ;;  %v12114_v21 = vld [vmem:[%s13209_s30 + $0x198] sm:$0xff]  }
 0x21f   : > { %10983 = vmatpush3.bf16.msra.mxu1 %v12086_v23  ;;  %10890 = vmatprep.subr.bf16.mxu0 %v12087_v24  ;;  %v10122_v62 = vcombine.high %v4569_v57, %v4581_v59  ;;  %v4593_v2 = vld [vmem:[#allocation2 + $0x240] sm:$0xff]  ;;  %v4594_v4 = vld [vmem:[#allocation2 + $0x248] sm:$0xff]  ;;  %v10121_v8 = vcombine.low %v4569_v57, %v4581_v59  ;;  %v12124_v48 = vld [vmem:[%s13209_s30 + $0x130] sm:$0xff]  }
 0x220   : > { %10984 = vmatprep.subr.bf16.mxu1 %v12088_v25  ;;  %v4605_v3 = vld [vmem:[#allocation2 + $0x2a0] sm:$0xff]  ;;  %v4606_v5 = vld [vmem:[#allocation2 + $0x2a8] sm:$0xff]  ;;  %v12125_v51 = vld [vmem:[%s13209_s30 + $0x1f0] sm:$0xff]  }
 0x221   : > { %v10146_v11 = vcombine.high %v4593_v2, %v4605_v3  ;;  %v10148_v13 = vcombine.high %v4594_v4, %v4606_v5  ;;  %v4617_v14 = vld [vmem:[#allocation2 + $0x300] sm:$0xff]  ;;  %v4618_v17 = vld [vmem:[#allocation2 + $0x308] sm:$0xff]  ;;  %v10145_v22 = vcombine.low %v4593_v2, %v4605_v3  ;;  %v10147_v23 = vcombine.low %v4594_v4, %v4606_v5  ;;  %v12128_v59 = vld [vmem:[%s13209_s30 + $0x138] sm:$0xff]  }
 0x222   : > { %10891 = vmatpush3.bf16.msra.mxu0 %v12089_v26  ;;  %v4629_v15 = vld [vmem:[#allocation2 + $0x360] sm:$0xff]  ;;  %v4630_v18 = vld [vmem:[#allocation2 + $0x368] sm:$0xff]  ;;  %v12129_v60 = vld [vmem:[%s13209_s30 + $0x1f8] sm:$0xff]  }
 0x223   : > { %10985 = vmatpush3.bf16.msra.mxu1 %v12090_v27  ;;  %10892 = vmatprep.subr.bf16.mxu0 %v12091_v28  ;;  %v10170_v24 = vcombine.high %v4617_v14, %v4629_v15  ;;  %v10172_v25 = vcombine.high %v4618_v17, %v4630_v18  ;;  %v12115_v26 = vld [vmem:[%s13209_s30 + $0x160] sm:$0xff]   ;;  %v10171_v36 = vcombine.low %v4618_v17, %v4630_v18  ;;  %v12120_v38 = vld [vmem:[%s13209_s30 + $0x128] sm:$0xff]   ;;  %v12130_v61 = vld [vmem:[%s13209_s30 + $0x1b8] sm:$0xff]  }
 0x224   : > { %10986 = vmatprep.subr.bf16.mxu1 %v12092_v29  ;;  %v12116_v27 = vld [vmem:[%s13209_s30 + $0x120] sm:$0xff]   ;;  %v12121_v40 = vld [vmem:[%s13209_s30 + $0x1e8] sm:$0xff]  }
 0x225   : > { %v12117_v28 = vld [vmem:[%s13209_s30 + $0x1e0] sm:$0xff]   ;;  %v12122_v41 = vld [vmem:[%s13209_s30 + $0x1a8] sm:$0xff]  }
 0x226   : > { %10893 = vmatpush3.bf16.msra.mxu0 %v12093_v30  ;;  %v4641_v29 = vld [vmem:[#allocation2 + $0x3c0] sm:$0xff]  ;;  %v4690_v57 = vld [vmem:[#allocation2 + $0x548] sm:$0xff] }
 0x227   : > { %10987 = vmatpush3.bf16.msra.mxu1 %v12094_v31  ;;  %10894 = vmatprep.subr.bf16.mxu0 %v12095_v32  ;;  %v4653_v30 = vld [vmem:[#allocation2 + $0x420] sm:$0xff]  ;;  %v4642_v32 = vld [vmem:[#allocation2 + $0x3c8] sm:$0xff] }
 0x228   : > { %10988 = vmatprep.subr.bf16.mxu1 %v12096_v33  ;;  %v12118_v31 = vld [vmem:[%s13209_s30 + $0x1a0] sm:$0xff]   ;;  %v4654_v33 = vld [vmem:[#allocation2 + $0x428] sm:$0xff]  ;;  %v10194_v37 = vcombine.high %v4641_v29, %v4653_v30 }
 0x229   : > { %v4677_v43 = vld [vmem:[#allocation2 + $0x4e0] sm:$0xff]  ;;  %v10195_v49 = vcombine.low %v4642_v32, %v4654_v33 }
 0x22a   : > { %10895 = vmatpush3.bf16.msra.mxu0 %v12097_v34  ;;  %v10169_v34 = vcombine.low %v4617_v14, %v4629_v15  ;;  %v12135_v2 = vld [vmem:[%s13209_s30 + $0x240] sm:$0xff]   ;;  %v4738_v14 = vld [vmem:[#allocation2 + $0x6c8] sm:$0xff] }
 0x22b   : > { %10989 = vmatpush3.bf16.msra.mxu1 %v12098_v35  ;;  %11068 = vmatprep.subr.bf16.mxu0 %v12099_v44  ;;  %v12119_v35 = vld [vmem:[%s13209_s30 + $0x168] sm:$0xff]   ;;  %v12123_v44 = vld [vmem:[%s13209_s30 + $0x170] sm:$0xff]   ;;  %v12137_v3 = vld [vmem:[%s13209_s30 + $0x2c0] sm:$0xff]  }
 0x22c   : > { %11162 = vmatprep.subr.bf16.mxu1 %v12101_v46  ;;  %v4678_v46 = vld [vmem:[#allocation2 + $0x4e8] sm:$0xff]  ;;  %v4713_v4 = vld [vmem:[#allocation2 + $0x600] sm:$0xff] }
 0x22d   : > { %7921 = vmatmul.mubr.bf16.vlgmr.msra.gmra.mrb[0].mxu0 %v10073_v39  ;;  %v10196_v39 = vcombine.high %v4642_v32, %v4654_v33  ;;  %v4725_v5 = vld [vmem:[#allocation2 + $0x660] sm:$0xff]  ;;  %v4750_v15 = vld [vmem:[#allocation2 + $0x728] sm:$0xff] }
 0x22e   : > { %8057 = vmatmul.mubr.bf16.vlgmr.msra.gmra.mrb[0].mxu1 %v10075_v42  ;;  %11069 = vmatpush3.bf16.msra.mxu0 %v12100_v45  ;;  %v4665_v42 = vld [vmem:[#allocation2 + $0x480] sm:$0xff]  ;;  %v4666_v45 = vld [vmem:[#allocation2 + $0x488] sm:$0xff] }
 0x22f   : > { %11163 = vmatpush3.bf16.msra.mxu1 %v12102_v47  ;;  %7928 = vmatprep.mubr.bf16.mxu0 %v10098_v50  ;;  %v10193_v47 = vcombine.low %v4641_v29, %v4653_v30  ;;  %v10218_v50 = vcombine.high %v4665_v42, %v4677_v43  ;;  %v10220_v52 = vcombine.high %v4666_v45, %v4678_v46  ;;  %v4797_v29 = vld [vmem:[#allocation2 + $0x8a0] sm:$0xff]  ;;  %v4786_v30 = vld [vmem:[#allocation2 + $0x848] sm:$0xff] }
 0x230   : > { %8064 = vmatprep.mubr.bf16.mxu1 %v10100_v53  ;;  %11070 = vmatprep.subr.bf16.mxu0 %v12103_v54  ;;  %v12126_v53 = vld [vmem:[%s13209_s30 + $0x1b0] sm:$0xff]   ;;  %v4689_v54 = vld [vmem:[#allocation2 + $0x540] sm:$0xff] }
 0x231   : > { %11164 = vmatprep.subr.bf16.mxu1 %v12105_v0 }
 0x232   : > { %11071 = vmatpush3.bf16.msra.mxu0 %v12104_v56  ;;  %v12127_v56 = vld [vmem:[%s13209_s30 + $0x178] sm:$0xff]  }
 0x233   : > { %11165 = vmatpush3.bf16.msra.mxu1 %v12106_v1  ;;  %11072 = vmatprep.subr.bf16.mxu0 %v12107_v6  ;;  %v4714_v6 = vld [vmem:[#allocation2 + $0x608] sm:$0xff] }
 0x234   : > { %11166 = vmatprep.subr.bf16.mxu1 %v12109_v9 }
 0x235   : > { %7929 = vmatmul.mubr.bf16.gmra.mrb[4].mxu0 %v10097_v55  ;;  %v4701_v55 = vld [vmem:[#allocation2 + $0x5a0] sm:$0xff] }
 0x236   : > { %8065 = vmatmul.mubr.bf16.gmra.mrb[4].mxu1 %v10099_v58  ;;  %7936 = vmatprep.mubr.bf16.mxu0 %v10122_v62  ;;  %v4702_v58 = vld [vmem:[#allocation2 + $0x5a8] sm:$0xff]  ;;  %v10217_v62 = vcombine.low %v4665_v42, %v4677_v43  ;;  %v10242_v0 = vcombine.high %v4689_v54, %v4701_v55  ;;  %v4523_v42 = vld [vmem:[#allocation2 + $0x10] sm:$0xff] }
 0x237   : > { %8072 = vmatprep.mubr.bf16.mxu1 %v10124_v63  ;;  %11073 = vmatpush3.bf16.msra.mxu0 %v12108_v7  ;;  %v10219_v63 = vcombine.low %v4666_v45, %v4678_v46  ;;  %v10244_v1 = vcombine.high %v4690_v57, %v4702_v58  ;;  %v4726_v7 = vld [vmem:[#allocation2 + $0x668] sm:$0xff]  ;;  %v10243_v9 = vcombine.low %v4690_v57, %v4702_v58  ;;  %v4535_v43 = vld [vmem:[#allocation2 + $0x70] sm:$0xff]  ;;  %v4536_v45 = vld [vmem:[#allocation2 + $0x78] sm:$0xff] }
 0x238   : > { %11167 = vmatpush3.bf16.msra.mxu1 %v12110_v12  ;;  %11074 = vmatprep.subr.bf16.mxu0 %v12111_v16  ;;  %v4737_v12 = vld [vmem:[#allocation2 + $0x6c0] sm:$0xff]  ;;  %v10265_v16 = vcombine.low %v4713_v4, %v4725_v5  ;;  %v10267_v17 = vcombine.low %v4714_v6, %v4726_v7 }
 0x239   : > { %11168 = vmatprep.subr.bf16.mxu1 %v12113_v20  ;;  %v4761_v20 = vld [vmem:[#allocation2 + $0x780] sm:$0xff] }
 0x23a   : > { %v12138_v57 = vld [vmem:[%s13209_s30 + $0x280] sm:$0xff]  }
 0x23b   : > { %11075 = vmatpush3.bf16.msra.mxu0 %v12112_v19  ;;  %v10292_v19 = vcombine.high %v4738_v14, %v4750_v15 }
 0x23c   : > { %11169 = vmatpush3.bf16.msra.mxu1 %v12114_v21  ;;  %11076 = vmatprep.subr.bf16.mxu0 %v12115_v26  ;;  %v4773_v21 = vld [vmem:[#allocation2 + $0x7e0] sm:$0xff] }
 0x23d   : > { %7937 = vmatmul.mubr.bf16.gmra.mrb[8].mxu0 %v10121_v8  ;;  %11170 = vmatprep.subr.bf16.mxu1 %v12117_v28  ;;  %v10241_v8 = vcombine.low %v4689_v54, %v4701_v55  ;;  %v10314_v26 = vcombine.high %v4761_v20, %v4773_v21  ;;  %v4785_v28 = vld [vmem:[#allocation2 + $0x840] sm:$0xff]  ;;  %v10313_v32 = vcombine.low %v4761_v20, %v4773_v21  ;;  %v4560_v54 = vld [vmem:[#allocation2 + $0x138] sm:$0xff] }
 0x23e   : > { %8073 = vmatmul.mubr.bf16.gmra.mrb[8].mxu1 %v10123_v10  ;;  %7944 = vmatprep.mubr.bf16.mxu0 %v10146_v11  ;;  %v10266_v10 = vcombine.high %v4713_v4, %v4725_v5  ;;  %v10268_v11 = vcombine.high %v4714_v6, %v4726_v7  ;;  %v12143_v4 = vld [vmem:[%s13209_s30 + $0x250] sm:$0xff]   ;;  %v12151_v20 = vld [vmem:[%s13209_s30 + $0x260] sm:$0xff]  }
 0x23f   : > { %8080 = vmatprep.mubr.bf16.mxu1 %v10148_v13  ;;  %11077 = vmatpush3.bf16.msra.mxu0 %v12116_v27  ;;  %v4749_v13 = vld [vmem:[#allocation2 + $0x720] sm:$0xff]  ;;  %v12145_v5 = vld [vmem:[%s13209_s30 + $0x2d0] sm:$0xff]  }
 0x240   : > { %11171 = vmatpush3.bf16.msra.mxu1 %v12118_v31  ;;  %11078 = vmatprep.subr.bf16.mxu0 %v12119_v35  ;;  %v10290_v18 = vcombine.high %v4737_v12, %v4749_v13  ;;  %v4798_v31 = vld [vmem:[#allocation2 + $0x8a8] sm:$0xff]  ;;  %v12153_v21 = vld [vmem:[%s13209_s30 + $0x2e0] sm:$0xff]  }
 0x241   : > { %11172 = vmatprep.subr.bf16.mxu1 %v12121_v40  ;;  %v10340_v35 = vcombine.high %v4786_v30, %v4798_v31 }
 0x243   : > { %11079 = vmatpush3.bf16.msra.mxu0 %v12120_v38  ;;  %v10337_v38 = vcombine.low %v4785_v28, %v4797_v29 }
 0x244   : > { %11173 = vmatpush3.bf16.msra.mxu1 %v12122_v41  ;;  %11080 = vmatprep.subr.bf16.mxu0 %v12123_v44  ;;  %v4524_v44 = vld [vmem:[#allocation2 + $0x18] sm:$0xff] }
 0x245   : > { %7945 = vmatmul.mubr.bf16.gmra.mrb[12].mxu0 %v10145_v22  ;;  %11174 = vmatprep.subr.bf16.mxu1 %v12125_v51  ;;  %v4762_v22 = vld [vmem:[#allocation2 + $0x788] sm:$0xff]  ;;  %v4559_v51 = vld [vmem:[#allocation2 + $0x130] sm:$0xff]  ;;  %v10079_v55 = vcombine.low %v4524_v44, %v4536_v45 }
 0x246   : > { %8081 = vmatmul.mubr.bf16.gmra.mrb[12].mxu1 %v10147_v23  ;;  %7952 = vmatprep.mubr.bf16.mxu0 %v10170_v24  ;;  %v4774_v23 = vld [vmem:[#allocation2 + $0x7e8] sm:$0xff]  ;;  %v10289_v24 = vcombine.low %v4737_v12, %v4749_v13  ;;  %v12147_v12 = vld [vmem:[%s13209_s30 + $0x258] sm:$0xff]   ;;  %v4595_v13 = vld [vmem:[#allocation2 + $0x250] sm:$0xff] }
 0x247   : > { %8088 = vmatprep.mubr.bf16.mxu1 %v10172_v25  ;;  %11081 = vmatpush3.bf16.msra.mxu0 %v12124_v48  ;;  %v10291_v25 = vcombine.low %v4738_v14, %v4750_v15  ;;  %v10316_v27 = vcombine.high %v4762_v22, %v4774_v23  ;;  %v10315_v33 = vcombine.low %v4762_v22, %v4774_v23  ;;  %v4607_v14 = vld [vmem:[#allocation2 + $0x2b0] sm:$0xff]  ;;  %v12148_v15 = vld [vmem:[%s13209_s30 + $0x218] sm:$0xff]  }
 0x248   : > { %11175 = vmatpush3.bf16.msra.mxu1 %v12126_v53  ;;  %11082 = vmatprep.subr.bf16.mxu0 %v12127_v56  ;;  %v10078_v48 = vcombine.high %v4523_v42, %v4535_v43  ;;  %v10077_v53 = vcombine.low %v4523_v42, %v4535_v43  ;;  %v12136_v56 = vld [vmem:[%s13209_s30 + $0x200] sm:$0xff]   ;;  %v12162_v42 = vld [vmem:[%s13209_s30 + $0x2b0] sm:$0xff]   ;;  %v12163_v43 = vld [vmem:[%s13209_s30 + $0x278] sm:$0xff]  }
 0x249   : > { %11176 = vmatprep.subr.bf16.mxu1 %v12129_v60  ;;  %v12139_v60 = vld [vmem:[%s13209_s30 + $0x248] sm:$0xff]  }
 0x24b   : > { %11083 = vmatpush3.bf16.msra.mxu0 %v12128_v59 }
 0x24c   : > { %11177 = vmatpush3.bf16.msra.mxu1 %v12130_v61  ;;  %11256 = vmatprep.subr.bf16.mxu0 %v12135_v2  ;;  %v12140_v61 = vld [vmem:[%s13209_s30 + $0x208] sm:$0xff]   ;;  %v4584_v2 = vld [vmem:[#allocation2 + $0x1f8] sm:$0xff] }
 0x24d   : > { %7953 = vmatmul.mubr.bf16.gmra.mrb[16].mxu0 %v10169_v34  ;;  %11350 = vmatprep.subr.bf16.mxu1 %v12137_v3  ;;  %v10338_v34 = vcombine.high %v4785_v28, %v4797_v29  ;;  %v12142_v3 = vld [vmem:[%s13209_s30 + $0x288] sm:$0xff]  }
 0x24e   : > { %8089 = vmatmul.mubr.bf16.gmra.mrb[16].mxu1 %v10171_v36  ;;  %7960 = vmatprep.mubr.bf16.mxu0 %v10194_v37  ;;  %v4809_v36 = vld [vmem:[#allocation2 + $0x900] sm:$0x33]  ;;  %v4810_v37 = vld [vmem:[#allocation2 + $0x908] sm:$0x33] }
 0x24f   : > { %8096 = vmatprep.mubr.bf16.mxu1 %v10196_v39  ;;  %v10339_v39 = vcombine.low %v4786_v30, %v4798_v31  ;;  %v10362_v40 = vcombine.high %v4809_v36, %v4809_v36  ;;  %v10364_v41 = vcombine.high %v4810_v37, %v4810_v37  ;;  %v10361_v46 = vcombine.low %v4809_v36, %v4809_v36  ;;  %v12157_v29 = vld [vmem:[%s13209_s30 + $0x2e8] sm:$0xff]   ;;  %v4619_v30 = vld [vmem:[#allocation2 + $0x310] sm:$0xff] }
 0x250   : > { %v4631_v31 = vld [vmem:[#allocation2 + $0x370] sm:$0xff] }
 0x251   : > { %v12159_v36 = vld [vmem:[%s13209_s30 + $0x270] sm:$0xff]  }
 0x255   : > { %7961 = vmatmul.mubr.bf16.gmra.mrb[20].mxu0 %v10193_v47  ;;  %v10363_v47 = vcombine.low %v4810_v37, %v4810_v37  ;;  %v12161_v37 = vld [vmem:[%s13209_s30 + $0x2f0] sm:$0xff]  }
 0x256   : > { %8097 = vmatmul.mubr.bf16.gmra.mrb[20].mxu1 %v10195_v49  ;;  %7968 = vmatprep.mubr.bf16.mxu0 %v10218_v50  ;;  %v10080_v49 = vcombine.high %v4524_v44, %v4536_v45  ;;  %v4547_v50 = vld [vmem:[#allocation2 + $0xd0] sm:$0xff]  ;;  %v12165_v45 = vld [vmem:[%s13209_s30 + $0x2f8] sm:$0xff]  }
 0x257   : > { %8104 = vmatprep.mubr.bf16.mxu1 %v10220_v52  ;;  %v4548_v52 = vld [vmem:[#allocation2 + $0xd8] sm:$0xff]  ;;  %v10102_v58 = vcombine.high %v4547_v50, %v4559_v51  ;;  %v10101_v6 = vcombine.low %v4547_v50, %v4559_v51 }
 0x258   : > { %v10104_v59 = vcombine.high %v4548_v52, %v4560_v54  ;;  %v10103_v7 = vcombine.low %v4548_v52, %v4560_v54  ;;  %v4656_v50 = vld [vmem:[#allocation2 + $0x438] sm:$0xff]  ;;  %v12171_v52 = vld [vmem:[%s13209_s30 + $0x340] sm:$0xff]   ;;  %v10173_v54 = vcombine.low %v4619_v30, %v4631_v31 }
 0x259   : > { %v12166_v51 = vld [vmem:[%s13209_s30 + $0x2b8] sm:$0xff]  }
 0x25d   : > { %7969 = vmatmul.mubr.bf16.gmra.mrb[24].mxu0 %v10217_v62  ;;  %v4571_v62 = vld [vmem:[#allocation2 + $0x190] sm:$0xff] }
 0x25e   : > { %8105 = vmatmul.mubr.bf16.gmra.mrb[24].mxu1 %v10219_v63  ;;  %7976 = vmatprep.mubr.bf16.mxu0 %v10242_v0  ;;  %v12141_v63 = vld [vmem:[%s13209_s30 + $0x2c8] sm:$0xff]   ;;  %v4583_v0 = vld [vmem:[#allocation2 + $0x1f0] sm:$0xff] }
 0x25f   : > { %8112 = vmatprep.mubr.bf16.mxu1 %v10244_v1  ;;  %v4572_v1 = vld [vmem:[#allocation2 + $0x198] sm:$0xff]  ;;  %v10125_v22 = vcombine.low %v4571_v62, %v4583_v0 }
 0x260   : > { %v10127_v23 = vcombine.low %v4572_v1, %v4584_v2 }
 0x265   : > { %7977 = vmatmul.mubr.bf16.gmra.mrb[28].mxu0 %v10241_v8  ;;  %v10126_v8 = vcombine.high %v4571_v62, %v4583_v0 }
 0x266   : > { %8113 = vmatmul.mubr.bf16.gmra.mrb[28].mxu1 %v10243_v9  ;;  %7984 = vmatprep.mubr.bf16.mxu0 %v10266_v10  ;;  %v10128_v9 = vcombine.high %v4572_v1, %v4584_v2  ;;  %v12144_v10 = vld [vmem:[%s13209_s30 + $0x210] sm:$0xff]  }
 0x267   : > { %8120 = vmatprep.mubr.bf16.mxu1 %v10268_v11  ;;  %v12146_v11 = vld [vmem:[%s13209_s30 + $0x290] sm:$0xff]  }
 0x268   : > { %v4691_v2 = vld [vmem:[#allocation2 + $0x550] sm:$0xff] }
 0x26d   : > { %7985 = vmatmul.mubr.bf16.gmra.mrb[32].mxu0 %v10265_v16  ;;  %v12149_v16 = vld [vmem:[%s13209_s30 + $0x2d8] sm:$0xff]  }
 0x26e   : > { %8121 = vmatmul.mubr.bf16.gmra.mrb[32].mxu1 %v10267_v17  ;;  %7992 = vmatprep.mubr.bf16.mxu0 %v10290_v18  ;;  %v4596_v17 = vld [vmem:[#allocation2 + $0x258] sm:$0xff] }
 0x26f   : > { %8128 = vmatprep.mubr.bf16.mxu1 %v10292_v19  ;;  %v4608_v18 = vld [vmem:[#allocation2 + $0x2b8] sm:$0xff] }
 0x270   : > { %v12150_v19 = vld [vmem:[%s13209_s30 + $0x298] sm:$0xff]   ;;  %v10152_v28 = vcombine.high %v4596_v17, %v4608_v18 }
 0x275   : > { %7993 = vmatmul.mubr.bf16.gmra.mrb[36].mxu0 %v10289_v24  ;;  %v10150_v24 = vcombine.high %v4595_v13, %v4607_v14 }
 0x276   : > { %8129 = vmatmul.mubr.bf16.gmra.mrb[36].mxu1 %v10291_v25  ;;  %8000 = vmatprep.mubr.bf16.mxu0 %v10314_v26  ;;  %v12152_v25 = vld [vmem:[%s13209_s30 + $0x220] sm:$0xff]  }
 0x277   : > { %8136 = vmatprep.mubr.bf16.mxu1 %v10316_v27  ;;  %v12154_v26 = vld [vmem:[%s13209_s30 + $0x2a0] sm:$0xff]   ;;  %v12155_v27 = vld [vmem:[%s13209_s30 + $0x268] sm:$0xff]  }
 0x27d   : > { %8001 = vmatmul.mubr.bf16.gmra.mrb[40].mxu0 %v10313_v32  ;;  %v4620_v32 = vld [vmem:[#allocation2 + $0x318] sm:$0xff] }
 0x27e   : > { %8137 = vmatmul.mubr.bf16.gmra.mrb[40].mxu1 %v10315_v33  ;;  %8008 = vmatprep.mubr.bf16.mxu0 %v10338_v34  ;;  %v4632_v33 = vld [vmem:[#allocation2 + $0x378] sm:$0xff]  ;;  %v12156_v34 = vld [vmem:[%s13209_s30 + $0x228] sm:$0xff]  }
 0x27f   : > { %8144 = vmatprep.mubr.bf16.mxu1 %v10340_v35  ;;  %v12158_v35 = vld [vmem:[%s13209_s30 + $0x2a8] sm:$0xff]   ;;  %v10176_v44 = vcombine.high %v4620_v32, %v4632_v33 }
 0x285   : > { %8009 = vmatmul.mubr.bf16.gmra.mrb[44].mxu0 %v10337_v38  ;;  %v10149_v38 = vcombine.low %v4595_v13, %v4607_v14  ;;  %v4728_v13 = vld [vmem:[#allocation2 + $0x678] sm:$0xff] }
 0x286   : > { %8145 = vmatmul.mubr.bf16.gmra.mrb[44].mxu1 %v10339_v39  ;;  %8016 = vmatprep.mubr.bf16.mxu0 %v10362_v40  ;;  %v10151_v39 = vcombine.low %v4596_v17, %v4608_v18  ;;  %v10174_v40 = vcombine.high %v4619_v30, %v4631_v31  ;;  %v4739_v18 = vld [vmem:[#allocation2 + $0x6d0] sm:$0xff] }
 0x287   : > { %8152 = vmatprep.mubr.bf16.mxu1 %v10364_v41  ;;  %v12160_v41 = vld [vmem:[%s13209_s30 + $0x230] sm:$0xff]  }
 0x28d   : > { %8017 = vmatmul.mubr.bf16.gmra.mrb[48].mxu0 %v10361_v46  ;;  %v4643_v46 = vld [vmem:[#allocation2 + $0x3d0] sm:$0xff] }
 0x28e   : > { %8153 = vmatmul.mubr.bf16.gmra.mrb[48].mxu1 %v10363_v47  ;;  %8192 = vmatprep.mubr.bf16.mxu0 %v10078_v48  ;;  %v4655_v47 = vld [vmem:[#allocation2 + $0x430] sm:$0xff]  ;;  %v12164_v48 = vld [vmem:[%s13209_s30 + $0x238] sm:$0xff]  }
 0x28f   : > { %8328 = vmatprep.mubr.bf16.mxu1 %v10080_v49  ;;  %v4644_v49 = vld [vmem:[#allocation2 + $0x3d8] sm:$0xff]  ;;  %v10197_v62 = vcombine.low %v4643_v46, %v4655_v47 }
 0x295   : > { %8193 = vmatmul.mubr.bf16.vlgmr.msra.gmra.mrb[52].mxu0 %v10077_v53  ;;  %v12173_v53 = vld [vmem:[%s13209_s30 + $0x3c0] sm:$0xff]  }
 0x296   : > { %8329 = vmatmul.mubr.bf16.vlgmr.msra.gmra.mrb[52].mxu1 %v10079_v55  ;;  %11257 = vmatpush3.bf16.msra.mxu0 %v12136_v56  ;;  %v10175_v55 = vcombine.low %v4620_v32, %v4632_v33  ;;  %v10198_v56 = vcombine.high %v4643_v46, %v4655_v47 }
 0x297   : > { %11351 = vmatpush3.bf16.msra.mxu1 %v12138_v57  ;;  %8200 = vmatprep.mubr.bf16.mxu0 %v10102_v58  ;;  %v10200_v57 = vcombine.high %v4644_v49, %v4656_v50  ;;  %v4667_v58 = vld [vmem:[#allocation2 + $0x490] sm:$0xff] }
 0x298   : > { %8336 = vmatprep.mubr.bf16.mxu1 %v10104_v59  ;;  %11258 = vmatprep.subr.bf16.mxu0 %v12139_v60  ;;  %v4679_v59 = vld [vmem:[#allocation2 + $0x4f0] sm:$0xff]  ;;  %v4668_v60 = vld [vmem:[#allocation2 + $0x498] sm:$0xff] }
 0x299   : > { %11352 = vmatprep.subr.bf16.mxu1 %v12141_v63  ;;  %v10199_v63 = vcombine.low %v4644_v49, %v4656_v50  ;;  %v10222_v0 = vcombine.high %v4667_v58, %v4679_v59  ;;  %v4537_v49 = vld [vmem:[#allocation2 + $0x80] sm:$0xff]  ;;  %v4526_v50 = vld [vmem:[#allocation2 + $0x28] sm:$0xff] }
 0x29a   : > { %11259 = vmatpush3.bf16.msra.mxu0 %v12140_v61  ;;  %v4680_v61 = vld [vmem:[#allocation2 + $0x4f8] sm:$0xff] }
 0x29b   : > { %11353 = vmatpush3.bf16.msra.mxu1 %v12142_v3  ;;  %11260 = vmatprep.subr.bf16.mxu0 %v12143_v4  ;;  %v10224_v1 = vcombine.high %v4668_v60, %v4680_v61  ;;  %v4703_v3 = vld [vmem:[#allocation2 + $0x5b0] sm:$0xff]  ;;  %v4692_v4 = vld [vmem:[#allocation2 + $0x558] sm:$0xff] }
 0x29c   : > { %11354 = vmatprep.subr.bf16.mxu1 %v12145_v5  ;;  %v4704_v5 = vld [vmem:[#allocation2 + $0x5b8] sm:$0xff]  ;;  %v10245_v14 = vcombine.low %v4691_v2, %v4703_v3 }
 0x29d   : > { %8201 = vmatmul.mubr.bf16.gmra.mrb[56].mxu0 %v10101_v6  ;;  %v10221_v6 = vcombine.low %v4667_v58, %v4679_v59  ;;  %v4550_v59 = vld [vmem:[#allocation2 + $0xe8] sm:$0xff] }
 0x29e   : > { %8337 = vmatmul.mubr.bf16.gmra.mrb[56].mxu1 %v10103_v7  ;;  %8208 = vmatprep.mubr.bf16.mxu0 %v10126_v8  ;;  %v10223_v7 = vcombine.low %v4668_v60, %v4680_v61  ;;  %v10246_v8 = vcombine.high %v4691_v2, %v4703_v3  ;;  %v4562_v60 = vld [vmem:[#allocation2 + $0x148] sm:$0xff] }
 0x29f   : > { %8344 = vmatprep.mubr.bf16.mxu1 %v10128_v9  ;;  %11261 = vmatpush3.bf16.msra.mxu0 %v12144_v10  ;;  %v10248_v9 = vcombine.high %v4692_v4, %v4704_v5  ;;  %v4715_v10 = vld [vmem:[#allocation2 + $0x610] sm:$0xff]  ;;  %v12175_v2 = vld [vmem:[%s13209_s30 + $0x348] sm:$0xff]  }
 0x2a0   : > { %11355 = vmatpush3.bf16.msra.mxu1 %v12146_v11  ;;  %11262 = vmatprep.subr.bf16.mxu0 %v12147_v12  ;;  %v4727_v11 = vld [vmem:[#allocation2 + $0x670] sm:$0xff]  ;;  %v4716_v12 = vld [vmem:[#allocation2 + $0x618] sm:$0xff]  ;;  %v12177_v3 = vld [vmem:[%s13209_s30 + $0x3c8] sm:$0xff]  }
 0x2a1   : > { %11356 = vmatprep.subr.bf16.mxu1 %v12149_v16  ;;  %v10270_v16 = vcombine.high %v4715_v10, %v4727_v11  ;;  %v10272_v17 = vcombine.high %v4716_v12, %v4728_v13 }
 0x2a3   : > { %11263 = vmatpush3.bf16.msra.mxu0 %v12148_v15  ;;  %v10247_v15 = vcombine.low %v4692_v4, %v4704_v5  ;;  %v12176_v4 = vld [vmem:[%s13209_s30 + $0x308] sm:$0xff]   ;;  %v15117_v5 = vld [vmem:[#allocation2 + $0x1a0] sm:$0xff] }
 0x2a4   : > { %11357 = vmatpush3.bf16.msra.mxu1 %v12150_v19  ;;  %11264 = vmatprep.subr.bf16.mxu0 %v12151_v20  ;;  %v4751_v19 = vld [vmem:[#allocation2 + $0x730] sm:$0xff]  ;;  %v4740_v20 = vld [vmem:[#allocation2 + $0x6d8] sm:$0xff] }
 0x2a5   : > { %8209 = vmatmul.mubr.bf16.gmra.mrb[60].mxu0 %v10125_v22  ;;  %11358 = vmatprep.subr.bf16.mxu1 %v12153_v21  ;;  %v4752_v21 = vld [vmem:[#allocation2 + $0x738] sm:$0xff]  ;;  %v10269_v22 = vcombine.low %v4715_v10, %v4727_v11  ;;  %v10293_v30 = vcombine.low %v4739_v18, %v4751_v19  ;;  %v15123_v10 = vld [vmem:[#allocation2 + $0x1a8] sm:$0xff] }
 0x2a6   : > { %8345 = vmatmul.mubr.bf16.gmra.mrb[60].mxu1 %v10127_v23  ;;  %8216 = vmatprep.mubr.bf16.mxu0 %v10150_v24  ;;  %v10271_v23 = vcombine.low %v4716_v12, %v4728_v13  ;;  %v10294_v24 = vcombine.high %v4739_v18, %v4751_v19  ;;  %v10295_v31 = vcombine.low %v4740_v20, %v4752_v21  ;;  %v15125_v11 = vld [vmem:[#allocation2 + $0x208] sm:$0xff]  ;;  %v12181_v12 = vld [vmem:[%s13209_s30 + $0x3d0] sm:$0xff]  }
 0x2a7   : > { %8352 = vmatprep.mubr.bf16.mxu1 %v10152_v28  ;;  %11265 = vmatpush3.bf16.msra.mxu0 %v12152_v25  ;;  %v10296_v25 = vcombine.high %v4740_v20, %v4752_v21  ;;  %v4764_v28 = vld [vmem:[#allocation2 + $0x798] sm:$0xff]  ;;  %v10107_v20 = vcombine.low %v4550_v59, %v4562_v60 }
 0x2a8   : > { %11359 = vmatpush3.bf16.msra.mxu1 %v12154_v26  ;;  %11266 = vmatprep.subr.bf16.mxu0 %v12155_v27  ;;  %v4763_v26 = vld [vmem:[#allocation2 + $0x790] sm:$0xff] }
 0x2a9   : > { %11360 = vmatprep.subr.bf16.mxu1 %v12157_v29  ;;  %v4775_v27 = vld [vmem:[#allocation2 + $0x7f0] sm:$0xff]  ;;  %v4776_v29 = vld [vmem:[#allocation2 + $0x7f8] sm:$0xff] }
 0x2aa   : > { %v10318_v32 = vcombine.high %v4763_v26, %v4775_v27  ;;  %v10320_v33 = vcombine.high %v4764_v28, %v4776_v29 }
 0x2ab   : > { %11267 = vmatpush3.bf16.msra.mxu0 %v12156_v34  ;;  %v4787_v34 = vld [vmem:[#allocation2 + $0x850] sm:$0xff] }
 0x2ac   : > { %11361 = vmatpush3.bf16.msra.mxu1 %v12158_v35  ;;  %11268 = vmatprep.subr.bf16.mxu0 %v12159_v36  ;;  %v4799_v35 = vld [vmem:[#allocation2 + $0x8b0] sm:$0xff]  ;;  %v4788_v36 = vld [vmem:[#allocation2 + $0x858] sm:$0xff] }
 0x2ad   : > { %8217 = vmatmul.mubr.bf16.gmra.mrb[64].mxu0 %v10149_v38  ;;  %11362 = vmatprep.subr.bf16.mxu1 %v12161_v37  ;;  %v4800_v37 = vld [vmem:[#allocation2 + $0x8b8] sm:$0xff]  ;;  %v10317_v38 = vcombine.low %v4763_v26, %v4775_v27  ;;  %v12180_v26 = vld [vmem:[%s13209_s30 + $0x310] sm:$0xff]  }
 0x2ae   : > { %8353 = vmatmul.mubr.bf16.gmra.mrb[64].mxu1 %v10151_v39  ;;  %8224 = vmatprep.mubr.bf16.mxu0 %v10174_v40  ;;  %v10319_v39 = vcombine.low %v4764_v28, %v4776_v29  ;;  %v10342_v40 = vcombine.high %v4787_v34, %v4799_v35 }
 0x2af   : > { %8360 = vmatprep.mubr.bf16.mxu1 %v10176_v44  ;;  %11269 = vmatpush3.bf16.msra.mxu0 %v12160_v41  ;;  %v10344_v41 = vcombine.high %v4788_v36, %v4800_v37  ;;  %v10341_v44 = vcombine.low %v4787_v34, %v4799_v35 }
 0x2b0   : > { %11363 = vmatpush3.bf16.msra.mxu1 %v12162_v42  ;;  %11270 = vmatprep.subr.bf16.mxu0 %v12163_v43  ;;  %v4811_v42 = vld [vmem:[#allocation2 + $0x910] sm:$0x33]  ;;  %v4812_v43 = vld [vmem:[#allocation2 + $0x918] sm:$0x33] }
 0x2b1   : > { %11364 = vmatprep.subr.bf16.mxu1 %v12165_v45  ;;  %v10343_v45 = vcombine.low %v4788_v36, %v4800_v37  ;;  %v10366_v46 = vcombine.high %v4811_v42, %v4811_v42  ;;  %v10368_v47 = vcombine.high %v4812_v43, %v4812_v43  ;;  %v15147_v36 = vld [vmem:[#allocation2 + $0x260] sm:$0xff] }
 0x2b2   : > { %v15149_v37 = vld [vmem:[#allocation2 + $0x2c0] sm:$0xff] }
 0x2b3   : > { %11271 = vmatpush3.bf16.msra.mxu0 %v12164_v48  ;;  %v4525_v48 = vld [vmem:[#allocation2 + $0x20] sm:$0xff] }
 0x2b4   : > { %11365 = vmatpush3.bf16.msra.mxu1 %v12166_v51  ;;  %11444 = vmatprep.subr.bf16.mxu0 %v12171_v52  ;;  %v4538_v51 = vld [vmem:[#allocation2 + $0x88] sm:$0xff]  ;;  %v10365_v52 = vcombine.low %v4811_v42, %v4811_v42  ;;  %v10081_v58 = vcombine.low %v4525_v48, %v4537_v49 }
 0x2b5   : > { %8225 = vmatmul.mubr.bf16.gmra.mrb[68].mxu0 %v10173_v54  ;;  %11538 = vmatprep.subr.bf16.mxu1 %v12173_v53  ;;  %v10367_v53 = vcombine.low %v4812_v43, %v4812_v43  ;;  %v10082_v54 = vcombine.high %v4525_v48, %v4537_v49  ;;  %v10083_v61 = vcombine.low %v4526_v50, %v4538_v51  ;;  %v15156_v42 = vld [vmem:[#allocation2 + $0x2c8] sm:$0xff]  ;;  %v12186_v43 = vld [vmem:[%s13209_s30 + $0x398] sm:$0xff]   ;;  %v12189_v48 = vld [vmem:[%s13209_s30 + $0x3e0] sm:$0xff]  }
 0x2b6   : > { %8361 = vmatmul.mubr.bf16.gmra.mrb[68].mxu1 %v10175_v55  ;;  %8232 = vmatprep.mubr.bf16.mxu0 %v10198_v56  ;;  %v10084_v55 = vcombine.high %v4526_v50, %v4538_v51  ;;  %v4549_v56 = vld [vmem:[#allocation2 + $0xe0] sm:$0xff] }
 0x2b7   : > { %8368 = vmatprep.mubr.bf16.mxu1 %v10200_v57  ;;  %v4561_v57 = vld [vmem:[#allocation2 + $0x140] sm:$0xff] }
 0x2bd   : > { %8233 = vmatmul.mubr.bf16.gmra.mrb[72].mxu0 %v10197_v62  ;;  %v12172_v62 = vld [vmem:[%s13209_s30 + $0x300] sm:$0xff]  }
 0x2be   : > { %8369 = vmatmul.mubr.bf16.gmra.mrb[72].mxu1 %v10199_v63  ;;  %8240 = vmatprep.mubr.bf16.mxu0 %v10222_v0  ;;  %v12174_v63 = vld [vmem:[%s13209_s30 + $0x380] sm:$0xff]   ;;  %v10106_v0 = vcombine.high %v4549_v56, %v4561_v57 }
 0x2bf   : > { %8376 = vmatprep.mubr.bf16.mxu1 %v10224_v1  ;;  %v10108_v1 = vcombine.high %v4550_v59, %v4562_v60 }
 0x2c5   : > { %8241 = vmatmul.mubr.bf16.gmra.mrb[76].mxu0 %v10221_v6  ;;  %v15119_v6 = vld [vmem:[#allocation2 + $0x200] sm:$0xff] }
 0x2c6   : > { %8377 = vmatmul.mubr.bf16.gmra.mrb[76].mxu1 %v10223_v7  ;;  %8248 = vmatprep.mubr.bf16.mxu0 %v10246_v8  ;;  %v12178_v7 = vld [vmem:[%s13209_s30 + $0x388] sm:$0xff]   ;;  %v12179_v8 = vld [vmem:[%s13209_s30 + $0x350] sm:$0xff]   ;;  %v10130_v21 = vcombine.high %v15117_v5, %v15119_v6 }
 0x2c7   : > { %8384 = vmatprep.mubr.bf16.mxu1 %v10248_v9 }
 0x2cd   : > { %8249 = vmatmul.mubr.bf16.gmra.mrb[80].mxu0 %v10245_v14  ;;  %v15133_v14 = vld [vmem:[%s1787_s28] ss:$0 sm:$0xff] }
 0x2ce   : > { %8385 = vmatmul.mubr.bf16.gmra.mrb[80].mxu1 %v10247_v15  ;;  %8256 = vmatprep.mubr.bf16.mxu0 %v10270_v16  ;;  %v10105_v16 = vcombine.low %v4549_v56, %v4561_v57 }
 0x2cf   : > { %8392 = vmatprep.mubr.bf16.mxu1 %v10272_v17 }
 0x2d5   : > { %8257 = vmatmul.mubr.bf16.gmra.mrb[84].mxu0 %v10269_v22 }
 0x2d6   : > { %8393 = vmatmul.mubr.bf16.gmra.mrb[84].mxu1 %v10271_v23  ;;  %8264 = vmatprep.mubr.bf16.mxu0 %v10294_v24 }
 0x2d7   : > { %8400 = vmatprep.mubr.bf16.mxu1 %v10296_v25  ;;  %v10132_v25 = vcombine.high %v15123_v10, %v15125_v11 }
 0x2dd   : > { %8265 = vmatmul.mubr.bf16.gmra.mrb[88].mxu0 %v10293_v30  ;;  %v12182_v30 = vld [vmem:[%s13209_s30 + $0x390] sm:$0xff]  }
 0x2de   : > { %8401 = vmatmul.mubr.bf16.gmra.mrb[88].mxu1 %v10295_v31  ;;  %8272 = vmatprep.mubr.bf16.mxu0 %v10318_v32  ;;  %v12183_v31 = vld [vmem:[%s13209_s30 + $0x358] sm:$0xff]  }
 0x2df   : > { %8408 = vmatprep.mubr.bf16.mxu1 %v10320_v33  ;;  %v12185_v33 = vld [vmem:[%s13209_s30 + $0x3d8] sm:$0xff]  }
 0x2e5   : > { %8273 = vmatmul.mubr.bf16.gmra.mrb[92].mxu0 %v10317_v38  ;;  %v15151_v38 = vld [vmem:[#allocation2 + $0x268] sm:$0xff] }
 0x2e6   : > { %8409 = vmatmul.mubr.bf16.gmra.mrb[92].mxu1 %v10319_v39  ;;  %8280 = vmatprep.mubr.bf16.mxu0 %v10342_v40  ;;  %v12184_v39 = vld [vmem:[%s13209_s30 + $0x318] sm:$0xff]   ;;  %v10156_v57 = vcombine.high %v15151_v38, %v15156_v42 }
 0x2e7   : > { %8416 = vmatprep.mubr.bf16.mxu1 %v10344_v41 }
 0x2ed   : > { %8281 = vmatmul.mubr.bf16.gmra.mrb[96].mxu0 %v10341_v44  ;;  %v12187_v44 = vld [vmem:[%s13209_s30 + $0x360] sm:$0xff]  }
 0x2ee   : > { %8417 = vmatmul.mubr.bf16.gmra.mrb[96].mxu1 %v10343_v45  ;;  %8288 = vmatprep.mubr.bf16.mxu0 %v10366_v46 }
 0x2ef   : > { %8424 = vmatprep.mubr.bf16.mxu1 %v10368_v47  ;;  %v10129_v47 = vcombine.low %v15117_v5, %v15119_v6  ;;  %v15179_v5 = vld [vmem:[#allocation2 + $0x380] sm:$0xff]  ;;  %v15181_v6 = vld [vmem:[#allocation2 + $0x328] sm:$0xff] }
 0x2f5   : > { %8289 = vmatmul.mubr.bf16.gmra.mrb[100].mxu0 %v10365_v52  ;;  %v10131_v52 = vcombine.low %v15123_v10, %v15125_v11  ;;  %v12194_v10 = vld [vmem:[%s13209_s30 + $0x3a8] sm:$0xff]   ;;  %v12195_v11 = vld [vmem:[%s13209_s30 + $0x370] sm:$0xff]  }
 0x2f6   : > { %8425 = vmatmul.mubr.bf16.gmra.mrb[100].mxu1 %v10367_v53  ;;  %8464 = vmatprep.mubr.bf16.mxu0 %v10082_v54  ;;  %v10154_v53 = vcombine.high %v15147_v36, %v15149_v37 }
 0x2f7   : > { %8600 = vmatprep.mubr.bf16.mxu1 %v10084_v55 }
 0x2fd   : > { %8465 = vmatmul.mubr.bf16.vlgmr.msra.gmra.mrb[104].mxu0 %v10081_v58  ;;  %v12188_v58 = vld [vmem:[%s13209_s30 + $0x320] sm:$0xff]  }
 0x2fe   : > { %8601 = vmatmul.mubr.bf16.vlgmr.msra.gmra.mrb[104].mxu1 %v10083_v61  ;;  %11445 = vmatpush3.bf16.msra.mxu0 %v12172_v62  ;;  %v12190_v62 = vld [vmem:[%s13209_s30 + $0x3a0] sm:$0xff]  }
 0x2ff   : > { %11539 = vmatpush3.bf16.msra.mxu1 %v12174_v63  ;;  %8472 = vmatprep.mubr.bf16.mxu0 %v10106_v0  ;;  %v12191_v63 = vld [vmem:[%s13209_s30 + $0x368] sm:$0xff]  }
 0x300   : > { %v10896_v9 = vpop.f32.mrb[0].mxu0  ;;  %8608 = vmatprep.mubr.bf16.mxu1 %v10108_v1  ;;  %11446 = vmatprep.subr.bf16.mxu0 %v12175_v2  ;;  %v12193_v1 = vld [vmem:[%s13209_s30 + $0x3e8] sm:$0xff]  }
 0x301   : > { %v10990_v13 = vpop.f32.mrb[0].mxu1  ;;  %v10897_v15 = vpop.f32.mrb[1].mxu0  ;;  %11540 = vmatprep.subr.bf16.mxu1 %v12177_v3  ;;  %v15175_v3 = vld [vmem:[#allocation2 + $0x320] sm:$0xff] }
 0x302   : > { %v10898_v17 = vadd.f32 %v10897_v15, %v10896_v9  ;;  %v10991_v18 = vpop.f32.mrb[1].mxu1  ;;  %v10899_v19 = vpop.f32.mrb[2].mxu0  ;;  %11447 = vmatpush3.bf16.msra.mxu0 %v12176_v4  ;;  %v15184_v9 = vld [vmem:[#allocation2 + $0x388] sm:$0xff] }
 0x303   : > { %v10992_v22 = vadd.f32 %v10991_v18, %v10990_v13  ;;  %v10993_v23 = vpop.f32.mrb[2].mxu1  ;;  %v10900_v24 = vpop.f32.mrb[3].mxu0  ;;  %11541 = vmatpush3.bf16.msra.mxu1 %v12178_v7  ;;  %11448 = vmatprep.subr.bf16.mxu0 %v12179_v8  ;;  %v12192_v7 = vld [vmem:[%s13209_s30 + $0x328] sm:$0xff]  }
 0x304   : > { %v7923_v27 = vadd.f32 %v10898_v17, %v15133_v14  ;;  %v10901_v28 = vadd.f32 %v10900_v24, %v10899_v19  ;;  %v10994_v29 = vpop.f32.mrb[3].mxu1  ;;  %11542 = vmatprep.subr.bf16.mxu1 %v12181_v12  ;;  %v12197_v17 = vld [vmem:[%s13209_s30 + $0x3f0] sm:$0xff]  }
 0x305   : > { %v10995_v32 = vadd.f32 %v10994_v29, %v10993_v23  ;;  %8473 = vmatmul.mubr.bf16.gmra.mrb[108].mxu0 %v10105_v16  ;;  %v10153_v16 = vcombine.low %v15147_v36, %v15149_v37  ;;  %v15205_v37 = vld [vmem:[#allocation2 + $0x3e0] sm:$0xff] }
 0x306   : > { %v15144_v34 = vadd.f32 %v10992_v22, %v7923_v27  ;;  %v7926_v35 = vadd.f32 %v10901_v28, %v15133_v14  ;;  %8609 = vmatmul.mubr.bf16.gmra.mrb[108].mxu1 %v10107_v20  ;;  %8480 = vmatprep.mubr.bf16.mxu0 %v10130_v21  ;;  %v10155_v21 = vcombine.low %v15151_v38, %v15156_v42  ;;  %v12196_v27 = vld [vmem:[%s13209_s30 + $0x330] sm:$0xff]   ;;  %v12200_v42 = vld [vmem:[%s13209_s30 + $0x338] sm:$0xff]  }
 0x307   : > { %8616 = vmatprep.mubr.bf16.mxu1 %v10132_v25  ;;  %11449 = vmatpush3.bf16.msra.mxu0 %v12180_v26  ;;  %v10178_v22 = vcombine.high %v15175_v3, %v15179_v5  ;;  %v10180_v26 = vcombine.high %v15181_v6, %v15184_v9 }
 0x308   : > { %v15154_v40 = vadd.f32 %v10995_v32, %v7926_v35  ;;  %v10902_v41 = vpop.f32.mrb[4].mxu0  ;;  %11543 = vmatpush3.bf16.msra.mxu1 %v12182_v30  ;;  %11450 = vmatprep.subr.bf16.mxu0 %v12183_v31  ;;  %v12198_v31 = vld [vmem:[%s13209_s30 + $0x3b0] sm:$0xff]   ;;  %v12199_v32 = vld [vmem:[%s13209_s30 + $0x378] sm:$0xff]  }
 0x309   : > { %v10996_v45 = vpop.f32.mrb[4].mxu1  ;;  %v10903_v46 = vpop.f32.mrb[5].mxu0  ;;  %11544 = vmatprep.subr.bf16.mxu1 %v12185_v33  ;;  %v12201_v35 = vld [vmem:[%s13209_s30 + $0x3f8] sm:$0xff]  }
 0x30a   : > { %v10904_v49 = vadd.f32 %v10903_v46, %v10902_v41  ;;  %v10997_v50 = vpop.f32.mrb[5].mxu1  ;;  %v10905_v51 = vpop.f32.mrb[6].mxu0  ;;  %v4646_v41 = vld [vmem:[#allocation2 + $0x3e8] sm:$0xff]  ;;  %v12207_v46 = vld [vmem:[%s13209_s30 + $0x440] sm:$0xff]  }
 0x30b   : > { %v10998_v54 = vadd.f32 %v10997_v50, %v10996_v45  ;;  %v10999_v55 = vpop.f32.mrb[6].mxu1  ;;  %v10906_v56 = vpop.f32.mrb[7].mxu0  ;;  %11451 = vmatpush3.bf16.msra.mxu0 %v12184_v39  ;;  %v4657_v39 = vld [vmem:[#allocation2 + $0x440] sm:$0xff]  ;;  %v12202_v45 = vld [vmem:[%s13209_s30 + $0x3b8] sm:$0xff]   ;;  %v10177_v50 = vcombine.low %v15175_v3, %v15179_v5 }
 0x30c   : > { %v7931_v59 = vadd.f32 %v10904_v49, %v15133_v14  ;;  %v10907_v60 = vadd.f32 %v10906_v56, %v10905_v51  ;;  %v11000_v61 = vpop.f32.mrb[7].mxu1  ;;  %11545 = vmatpush3.bf16.msra.mxu1 %v12186_v43  ;;  %11452 = vmatprep.subr.bf16.mxu0 %v12187_v44  ;;  %v4658_v44 = vld [vmem:[#allocation2 + $0x448] sm:$0xff]  ;;  %v12209_v51 = vld [vmem:[%s13209_s30 + $0x4c0] sm:$0xff]   ;;  %v10202_v56 = vcombine.high %v15205_v37, %v4657_v39 }
 0x30d   : > { %v11001_v0 = vadd.f32 %v11000_v61, %v10999_v55  ;;  %8481 = vmatmul.mubr.bf16.gmra.mrb[112].mxu0 %v10129_v47  ;;  %11546 = vmatprep.subr.bf16.mxu1 %v12189_v48  ;;  %v10179_v55 = vcombine.low %v15181_v6, %v15184_v9  ;;  %v4669_v3 = vld [vmem:[#allocation2 + $0x4a0] sm:$0xff] }
 0x30e   : > { %v7934_v2 = vadd.f32 %v10907_v60, %v15133_v14  ;;  %8617 = vmatmul.mubr.bf16.gmra.mrb[112].mxu1 %v10131_v52  ;;  %8488 = vmatprep.mubr.bf16.mxu0 %v10154_v53  ;;  %v15177_v4 = vadd.f32 %v10998_v54, %v7931_v59  ;;  %v10204_v60 = vcombine.high %v4646_v41, %v4658_v44  ;;  %v4681_v5 = vld [vmem:[#allocation2 + $0x500] sm:$0xff] }
 0x30f   : > { %8624 = vmatprep.mubr.bf16.mxu1 %v10156_v57  ;;  %11453 = vmatpush3.bf16.msra.mxu0 %v12188_v58 }
 0x310   : > { %v10908_v8 = vpop.f32.mrb[8].mxu0  ;;  %11547 = vmatpush3.bf16.msra.mxu1 %v12190_v62  ;;  %11454 = vmatprep.subr.bf16.mxu0 %v12191_v63  ;;  %v15188_v12 = vadd.f32 %v11001_v0, %v7934_v2 }
 0x311   : > { %v11002_v13 = vpop.f32.mrb[8].mxu1  ;;  %v10909_v15 = vpop.f32.mrb[9].mxu0  ;;  %11548 = vmatprep.subr.bf16.mxu1 %v12193_v1 }
 0x312   : > { %v10910_v18 = vadd.f32 %v10909_v15, %v10908_v8  ;;  %v11003_v19 = vpop.f32.mrb[9].mxu1  ;;  %v10911_v20 = vpop.f32.mrb[10].mxu0  ;;  %v4682_v8 = vld [vmem:[#allocation2 + $0x508] sm:$0xff] }
 0x313   : > { %v11004_v23 = vadd.f32 %v11003_v19, %v11002_v13  ;;  %v11005_v24 = vpop.f32.mrb[10].mxu1  ;;  %v10912_v25 = vpop.f32.mrb[11].mxu0  ;;  %11455 = vmatpush3.bf16.msra.mxu0 %v12192_v7  ;;  %v4670_v7 = vld [vmem:[#allocation2 + $0x4a8] sm:$0xff]  ;;  %v10201_v13 = vcombine.low %v15205_v37, %v4657_v39  ;;  %v10226_v19 = vcombine.high %v4669_v3, %v4681_v5 }
 0x314   : > { %v7939_v28 = vadd.f32 %v10910_v18, %v15133_v14  ;;  %v10913_v29 = vadd.f32 %v10912_v25, %v10911_v20  ;;  %v11006_v30 = vpop.f32.mrb[11].mxu1  ;;  %11549 = vmatpush3.bf16.msra.mxu1 %v12194_v10  ;;  %11456 = vmatprep.subr.bf16.mxu0 %v12195_v11  ;;  %v10203_v18 = vcombine.low %v4646_v41, %v4658_v44 }
 0x315   : > { %v11007_v33 = vadd.f32 %v11006_v30, %v11005_v24  ;;  %8489 = vmatmul.mubr.bf16.gmra.mrb[116].mxu0 %v10153_v16  ;;  %11550 = vmatprep.subr.bf16.mxu1 %v12197_v17  ;;  %v4693_v30 = vld [vmem:[#allocation2 + $0x560] sm:$0xff]  ;;  %v10225_v41 = vcombine.low %v4669_v3, %v4681_v5 }
 0x316   : > { %v7942_v36 = vadd.f32 %v10913_v29, %v15133_v14  ;;  %8625 = vmatmul.mubr.bf16.gmra.mrb[116].mxu1 %v10155_v21  ;;  %8496 = vmatprep.mubr.bf16.mxu0 %v10178_v22  ;;  %v15207_v38 = vadd.f32 %v11004_v23, %v7939_v28  ;;  %v10228_v23 = vcombine.high %v4670_v7, %v4682_v8 }
 0x317   : > { %8632 = vmatprep.mubr.bf16.mxu1 %v10180_v26  ;;  %11457 = vmatpush3.bf16.msra.mxu0 %v12196_v27 }
 0x318   : > { %v10914_v43 = vpop.f32.mrb[12].mxu0  ;;  %11551 = vmatpush3.bf16.msra.mxu1 %v12198_v31  ;;  %11458 = vmatprep.subr.bf16.mxu0 %v12199_v32  ;;  %v15212_v47 = vadd.f32 %v11007_v33, %v7942_v36  ;;  %v4705_v31 = vld [vmem:[#allocation2 + $0x5c0] sm:$0xff]  ;;  %v4694_v33 = vld [vmem:[#allocation2 + $0x568] sm:$0xff] }
 0x319   : > { %v11008_v48 = vpop.f32.mrb[12].mxu1  ;;  %v10915_v49 = vpop.f32.mrb[13].mxu0  ;;  %11552 = vmatprep.subr.bf16.mxu1 %v12201_v35  ;;  %v4706_v35 = vld [vmem:[#allocation2 + $0x5c8] sm:$0xff]  ;;  %v10249_v3 = vcombine.low %v4693_v30, %v4705_v31 }
 0x31a   : > { %v10916_v52 = vadd.f32 %v10915_v49, %v10914_v43  ;;  %v11009_v53 = vpop.f32.mrb[13].mxu1  ;;  %v10917_v54 = vpop.f32.mrb[14].mxu0 }
 0x31b   : > { %v11010_v57 = vadd.f32 %v11009_v53, %v11008_v48  ;;  %v11011_v58 = vpop.f32.mrb[14].mxu1  ;;  %v10918_v59 = vpop.f32.mrb[15].mxu0  ;;  %11459 = vmatpush3.bf16.msra.mxu0 %v12200_v42 }
 0x31c   : > { %v7947_v61 = vadd.f32 %v10916_v52, %v15133_v14  ;;  %v10919_v62 = vadd.f32 %v10918_v59, %v10917_v54  ;;  %v11012_v63 = vpop.f32.mrb[15].mxu1  ;;  %11553 = vmatpush3.bf16.msra.mxu1 %v12202_v45  ;;  %11632 = vmatprep.subr.bf16.mxu0 %v12207_v46  ;;  %v10227_v45 = vcombine.low %v4670_v7, %v4682_v8  ;;  %v4729_v59 = vld [vmem:[#allocation2 + $0x680] sm:$0xff] }
 0x31d   : > { %v11013_v0 = vadd.f32 %v11012_v63, %v11011_v58  ;;  %8497 = vmatmul.mubr.bf16.gmra.mrb[120].mxu0 %v10177_v50  ;;  %11726 = vmatprep.subr.bf16.mxu1 %v12209_v51  ;;  %v10250_v46 = vcombine.high %v4693_v30, %v4705_v31  ;;  %v10252_v51 = vcombine.high %v4694_v33, %v4706_v35  ;;  %v4717_v58 = vld [vmem:[#allocation2 + $0x620] sm:$0xff] }
 0x31e   : > { %v7950_v1 = vadd.f32 %v10919_v62, %v15133_v14  ;;  %8633 = vmatmul.mubr.bf16.gmra.mrb[120].mxu1 %v10179_v55  ;;  %8504 = vmatprep.mubr.bf16.mxu0 %v10202_v56  ;;  %v15222_v2 = vadd.f32 %v11010_v57, %v7947_v61  ;;  %v4718_v61 = vld [vmem:[#allocation2 + $0x628] sm:$0xff]  ;;  %v10251_v8 = vcombine.low %v4694_v33, %v4706_v35 }
 0x31f   : > { %8640 = vmatprep.mubr.bf16.mxu1 %v10204_v60  ;;  %v4730_v62 = vld [vmem:[#allocation2 + $0x688] sm:$0xff] }
 0x320   : > { %v10920_v6 = vpop.f32.mrb[16].mxu0  ;;  %v15224_v9 = vadd.f32 %v11013_v0, %v7950_v1 }
 0x321   : > { %v11014_v10 = vpop.f32.mrb[16].mxu1  ;;  %v10921_v11 = vpop.f32.mrb[17].mxu0 }
 0x322   : > { %v10922_v15 = vadd.f32 %v10921_v11, %v10920_v6  ;;  %v11015_v16 = vpop.f32.mrb[17].mxu1  ;;  %v10923_v17 = vpop.f32.mrb[18].mxu0 }
 0x323   : > { %v11016_v20 = vadd.f32 %v11015_v16, %v11014_v10  ;;  %v11017_v21 = vpop.f32.mrb[18].mxu1  ;;  %v10924_v22 = vpop.f32.mrb[19].mxu0  ;;  %v10274_v10 = vcombine.high %v4717_v58, %v4729_v59  ;;  %v10276_v16 = vcombine.high %v4718_v61, %v4730_v62 }
 0x324   : > { %v7955_v24 = vadd.f32 %v10922_v15, %v15133_v14  ;;  %v10925_v25 = vadd.f32 %v10924_v22, %v10923_v17  ;;  %v11018_v26 = vpop.f32.mrb[19].mxu1 }
 0x325   : > { %v11019_v27 = vadd.f32 %v11018_v26, %v11017_v21  ;;  %8505 = vmatmul.mubr.bf16.gmra.mrb[124].mxu0 %v10201_v13  ;;  %v4742_v26 = vld [vmem:[#allocation2 + $0x6e8] sm:$0xff] }
 0x326   : > { %v7958_v28 = vadd.f32 %v10925_v25, %v15133_v14  ;;  %8641 = vmatmul.mubr.bf16.gmra.mrb[124].mxu1 %v10203_v18  ;;  %8512 = vmatprep.mubr.bf16.mxu0 %v10226_v19  ;;  %v15229_v29 = vadd.f32 %v11016_v20, %v7955_v24  ;;  %v4753_v24 = vld [vmem:[#allocation2 + $0x740] sm:$0xff] }
 0x327   : > { %8648 = vmatprep.mubr.bf16.mxu1 %v10228_v23  ;;  %v4741_v23 = vld [vmem:[#allocation2 + $0x6e0] sm:$0xff] }
 0x328   : > { %v10926_v32 = vpop.f32.mrb[20].mxu0  ;;  %v15231_v36 = vadd.f32 %v11019_v27, %v7958_v28  ;;  %v4754_v27 = vld [vmem:[#allocation2 + $0x748] sm:$0xff] }
 0x329   : > { %v11020_v37 = vpop.f32.mrb[20].mxu1  ;;  %v10927_v39 = vpop.f32.mrb[21].mxu0 }
 0x32a   : > { %v10928_v42 = vadd.f32 %v10927_v39, %v10926_v32  ;;  %v11021_v43 = vpop.f32.mrb[21].mxu1  ;;  %v10929_v44 = vpop.f32.mrb[22].mxu0  ;;  %v10273_v32 = vcombine.low %v4717_v58, %v4729_v59  ;;  %v10275_v39 = vcombine.low %v4718_v61, %v4730_v62  ;;  %v4778_v58 = vld [vmem:[#allocation2 + $0x808] sm:$0xff]  ;;  %v10297_v62 = vcombine.low %v4741_v23, %v4753_v24 }
 0x32b   : > { %v11022_v48 = vadd.f32 %v11021_v43, %v11020_v37  ;;  %v11023_v49 = vpop.f32.mrb[22].mxu1  ;;  %v10930_v50 = vpop.f32.mrb[23].mxu0 }
 0x32c   : > { %v7963_v52 = vadd.f32 %v10928_v42, %v15133_v14  ;;  %v10931_v53 = vadd.f32 %v10930_v50, %v10929_v44  ;;  %v11024_v54 = vpop.f32.mrb[23].mxu1 }
 0x32d   : > { %v11025_v55 = vadd.f32 %v11024_v54, %v11023_v49  ;;  %8513 = vmatmul.mubr.bf16.gmra.mrb[128].mxu0 %v10225_v41  ;;  %v10298_v41 = vcombine.high %v4741_v23, %v4753_v24  ;;  %v4777_v54 = vld [vmem:[#allocation2 + $0x800] sm:$0xff]  ;;  %v4790_v24 = vld [vmem:[#allocation2 + $0x868] sm:$0xff] }
 0x32e   : > { %v7966_v56 = vadd.f32 %v10931_v53, %v15133_v14  ;;  %8649 = vmatmul.mubr.bf16.gmra.mrb[128].mxu1 %v10227_v45  ;;  %8520 = vmatprep.mubr.bf16.mxu0 %v10250_v46  ;;  %v15235_v57 = vadd.f32 %v11022_v48, %v7963_v52  ;;  %v10300_v45 = vcombine.high %v4742_v26, %v4754_v27  ;;  %v4765_v53 = vld [vmem:[#allocation2 + $0x7a0] sm:$0xff] }
 0x32f   : > { %8656 = vmatprep.mubr.bf16.mxu1 %v10252_v51 }
 0x330   : > { %v10932_v60 = vpop.f32.mrb[24].mxu0  ;;  %v15237_v63 = vadd.f32 %v11025_v55, %v7966_v56  ;;  %v4766_v56 = vld [vmem:[#allocation2 + $0x7a8] sm:$0xff] }
 0x331   : > { %v11026_v0 = vpop.f32.mrb[24].mxu1  ;;  %v10933_v1 = vpop.f32.mrb[25].mxu0 }
 0x332   : > { %v10934_v5 = vadd.f32 %v10933_v1, %v10932_v60  ;;  %v11027_v6 = vpop.f32.mrb[25].mxu1  ;;  %v10935_v7 = vpop.f32.mrb[26].mxu0 }
 0x333   : > { %v11028_v11 = vadd.f32 %v11027_v6, %v11026_v0  ;;  %v11029_v13 = vpop.f32.mrb[26].mxu1  ;;  %v10936_v15 = vpop.f32.mrb[27].mxu0  ;;  %v10322_v6 = vcombine.high %v4765_v53, %v4777_v54 }
 0x334   : > { %v7971_v17 = vadd.f32 %v10934_v5, %v15133_v14  ;;  %v10937_v18 = vadd.f32 %v10936_v15, %v10935_v7  ;;  %v11030_v19 = vpop.f32.mrb[27].mxu1  ;;  %v10299_v5 = vcombine.low %v4742_v26, %v4754_v27 }
 0x335   : > { %v11031_v20 = vadd.f32 %v11030_v19, %v11029_v13  ;;  %8521 = vmatmul.mubr.bf16.gmra.mrb[132].mxu0 %v10249_v3 }
 0x336   : > { %v7974_v21 = vadd.f32 %v10937_v18, %v15133_v14  ;;  %8657 = vmatmul.mubr.bf16.gmra.mrb[132].mxu1 %v10251_v8  ;;  %8528 = vmatprep.mubr.bf16.mxu0 %v10274_v10  ;;  %v15241_v22 = vadd.f32 %v11028_v11, %v7971_v17  ;;  %v10324_v11 = vcombine.high %v4766_v56, %v4778_v58 }
 0x337   : > { %8664 = vmatprep.mubr.bf16.mxu1 %v10276_v16 }
 0x338   : > { %v10938_v25 = vpop.f32.mrb[28].mxu0  ;;  %v15243_v28 = vadd.f32 %v11031_v20, %v7974_v21  ;;  %v4789_v20 = vld [vmem:[#allocation2 + $0x860] sm:$0xff] }
 0x339   : > { %v11032_v30 = vpop.f32.mrb[28].mxu1  ;;  %v10939_v31 = vpop.f32.mrb[29].mxu0  ;;  %v4801_v21 = vld [vmem:[#allocation2 + $0x8c0] sm:$0xff] }
 0x33a   : > { %v10940_v33 = vadd.f32 %v10939_v31, %v10938_v25  ;;  %v11033_v35 = vpop.f32.mrb[29].mxu1  ;;  %v10941_v37 = vpop.f32.mrb[30].mxu0  ;;  %v4802_v25 = vld [vmem:[#allocation2 + $0x8c8] sm:$0xff]  ;;  %v10321_v31 = vcombine.low %v4765_v53, %v4777_v54  ;;  %v4813_v53 = vld [vmem:[#allocation2 + $0x920] sm:$0x33] }
 0x33b   : > { %v11034_v42 = vadd.f32 %v11033_v35, %v11032_v30  ;;  %v11035_v43 = vpop.f32.mrb[30].mxu1  ;;  %v10942_v44 = vpop.f32.mrb[31].mxu0 }
 0x33c   : > { %v7979_v46 = vadd.f32 %v10940_v33, %v15133_v14  ;;  %v10943_v48 = vadd.f32 %v10942_v44, %v10941_v37  ;;  %v11036_v49 = vpop.f32.mrb[31].mxu1  ;;  %v10323_v37 = vcombine.low %v4766_v56, %v4778_v58  ;;  %v10348_v44 = vcombine.high %v4790_v24, %v4802_v25 }
 0x33d   : > { %v11037_v50 = vadd.f32 %v11036_v49, %v11035_v43  ;;  %8529 = vmatmul.mubr.bf16.gmra.mrb[136].mxu0 %v10273_v32 }
 0x33e   : > { %v7982_v51 = vadd.f32 %v10943_v48, %v15133_v14  ;;  %8665 = vmatmul.mubr.bf16.gmra.mrb[136].mxu1 %v10275_v39  ;;  %8536 = vmatprep.mubr.bf16.mxu0 %v10298_v41  ;;  %v15247_v52 = vadd.f32 %v11034_v42, %v7979_v46  ;;  %v10346_v39 = vcombine.high %v4789_v20, %v4801_v21 }
 0x33f   : > { %8672 = vmatprep.mubr.bf16.mxu1 %v10300_v45 }
 0x340   : > { %v10944_v55 = vpop.f32.mrb[32].mxu0  ;;  %v15249_v59 = vadd.f32 %v11037_v50, %v7982_v51 }
 0x341   : > { %v11038_v60 = vpop.f32.mrb[32].mxu1  ;;  %v10945_v61 = vpop.f32.mrb[33].mxu0 }
 0x342   : > { %v10946_v0 = vadd.f32 %v10945_v61, %v10944_v55  ;;  %v11039_v1 = vpop.f32.mrb[33].mxu1  ;;  %v10947_v3 = vpop.f32.mrb[34].mxu0  ;;  %v4814_v55 = vld [vmem:[#allocation2 + $0x928] sm:$0x33]  ;;  %v10345_v61 = vcombine.low %v4789_v20, %v4801_v21  ;;  %v4527_v20 = vld [vmem:[#allocation2 + $0x30] sm:$0xff] }
 0x343   : > { %v11040_v7 = vadd.f32 %v11039_v1, %v11038_v60  ;;  %v11041_v8 = vpop.f32.mrb[34].mxu1  ;;  %v10948_v10 = vpop.f32.mrb[35].mxu0  ;;  %v4539_v21 = vld [vmem:[#allocation2 + $0x90] sm:$0xff] }
 0x344   : > { %v7987_v13 = vadd.f32 %v10946_v0, %v15133_v14  ;;  %v10949_v15 = vadd.f32 %v10948_v10, %v10947_v3  ;;  %v11042_v16 = vpop.f32.mrb[35].mxu1  ;;  %v10347_v3 = vcombine.low %v4790_v24, %v4802_v25  ;;  %v10372_v10 = vcombine.high %v4814_v55, %v4814_v55  ;;  %v4528_v24 = vld [vmem:[#allocation2 + $0x38] sm:$0xff] }
 0x345   : > { %v11043_v17 = vadd.f32 %v11042_v16, %v11041_v8  ;;  %8537 = vmatmul.mubr.bf16.gmra.mrb[140].mxu0 %v10297_v62  ;;  %v4540_v25 = vld [vmem:[#allocation2 + $0x98] sm:$0xff] }
 0x346   : > { %v7990_v18 = vadd.f32 %v10949_v15, %v15133_v14  ;;  %8673 = vmatmul.mubr.bf16.gmra.mrb[140].mxu1 %v10299_v5  ;;  %8544 = vmatprep.mubr.bf16.mxu0 %v10322_v6  ;;  %v15253_v19 = vadd.f32 %v11040_v7, %v7987_v13  ;;  %v10370_v5 = vcombine.high %v4813_v53, %v4813_v53 }
 0x347   : > { %8680 = vmatprep.mubr.bf16.mxu1 %v10324_v11 }
 0x348   : > { %v10950_v23 = vpop.f32.mrb[36].mxu0  ;;  %v15255_v26 = vadd.f32 %v11043_v17, %v7990_v18 }
 0x349   : > { %v11044_v27 = vpop.f32.mrb[36].mxu1  ;;  %v10951_v30 = vpop.f32.mrb[37].mxu0 }
 0x34a   : > { %v10952_v32 = vadd.f32 %v10951_v30, %v10950_v23  ;;  %v11045_v33 = vpop.f32.mrb[37].mxu1  ;;  %v10953_v35 = vpop.f32.mrb[38].mxu0 }
 0x34b   : > { %v11046_v41 = vadd.f32 %v11045_v33, %v11044_v27  ;;  %v11047_v42 = vpop.f32.mrb[38].mxu1  ;;  %v10954_v43 = vpop.f32.mrb[39].mxu0 }
 0x34c   : > { %v7995_v45 = vadd.f32 %v10952_v32, %v15133_v14  ;;  %v10955_v46 = vadd.f32 %v10954_v43, %v10953_v35  ;;  %v11048_v48 = vpop.f32.mrb[39].mxu1  ;;  %v10369_v32 = vcombine.low %v4813_v53, %v4813_v53 }
 0x34d   : > { %v11049_v49 = vadd.f32 %v11048_v48, %v11047_v42  ;;  %8545 = vmatmul.mubr.bf16.gmra.mrb[144].mxu0 %v10321_v31 }
 0x34e   : > { %v7998_v50 = vadd.f32 %v10955_v46, %v15133_v14  ;;  %8681 = vmatmul.mubr.bf16.gmra.mrb[144].mxu1 %v10323_v37  ;;  %8552 = vmatprep.mubr.bf16.mxu0 %v10346_v39  ;;  %v15259_v51 = vadd.f32 %v11046_v41, %v7995_v45  ;;  %v10371_v39 = vcombine.low %v4814_v55, %v4814_v55 }
 0x34f   : > { %8688 = vmatprep.mubr.bf16.mxu1 %v10348_v44  ;;  %v10086_v41 = vcombine.high %v4527_v20, %v4539_v21  ;;  %v10088_v45 = vcombine.high %v4528_v24, %v4540_v25 }
 0x350   : > { %v10956_v54 = vpop.f32.mrb[40].mxu0  ;;  %v15261_v56 = vadd.f32 %v11049_v49, %v7998_v50 }
 0x351   : > { %v11050_v58 = vpop.f32.mrb[40].mxu1  ;;  %v10957_v60 = vpop.f32.mrb[41].mxu0 }
 0x352   : > { %v10958_v62 = vadd.f32 %v10957_v60, %v10956_v54  ;;  %v11051_v0 = vpop.f32.mrb[41].mxu1  ;;  %v10959_v1 = vpop.f32.mrb[42].mxu0  ;;  %v15275_v60 = vld [vmem:[#allocation2 + $0x150] sm:$0xff] }
 0x353   : > { %v11052_v6 = vadd.f32 %v11051_v0, %v11050_v58  ;;  %v11053_v7 = vpop.f32.mrb[42].mxu1  ;;  %v10960_v8 = vpop.f32.mrb[43].mxu0  ;;  %v15273_v58 = vld [vmem:[#allocation2 + $0xf0] sm:$0xff] }
 0x354   : > { %v8003_v11 = vadd.f32 %v10958_v62, %v15133_v14  ;;  %v10961_v13 = vadd.f32 %v10960_v8, %v10959_v1  ;;  %v11054_v15 = vpop.f32.mrb[43].mxu1  ;;  %v10085_v1 = vcombine.low %v4527_v20, %v4539_v21 }
 0x355   : > { %v11055_v16 = vadd.f32 %v11054_v15, %v11053_v7  ;;  %8553 = vmatmul.mubr.bf16.gmra.mrb[148].mxu0 %v10345_v61 }
 0x356   : > { %v8006_v17 = vadd.f32 %v10961_v13, %v15133_v14  ;;  %8689 = vmatmul.mubr.bf16.gmra.mrb[148].mxu1 %v10347_v3  ;;  %8560 = vmatprep.mubr.bf16.mxu0 %v10370_v5  ;;  %v15265_v18 = vadd.f32 %v11052_v6, %v8003_v11  ;;  %v4552_v3 = vld [vmem:[#allocation2 + $0xf8] sm:$0xff]  ;;  %v12208_v11 = vld [vmem:[%s13209_s30 + $0x400] sm:$0xff]  }
 0x357   : > { %8696 = vmatprep.mubr.bf16.mxu1 %v10372_v10  ;;  %v4564_v5 = vld [vmem:[#allocation2 + $0x158] sm:$0xff]  ;;  %v10087_v10 = vcombine.low %v4528_v24, %v4540_v25  ;;  %v12212_v24 = vld [vmem:[%s13209_s30 + $0x408] sm:$0xff]   ;;  %v15287_v25 = vld [vmem:[#allocation2 + $0x1b0] sm:$0xff] }
 0x358   : > { %v10962_v23 = vpop.f32.mrb[44].mxu0  ;;  %v15267_v27 = vadd.f32 %v11055_v16, %v8006_v17  ;;  %v12210_v17 = vld [vmem:[%s13209_s30 + $0x480] sm:$0xff]  }
 0x359   : > { %v11056_v30 = vpop.f32.mrb[44].mxu1  ;;  %v10963_v31 = vpop.f32.mrb[45].mxu0 }
 0x35a   : > { %v10964_v33 = vadd.f32 %v10963_v31, %v10962_v23  ;;  %v11057_v35 = vpop.f32.mrb[45].mxu1  ;;  %v10965_v37 = vpop.f32.mrb[46].mxu0  ;;  %v10110_v23 = vcombine.high %v15273_v58, %v15275_v60  ;;  %v12211_v31 = vld [vmem:[%s13209_s30 + $0x448] sm:$0xff]  }
 0x35b   : > { %v11058_v42 = vadd.f32 %v11057_v35, %v11056_v30  ;;  %v11059_v43 = vpop.f32.mrb[46].mxu1  ;;  %v10966_v44 = vpop.f32.mrb[47].mxu0  ;;  %v10112_v30 = vcombine.high %v4552_v3, %v4564_v5  ;;  %v15291_v35 = vld [vmem:[#allocation2 + $0x210] sm:$0xff] }
 0x35c   : > { %v8011_v46 = vadd.f32 %v10964_v33, %v15133_v14  ;;  %v10967_v48 = vadd.f32 %v10966_v44, %v10965_v37  ;;  %v11060_v49 = vpop.f32.mrb[47].mxu1  ;;  %v12214_v37 = vld [vmem:[%s13209_s30 + $0x488] sm:$0xff]  }
 0x35d   : > { %v11061_v50 = vadd.f32 %v11060_v49, %v11059_v43  ;;  %8561 = vmatmul.mubr.bf16.gmra.mrb[152].mxu0 %v10369_v32  ;;  %v12213_v32 = vld [vmem:[%s13209_s30 + $0x4c8] sm:$0xff]   ;;  %v12217_v43 = vld [vmem:[%s13209_s30 + $0x4d0] sm:$0xff]  }
 0x35e   : > { %v8014_v54 = vadd.f32 %v10967_v48, %v15133_v14  ;;  %8697 = vmatmul.mubr.bf16.gmra.mrb[152].mxu1 %v10371_v39  ;;  %8736 = vmatprep.mubr.bf16.mxu0 %v10086_v41  ;;  %v15271_v53 = vadd.f32 %v11058_v42, %v8011_v46  ;;  %v12215_v39 = vld [vmem:[%s13209_s30 + $0x450] sm:$0xff]   ;;  %v15295_v41 = vld [vmem:[#allocation2 + $0x1b8] sm:$0xff]  ;;  %v10109_v46 = vcombine.low %v15273_v58, %v15275_v60 }
 0x35f   : > { %8872 = vmatprep.mubr.bf16.mxu1 %v10088_v45  ;;  %v15297_v42 = vld [vmem:[#allocation2 + $0x218] sm:$0xff]  ;;  %v12216_v58 = vld [vmem:[%s13209_s30 + $0x410] sm:$0xff]  }
 0x360   : > { %v10968_v55 = vpop.f32.mrb[48].mxu0  ;;  %v15277_v61 = vadd.f32 %v11061_v50, %v8014_v54  ;;  %v10111_v54 = vcombine.low %v4552_v3, %v4564_v5  ;;  %v12218_v3 = vld [vmem:[%s13209_s30 + $0x490] sm:$0xff]   ;;  %v12219_v5 = vld [vmem:[%s13209_s30 + $0x458] sm:$0xff]  }
 0x361   : > { %v11062_v62 = vpop.f32.mrb[48].mxu1  ;;  %v10969_v0 = vpop.f32.mrb[49].mxu0 }
 0x362   : > { %v10970_v6 = vadd.f32 %v10969_v0, %v10968_v55  ;;  %v11063_v7 = vpop.f32.mrb[49].mxu1  ;;  %v10971_v8 = vpop.f32.mrb[50].mxu0  ;;  %v10134_v55 = vcombine.high %v15287_v25, %v15291_v35 }
 0x363   : > { %v11064_v13 = vadd.f32 %v11063_v7, %v11062_v62  ;;  %v11065_v15 = vpop.f32.mrb[50].mxu1  ;;  %v10972_v16 = vpop.f32.mrb[51].mxu0 }
 0x364   : > { %v8019_v20 = vadd.f32 %v10970_v6, %v15133_v14  ;;  %v11066_v21 = vpop.f32.mrb[51].mxu1  ;;  %v10136_v6 = vcombine.high %v15295_v41, %v15297_v42  ;;  %v15312_v15 = vld [vmem:[#allocation2 + $0x270] sm:$0xff] }
 0x365   : > { %8737 = vmatmul.mubr.bf16.vlgmr.msra.gmra.mrb[156].mxu0 %v10085_v1  ;;  %v15321_v21 = vld [vmem:[#allocation2 + $0x2d8] sm:$0xff] }
 0x366   : > { %8873 = vmatmul.mubr.bf16.vlgmr.msra.gmra.mrb[156].mxu1 %v10087_v10  ;;  %11633 = vmatpush3.bf16.msra.mxu0 %v12208_v11  ;;  %v15289_v33 = vadd.f32 %v11064_v13, %v8019_v20  ;;  %v12221_v11 = vld [vmem:[%s13209_s30 + $0x4d8] sm:$0xff]  }
 0x367   : > { %11727 = vmatpush3.bf16.msra.mxu1 %v12210_v17  ;;  %8744 = vmatprep.mubr.bf16.mxu0 %v10110_v23  ;;  %v15318_v17 = vld [vmem:[#allocation2 + $0x278] sm:$0xff] }
 0x368   : > { %v11084_v14 = vpop.f32.mrb[52].mxu0  ;;  %8880 = vmatprep.mubr.bf16.mxu1 %v10112_v30  ;;  %11634 = vmatprep.subr.bf16.mxu0 %v12211_v31  ;;  %v12220_v23 = vld [vmem:[%s13209_s30 + $0x418] sm:$0xff]   ;;  %v12223_v30 = vld [vmem:[%s13209_s30 + $0x460] sm:$0xff]  }
 0x369   : > { %v11178_v44 = vpop.f32.mrb[52].mxu1  ;;  %v11085_v45 = vpop.f32.mrb[53].mxu0  ;;  %11728 = vmatprep.subr.bf16.mxu1 %v12213_v32 }
 0x36a   : > { %v11086_v48 = vadd.f32 %v11085_v45, %v11084_v14  ;;  %v11179_v49 = vpop.f32.mrb[53].mxu1  ;;  %v11087_v50 = vpop.f32.mrb[54].mxu0  ;;  %11635 = vmatpush3.bf16.msra.mxu0 %v12212_v24  ;;  %v10135_v45 = vcombine.low %v15295_v41, %v15297_v42  ;;  %v12226_v41 = vld [vmem:[%s13209_s30 + $0x4a0] sm:$0xff]   ;;  %v12227_v42 = vld [vmem:[%s13209_s30 + $0x468] sm:$0xff]  }
 0x36b   : > { %v11180_v62 = vadd.f32 %v11179_v49, %v11178_v44  ;;  %v11181_v0 = vpop.f32.mrb[54].mxu1  ;;  %v11088_v1 = vpop.f32.mrb[55].mxu0  ;;  %11729 = vmatpush3.bf16.msra.mxu1 %v12214_v37  ;;  %11636 = vmatprep.subr.bf16.mxu0 %v12215_v39  ;;  %v10133_v37 = vcombine.low %v15287_v25, %v15291_v35  ;;  %v12225_v39 = vld [vmem:[%s13209_s30 + $0x4e0] sm:$0xff]   ;;  %v10160_v25 = vcombine.high %v15318_v17, %v15321_v21 }
 0x36c   : > { %v8195_v60 = vadd.f32 %v11086_v48, %v15144_v34  ;;  %v11089_v7 = vadd.f32 %v11088_v1, %v11087_v50  ;;  %v11182_v8 = vpop.f32.mrb[55].mxu1  ;;  %11730 = vmatprep.subr.bf16.mxu1 %v12217_v43  ;;  %v15316_v34 = vld [vmem:[#allocation2 + $0x2d0] sm:$0xff]  ;;  %v12224_v35 = vld [vmem:[%s13209_s30 + $0x420] sm:$0xff]   ;;  %v12229_v1 = vld [vmem:[%s13209_s30 + $0x4e8] sm:$0xff]  }
 0x36d   : > { %v11183_v10 = vadd.f32 %v11182_v8, %v11181_v0  ;;  %8745 = vmatmul.mubr.bf16.gmra.mrb[160].mxu0 %v10109_v46  ;;  %v10158_v46 = vcombine.high %v15312_v15, %v15316_v34  ;;  %v12228_v8 = vld [vmem:[%s13209_s30 + $0x428] sm:$0xff]  }
 0x36e   : > { %v8198_v13 = vadd.f32 %v11089_v7, %v15154_v40  ;;  %8881 = vmatmul.mubr.bf16.gmra.mrb[160].mxu1 %v10111_v54  ;;  %8752 = vmatprep.mubr.bf16.mxu0 %v10134_v55  ;;  %v15314_v16 = vadd.f32 %v11180_v62, %v8195_v60  ;;  %v12222_v40 = vld [vmem:[%s13209_s30 + $0x498] sm:$0xff]   ;;  %v15346_v60 = vld [vmem:[#allocation2 + $0x390] sm:$0xff] }
 0x36f   : > { %8888 = vmatprep.mubr.bf16.mxu1 %v10136_v6  ;;  %11637 = vmatpush3.bf16.msra.mxu0 %v12216_v58  ;;  %v15348_v7 = vld [vmem:[#allocation2 + $0x338] sm:$0xff] }
 0x370   : > { %v11090_v20 = vpop.f32.mrb[56].mxu0  ;;  %11731 = vmatpush3.bf16.msra.mxu1 %v12218_v3  ;;  %11638 = vmatprep.subr.bf16.mxu0 %v12219_v5  ;;  %v15325_v31 = vadd.f32 %v11183_v10, %v8198_v13  ;;  %v15353_v10 = vld [vmem:[#allocation2 + $0x398] sm:$0xff] }
 0x371   : > { %v11184_v32 = vpop.f32.mrb[56].mxu1  ;;  %v11091_v24 = vpop.f32.mrb[57].mxu0  ;;  %11732 = vmatprep.subr.bf16.mxu1 %v12221_v11  ;;  %v12231_v11 = vld [vmem:[%s13209_s30 + $0x470] sm:$0xff]  }
 0x372   : > { %v11092_v14 = vadd.f32 %v11091_v24, %v11090_v20  ;;  %v11185_v43 = vpop.f32.mrb[57].mxu1  ;;  %v11093_v44 = vpop.f32.mrb[58].mxu0  ;;  %v10157_v20 = vcombine.low %v15312_v15, %v15316_v34  ;;  %v10184_v15 = vcombine.high %v15348_v7, %v15353_v10  ;;  %v12232_v34 = vld [vmem:[%s13209_s30 + $0x430] sm:$0xff]  }
 0x373   : > { %v11186_v48 = vadd.f32 %v11185_v43, %v11184_v32  ;;  %v11187_v49 = vpop.f32.mrb[58].mxu1  ;;  %v11094_v50 = vpop.f32.mrb[59].mxu0  ;;  %11639 = vmatpush3.bf16.msra.mxu0 %v12220_v23 }
 0x374   : > { %v8203_v54 = vadd.f32 %v11092_v14, %v15177_v4  ;;  %v11095_v55 = vadd.f32 %v11094_v50, %v11093_v44  ;;  %v11188_v62 = vpop.f32.mrb[59].mxu1  ;;  %11733 = vmatpush3.bf16.msra.mxu1 %v12222_v40  ;;  %11640 = vmatprep.subr.bf16.mxu0 %v12223_v30  ;;  %v15344_v4 = vld [vmem:[#allocation2 + $0x330] sm:$0xff]  ;;  %v12237_v50 = vld [vmem:[%s13209_s30 + $0x4f8] sm:$0xff]  }
 0x375   : > { %v11189_v0 = vadd.f32 %v11188_v62, %v11187_v49  ;;  %8753 = vmatmul.mubr.bf16.gmra.mrb[164].mxu0 %v10133_v37  ;;  %11734 = vmatprep.subr.bf16.mxu1 %v12225_v39  ;;  %v12233_v40 = vld [vmem:[%s13209_s30 + $0x4f0] sm:$0xff]   ;;  %v10159_v37 = vcombine.low %v15318_v17, %v15321_v21  ;;  %v10182_v39 = vcombine.high %v15344_v4, %v15346_v60  ;;  %v12235_v21 = vld [vmem:[%s13209_s30 + $0x478] sm:$0xff]  }
 0x376   : > { %v15341_v6 = vadd.f32 %v11186_v48, %v8203_v54  ;;  %v8206_v58 = vadd.f32 %v11095_v55, %v15188_v12  ;;  %8889 = vmatmul.mubr.bf16.gmra.mrb[164].mxu1 %v10135_v45  ;;  %8760 = vmatprep.mubr.bf16.mxu0 %v10158_v46  ;;  %v12230_v12 = vld [vmem:[%s13209_s30 + $0x4a8] sm:$0xff]   ;;  %v12234_v17 = vld [vmem:[%s13209_s30 + $0x4b0] sm:$0xff]   ;;  %v15376_v55 = vld [vmem:[#allocation2 + $0x3f8] sm:$0xff] }
 0x377   : > { %8896 = vmatprep.mubr.bf16.mxu1 %v10160_v25  ;;  %11641 = vmatpush3.bf16.msra.mxu0 %v12224_v35  ;;  %v4659_v54 = vld [vmem:[#allocation2 + $0x450] sm:$0xff]  ;;  %v12236_v62 = vld [vmem:[%s13209_s30 + $0x438] sm:$0xff]  }
 0x378   : > { %v15351_v3 = vadd.f32 %v11189_v0, %v8206_v58  ;;  %v11096_v5 = vpop.f32.mrb[60].mxu0  ;;  %11735 = vmatpush3.bf16.msra.mxu1 %v12226_v41  ;;  %11642 = vmatprep.subr.bf16.mxu0 %v12227_v42  ;;  %v4660_v0 = vld [vmem:[#allocation2 + $0x458] sm:$0xff]  ;;  %v12243_v58 = vld [vmem:[%s13209_s30 + $0x540] sm:$0xff]  }
 0x379   : > { %v11190_v13 = vpop.f32.mrb[60].mxu1  ;;  %v11097_v23 = vpop.f32.mrb[61].mxu0  ;;  %11736 = vmatprep.subr.bf16.mxu1 %v12229_v1  ;;  %v12238_v1 = vld [vmem:[%s13209_s30 + $0x4b8] sm:$0xff]  }
 0x37a   : > { %v11098_v30 = vadd.f32 %v11097_v23, %v11096_v5  ;;  %v11191_v32 = vpop.f32.mrb[61].mxu1  ;;  %v11099_v24 = vpop.f32.mrb[62].mxu0  ;;  %v10181_v5 = vcombine.low %v15344_v4, %v15346_v60 }
 0x37b   : > { %v11192_v14 = vadd.f32 %v11191_v32, %v11190_v13  ;;  %v11193_v43 = vpop.f32.mrb[62].mxu1  ;;  %v11100_v44 = vpop.f32.mrb[63].mxu0  ;;  %11643 = vmatpush3.bf16.msra.mxu0 %v12228_v8 }
 0x37c   : > { %v8211_v45 = vadd.f32 %v11098_v30, %v15207_v38  ;;  %v11101_v46 = vadd.f32 %v11100_v44, %v11099_v24  ;;  %v11194_v48 = vpop.f32.mrb[63].mxu1  ;;  %11737 = vmatpush3.bf16.msra.mxu1 %v12230_v12  ;;  %11644 = vmatprep.subr.bf16.mxu0 %v12231_v11  ;;  %v15374_v38 = vld [vmem:[#allocation2 + $0x3f0] sm:$0xff]  ;;  %v12245_v12 = vld [vmem:[%s13209_s30 + $0x5c0] sm:$0xff]  }
 0x37d   : > { %v11195_v49 = vadd.f32 %v11194_v48, %v11193_v43  ;;  %8761 = vmatmul.mubr.bf16.gmra.mrb[168].mxu0 %v10157_v20  ;;  %11738 = vmatprep.subr.bf16.mxu1 %v12233_v40  ;;  %v10183_v20 = vcombine.low %v15348_v7, %v15353_v10  ;;  %v10206_v40 = vcombine.high %v15374_v38, %v4659_v54  ;;  %v4671_v10 = vld [vmem:[#allocation2 + $0x4b0] sm:$0xff] }
 0x37e   : > { %v15371_v25 = vadd.f32 %v11192_v14, %v8211_v45  ;;  %v8214_v35 = vadd.f32 %v11101_v46, %v15212_v47  ;;  %8897 = vmatmul.mubr.bf16.gmra.mrb[168].mxu1 %v10159_v37  ;;  %8768 = vmatprep.mubr.bf16.mxu0 %v10182_v39  ;;  %v10208_v37 = vcombine.high %v15376_v55, %v4660_v0  ;;  %v4683_v44 = vld [vmem:[#allocation2 + $0x510] sm:$0xff]  ;;  %v4684_v45 = vld [vmem:[#allocation2 + $0x518] sm:$0xff] }
 0x37f   : > { %8904 = vmatprep.mubr.bf16.mxu1 %v10184_v15  ;;  %11645 = vmatpush3.bf16.msra.mxu0 %v12232_v34 }
 0x380   : > { %v15379_v41 = vadd.f32 %v11195_v49, %v8214_v35  ;;  %v11102_v42 = vpop.f32.mrb[64].mxu0  ;;  %11739 = vmatpush3.bf16.msra.mxu1 %v12234_v17  ;;  %11646 = vmatprep.subr.bf16.mxu0 %v12235_v21  ;;  %v10205_v17 = vcombine.low %v15374_v38, %v4659_v54  ;;  %v10207_v35 = vcombine.low %v15376_v55, %v4660_v0  ;;  %v4695_v54 = vld [vmem:[#allocation2 + $0x570] sm:$0xff] }
 0x381   : > { %v11196_v47 = vpop.f32.mrb[64].mxu1  ;;  %v11103_v8 = vpop.f32.mrb[65].mxu0  ;;  %11740 = vmatprep.subr.bf16.mxu1 %v12237_v50  ;;  %v4707_v55 = vld [vmem:[#allocation2 + $0x5d0] sm:$0xff] }
 0x382   : > { %v11104_v11 = vadd.f32 %v11103_v8, %v11102_v42  ;;  %v11197_v13 = vpop.f32.mrb[65].mxu1  ;;  %v11105_v23 = vpop.f32.mrb[66].mxu0 }
 0x383   : > { %v11198_v30 = vadd.f32 %v11197_v13, %v11196_v47  ;;  %v11199_v32 = vpop.f32.mrb[66].mxu1  ;;  %v11106_v24 = vpop.f32.mrb[67].mxu0  ;;  %11647 = vmatpush3.bf16.msra.mxu0 %v12236_v62 }
 0x384   : > { %v8219_v39 = vadd.f32 %v11104_v11, %v15222_v2  ;;  %v11107_v14 = vadd.f32 %v11106_v24, %v11105_v23  ;;  %v11200_v4 = vpop.f32.mrb[67].mxu1  ;;  %11741 = vmatpush3.bf16.msra.mxu1 %v12238_v1  ;;  %11820 = vmatprep.subr.bf16.mxu0 %v12243_v58  ;;  %v4672_v2 = vld [vmem:[#allocation2 + $0x4b8] sm:$0xff] }
 0x385   : > { %v11201_v60 = vadd.f32 %v11200_v4, %v11199_v32  ;;  %8769 = vmatmul.mubr.bf16.gmra.mrb[172].mxu0 %v10181_v5  ;;  %11914 = vmatprep.subr.bf16.mxu1 %v12245_v12  ;;  %v10232_v58 = vcombine.high %v4672_v2, %v4684_v45  ;;  %v4696_v23 = vld [vmem:[#allocation2 + $0x578] sm:$0xff] }
 0x386   : > { %v15391_v43 = vadd.f32 %v11198_v30, %v8219_v39  ;;  %v8222_v7 = vadd.f32 %v11107_v14, %v15224_v9  ;;  %8905 = vmatmul.mubr.bf16.gmra.mrb[172].mxu1 %v10183_v20  ;;  %8776 = vmatprep.mubr.bf16.mxu0 %v10206_v40  ;;  %v10230_v9 = vcombine.high %v4671_v10, %v4683_v44  ;;  %v4708_v20 = vld [vmem:[#allocation2 + $0x5d8] sm:$0xff] }
 0x387   : > { %8912 = vmatprep.mubr.bf16.mxu1 %v10208_v37  ;;  %v10229_v30 = vcombine.low %v4671_v10, %v4683_v44  ;;  %v10231_v39 = vcombine.low %v4672_v2, %v4684_v45  ;;  %v10254_v14 = vcombine.high %v4695_v54, %v4707_v55  ;;  %v4719_v10 = vld [vmem:[#allocation2 + $0x630] sm:$0xff] }
 0x388   : > { %v15394_v15 = vadd.f32 %v11201_v60, %v8222_v7  ;;  %v11108_v34 = vpop.f32.mrb[68].mxu0  ;;  %v10256_v7 = vcombine.high %v4696_v23, %v4708_v20  ;;  %v4731_v44 = vld [vmem:[#allocation2 + $0x690] sm:$0xff] }
 0x389   : > { %v11202_v46 = vpop.f32.mrb[68].mxu1  ;;  %v11109_v48 = vpop.f32.mrb[69].mxu0 }
 0x38a   : > { %v11110_v21 = vadd.f32 %v11109_v48, %v11108_v34  ;;  %v11203_v49 = vpop.f32.mrb[69].mxu1  ;;  %v11111_v50 = vpop.f32.mrb[70].mxu0 }
 0x38b   : > { %v11204_v62 = vadd.f32 %v11203_v49, %v11202_v46  ;;  %v11205_v42 = vpop.f32.mrb[70].mxu1  ;;  %v11112_v1 = vpop.f32.mrb[71].mxu0 }
 0x38c   : > { %v8227_v47 = vadd.f32 %v11110_v21, %v15229_v29  ;;  %v11113_v8 = vadd.f32 %v11112_v1, %v11111_v50  ;;  %v11206_v5 = vpop.f32.mrb[71].mxu1  ;;  %v4720_v50 = vld [vmem:[#allocation2 + $0x638] sm:$0xff] }
 0x38d   : > { %v11207_v12 = vadd.f32 %v11206_v5, %v11205_v42  ;;  %8777 = vmatmul.mubr.bf16.gmra.mrb[176].mxu0 %v10205_v17 }
 0x38e   : > { %v15399_v11 = vadd.f32 %v11204_v62, %v8227_v47  ;;  %v8230_v38 = vadd.f32 %v11113_v8, %v15231_v36  ;;  %8913 = vmatmul.mubr.bf16.gmra.mrb[176].mxu1 %v10207_v35  ;;  %8784 = vmatprep.mubr.bf16.mxu0 %v10230_v9  ;;  %v4732_v35 = vld [vmem:[#allocation2 + $0x698] sm:$0xff]  ;;  %v10253_v62 = vcombine.low %v4695_v54, %v4707_v55  ;;  %v4743_v54 = vld [vmem:[#allocation2 + $0x6f0] sm:$0xff] }
 0x38f   : > { %8920 = vmatprep.mubr.bf16.mxu1 %v10232_v58  ;;  %v10255_v47 = vcombine.low %v4696_v23, %v4708_v20  ;;  %v10278_v8 = vcombine.high %v4719_v10, %v4731_v44  ;;  %v4755_v55 = vld [vmem:[#allocation2 + $0x750] sm:$0xff] }
 0x390   : > { %v15402_v0 = vadd.f32 %v11207_v12, %v8230_v38  ;;  %v11114_v13 = vpop.f32.mrb[72].mxu0  ;;  %v10280_v38 = vcombine.high %v4720_v50, %v4732_v35 }
 0x391   : > { %v11208_v40 = vpop.f32.mrb[72].mxu1  ;;  %v11115_v29 = vpop.f32.mrb[73].mxu0 }
 0x392   : > { %v11116_v32 = vadd.f32 %v11115_v29, %v11114_v13  ;;  %v11209_v24 = vpop.f32.mrb[73].mxu1  ;;  %v11117_v37 = vpop.f32.mrb[74].mxu0 }
 0x393   : > { %v11210_v4 = vadd.f32 %v11209_v24, %v11208_v40  ;;  %v11211_v36 = vpop.f32.mrb[74].mxu1  ;;  %v11118_v60 = vpop.f32.mrb[75].mxu0 }
 0x394   : > { %v8235_v34 = vadd.f32 %v11116_v32, %v15235_v57  ;;  %v11119_v46 = vadd.f32 %v11118_v60, %v11117_v37  ;;  %v11212_v48 = vpop.f32.mrb[75].mxu1  ;;  %v4744_v37 = vld [vmem:[#allocation2 + $0x6f8] sm:$0xff] }
 0x395   : > { %v11213_v17 = vadd.f32 %v11212_v48, %v11211_v36  ;;  %8785 = vmatmul.mubr.bf16.gmra.mrb[180].mxu0 %v10229_v30 }
 0x396   : > { %v15405_v21 = vadd.f32 %v11210_v4, %v8235_v34  ;;  %v8238_v49 = vadd.f32 %v11119_v46, %v15237_v63  ;;  %8921 = vmatmul.mubr.bf16.gmra.mrb[180].mxu1 %v10231_v39  ;;  %8792 = vmatprep.mubr.bf16.mxu0 %v10254_v14  ;;  %v4756_v39 = vld [vmem:[#allocation2 + $0x758] sm:$0xff]  ;;  %v10277_v4 = vcombine.low %v4719_v10, %v4731_v44  ;;  %v4767_v10 = vld [vmem:[#allocation2 + $0x7b0] sm:$0xff] }
 0x397   : > { %8928 = vmatprep.mubr.bf16.mxu1 %v10256_v7  ;;  %v10279_v34 = vcombine.low %v4720_v50, %v4732_v35  ;;  %v10302_v46 = vcombine.high %v4743_v54, %v4755_v55  ;;  %v4779_v44 = vld [vmem:[#allocation2 + $0x810] sm:$0xff] }
 0x398   : > { %v15408_v2 = vadd.f32 %v11213_v17, %v8238_v49  ;;  %v11120_v45 = vpop.f32.mrb[76].mxu0  ;;  %v10304_v49 = vcombine.high %v4744_v37, %v4756_v39 }
 0x399   : > { %v11214_v9 = vpop.f32.mrb[76].mxu1  ;;  %v11121_v57 = vpop.f32.mrb[77].mxu0 }
 0x39a   : > { %v11122_v42 = vadd.f32 %v11121_v57, %v11120_v45  ;;  %v11215_v1 = vpop.f32.mrb[77].mxu1  ;;  %v11123_v58 = vpop.f32.mrb[78].mxu0 }
 0x39b   : > { %v11216_v5 = vadd.f32 %v11215_v1, %v11214_v9  ;;  %v11217_v63 = vpop.f32.mrb[78].mxu1  ;;  %v11124_v12 = vpop.f32.mrb[79].mxu0 }
 0x39c   : > { %v8243_v13 = vadd.f32 %v11122_v42, %v15241_v22  ;;  %v11125_v40 = vadd.f32 %v11124_v12, %v11123_v58  ;;  %v11218_v29 = vpop.f32.mrb[79].mxu1  ;;  %v4768_v58 = vld [vmem:[#allocation2 + $0x7b8] sm:$0xff] }
 0x39d   : > { %v11219_v30 = vadd.f32 %v11218_v29, %v11217_v63  ;;  %8793 = vmatmul.mubr.bf16.gmra.mrb[184].mxu0 %v10253_v62 }
 0x39e   : > { %v15411_v32 = vadd.f32 %v11216_v5, %v8243_v13  ;;  %v8246_v24 = vadd.f32 %v11125_v40, %v15243_v28  ;;  %8929 = vmatmul.mubr.bf16.gmra.mrb[184].mxu1 %v10255_v47  ;;  %8800 = vmatprep.mubr.bf16.mxu0 %v10278_v8  ;;  %v4780_v47 = vld [vmem:[#allocation2 + $0x818] sm:$0xff]  ;;  %v10301_v5 = vcombine.low %v4743_v54, %v4755_v55  ;;  %v4791_v54 = vld [vmem:[#allocation2 + $0x870] sm:$0xff] }
 0x39f   : > { %8936 = vmatprep.mubr.bf16.mxu1 %v10280_v38  ;;  %v10303_v13 = vcombine.low %v4744_v37, %v4756_v39  ;;  %v10326_v40 = vcombine.high %v4767_v10, %v4779_v44  ;;  %v4803_v55 = vld [vmem:[#allocation2 + $0x8d0] sm:$0xff] }
 0x3a0   : > { %v15414_v23 = vadd.f32 %v11219_v30, %v8246_v24  ;;  %v11126_v20 = vpop.f32.mrb[80].mxu0  ;;  %v10328_v24 = vcombine.high %v4768_v58, %v4780_v47 }
 0x3a1   : > { %v11220_v14 = vpop.f32.mrb[80].mxu1  ;;  %v11127_v22 = vpop.f32.mrb[81].mxu0 }
 0x3a2   : > { %v11128_v36 = vadd.f32 %v11127_v22, %v11126_v20  ;;  %v11221_v60 = vpop.f32.mrb[81].mxu1  ;;  %v11129_v7 = vpop.f32.mrb[82].mxu0 }
 0x3a3   : > { %v11222_v48 = vadd.f32 %v11221_v60, %v11220_v14  ;;  %v11223_v28 = vpop.f32.mrb[82].mxu1  ;;  %v11130_v17 = vpop.f32.mrb[83].mxu0 }
 0x3a4   : > { %v8251_v45 = vadd.f32 %v11128_v36, %v15247_v52  ;;  %v11131_v9 = vadd.f32 %v11130_v17, %v11129_v7  ;;  %v11224_v57 = vpop.f32.mrb[83].mxu1  ;;  %v4792_v7 = vld [vmem:[#allocation2 + $0x878] sm:$0xff] }
 0x3a5   : > { %v11225_v62 = vadd.f32 %v11224_v57, %v11223_v28  ;;  %8801 = vmatmul.mubr.bf16.gmra.mrb[188].mxu0 %v10277_v4 }
 0x3a6   : > { %v15417_v42 = vadd.f32 %v11222_v48, %v8251_v45  ;;  %v8254_v1 = vadd.f32 %v11131_v9, %v15249_v59  ;;  %8937 = vmatmul.mubr.bf16.gmra.mrb[188].mxu1 %v10279_v34  ;;  %8808 = vmatprep.mubr.bf16.mxu0 %v10302_v46  ;;  %v4804_v34 = vld [vmem:[#allocation2 + $0x8d8] sm:$0xff]  ;;  %v10325_v48 = vcombine.low %v4767_v10, %v4779_v44  ;;  %v4815_v10 = vld [vmem:[#allocation2 + $0x930] sm:$0x33] }
 0x3a7   : > { %8944 = vmatprep.mubr.bf16.mxu1 %v10304_v49  ;;  %v10327_v45 = vcombine.low %v4768_v58, %v4780_v47  ;;  %v10350_v9 = vcombine.high %v4791_v54, %v4803_v55  ;;  %v4816_v47 = vld [vmem:[#allocation2 + $0x938] sm:$0x33] }
 0x3a8   : > { %v15420_v50 = vadd.f32 %v11225_v62, %v8254_v1  ;;  %v11132_v35 = vpop.f32.mrb[84].mxu0  ;;  %v10352_v1 = vcombine.high %v4792_v7, %v4804_v34 }
 0x3a9   : > { %v11226_v8 = vpop.f32.mrb[84].mxu1  ;;  %v11133_v52 = vpop.f32.mrb[85].mxu0 }
 0x3aa   : > { %v11134_v63 = vadd.f32 %v11133_v52, %v11132_v35  ;;  %v11227_v12 = vpop.f32.mrb[85].mxu1  ;;  %v11135_v38 = vpop.f32.mrb[86].mxu0 }
 0x3ab   : > { %v11228_v29 = vadd.f32 %v11227_v12, %v11226_v8  ;;  %v11229_v59 = vpop.f32.mrb[86].mxu1  ;;  %v11136_v30 = vpop.f32.mrb[87].mxu0 }
 0x3ac   : > { %v8259_v20 = vadd.f32 %v11134_v63, %v15253_v19  ;;  %v11137_v14 = vadd.f32 %v11136_v30, %v11135_v38  ;;  %v11230_v22 = vpop.f32.mrb[87].mxu1  ;;  %v10351_v30 = vcombine.low %v4792_v7, %v4804_v34 }
 0x3ad   : > { %v11231_v4 = vadd.f32 %v11230_v22, %v11229_v59  ;;  %8809 = vmatmul.mubr.bf16.gmra.mrb[192].mxu0 %v10301_v5 }
 0x3ae   : > { %v15423_v36 = vadd.f32 %v11228_v29, %v8259_v20  ;;  %v8262_v60 = vadd.f32 %v11137_v14, %v15255_v26  ;;  %8945 = vmatmul.mubr.bf16.gmra.mrb[192].mxu1 %v10303_v13  ;;  %8816 = vmatprep.mubr.bf16.mxu0 %v10326_v40  ;;  %v10349_v40 = vcombine.low %v4791_v54, %v4803_v55  ;;  %v4529_v54 = vld [vmem:[#allocation2 + $0x40] sm:$0xff] }
 0x3af   : > { %8952 = vmatprep.mubr.bf16.mxu1 %v10328_v24  ;;  %v10374_v24 = vcombine.high %v4815_v10, %v4815_v10  ;;  %v4541_v55 = vld [vmem:[#allocation2 + $0xa0] sm:$0xff] }
 0x3b0   : > { %v15426_v37 = vadd.f32 %v11231_v4, %v8262_v60  ;;  %v11138_v39 = vpop.f32.mrb[88].mxu0 }
 0x3b1   : > { %v11232_v46 = vpop.f32.mrb[88].mxu1  ;;  %v11139_v19 = vpop.f32.mrb[89].mxu0 }
 0x3b2   : > { %v11140_v28 = vadd.f32 %v11139_v19, %v11138_v39  ;;  %v11233_v17 = vpop.f32.mrb[89].mxu1  ;;  %v11141_v49 = vpop.f32.mrb[90].mxu0 }
 0x3b3   : > { %v11234_v57 = vadd.f32 %v11233_v17, %v11232_v46  ;;  %v11235_v26 = vpop.f32.mrb[90].mxu1  ;;  %v11142_v62 = vpop.f32.mrb[91].mxu0  ;;  %v4542_v17 = vld [vmem:[#allocation2 + $0xa8] sm:$0xff] }
 0x3b4   : > { %v8267_v35 = vadd.f32 %v11140_v28, %v15259_v51  ;;  %v11143_v8 = vadd.f32 %v11142_v62, %v11141_v49  ;;  %v11236_v52 = vpop.f32.mrb[91].mxu1  ;;  %v4530_v28 = vld [vmem:[#allocation2 + $0x48] sm:$0xff]  ;;  %v10375_v62 = vcombine.low %v4816_v47, %v4816_v47 }
 0x3b5   : > { %v11237_v5 = vadd.f32 %v11236_v52, %v11235_v26  ;;  %8817 = vmatmul.mubr.bf16.gmra.mrb[196].mxu0 %v10325_v48  ;;  %v10092_v52 = vcombine.high %v4530_v28, %v4542_v17 }
 0x3b6   : > { %v15429_v63 = vadd.f32 %v11234_v57, %v8267_v35  ;;  %v8270_v12 = vadd.f32 %v11143_v8, %v15261_v56  ;;  %8953 = vmatmul.mubr.bf16.gmra.mrb[196].mxu1 %v10327_v45  ;;  %8824 = vmatprep.mubr.bf16.mxu0 %v10350_v9  ;;  %v10376_v56 = vcombine.high %v4816_v47, %v4816_v47 }
 0x3b7   : > { %8960 = vmatprep.mubr.bf16.mxu1 %v10352_v1  ;;  %v10373_v45 = vcombine.low %v4815_v10, %v4815_v10  ;;  %v10090_v1 = vcombine.high %v4529_v54, %v4541_v55 }
 0x3b8   : > { %v15432_v44 = vadd.f32 %v11237_v5, %v8270_v12  ;;  %v11144_v58 = vpop.f32.mrb[92].mxu0 }
 0x3b9   : > { %v11238_v38 = vpop.f32.mrb[92].mxu1  ;;  %v11145_v13 = vpop.f32.mrb[93].mxu0 }
 0x3ba   : > { %v11146_v51 = vadd.f32 %v11145_v13, %v11144_v58  ;;  %v11239_v29 = vpop.f32.mrb[93].mxu1  ;;  %v11147_v59 = vpop.f32.mrb[94].mxu0 }
 0x3bb   : > { %v11240_v20 = vadd.f32 %v11239_v29, %v11238_v38  ;;  %v11241_v14 = vpop.f32.mrb[94].mxu1  ;;  %v11148_v22 = vpop.f32.mrb[95].mxu0  ;;  %v4565_v29 = vld [vmem:[#allocation2 + $0x160] sm:$0xff] }
 0x3bc   : > { %v8275_v4 = vadd.f32 %v11146_v51, %v15265_v18  ;;  %v11149_v60 = vadd.f32 %v11148_v22, %v11147_v59  ;;  %v11242_v39 = vpop.f32.mrb[95].mxu1  ;;  %v15446_v51 = vld [vmem:[#allocation2 + $0x100] sm:$0xff] }
 0x3bd   : > { %v11243_v46 = vadd.f32 %v11242_v39, %v11241_v14  ;;  %8825 = vmatmul.mubr.bf16.gmra.mrb[200].mxu0 %v10349_v40 }
 0x3be   : > { %v15435_v19 = vadd.f32 %v11240_v20, %v8275_v4  ;;  %v8278_v48 = vadd.f32 %v11149_v60, %v15267_v27  ;;  %8961 = vmatmul.mubr.bf16.gmra.mrb[200].mxu1 %v10351_v30  ;;  %8832 = vmatprep.mubr.bf16.mxu0 %v10374_v24  ;;  %v10089_v30 = vcombine.low %v4529_v54, %v4541_v55  ;;  %v4554_v24 = vld [vmem:[#allocation2 + $0x108] sm:$0xff]  ;;  %v12244_v4 = vld [vmem:[%s13209_s30 + $0x500] sm:$0xff]  }
 0x3bf   : > { %8968 = vmatprep.mubr.bf16.mxu1 %v10376_v56  ;;  %v4566_v20 = vld [vmem:[#allocation2 + $0x168] sm:$0xff]  ;;  %v10091_v56 = vcombine.low %v4530_v28, %v4542_v17  ;;  %v15457_v17 = vld [vmem:[#allocation2 + $0x1c0] sm:$0xff] }
 0x3c0   : > { %v15438_v7 = vadd.f32 %v11243_v46, %v8278_v48  ;;  %v11150_v34 = vpop.f32.mrb[96].mxu0  ;;  %v12246_v48 = vld [vmem:[%s13209_s30 + $0x580] sm:$0xff]   ;;  %v12248_v28 = vld [vmem:[%s13209_s30 + $0x508] sm:$0xff]  }
 0x3c1   : > { %v11244_v49 = vpop.f32.mrb[96].mxu1  ;;  %v11151_v18 = vpop.f32.mrb[97].mxu0 }
 0x3c2   : > { %v11152_v9 = vadd.f32 %v11151_v18, %v11150_v34  ;;  %v11245_v57 = vpop.f32.mrb[97].mxu1  ;;  %v11153_v26 = vpop.f32.mrb[98].mxu0  ;;  %v10114_v34 = vcombine.high %v15446_v51, %v4565_v29  ;;  %v12247_v18 = vld [vmem:[%s13209_s30 + $0x548] sm:$0xff]  }
 0x3c3   : > { %v11246_v35 = vadd.f32 %v11245_v57, %v11244_v49  ;;  %v11247_v27 = vpop.f32.mrb[98].mxu1  ;;  %v11154_v8 = vpop.f32.mrb[99].mxu0  ;;  %v10116_v49 = vcombine.high %v4554_v24, %v4566_v20  ;;  %v15459_v57 = vld [vmem:[#allocation2 + $0x220] sm:$0xff] }
 0x3c4   : > { %v8283_v5 = vadd.f32 %v11152_v9, %v15271_v53  ;;  %v11155_v12 = vadd.f32 %v11154_v8, %v11153_v26  ;;  %v11248_v58 = vpop.f32.mrb[99].mxu1  ;;  %v12250_v26 = vld [vmem:[%s13209_s30 + $0x588] sm:$0xff]  }
 0x3c5   : > { %v11249_v38 = vadd.f32 %v11248_v58, %v11247_v27  ;;  %8833 = vmatmul.mubr.bf16.gmra.mrb[204].mxu0 %v10373_v45  ;;  %v12249_v45 = vld [vmem:[%s13209_s30 + $0x5c8] sm:$0xff]   ;;  %v12253_v27 = vld [vmem:[%s13209_s30 + $0x5d0] sm:$0xff]  }
 0x3c6   : > { %v15441_v13 = vadd.f32 %v11246_v35, %v8283_v5  ;;  %v8286_v40 = vadd.f32 %v11155_v12, %v15277_v61  ;;  %8969 = vmatmul.mubr.bf16.gmra.mrb[204].mxu1 %v10375_v62  ;;  %9008 = vmatprep.mubr.bf16.mxu0 %v10090_v1  ;;  %v12251_v62 = vld [vmem:[%s13209_s30 + $0x550] sm:$0xff]   ;;  %v15463_v1 = vld [vmem:[#allocation2 + $0x1c8] sm:$0xff]  ;;  %v10113_v5 = vcombine.low %v15446_v51, %v4565_v29 }
 0x3c7   : > { %9144 = vmatprep.mubr.bf16.mxu1 %v10092_v52  ;;  %v15465_v35 = vld [vmem:[#allocation2 + $0x228] sm:$0xff]  ;;  %v12252_v51 = vld [vmem:[%s13209_s30 + $0x510] sm:$0xff]  }
 0x3c8   : > { %v15444_v10 = vadd.f32 %v11249_v38, %v8286_v40  ;;  %v11156_v47 = vpop.f32.mrb[100].mxu0  ;;  %v10115_v40 = vcombine.low %v4554_v24, %v4566_v20  ;;  %v12254_v24 = vld [vmem:[%s13209_s30 + $0x590] sm:$0xff]   ;;  %v12255_v20 = vld [vmem:[%s13209_s30 + $0x558] sm:$0xff]  }
 0x3c9   : > { %v11250_v53 = vpop.f32.mrb[100].mxu1  ;;  %v11157_v59 = vpop.f32.mrb[101].mxu0 }
 0x3ca   : > { %v11158_v14 = vadd.f32 %v11157_v59, %v11156_v47  ;;  %v11251_v61 = vpop.f32.mrb[101].mxu1  ;;  %v11159_v22 = vpop.f32.mrb[102].mxu0  ;;  %v10138_v47 = vcombine.high %v15457_v17, %v15459_v57 }
 0x3cb   : > { %v11252_v60 = vadd.f32 %v11251_v61, %v11250_v53  ;;  %v11253_v39 = vpop.f32.mrb[102].mxu1  ;;  %v11160_v46 = vpop.f32.mrb[103].mxu0 }
 0x3cc   : > { %v8291_v54 = vadd.f32 %v11158_v14, %v15289_v33  ;;  %v11254_v55 = vpop.f32.mrb[103].mxu1  ;;  %v10140_v14 = vcombine.high %v15463_v1, %v15465_v35  ;;  %v15481_v46 = vld [vmem:[#allocation2 + $0x280] sm:$0xff] }
 0x3cd   : > { %9009 = vmatmul.mubr.bf16.vlgmr.msra.gmra.mrb[208].mxu0 %v10089_v30 }
 0x3ce   : > { %v15454_v9 = vadd.f32 %v11252_v60, %v8291_v54  ;;  %9145 = vmatmul.mubr.bf16.vlgmr.msra.gmra.mrb[208].mxu1 %v10091_v56  ;;  %11821 = vmatpush3.bf16.msra.mxu0 %v12244_v4  ;;  %v12257_v4 = vld [vmem:[%s13209_s30 + $0x5d8] sm:$0xff]  }
 0x3cf   : > { %11915 = vmatpush3.bf16.msra.mxu1 %v12246_v48  ;;  %9016 = vmatprep.mubr.bf16.mxu0 %v10114_v34  ;;  %v15485_v48 = vld [vmem:[#allocation2 + $0x288] sm:$0xff]  ;;  %v12256_v34 = vld [vmem:[%s13209_s30 + $0x518] sm:$0xff]  }
 0x3d0   : > { %v11272_v33 = vpop.f32.mrb[104].mxu0  ;;  %9152 = vmatprep.mubr.bf16.mxu1 %v10116_v49  ;;  %11822 = vmatprep.subr.bf16.mxu0 %v12247_v18  ;;  %v15490_v49 = vld [vmem:[#allocation2 + $0x2e8] sm:$0xff]  ;;  %v12259_v18 = vld [vmem:[%s13209_s30 + $0x560] sm:$0xff]  }
 0x3d1   : > { %v11366_v8 = vpop.f32.mrb[104].mxu1  ;;  %v11273_v52 = vpop.f32.mrb[105].mxu0  ;;  %11916 = vmatprep.subr.bf16.mxu1 %v12249_v45 }
 0x3d2   : > { %v11274_v12 = vadd.f32 %v11273_v52, %v11272_v33  ;;  %v11367_v58 = vpop.f32.mrb[105].mxu1  ;;  %v11275_v38 = vpop.f32.mrb[106].mxu0  ;;  %11823 = vmatpush3.bf16.msra.mxu0 %v12248_v28  ;;  %v10139_v52 = vcombine.low %v15463_v1, %v15465_v35  ;;  %v12262_v1 = vld [vmem:[%s13209_s30 + $0x5a0] sm:$0xff]   ;;  %v12263_v35 = vld [vmem:[%s13209_s30 + $0x568] sm:$0xff]  }
 0x3d3   : > { %v11368_v53 = vadd.f32 %v11367_v58, %v11366_v8  ;;  %v11369_v59 = vpop.f32.mrb[106].mxu1  ;;  %v11276_v30 = vpop.f32.mrb[107].mxu0  ;;  %11917 = vmatpush3.bf16.msra.mxu1 %v12250_v26  ;;  %11824 = vmatprep.subr.bf16.mxu0 %v12251_v62  ;;  %v10137_v26 = vcombine.low %v15457_v17, %v15459_v57  ;;  %v12261_v62 = vld [vmem:[%s13209_s30 + $0x5e0] sm:$0xff]   ;;  %v10164_v17 = vcombine.high %v15485_v48, %v15490_v49 }
 0x3d4   : > { %v8467_v29 = vadd.f32 %v11274_v12, %v15314_v16  ;;  %v11277_v61 = vadd.f32 %v11276_v30, %v11275_v38  ;;  %v11370_v22 = vpop.f32.mrb[107].mxu1  ;;  %11918 = vmatprep.subr.bf16.mxu1 %v12253_v27  ;;  %v15483_v16 = vld [vmem:[#allocation2 + $0x2e0] sm:$0xff]  ;;  %v12265_v30 = vld [vmem:[%s13209_s30 + $0x5e8] sm:$0xff]  }
 0x3d5   : > { %v11371_v56 = vadd.f32 %v11370_v22, %v11369_v59  ;;  %9017 = vmatmul.mubr.bf16.gmra.mrb[212].mxu0 %v10113_v5  ;;  %v10162_v5 = vcombine.high %v15481_v46, %v15483_v16  ;;  %v12260_v57 = vld [vmem:[%s13209_s30 + $0x520] sm:$0xff]   ;;  %v12264_v22 = vld [vmem:[%s13209_s30 + $0x528] sm:$0xff]  }
 0x3d6   : > { %v15478_v60 = vadd.f32 %v11368_v53, %v8467_v29  ;;  %v8470_v39 = vadd.f32 %v11277_v61, %v15325_v31  ;;  %9153 = vmatmul.mubr.bf16.gmra.mrb[212].mxu1 %v10115_v40  ;;  %9024 = vmatprep.mubr.bf16.mxu0 %v10138_v47  ;;  %v12258_v31 = vld [vmem:[%s13209_s30 + $0x598] sm:$0xff]   ;;  %v15513_v29 = vld [vmem:[#allocation2 + $0x3a0] sm:$0xff]  ;;  %v15515_v61 = vld [vmem:[#allocation2 + $0x348] sm:$0xff] }
 0x3d7   : > { %9160 = vmatprep.mubr.bf16.mxu1 %v10140_v14  ;;  %11825 = vmatpush3.bf16.msra.mxu0 %v12252_v51 }
 0x3d8   : > { %v15488_v54 = vadd.f32 %v11371_v56, %v8470_v39  ;;  %v11278_v55 = vpop.f32.mrb[108].mxu0  ;;  %11919 = vmatpush3.bf16.msra.mxu1 %v12254_v24  ;;  %11826 = vmatprep.subr.bf16.mxu0 %v12255_v20  ;;  %v15520_v56 = vld [vmem:[#allocation2 + $0x3a8] sm:$0xff] }
 0x3d9   : > { %v11372_v45 = vpop.f32.mrb[108].mxu1  ;;  %v11279_v28 = vpop.f32.mrb[109].mxu0  ;;  %11920 = vmatprep.subr.bf16.mxu1 %v12257_v4  ;;  %v12267_v4 = vld [vmem:[%s13209_s30 + $0x570] sm:$0xff]  }
 0x3da   : > { %v11280_v33 = vadd.f32 %v11279_v28, %v11278_v55  ;;  %v11373_v27 = vpop.f32.mrb[109].mxu1  ;;  %v11281_v8 = vpop.f32.mrb[110].mxu0  ;;  %v10161_v55 = vcombine.low %v15481_v46, %v15483_v16  ;;  %v10188_v46 = vcombine.high %v15515_v61, %v15520_v56  ;;  %v12268_v16 = vld [vmem:[%s13209_s30 + $0x530] sm:$0xff]  }
 0x3db   : > { %v11374_v12 = vadd.f32 %v11373_v27, %v11372_v45  ;;  %v11375_v58 = vpop.f32.mrb[110].mxu1  ;;  %v11282_v38 = vpop.f32.mrb[111].mxu0  ;;  %11827 = vmatpush3.bf16.msra.mxu0 %v12256_v34 }
 0x3dc   : > { %v8475_v40 = vadd.f32 %v11280_v33, %v15341_v6  ;;  %v11283_v47 = vadd.f32 %v11282_v38, %v11281_v8  ;;  %v11376_v53 = vpop.f32.mrb[111].mxu1  ;;  %11921 = vmatpush3.bf16.msra.mxu1 %v12258_v31  ;;  %11828 = vmatprep.subr.bf16.mxu0 %v12259_v18  ;;  %v15511_v6 = vld [vmem:[#allocation2 + $0x340] sm:$0xff]  ;;  %v12269_v31 = vld [vmem:[%s13209_s30 + $0x5f0] sm:$0xff]   ;;  %v12273_v38 = vld [vmem:[%s13209_s30 + $0x5f8] sm:$0xff]  }
 0x3dd   : > { %v11377_v59 = vadd.f32 %v11376_v53, %v11375_v58  ;;  %9025 = vmatmul.mubr.bf16.gmra.mrb[216].mxu0 %v10137_v26  ;;  %11922 = vmatprep.subr.bf16.mxu1 %v12261_v62  ;;  %v10163_v26 = vcombine.low %v15485_v48, %v15490_v49  ;;  %v10186_v62 = vcombine.high %v15511_v6, %v15513_v29  ;;  %v12270_v48 = vld [vmem:[%s13209_s30 + $0x5b0] sm:$0xff]   ;;  %v12271_v49 = vld [vmem:[%s13209_s30 + $0x578] sm:$0xff]  }
 0x3de   : > { %v15508_v14 = vadd.f32 %v11374_v12, %v8475_v40  ;;  %v8478_v51 = vadd.f32 %v11283_v47, %v15351_v3  ;;  %9161 = vmatmul.mubr.bf16.gmra.mrb[216].mxu1 %v10139_v52  ;;  %9032 = vmatprep.mubr.bf16.mxu0 %v10162_v5  ;;  %v12266_v3 = vld [vmem:[%s13209_s30 + $0x5a8] sm:$0xff]   ;;  %v4661_v40 = vld [vmem:[#allocation2 + $0x460] sm:$0xff]  ;;  %v12272_v47 = vld [vmem:[%s13209_s30 + $0x538] sm:$0xff]  }
 0x3df   : > { %9168 = vmatprep.mubr.bf16.mxu1 %v10164_v17  ;;  %11829 = vmatpush3.bf16.msra.mxu0 %v12260_v57 }
 0x3e0   : > { %v15518_v24 = vadd.f32 %v11377_v59, %v8478_v51  ;;  %v11284_v20 = vpop.f32.mrb[112].mxu0  ;;  %11923 = vmatpush3.bf16.msra.mxu1 %v12262_v1  ;;  %11830 = vmatprep.subr.bf16.mxu0 %v12263_v35  ;;  %v4650_v35 = vld [vmem:[#allocation2 + $0x408] sm:$0xff] }
 0x3e1   : > { %v11378_v39 = vpop.f32.mrb[112].mxu1  ;;  %v11285_v34 = vpop.f32.mrb[113].mxu0  ;;  %11924 = vmatprep.subr.bf16.mxu1 %v12265_v30  ;;  %v4662_v59 = vld [vmem:[#allocation2 + $0x468] sm:$0xff]  ;;  %v12274_v30 = vld [vmem:[%s13209_s30 + $0x5b8] sm:$0xff]  }
 0x3e2   : > { %v11286_v18 = vadd.f32 %v11285_v34, %v11284_v20  ;;  %v11379_v45 = vpop.f32.mrb[113].mxu1  ;;  %v11287_v28 = vpop.f32.mrb[114].mxu0 }
 0x3e3   : > { %v11380_v33 = vadd.f32 %v11379_v45, %v11378_v39  ;;  %v11381_v27 = vpop.f32.mrb[114].mxu1  ;;  %v11288_v8 = vpop.f32.mrb[115].mxu0  ;;  %11831 = vmatpush3.bf16.msra.mxu0 %v12264_v22  ;;  %v10187_v39 = vcombine.low %v15515_v61, %v15520_v56  ;;  %v10212_v45 = vcombine.high %v4650_v35, %v4662_v59  ;;  %v4673_v61 = vld [vmem:[#allocation2 + $0x4c0] sm:$0xff] }
 0x3e4   : > { %v8483_v52 = vadd.f32 %v11286_v18, %v15371_v25  ;;  %v11289_v5 = vadd.f32 %v11288_v8, %v11287_v28  ;;  %v11382_v12 = vpop.f32.mrb[115].mxu1  ;;  %11925 = vmatpush3.bf16.msra.mxu1 %v12266_v3  ;;  %11832 = vmatprep.subr.bf16.mxu0 %v12267_v4  ;;  %v4649_v25 = vld [vmem:[#allocation2 + $0x400] sm:$0xff] }
 0x3e5   : > { %v11383_v58 = vadd.f32 %v11382_v12, %v11381_v27  ;;  %9033 = vmatmul.mubr.bf16.gmra.mrb[220].mxu0 %v10161_v55  ;;  %11926 = vmatprep.subr.bf16.mxu1 %v12269_v31  ;;  %v10210_v34 = vcombine.high %v4649_v25, %v4661_v40  ;;  %v4685_v56 = vld [vmem:[#allocation2 + $0x520] sm:$0xff] }
 0x3e6   : > { %v15538_v17 = vadd.f32 %v11380_v33, %v8483_v52  ;;  %v8486_v57 = vadd.f32 %v11289_v5, %v15379_v41  ;;  %9169 = vmatmul.mubr.bf16.gmra.mrb[220].mxu1 %v10163_v26  ;;  %9040 = vmatprep.mubr.bf16.mxu0 %v10186_v62  ;;  %v10185_v41 = vcombine.low %v15511_v6, %v15513_v29 }
 0x3e7   : > { %9176 = vmatprep.mubr.bf16.mxu1 %v10188_v46  ;;  %11833 = vmatpush3.bf16.msra.mxu0 %v12268_v16  ;;  %v4674_v46 = vld [vmem:[#allocation2 + $0x4c8] sm:$0xff]  ;;  %v10209_v5 = vcombine.low %v4649_v25, %v4661_v40  ;;  %v4697_v25 = vld [vmem:[#allocation2 + $0x580] sm:$0xff] }
 0x3e8   : > { %v15542_v53 = vadd.f32 %v11383_v58, %v8486_v57  ;;  %v11290_v1 = vpop.f32.mrb[116].mxu0  ;;  %11927 = vmatpush3.bf16.msra.mxu1 %v12270_v48  ;;  %11834 = vmatprep.subr.bf16.mxu0 %v12271_v49  ;;  %v4686_v16 = vld [vmem:[#allocation2 + $0x528] sm:$0xff]  ;;  %v10211_v58 = vcombine.low %v4650_v35, %v4662_v59  ;;  %v4709_v40 = vld [vmem:[#allocation2 + $0x5e0] sm:$0xff] }
 0x3e9   : > { %v11384_v51 = vpop.f32.mrb[116].mxu1  ;;  %v11291_v22 = vpop.f32.mrb[117].mxu0  ;;  %11928 = vmatprep.subr.bf16.mxu1 %v12273_v38  ;;  %v10234_v38 = vcombine.high %v4673_v61, %v4685_v56 }
 0x3ea   : > { %v11292_v20 = vadd.f32 %v11291_v22, %v11290_v1  ;;  %v11385_v3 = vpop.f32.mrb[117].mxu1  ;;  %v11293_v4 = vpop.f32.mrb[118].mxu0  ;;  %v10236_v1 = vcombine.high %v4674_v46, %v4686_v16 }
 0x3eb   : > { %v11386_v55 = vadd.f32 %v11385_v3, %v11384_v51  ;;  %v11387_v31 = vpop.f32.mrb[118].mxu1  ;;  %v11294_v18 = vpop.f32.mrb[119].mxu0  ;;  %11835 = vmatpush3.bf16.msra.mxu0 %v12272_v47 }
 0x3ec   : > { %v8491_v28 = vadd.f32 %v11292_v20, %v15391_v43  ;;  %v11295_v26 = vadd.f32 %v11294_v18, %v11293_v4  ;;  %v11388_v62 = vpop.f32.mrb[119].mxu1  ;;  %11929 = vmatpush3.bf16.msra.mxu1 %v12274_v30  ;;  %v4698_v4 = vld [vmem:[#allocation2 + $0x588] sm:$0xff] }
 0x3ed   : > { %v11389_v33 = vadd.f32 %v11388_v62, %v11387_v31  ;;  %9041 = vmatmul.mubr.bf16.gmra.mrb[224].mxu0 %v10185_v41 }
 0x3ee   : > { %v15550_v6 = vadd.f32 %v11386_v55, %v8491_v28  ;;  %v8494_v29 = vadd.f32 %v11295_v26, %v15394_v15  ;;  %9177 = vmatmul.mubr.bf16.gmra.mrb[224].mxu1 %v10187_v39  ;;  %9048 = vmatprep.mubr.bf16.mxu0 %v10210_v34  ;;  %v4710_v39 = vld [vmem:[#allocation2 + $0x5e8] sm:$0xff]  ;;  %v10233_v55 = vcombine.low %v4673_v61, %v4685_v56  ;;  %v4721_v61 = vld [vmem:[#allocation2 + $0x640] sm:$0xff] }
 0x3ef   : > { %9184 = vmatprep.mubr.bf16.mxu1 %v10212_v45  ;;  %v10235_v28 = vcombine.low %v4674_v46, %v4686_v16  ;;  %v10258_v26 = vcombine.high %v4697_v25, %v4709_v40  ;;  %v4733_v56 = vld [vmem:[#allocation2 + $0x6a0] sm:$0xff] }
 0x3f0   : > { %v15553_v27 = vadd.f32 %v11389_v33, %v8494_v29  ;;  %v11296_v8 = vpop.f32.mrb[120].mxu0  ;;  %v10260_v29 = vcombine.high %v4698_v4, %v4710_v39 }
 0x3f1   : > { %v11390_v43 = vpop.f32.mrb[120].mxu1  ;;  %v11297_v52 = vpop.f32.mrb[121].mxu0 }
 0x3f2   : > { %v11298_v12 = vadd.f32 %v11297_v52, %v11296_v8  ;;  %v11391_v48 = vpop.f32.mrb[121].mxu1  ;;  %v11299_v49 = vpop.f32.mrb[122].mxu0 }
 0x3f3   : > { %v11392_v57 = vadd.f32 %v11391_v48, %v11390_v43  ;;  %v11393_v15 = vpop.f32.mrb[122].mxu1  ;;  %v11300_v47 = vpop.f32.mrb[123].mxu0 }
 0x3f4   : > { %v8499_v30 = vadd.f32 %v11298_v12, %v15399_v11  ;;  %v11301_v51 = vadd.f32 %v11300_v47, %v11299_v49  ;;  %v11394_v22 = vpop.f32.mrb[123].mxu1  ;;  %v4722_v49 = vld [vmem:[#allocation2 + $0x648] sm:$0xff] }
 0x3f5   : > { %v11395_v41 = vadd.f32 %v11394_v22, %v11393_v15  ;;  %9049 = vmatmul.mubr.bf16.gmra.mrb[228].mxu0 %v10209_v5 }
 0x3f6   : > { %v15556_v20 = vadd.f32 %v11392_v57, %v8499_v30  ;;  %v8502_v3 = vadd.f32 %v11301_v51, %v15402_v0  ;;  %9185 = vmatmul.mubr.bf16.gmra.mrb[228].mxu1 %v10211_v58  ;;  %9056 = vmatprep.mubr.bf16.mxu0 %v10234_v38  ;;  %v4734_v58 = vld [vmem:[#allocation2 + $0x6a8] sm:$0xff]  ;;  %v10257_v57 = vcombine.low %v4697_v25, %v4709_v40  ;;  %v4745_v25 = vld [vmem:[#allocation2 + $0x700] sm:$0xff] }
 0x3f7   : > { %9192 = vmatprep.mubr.bf16.mxu1 %v10236_v1  ;;  %v10259_v30 = vcombine.low %v4698_v4, %v4710_v39  ;;  %v10282_v51 = vcombine.high %v4721_v61, %v4733_v56  ;;  %v4757_v40 = vld [vmem:[#allocation2 + $0x760] sm:$0xff] }
 0x3f8   : > { %v15559_v35 = vadd.f32 %v11395_v41, %v8502_v3  ;;  %v11302_v59 = vpop.f32.mrb[124].mxu0  ;;  %v10284_v3 = vcombine.high %v4722_v49, %v4734_v58 }
 0x3f9   : > { %v11396_v34 = vpop.f32.mrb[124].mxu1  ;;  %v11303_v11 = vpop.f32.mrb[125].mxu0 }
 0x3fa   : > { %v11304_v31 = vadd.f32 %v11303_v11, %v11302_v59  ;;  %v11397_v18 = vpop.f32.mrb[125].mxu1  ;;  %v11305_v45 = vpop.f32.mrb[126].mxu0 }
 0x3fb   : > { %v11398_v62 = vadd.f32 %v11397_v18, %v11396_v34  ;;  %v11399_v0 = vpop.f32.mrb[126].mxu1  ;;  %v11306_v33 = vpop.f32.mrb[127].mxu0 }
 0x3fc   : > { %v8507_v8 = vadd.f32 %v11304_v31, %v15405_v21  ;;  %v11307_v43 = vadd.f32 %v11306_v33, %v11305_v45  ;;  %v11400_v52 = vpop.f32.mrb[127].mxu1  ;;  %v4746_v45 = vld [vmem:[#allocation2 + $0x708] sm:$0xff] }
 0x3fd   : > { %v11401_v5 = vadd.f32 %v11400_v52, %v11399_v0  ;;  %9057 = vmatmul.mubr.bf16.gmra.mrb[232].mxu0 %v10233_v55 }
 0x3fe   : > { %v15562_v12 = vadd.f32 %v11398_v62, %v8507_v8  ;;  %v8510_v48 = vadd.f32 %v11307_v43, %v15408_v2  ;;  %9193 = vmatmul.mubr.bf16.gmra.mrb[232].mxu1 %v10235_v28  ;;  %9064 = vmatprep.mubr.bf16.mxu0 %v10258_v26  ;;  %v4758_v28 = vld [vmem:[#allocation2 + $0x768] sm:$0xff]  ;;  %v10281_v62 = vcombine.low %v4721_v61, %v4733_v56  ;;  %v4769_v61 = vld [vmem:[#allocation2 + $0x7c0] sm:$0xff] }
 0x3ff   : > { %9200 = vmatprep.mubr.bf16.mxu1 %v10260_v29  ;;  %v10283_v8 = vcombine.low %v4722_v49, %v4734_v58  ;;  %v10306_v43 = vcombine.high %v4745_v25, %v4757_v40  ;;  %v4781_v56 = vld [vmem:[#allocation2 + $0x820] sm:$0xff] }
 0x400   : > { %v15565_v46 = vadd.f32 %v11401_v5, %v8510_v48  ;;  %v11308_v16 = vpop.f32.mrb[128].mxu0  ;;  %v10308_v48 = vcombine.high %v4746_v45, %v4758_v28 }
 0x401   : > { %v11402_v38 = vpop.f32.mrb[128].mxu1  ;;  %v11309_v21 = vpop.f32.mrb[129].mxu0 }
 0x402   : > { %v11310_v15 = vadd.f32 %v11309_v21, %v11308_v16  ;;  %v11403_v47 = vpop.f32.mrb[129].mxu1  ;;  %v11311_v1 = vpop.f32.mrb[130].mxu0 }
 0x403   : > { %v11404_v22 = vadd.f32 %v11403_v47, %v11402_v38  ;;  %v11405_v2 = vpop.f32.mrb[130].mxu1  ;;  %v11312_v41 = vpop.f32.mrb[131].mxu0 }
 0x404   : > { %v8515_v59 = vadd.f32 %v11310_v15, %v15411_v32  ;;  %v11313_v34 = vadd.f32 %v11312_v41, %v11311_v1  ;;  %v11406_v11 = vpop.f32.mrb[131].mxu1  ;;  %v4770_v1 = vld [vmem:[#allocation2 + $0x7c8] sm:$0xff] }
 0x405   : > { %v11407_v55 = vadd.f32 %v11406_v11, %v11405_v2  ;;  %9065 = vmatmul.mubr.bf16.gmra.mrb[236].mxu0 %v10257_v57 }
 0x406   : > { %v15568_v31 = vadd.f32 %v11404_v22, %v8515_v59  ;;  %v8518_v18 = vadd.f32 %v11313_v34, %v15414_v23  ;;  %9201 = vmatmul.mubr.bf16.gmra.mrb[236].mxu1 %v10259_v30  ;;  %9072 = vmatprep.mubr.bf16.mxu0 %v10282_v51  ;;  %v4782_v30 = vld [vmem:[#allocation2 + $0x828] sm:$0xff]  ;;  %v10305_v22 = vcombine.low %v4745_v25, %v4757_v40  ;;  %v4793_v25 = vld [vmem:[#allocation2 + $0x880] sm:$0xff] }
 0x407   : > { %9208 = vmatprep.mubr.bf16.mxu1 %v10284_v3  ;;  %v10307_v59 = vcombine.low %v4746_v45, %v4758_v28  ;;  %v10330_v34 = vcombine.high %v4769_v61, %v4781_v56  ;;  %v4805_v40 = vld [vmem:[#allocation2 + $0x8e0] sm:$0xff] }
 0x408   : > { %v15571_v4 = vadd.f32 %v11407_v55, %v8518_v18  ;;  %v11314_v39 = vpop.f32.mrb[132].mxu0  ;;  %v10332_v18 = vcombine.high %v4770_v1, %v4782_v30 }
 0x409   : > { %v11408_v26 = vpop.f32.mrb[132].mxu1  ;;  %v11315_v32 = vpop.f32.mrb[133].mxu0 }
 0x40a   : > { %v11316_v0 = vadd.f32 %v11315_v32, %v11314_v39  ;;  %v11409_v33 = vpop.f32.mrb[133].mxu1  ;;  %v11317_v29 = vpop.f32.mrb[134].mxu0 }
 0x40b   : > { %v11410_v52 = vadd.f32 %v11409_v33, %v11408_v26  ;;  %v11411_v23 = vpop.f32.mrb[134].mxu1  ;;  %v11318_v5 = vpop.f32.mrb[135].mxu0 }
 0x40c   : > { %v8523_v16 = vadd.f32 %v11316_v0, %v15417_v42  ;;  %v11319_v38 = vadd.f32 %v11318_v5, %v11317_v29  ;;  %v11412_v21 = vpop.f32.mrb[135].mxu1  ;;  %v4794_v29 = vld [vmem:[#allocation2 + $0x888] sm:$0xff] }
 0x40d   : > { %v11413_v57 = vadd.f32 %v11412_v21, %v11411_v23  ;;  %9073 = vmatmul.mubr.bf16.gmra.mrb[240].mxu0 %v10281_v62 }
 0x40e   : > { %v15574_v15 = vadd.f32 %v11410_v52, %v8523_v16  ;;  %v8526_v47 = vadd.f32 %v11319_v38, %v15420_v50  ;;  %9209 = vmatmul.mubr.bf16.gmra.mrb[240].mxu1 %v10283_v8  ;;  %9080 = vmatprep.mubr.bf16.mxu0 %v10306_v43  ;;  %v4806_v8 = vld [vmem:[#allocation2 + $0x8e8] sm:$0xff]  ;;  %v10329_v52 = vcombine.low %v4769_v61, %v4781_v56  ;;  %v4817_v61 = vld [vmem:[#allocation2 + $0x940] sm:$0x33] }
 0x40f   : > { %9216 = vmatprep.mubr.bf16.mxu1 %v10308_v48  ;;  %v10331_v16 = vcombine.low %v4770_v1, %v4782_v30  ;;  %v10354_v38 = vcombine.high %v4793_v25, %v4805_v40  ;;  %v4818_v30 = vld [vmem:[#allocation2 + $0x948] sm:$0x33] }
 0x410   : > { %v15577_v49 = vadd.f32 %v11413_v57, %v8526_v47  ;;  %v11320_v58 = vpop.f32.mrb[136].mxu0  ;;  %v10356_v47 = vcombine.high %v4794_v29, %v4806_v8 }
 0x411   : > { %v11414_v51 = vpop.f32.mrb[136].mxu1  ;;  %v11321_v42 = vpop.f32.mrb[137].mxu0 }
 0x412   : > { %v11322_v2 = vadd.f32 %v11321_v42, %v11320_v58  ;;  %v11415_v41 = vpop.f32.mrb[137].mxu1  ;;  %v11323_v3 = vpop.f32.mrb[138].mxu0 }
 0x413   : > { %v11416_v11 = vadd.f32 %v11415_v41, %v11414_v51  ;;  %v11417_v50 = vpop.f32.mrb[138].mxu1  ;;  %v11324_v55 = vpop.f32.mrb[139].mxu0 }
 0x414   : > { %v8531_v39 = vadd.f32 %v11322_v2, %v15423_v36  ;;  %v11325_v26 = vadd.f32 %v11324_v55, %v11323_v3  ;;  %v11418_v32 = vpop.f32.mrb[139].mxu1  ;;  %v10355_v55 = vcombine.low %v4794_v29, %v4806_v8 }
 0x415   : > { %v11419_v62 = vadd.f32 %v11418_v32, %v11417_v50  ;;  %9081 = vmatmul.mubr.bf16.gmra.mrb[244].mxu0 %v10305_v22 }
 0x416   : > { %v15580_v0 = vadd.f32 %v11416_v11, %v8531_v39  ;;  %v8534_v33 = vadd.f32 %v11325_v26, %v15426_v37  ;;  %9217 = vmatmul.mubr.bf16.gmra.mrb[244].mxu1 %v10307_v59  ;;  %9088 = vmatprep.mubr.bf16.mxu0 %v10330_v34  ;;  %v10353_v34 = vcombine.low %v4793_v25, %v4805_v40  ;;  %v4531_v25 = vld [vmem:[#allocation2 + $0x50] sm:$0xff] }
 0x417   : > { %9224 = vmatprep.mubr.bf16.mxu1 %v10332_v18  ;;  %v10378_v18 = vcombine.high %v4817_v61, %v4817_v61  ;;  %v4543_v40 = vld [vmem:[#allocation2 + $0xb0] sm:$0xff] }
 0x418   : > { %v15583_v45 = vadd.f32 %v11419_v62, %v8534_v33  ;;  %v11326_v28 = vpop.f32.mrb[140].mxu0 }
 0x419   : > { %v11420_v43 = vpop.f32.mrb[140].mxu1  ;;  %v11327_v36 = vpop.f32.mrb[141].mxu0 }
 0x41a   : > { %v11328_v23 = vadd.f32 %v11327_v36, %v11326_v28  ;;  %v11421_v5 = vpop.f32.mrb[141].mxu1  ;;  %v11329_v48 = vpop.f32.mrb[142].mxu0 }
 0x41b   : > { %v11422_v21 = vadd.f32 %v11421_v5, %v11420_v43  ;;  %v11423_v37 = vpop.f32.mrb[142].mxu1  ;;  %v11330_v57 = vpop.f32.mrb[143].mxu0  ;;  %v4544_v5 = vld [vmem:[#allocation2 + $0xb8] sm:$0xff] }
 0x41c   : > { %v8539_v58 = vadd.f32 %v11328_v23, %v15429_v63  ;;  %v11331_v51 = vadd.f32 %v11330_v57, %v11329_v48  ;;  %v11424_v42 = vpop.f32.mrb[143].mxu1  ;;  %v4532_v23 = vld [vmem:[#allocation2 + $0x58] sm:$0xff]  ;;  %v10379_v57 = vcombine.low %v4818_v30, %v4818_v30 }
 0x41d   : > { %v11425_v22 = vadd.f32 %v11424_v42, %v11423_v37  ;;  %9089 = vmatmul.mubr.bf16.gmra.mrb[248].mxu0 %v10329_v52  ;;  %v10096_v42 = vcombine.high %v4532_v23, %v4544_v5 }
 0x41e   : > { %v15586_v2 = vadd.f32 %v11422_v21, %v8539_v58  ;;  %v8542_v41 = vadd.f32 %v11331_v51, %v15432_v44  ;;  %9225 = vmatmul.mubr.bf16.gmra.mrb[248].mxu1 %v10331_v16  ;;  %9096 = vmatprep.mubr.bf16.mxu0 %v10354_v38  ;;  %v10380_v44 = vcombine.high %v4818_v30, %v4818_v30  ;;  %v4567_v30 = vld [vmem:[#allocation2 + $0x170] sm:$0xff] }
 0x41f   : > { %9232 = vmatprep.mubr.bf16.mxu1 %v10356_v47  ;;  %v10377_v16 = vcombine.low %v4817_v61, %v4817_v61  ;;  %v10094_v47 = vcombine.high %v4531_v25, %v4543_v40  ;;  %v4555_v61 = vld [vmem:[#allocation2 + $0x110] sm:$0xff] }
 0x420   : > { %v15589_v56 = vadd.f32 %v11425_v22, %v8542_v41  ;;  %v11332_v1 = vpop.f32.mrb[144].mxu0 }
 0x421   : > { %v11426_v3 = vpop.f32.mrb[144].mxu1  ;;  %v11333_v59 = vpop.f32.mrb[145].mxu0 }
 0x422   : > { %v11334_v63 = vadd.f32 %v11333_v59, %v11332_v1  ;;  %v11427_v11 = vpop.f32.mrb[145].mxu1  ;;  %v11335_v50 = vpop.f32.mrb[146].mxu0 }
 0x423   : > { %v11428_v39 = vadd.f32 %v11427_v11, %v11426_v3  ;;  %v11429_v26 = vpop.f32.mrb[146].mxu1  ;;  %v11336_v32 = vpop.f32.mrb[147].mxu0 }
 0x424   : > { %v8547_v62 = vadd.f32 %v11334_v63, %v15435_v19  ;;  %v11337_v33 = vadd.f32 %v11336_v32, %v11335_v50  ;;  %v11430_v28 = vpop.f32.mrb[147].mxu1  ;;  %v4556_v50 = vld [vmem:[#allocation2 + $0x118] sm:$0xff] }
 0x425   : > { %v11431_v43 = vadd.f32 %v11430_v28, %v11429_v26  ;;  %9097 = vmatmul.mubr.bf16.gmra.mrb[252].mxu0 %v10353_v34 }
 0x426   : > { %v15592_v36 = vadd.f32 %v11428_v39, %v8547_v62  ;;  %v8550_v52 = vadd.f32 %v11337_v33, %v15438_v7  ;;  %9233 = vmatmul.mubr.bf16.gmra.mrb[252].mxu1 %v10355_v55  ;;  %9104 = vmatprep.mubr.bf16.mxu0 %v10378_v18  ;;  %v4568_v55 = vld [vmem:[#allocation2 + $0x178] sm:$0xff]  ;;  %v10093_v39 = vcombine.low %v4531_v25, %v4543_v40  ;;  %v4591_v25 = vld [vmem:[#allocation2 + $0x230] sm:$0xff] }
 0x427   : > { %9240 = vmatprep.mubr.bf16.mxu1 %v10380_v44  ;;  %v10095_v62 = vcombine.low %v4532_v23, %v4544_v5  ;;  %v10118_v33 = vcombine.high %v4555_v61, %v4567_v30 }
 0x428   : > { %v15595_v29 = vadd.f32 %v11431_v43, %v8550_v52  ;;  %v11338_v8 = vpop.f32.mrb[148].mxu0  ;;  %v10120_v52 = vcombine.high %v4556_v50, %v4568_v55 }
 0x429   : > { %v11432_v48 = vpop.f32.mrb[148].mxu1  ;;  %v11339_v19 = vpop.f32.mrb[149].mxu0 }
 0x42a   : > { %v11340_v38 = vadd.f32 %v11339_v19, %v11338_v8  ;;  %v11433_v21 = vpop.f32.mrb[149].mxu1  ;;  %v11341_v37 = vpop.f32.mrb[150].mxu0 }
 0x42b   : > { %v11434_v58 = vadd.f32 %v11433_v21, %v11432_v48  ;;  %v11435_v7 = vpop.f32.mrb[150].mxu1  ;;  %v11342_v51 = vpop.f32.mrb[151].mxu0  ;;  %v4592_v21 = vld [vmem:[#allocation2 + $0x238] sm:$0xff] }
 0x42c   : > { %v8555_v22 = vadd.f32 %v11340_v38, %v15441_v13  ;;  %v11343_v41 = vadd.f32 %v11342_v51, %v11341_v37  ;;  %v11436_v1 = vpop.f32.mrb[151].mxu1  ;;  %v4580_v38 = vld [vmem:[#allocation2 + $0x1d8] sm:$0xff]  ;;  %v10117_v37 = vcombine.low %v4555_v61, %v4567_v30  ;;  %v4603_v61 = vld [vmem:[#allocation2 + $0x290] sm:$0xff] }
 0x42d   : > { %v11437_v3 = vadd.f32 %v11436_v1, %v11435_v7  ;;  %9105 = vmatmul.mubr.bf16.gmra.mrb[0].mxu0 %v10377_v16  ;;  %v4579_v16 = vld [vmem:[#allocation2 + $0x1d0] sm:$0xff]  ;;  %v10119_v7 = vcombine.low %v4556_v50, %v4568_v55 }
 0x42e   : > { %v15598_v59 = vadd.f32 %v11434_v58, %v8555_v22  ;;  %v8558_v34 = vadd.f32 %v11343_v41, %v15444_v10  ;;  %9241 = vmatmul.mubr.bf16.gmra.mrb[0].mxu1 %v10379_v57  ;;  %9280 = vmatprep.mubr.bf16.mxu0 %v10094_v47  ;;  %v10144_v41 = vcombine.high %v4580_v38, %v4592_v21  ;;  %v4615_v30 = vld [vmem:[#allocation2 + $0x2f0] sm:$0xff] }
 0x42f   : > { %9416 = vmatprep.mubr.bf16.mxu1 %v10096_v42 }
 0x430   : > { %v15601_v63 = vadd.f32 %v11437_v3, %v8558_v34  ;;  %v11344_v11 = vpop.f32.mrb[152].mxu0 }
 0x431   : > { %v11438_v18 = vpop.f32.mrb[152].mxu1  ;;  %v11345_v13 = vpop.f32.mrb[153].mxu0 }
 0x432   : > { %v11346_v26 = vadd.f32 %v11345_v13, %v11344_v11  ;;  %v11439_v32 = vpop.f32.mrb[153].mxu1  ;;  %v11347_v44 = vpop.f32.mrb[154].mxu0 }
 0x433   : > { %v11440_v28 = vadd.f32 %v11439_v32, %v11438_v18  ;;  %v11441_v10 = vpop.f32.mrb[154].mxu1  ;;  %v11348_v43 = vpop.f32.mrb[155].mxu0  ;;  %v10141_v44 = vcombine.low %v4579_v16, %v4591_v25 }
 0x434   : > { %v8563_v8 = vadd.f32 %v11346_v26, %v15454_v9  ;;  %v11442_v48 = vpop.f32.mrb[155].mxu1  ;;  %v10142_v9 = vcombine.high %v4579_v16, %v4591_v25  ;;  %v4616_v26 = vld [vmem:[#allocation2 + $0x2f8] sm:$0xff]  ;;  %v10143_v10 = vcombine.low %v4580_v38, %v4592_v21  ;;  %v10166_v43 = vcombine.high %v4603_v61, %v4615_v30  ;;  %v4627_v16 = vld [vmem:[#allocation2 + $0x350] sm:$0xff] }
 0x435   : > { %9281 = vmatmul.mubr.bf16.vlgmr.msra.gmra.mrb[4].mxu0 %v10093_v39  ;;  %v4604_v39 = vld [vmem:[#allocation2 + $0x298] sm:$0xff]  ;;  %v4639_v25 = vld [vmem:[#allocation2 + $0x3b0] sm:$0xff] }
 0x436   : > { %v15604_v19 = vadd.f32 %v11440_v28, %v8563_v8  ;;  %9417 = vmatmul.mubr.bf16.vlgmr.msra.gmra.mrb[4].mxu1 %v10095_v62  ;;  %9288 = vmatprep.mubr.bf16.mxu0 %v10118_v33  ;;  %v10168_v48 = vcombine.high %v4604_v39, %v4616_v26 }
 0x437   : > { %9424 = vmatprep.mubr.bf16.mxu1 %v10120_v52 }
 0x438   : > { %v11460_v40 = vpop.f32.mrb[156].mxu0 }
 0x439   : > { %v11554_v23 = vpop.f32.mrb[156].mxu1  ;;  %v11461_v5 = vpop.f32.mrb[157].mxu0 }
 0x43a   : > { %v11462_v57 = vadd.f32 %v11461_v5, %v11460_v40  ;;  %v11555_v47 = vpop.f32.mrb[157].mxu1  ;;  %v11463_v58 = vpop.f32.mrb[158].mxu0 }
 0x43b   : > { %v11556_v51 = vadd.f32 %v11555_v47, %v11554_v23  ;;  %v11557_v42 = vpop.f32.mrb[158].mxu1  ;;  %v11464_v22 = vpop.f32.mrb[159].mxu0 }
 0x43c   : > { %v8739_v1 = vadd.f32 %v11462_v57, %v15478_v60  ;;  %v11465_v3 = vadd.f32 %v11464_v22, %v11463_v58  ;;  %v11558_v34 = vpop.f32.mrb[159].mxu1  ;;  %v4628_v58 = vld [vmem:[#allocation2 + $0x358] sm:$0xff] }
 0x43d   : > { %v11559_v11 = vadd.f32 %v11558_v34, %v11557_v42  ;;  %9289 = vmatmul.mubr.bf16.gmra.mrb[8].mxu0 %v10117_v37 }
 0x43e   : > { %v15607_v18 = vadd.f32 %v11556_v51, %v8739_v1  ;;  %v8742_v13 = vadd.f32 %v11465_v3, %v15488_v54  ;;  %9425 = vmatmul.mubr.bf16.gmra.mrb[8].mxu1 %v10119_v7  ;;  %9296 = vmatprep.mubr.bf16.mxu0 %v10142_v9  ;;  %v4640_v7 = vld [vmem:[#allocation2 + $0x3b8] sm:$0xff]  ;;  %v10165_v51 = vcombine.low %v4603_v61, %v4615_v30  ;;  %v4651_v61 = vld [vmem:[#allocation2 + $0x410] sm:$0xff] }
 0x43f   : > { %9432 = vmatprep.mubr.bf16.mxu1 %v10144_v41  ;;  %v10167_v1 = vcombine.low %v4604_v39, %v4616_v26  ;;  %v10190_v3 = vcombine.high %v4627_v16, %v4639_v25  ;;  %v4663_v30 = vld [vmem:[#allocation2 + $0x470] sm:$0xff] }
 0x440   : > { %v15610_v50 = vadd.f32 %v11559_v11, %v8742_v13  ;;  %v11466_v55 = vpop.f32.mrb[160].mxu0  ;;  %v10192_v13 = vcombine.high %v4628_v58, %v4640_v7 }
 0x441   : > { %v11560_v32 = vpop.f32.mrb[160].mxu1  ;;  %v11467_v60 = vpop.f32.mrb[161].mxu0 }
 0x442   : > { %v11468_v62 = vadd.f32 %v11467_v60, %v11466_v55  ;;  %v11561_v33 = vpop.f32.mrb[161].mxu1  ;;  %v11469_v28 = vpop.f32.mrb[162].mxu0 }
 0x443   : > { %v11562_v52 = vadd.f32 %v11561_v33, %v11560_v32  ;;  %v11563_v54 = vpop.f32.mrb[162].mxu1  ;;  %v11470_v8 = vpop.f32.mrb[163].mxu0 }
 0x444   : > { %v8747_v40 = vadd.f32 %v11468_v62, %v15508_v14  ;;  %v11471_v23 = vadd.f32 %v11470_v8, %v11469_v28  ;;  %v11564_v5 = vpop.f32.mrb[163].mxu1  ;;  %v4652_v28 = vld [vmem:[#allocation2 + $0x418] sm:$0xff] }
 0x445   : > { %v11565_v37 = vadd.f32 %v11564_v5, %v11563_v54  ;;  %9297 = vmatmul.mubr.bf16.gmra.mrb[12].mxu0 %v10141_v44 }
 0x446   : > { %v15613_v57 = vadd.f32 %v11562_v52, %v8747_v40  ;;  %v8750_v47 = vadd.f32 %v11471_v23, %v15518_v24  ;;  %9433 = vmatmul.mubr.bf16.gmra.mrb[12].mxu1 %v10143_v10  ;;  %9304 = vmatprep.mubr.bf16.mxu0 %v10166_v43  ;;  %v4664_v10 = vld [vmem:[#allocation2 + $0x478] sm:$0xff]  ;;  %v10189_v52 = vcombine.low %v4627_v16, %v4639_v25  ;;  %v4675_v16 = vld [vmem:[#allocation2 + $0x4d0] sm:$0xff] }
 0x447   : > { %9440 = vmatprep.mubr.bf16.mxu1 %v10168_v48  ;;  %v10191_v40 = vcombine.low %v4628_v58, %v4640_v7  ;;  %v10214_v23 = vcombine.high %v4651_v61, %v4663_v30  ;;  %v4687_v25 = vld [vmem:[#allocation2 + $0x530] sm:$0xff] }
 0x448   : > { %v15616_v38 = vadd.f32 %v11565_v37, %v8750_v47  ;;  %v11472_v21 = vpop.f32.mrb[164].mxu0  ;;  %v10216_v47 = vcombine.high %v4652_v28, %v4664_v10 }
 0x449   : > { %v11566_v9 = vpop.f32.mrb[164].mxu1  ;;  %v11473_v14 = vpop.f32.mrb[165].mxu0 }
 0x44a   : > { %v11474_v42 = vadd.f32 %v11473_v14, %v11472_v21  ;;  %v11567_v22 = vpop.f32.mrb[165].mxu1  ;;  %v11475_v41 = vpop.f32.mrb[166].mxu0 }
 0x44b   : > { %v11568_v34 = vadd.f32 %v11567_v22, %v11566_v9  ;;  %v11569_v24 = vpop.f32.mrb[166].mxu1  ;;  %v11476_v11 = vpop.f32.mrb[167].mxu0 }
 0x44c   : > { %v8755_v55 = vadd.f32 %v11474_v42, %v15538_v17  ;;  %v11477_v32 = vadd.f32 %v11476_v11, %v11475_v41  ;;  %v11570_v60 = vpop.f32.mrb[167].mxu1  ;;  %v4676_v41 = vld [vmem:[#allocation2 + $0x4d8] sm:$0xff] }
 0x44d   : > { %v11571_v44 = vadd.f32 %v11570_v60, %v11569_v24  ;;  %9305 = vmatmul.mubr.bf16.gmra.mrb[16].mxu0 %v10165_v51 }
 0x44e   : > { %v15619_v62 = vadd.f32 %v11568_v34, %v8755_v55  ;;  %v8758_v33 = vadd.f32 %v11477_v32, %v15542_v53  ;;  %9441 = vmatmul.mubr.bf16.gmra.mrb[16].mxu1 %v10167_v1  ;;  %9312 = vmatprep.mubr.bf16.mxu0 %v10190_v3  ;;  %v4688_v1 = vld [vmem:[#allocation2 + $0x538] sm:$0xff]  ;;  %v10213_v34 = vcombine.low %v4651_v61, %v4663_v30  ;;  %v4699_v61 = vld [vmem:[#allocation2 + $0x590] sm:$0xff] }
 0x44f   : > { %9448 = vmatprep.mubr.bf16.mxu1 %v10192_v13  ;;  %v10215_v55 = vcombine.low %v4652_v28, %v4664_v10  ;;  %v10238_v32 = vcombine.high %v4675_v16, %v4687_v25  ;;  %v4711_v30 = vld [vmem:[#allocation2 + $0x5f0] sm:$0xff] }
 0x450   : > { %v15622_v39 = vadd.f32 %v11571_v44, %v8758_v33  ;;  %v11478_v26 = vpop.f32.mrb[168].mxu0  ;;  %v10240_v33 = vcombine.high %v4676_v41, %v4688_v1 }
 0x451   : > { %v11572_v43 = vpop.f32.mrb[168].mxu1  ;;  %v11479_v17 = vpop.f32.mrb[169].mxu0 }
 0x452   : > { %v11480_v54 = vadd.f32 %v11479_v17, %v11478_v26  ;;  %v11573_v8 = vpop.f32.mrb[169].mxu1  ;;  %v11481_v48 = vpop.f32.mrb[170].mxu0 }
 0x453   : > { %v11574_v5 = vadd.f32 %v11573_v8, %v11572_v43  ;;  %v11575_v53 = vpop.f32.mrb[170].mxu1  ;;  %v11482_v37 = vpop.f32.mrb[171].mxu0 }
 0x454   : > { %v8763_v21 = vadd.f32 %v11480_v54, %v15550_v6  ;;  %v11483_v9 = vadd.f32 %v11482_v37, %v11481_v48  ;;  %v11576_v14 = vpop.f32.mrb[171].mxu1  ;;  %v4700_v48 = vld [vmem:[#allocation2 + $0x598] sm:$0xff] }
 0x455   : > { %v11577_v51 = vadd.f32 %v11576_v14, %v11575_v53  ;;  %9313 = vmatmul.mubr.bf16.gmra.mrb[20].mxu0 %v10189_v52 }
 0x456   : > { %v15625_v42 = vadd.f32 %v11574_v5, %v8763_v21  ;;  %v8766_v22 = vadd.f32 %v11483_v9, %v15553_v27  ;;  %9449 = vmatmul.mubr.bf16.gmra.mrb[20].mxu1 %v10191_v40  ;;  %9320 = vmatprep.mubr.bf16.mxu0 %v10214_v23  ;;  %v4712_v40 = vld [vmem:[#allocation2 + $0x5f8] sm:$0xff]  ;;  %v10237_v5 = vcombine.low %v4675_v16, %v4687_v25  ;;  %v4723_v16 = vld [vmem:[#allocation2 + $0x650] sm:$0xff] }
 0x457   : > { %9456 = vmatprep.mubr.bf16.mxu1 %v10216_v47  ;;  %v10239_v21 = vcombine.low %v4676_v41, %v4688_v1  ;;  %v10262_v9 = vcombine.high %v4699_v61, %v4711_v30  ;;  %v4735_v25 = vld [vmem:[#allocation2 + $0x6b0] sm:$0xff] }
 0x458   : > { %v15628_v58 = vadd.f32 %v11577_v51, %v8766_v22  ;;  %v11484_v7 = vpop.f32.mrb[172].mxu0  ;;  %v10264_v22 = vcombine.high %v4700_v48, %v4712_v40 }
 0x459   : > { %v11578_v3 = vpop.f32.mrb[172].mxu1  ;;  %v11485_v6 = vpop.f32.mrb[173].mxu0 }
 0x45a   : > { %v11486_v24 = vadd.f32 %v11485_v6, %v11484_v7  ;;  %v11579_v11 = vpop.f32.mrb[173].mxu1  ;;  %v11487_v13 = vpop.f32.mrb[174].mxu0 }
 0x45b   : > { %v11580_v60 = vadd.f32 %v11579_v11, %v11578_v3  ;;  %v11581_v27 = vpop.f32.mrb[174].mxu1  ;;  %v11488_v44 = vpop.f32.mrb[175].mxu0 }
 0x45c   : > { %v8771_v26 = vadd.f32 %v11486_v24, %v15556_v20  ;;  %v11489_v43 = vadd.f32 %v11488_v44, %v11487_v13  ;;  %v11582_v17 = vpop.f32.mrb[175].mxu1  ;;  %v4724_v13 = vld [vmem:[#allocation2 + $0x658] sm:$0xff] }
 0x45d   : > { %v11583_v52 = vadd.f32 %v11582_v17, %v11581_v27  ;;  %9321 = vmatmul.mubr.bf16.gmra.mrb[24].mxu0 %v10213_v34 }
 0x45e   : > { %v15631_v54 = vadd.f32 %v11580_v60, %v8771_v26  ;;  %v8774_v8 = vadd.f32 %v11489_v43, %v15559_v35  ;;  %9457 = vmatmul.mubr.bf16.gmra.mrb[24].mxu1 %v10215_v55  ;;  %9328 = vmatprep.mubr.bf16.mxu0 %v10238_v32  ;;  %v4736_v55 = vld [vmem:[#allocation2 + $0x6b8] sm:$0xff]  ;;  %v10261_v60 = vcombine.low %v4699_v61, %v4711_v30  ;;  %v4747_v61 = vld [vmem:[#allocation2 + $0x710] sm:$0xff] }
 0x45f   : > { %9464 = vmatprep.mubr.bf16.mxu1 %v10240_v33  ;;  %v10263_v26 = vcombine.low %v4700_v48, %v4712_v40  ;;  %v10286_v43 = vcombine.high %v4723_v16, %v4735_v25  ;;  %v4759_v30 = vld [vmem:[#allocation2 + $0x770] sm:$0xff] }
 0x460   : > { %v15634_v28 = vadd.f32 %v11583_v52, %v8774_v8  ;;  %v11490_v10 = vpop.f32.mrb[176].mxu0  ;;  %v10288_v8 = vcombine.high %v4724_v13, %v4736_v55 }
 0x461   : > { %v11584_v23 = vpop.f32.mrb[176].mxu1  ;;  %v11491_v20 = vpop.f32.mrb[177].mxu0 }
 0x462   : > { %v11492_v53 = vadd.f32 %v11491_v20, %v11490_v10  ;;  %v11585_v37 = vpop.f32.mrb[177].mxu1  ;;  %v11493_v47 = vpop.f32.mrb[178].mxu0 }
 0x463   : > { %v11586_v14 = vadd.f32 %v11585_v37, %v11584_v23  ;;  %v11587_v35 = vpop.f32.mrb[178].mxu1  ;;  %v11494_v51 = vpop.f32.mrb[179].mxu0 }
 0x464   : > { %v8779_v7 = vadd.f32 %v11492_v53, %v15562_v12  ;;  %v11495_v3 = vadd.f32 %v11494_v51, %v11493_v47  ;;  %v11588_v6 = vpop.f32.mrb[179].mxu1  ;;  %v4748_v47 = vld [vmem:[#allocation2 + $0x718] sm:$0xff] }
 0x465   : > { %v11589_v34 = vadd.f32 %v11588_v6, %v11587_v35  ;;  %9329 = vmatmul.mubr.bf16.gmra.mrb[28].mxu0 %v10237_v5 }
 0x466   : > { %v15637_v24 = vadd.f32 %v11586_v14, %v8779_v7  ;;  %v8782_v11 = vadd.f32 %v11495_v3, %v15565_v46  ;;  %9465 = vmatmul.mubr.bf16.gmra.mrb[28].mxu1 %v10239_v21  ;;  %9336 = vmatprep.mubr.bf16.mxu0 %v10262_v9  ;;  %v4760_v21 = vld [vmem:[#allocation2 + $0x778] sm:$0xff]  ;;  %v10285_v14 = vcombine.low %v4723_v16, %v4735_v25  ;;  %v4771_v16 = vld [vmem:[#allocation2 + $0x7d0] sm:$0xff] }
 0x467   : > { %9472 = vmatprep.mubr.bf16.mxu1 %v10264_v22  ;;  %v10287_v7 = vcombine.low %v4724_v13, %v4736_v55  ;;  %v10310_v3 = vcombine.high %v4747_v61, %v4759_v30  ;;  %v4783_v25 = vld [vmem:[#allocation2 + $0x830] sm:$0xff] }
 0x468   : > { %v15640_v41 = vadd.f32 %v11589_v34, %v8782_v11  ;;  %v11496_v1 = vpop.f32.mrb[180].mxu0  ;;  %v10312_v11 = vcombine.high %v4748_v47, %v4760_v21 }
 0x469   : > { %v11590_v32 = vpop.f32.mrb[180].mxu1  ;;  %v11497_v12 = vpop.f32.mrb[181].mxu0 }
 0x46a   : > { %v11498_v27 = vadd.f32 %v11497_v12, %v11496_v1  ;;  %v11591_v44 = vpop.f32.mrb[181].mxu1  ;;  %v11499_v33 = vpop.f32.mrb[182].mxu0 }
 0x46b   : > { %v11592_v17 = vadd.f32 %v11591_v44, %v11590_v32  ;;  %v11593_v46 = vpop.f32.mrb[182].mxu1  ;;  %v11500_v52 = vpop.f32.mrb[183].mxu0 }
 0x46c   : > { %v8787_v10 = vadd.f32 %v11498_v27, %v15568_v31  ;;  %v11501_v23 = vadd.f32 %v11500_v52, %v11499_v33  ;;  %v11594_v20 = vpop.f32.mrb[183].mxu1  ;;  %v4772_v33 = vld [vmem:[#allocation2 + $0x7d8] sm:$0xff] }
 0x46d   : > { %v11595_v5 = vadd.f32 %v11594_v20, %v11593_v46  ;;  %9337 = vmatmul.mubr.bf16.gmra.mrb[32].mxu0 %v10261_v60 }
 0x46e   : > { %v15643_v53 = vadd.f32 %v11592_v17, %v8787_v10  ;;  %v8790_v37 = vadd.f32 %v11501_v23, %v15571_v4  ;;  %9473 = vmatmul.mubr.bf16.gmra.mrb[32].mxu1 %v10263_v26  ;;  %9344 = vmatprep.mubr.bf16.mxu0 %v10286_v43  ;;  %v4784_v26 = vld [vmem:[#allocation2 + $0x838] sm:$0xff]  ;;  %v10309_v17 = vcombine.low %v4747_v61, %v4759_v30  ;;  %v4795_v61 = vld [vmem:[#allocation2 + $0x890] sm:$0xff] }
 0x46f   : > { %9480 = vmatprep.mubr.bf16.mxu1 %v10288_v8  ;;  %v10311_v10 = vcombine.low %v4748_v47, %v4760_v21  ;;  %v10334_v23 = vcombine.high %v4771_v16, %v4783_v25  ;;  %v4807_v30 = vld [vmem:[#allocation2 + $0x8f0] sm:$0xff] }
 0x470   : > { %v15646_v48 = vadd.f32 %v11595_v5, %v8790_v37  ;;  %v11502_v40 = vpop.f32.mrb[184].mxu0  ;;  %v10336_v37 = vcombine.high %v4772_v33, %v4784_v26 }
 0x471   : > { %v11596_v9 = vpop.f32.mrb[184].mxu1  ;;  %v11503_v31 = vpop.f32.mrb[185].mxu0 }
 0x472   : > { %v11504_v35 = vadd.f32 %v11503_v31, %v11502_v40  ;;  %v11597_v51 = vpop.f32.mrb[185].mxu1  ;;  %v11505_v22 = vpop.f32.mrb[186].mxu0 }
 0x473   : > { %v11598_v6 = vadd.f32 %v11597_v51, %v11596_v9  ;;  %v11599_v4 = vpop.f32.mrb[186].mxu1  ;;  %v11506_v34 = vpop.f32.mrb[187].mxu0 }
 0x474   : > { %v8795_v1 = vadd.f32 %v11504_v35, %v15574_v15  ;;  %v11507_v32 = vadd.f32 %v11506_v34, %v11505_v22  ;;  %v11600_v12 = vpop.f32.mrb[187].mxu1  ;;  %v4796_v22 = vld [vmem:[#allocation2 + $0x898] sm:$0xff] }
 0x475   : > { %v11601_v60 = vadd.f32 %v11600_v12, %v11599_v4  ;;  %9345 = vmatmul.mubr.bf16.gmra.mrb[36].mxu0 %v10285_v14 }
 0x476   : > { %v15649_v27 = vadd.f32 %v11598_v6, %v8795_v1  ;;  %v8798_v44 = vadd.f32 %v11507_v32, %v15577_v49  ;;  %9481 = vmatmul.mubr.bf16.gmra.mrb[36].mxu1 %v10287_v7  ;;  %9352 = vmatprep.mubr.bf16.mxu0 %v10310_v3  ;;  %v4808_v7 = vld [vmem:[#allocation2 + $0x8f8] sm:$0xff]  ;;  %v10333_v6 = vcombine.low %v4771_v16, %v4783_v25  ;;  %v4819_v16 = vld [vmem:[#allocation2 + $0x950] sm:$0x33] }
 0x477   : > { %9488 = vmatprep.mubr.bf16.mxu1 %v10312_v11  ;;  %v10335_v1 = vcombine.low %v4772_v33, %v4784_v26  ;;  %v10358_v32 = vcombine.high %v4795_v61, %v4807_v30  ;;  %v4820_v26 = vld [vmem:[#allocation2 + $0x958] sm:$0x33] }
 0x478   : > { %v15652_v13 = vadd.f32 %v11601_v60, %v8798_v44  ;;  %v11508_v55 = vpop.f32.mrb[188].mxu0  ;;  %v10360_v44 = vcombine.high %v4796_v22, %v4808_v7 }
 0x479   : > { %v11602_v43 = vpop.f32.mrb[188].mxu1  ;;  %v11509_v15 = vpop.f32.mrb[189].mxu0 }
 0x47a   : > { %v11510_v46 = vadd.f32 %v11509_v15, %v11508_v55  ;;  %v11603_v52 = vpop.f32.mrb[189].mxu1  ;;  %v11511_v8 = vpop.f32.mrb[190].mxu0 }
 0x47b   : > { %v11604_v20 = vadd.f32 %v11603_v52, %v11602_v43  ;;  %v11605_v49 = vpop.f32.mrb[190].mxu1  ;;  %v11512_v5 = vpop.f32.mrb[191].mxu0 }
 0x47c   : > { %v8803_v40 = vadd.f32 %v11510_v46, %v15580_v0  ;;  %v11513_v9 = vadd.f32 %v11512_v5, %v11511_v8  ;;  %v11606_v31 = vpop.f32.mrb[191].mxu1  ;;  %v10359_v5 = vcombine.low %v4796_v22, %v4808_v7 }
 0x47d   : > { %v11607_v14 = vadd.f32 %v11606_v31, %v11605_v49  ;;  %9353 = vmatmul.mubr.bf16.gmra.mrb[40].mxu0 %v10309_v17 }
 0x47e   : > { %v15655_v35 = vadd.f32 %v11604_v20, %v8803_v40  ;;  %v8806_v51 = vadd.f32 %v11513_v9, %v15583_v45  ;;  %9489 = vmatmul.mubr.bf16.gmra.mrb[40].mxu1 %v10311_v10  ;;  %9360 = vmatprep.mubr.bf16.mxu0 %v10334_v23  ;;  %v10357_v23 = vcombine.low %v4795_v61, %v4807_v30 }
 0x47f   : > { %9496 = vmatprep.mubr.bf16.mxu1 %v10336_v37  ;;  %v10382_v37 = vcombine.high %v4819_v16, %v4819_v16 }
 0x480   : > { %v15658_v47 = vadd.f32 %v11607_v14, %v8806_v51  ;;  %v11514_v21 = vpop.f32.mrb[192].mxu0 }
 0x481   : > { %v11608_v3 = vpop.f32.mrb[192].mxu1  ;;  %v11515_v0 = vpop.f32.mrb[193].mxu0 }
 0x482   : > { %v11516_v4 = vadd.f32 %v11515_v0, %v11514_v21  ;;  %v11609_v34 = vpop.f32.mrb[193].mxu1  ;;  %v11517_v11 = vpop.f32.mrb[194].mxu0 }
 0x483   : > { %v11610_v12 = vadd.f32 %v11609_v34, %v11608_v3  ;;  %v11611_v45 = vpop.f32.mrb[194].mxu1  ;;  %v11518_v60 = vpop.f32.mrb[195].mxu0 }
 0x484   : > { %v8811_v55 = vadd.f32 %v11516_v4, %v15586_v2  ;;  %v11519_v43 = vadd.f32 %v11518_v60, %v11517_v11  ;;  %v11612_v15 = vpop.f32.mrb[195].mxu1  ;;  %v10381_v4 = vcombine.low %v4819_v16, %v4819_v16 }
 0x485   : > { %v11613_v17 = vadd.f32 %v11612_v15, %v11611_v45  ;;  %9361 = vmatmul.mubr.bf16.gmra.mrb[44].mxu0 %v10333_v6 }
 0x486   : > { %v15661_v46 = vadd.f32 %v11610_v12, %v8811_v55  ;;  %v8814_v52 = vadd.f32 %v11519_v43, %v15589_v56  ;;  %9497 = vmatmul.mubr.bf16.gmra.mrb[44].mxu1 %v10335_v1  ;;  %9368 = vmatprep.mubr.bf16.mxu0 %v10358_v32  ;;  %v10384_v56 = vcombine.high %v4820_v26, %v4820_v26 }
 0x487   : > { %9504 = vmatprep.mubr.bf16.mxu1 %v10360_v44  ;;  %v10383_v1 = vcombine.low %v4820_v26, %v4820_v26 }
 0x488   : > { %v15664_v25 = vadd.f32 %v11613_v17, %v8814_v52  ;;  %v11520_v33 = vpop.f32.mrb[196].mxu0 }
 0x489   : > { %v11614_v8 = vpop.f32.mrb[196].mxu1  ;;  %v11521_v10 = vpop.f32.mrb[197].mxu0 }
 0x48a   : > { %v11522_v2 = vadd.f32 %v11521_v10, %v11520_v33  ;;  %v11615_v20 = vpop.f32.mrb[197].mxu1  ;;  %v11523_v49 = vpop.f32.mrb[198].mxu0 }
 0x48b   : > { %v11616_v40 = vadd.f32 %v11615_v20, %v11614_v8  ;;  %v11617_v9 = vpop.f32.mrb[198].mxu1  ;;  %v11524_v31 = vpop.f32.mrb[199].mxu0 }
 0x48c   : > { %v8819_v14 = vadd.f32 %v11522_v2, %v15592_v36  ;;  %v11525_v51 = vadd.f32 %v11524_v31, %v11523_v49  ;;  %v11618_v21 = vpop.f32.mrb[199].mxu1 }
 0x48d   : > { %v11619_v3 = vadd.f32 %v11618_v21, %v11617_v9  ;;  %9369 = vmatmul.mubr.bf16.gmra.mrb[48].mxu0 %v10357_v23 }
 0x48e   : > { %v15667_v0 = vadd.f32 %v11616_v40, %v8819_v14  ;;  %v8822_v6 = vadd.f32 %v11525_v51, %v15595_v29  ;;  %9505 = vmatmul.mubr.bf16.gmra.mrb[48].mxu1 %v10359_v5  ;;  %9376 = vmatprep.mubr.bf16.mxu0 %v10382_v37 }
 0x48f   : > { %9512 = vmatprep.mubr.bf16.mxu1 %v10384_v56 }
 0x490   : > { %v15670_v61 = vadd.f32 %v11619_v3, %v8822_v6  ;;  %v11526_v30 = vpop.f32.mrb[200].mxu0 }
 0x491   : > { %v11620_v22 = vpop.f32.mrb[200].mxu1  ;;  %v11527_v7 = vpop.f32.mrb[201].mxu0 }
 0x492   : > { %v11528_v34 = vadd.f32 %v11527_v7, %v11526_v30  ;;  %v11621_v11 = vpop.f32.mrb[201].mxu1  ;;  %v11529_v36 = vpop.f32.mrb[202].mxu0 }
 0x493   : > { %v11622_v32 = vadd.f32 %v11621_v11, %v11620_v22  ;;  %v11623_v12 = vpop.f32.mrb[202].mxu1  ;;  %v11530_v45 = vpop.f32.mrb[203].mxu0 }
 0x494   : > { %v8827_v60 = vadd.f32 %v11528_v34, %v15598_v59  ;;  %v11531_v44 = vadd.f32 %v11530_v45, %v11529_v36  ;;  %v11624_v29 = vpop.f32.mrb[203].mxu1 }
 0x495   : > { %v11625_v55 = vadd.f32 %v11624_v29, %v11623_v12  ;;  %9377 = vmatmul.mubr.bf16.gmra.mrb[52].mxu0 %v10381_v4 }
 0x496   : > { %v15673_v43 = vadd.f32 %v11622_v32, %v8827_v60  ;;  %v8830_v15 = vadd.f32 %v11531_v44, %v15601_v63  ;;  %9513 = vmatmul.mubr.bf16.gmra.mrb[52].mxu1 %v10383_v1 }
 0x498   : > { %v15676_v17 = vadd.f32 %v11625_v55, %v8830_v15  ;;  %v11532_v52 = vpop.f32.mrb[204].mxu0 }
 0x499   : > { %v11626_v16 = vpop.f32.mrb[204].mxu1  ;;  %v11533_v33 = vpop.f32.mrb[205].mxu0 }
 0x49a   : > { %v11534_v26 = vadd.f32 %v11533_v33, %v11532_v52  ;;  %v11627_v8 = vpop.f32.mrb[205].mxu1  ;;  %v11535_v10 = vpop.f32.mrb[206].mxu0 }
 0x49b   : > { %v11628_v23 = vadd.f32 %v11627_v8, %v11626_v16  ;;  %v11629_v2 = vpop.f32.mrb[206].mxu1  ;;  %v11536_v59 = vpop.f32.mrb[207].mxu0 }
 0x49c   : > { %v8835_v20 = vadd.f32 %v11534_v26, %v15604_v19  ;;  %v11630_v49 = vpop.f32.mrb[207].mxu1 }
 0x49e   : > { %v15679_v5 = vadd.f32 %v11628_v23, %v8835_v20 }
 0x4a0   : > { %v11648_v37 = vpop.f32.mrb[208].mxu0 }
 0x4a1   : > { %v11742_v40 = vpop.f32.mrb[208].mxu1  ;;  %v11649_v63 = vpop.f32.mrb[209].mxu0 }
 0x4a2   : > { %v11650_v9 = vadd.f32 %v11649_v63, %v11648_v37  ;;  %v11743_v31 = vpop.f32.mrb[209].mxu1  ;;  %v11651_v56 = vpop.f32.mrb[210].mxu0 }
 0x4a3   : > { %v11744_v14 = vadd.f32 %v11743_v31, %v11742_v40  ;;  %v11745_v51 = vpop.f32.mrb[210].mxu1  ;;  %v11652_v21 = vpop.f32.mrb[211].mxu0 }
 0x4a4   : > { %v9011_v3 = vadd.f32 %v11650_v9, %v15607_v18  ;;  %v11653_v6 = vadd.f32 %v11652_v21, %v11651_v56  ;;  %v11746_v30 = vpop.f32.mrb[211].mxu1 }
 0x4a5   : > { %v11747_v22 = vadd.f32 %v11746_v30, %v11745_v51 }
 0x4a6   : > { %v15682_v7 = vadd.f32 %v11744_v14, %v9011_v3  ;;  %v9014_v19 = vadd.f32 %v11653_v6, %v15610_v50 }
 0x4a8   : > { %v15685_v4 = vadd.f32 %v11747_v22, %v9014_v19  ;;  %v11654_v34 = vpop.f32.mrb[212].mxu0 }
 0x4a9   : > { %v11748_v11 = vpop.f32.mrb[212].mxu1  ;;  %v11655_v36 = vpop.f32.mrb[213].mxu0 }
 0x4aa   : > { %v11656_v1 = vadd.f32 %v11655_v36, %v11654_v34  ;;  %v11749_v32 = vpop.f32.mrb[213].mxu1  ;;  %v11657_v12 = vpop.f32.mrb[214].mxu0 }
 0x4ab   : > { %v11750_v45 = vadd.f32 %v11749_v32, %v11748_v11  ;;  %v11751_v60 = vpop.f32.mrb[214].mxu1  ;;  %v11658_v44 = vpop.f32.mrb[215].mxu0 }
 0x4ac   : > { %v9019_v18 = vadd.f32 %v11656_v1, %v15613_v57  ;;  %v11659_v29 = vadd.f32 %v11658_v44, %v11657_v12  ;;  %v11752_v55 = vpop.f32.mrb[215].mxu1 }
 0x4ad   : > { %v11753_v15 = vadd.f32 %v11752_v55, %v11751_v60 }
 0x4ae   : > { %v15688_v52 = vadd.f32 %v11750_v45, %v9019_v18  ;;  %v9022_v50 = vadd.f32 %v11659_v29, %v15616_v38 }
 0x4b0   : > { %v15691_v16 = vadd.f32 %v11753_v15, %v9022_v50  ;;  %v11660_v33 = vpop.f32.mrb[216].mxu0 }
 0x4b1   : > { %v11754_v26 = vpop.f32.mrb[216].mxu1  ;;  %v11661_v8 = vpop.f32.mrb[217].mxu0 }
 0x4b2   : > { %v11662_v10 = vadd.f32 %v11661_v8, %v11660_v33  ;;  %v11755_v23 = vpop.f32.mrb[217].mxu1  ;;  %v11663_v2 = vpop.f32.mrb[218].mxu0 }
 0x4b3   : > { %v11756_v59 = vadd.f32 %v11755_v23, %v11754_v26  ;;  %v11757_v20 = vpop.f32.mrb[218].mxu1  ;;  %v11664_v49 = vpop.f32.mrb[219].mxu0 }
 0x4b4   : > { %v9027_v57 = vadd.f32 %v11662_v10, %v15619_v62  ;;  %v11665_v37 = vadd.f32 %v11664_v49, %v11663_v2  ;;  %v11758_v40 = vpop.f32.mrb[219].mxu1 }
 0x4b5   : > { %v11759_v63 = vadd.f32 %v11758_v40, %v11757_v20 }
 0x4b6   : > { %v15694_v9 = vadd.f32 %v11756_v59, %v9027_v57  ;;  %v9030_v38 = vadd.f32 %v11665_v37, %v15622_v39 }
 0x4b8   : > { %v15697_v31 = vadd.f32 %v11759_v63, %v9030_v38  ;;  %v11666_v56 = vpop.f32.mrb[220].mxu0 }
 0x4b9   : > { %v11760_v14 = vpop.f32.mrb[220].mxu1  ;;  %v11667_v51 = vpop.f32.mrb[221].mxu0 }
 0x4ba   : > { %v11668_v21 = vadd.f32 %v11667_v51, %v11666_v56  ;;  %v11761_v3 = vpop.f32.mrb[221].mxu1  ;;  %v11669_v6 = vpop.f32.mrb[222].mxu0 }
 0x4bb   : > { %v11762_v30 = vadd.f32 %v11761_v3, %v11760_v14  ;;  %v11763_v22 = vpop.f32.mrb[222].mxu1  ;;  %v11670_v19 = vpop.f32.mrb[223].mxu0 }
 0x4bc   : > { %v9035_v62 = vadd.f32 %v11668_v21, %v15625_v42  ;;  %v11671_v34 = vadd.f32 %v11670_v19, %v11669_v6  ;;  %v11764_v11 = vpop.f32.mrb[223].mxu1 }
 0x4bd   : > { %v11765_v36 = vadd.f32 %v11764_v11, %v11763_v22 }
 0x4be   : > { %v15700_v1 = vadd.f32 %v11762_v30, %v9035_v62  ;;  %v9038_v39 = vadd.f32 %v11671_v34, %v15628_v58 }
 0x4c0   : > { %v15703_v32 = vadd.f32 %v11765_v36, %v9038_v39  ;;  %v11672_v12 = vpop.f32.mrb[224].mxu0 }
 0x4c1   : > { %v11766_v45 = vpop.f32.mrb[224].mxu1  ;;  %v11673_v60 = vpop.f32.mrb[225].mxu0 }
 0x4c2   : > { %v11674_v44 = vadd.f32 %v11673_v60, %v11672_v12  ;;  %v11767_v18 = vpop.f32.mrb[225].mxu1  ;;  %v11675_v29 = vpop.f32.mrb[226].mxu0 }
 0x4c3   : > { %v11768_v55 = vadd.f32 %v11767_v18, %v11766_v45  ;;  %v11769_v15 = vpop.f32.mrb[226].mxu1  ;;  %v11676_v50 = vpop.f32.mrb[227].mxu0 }
 0x4c4   : > { %v9043_v42 = vadd.f32 %v11674_v44, %v15631_v54  ;;  %v11677_v33 = vadd.f32 %v11676_v50, %v11675_v29  ;;  %v11770_v26 = vpop.f32.mrb[227].mxu1 }
 0x4c5   : > { %v11771_v8 = vadd.f32 %v11770_v26, %v11769_v15 }
 0x4c6   : > { %v15706_v10 = vadd.f32 %v11768_v55, %v9043_v42  ;;  %v9046_v58 = vadd.f32 %v11677_v33, %v15634_v28 }
 0x4c8   : > { %v15709_v23 = vadd.f32 %v11771_v8, %v9046_v58  ;;  %v11678_v2 = vpop.f32.mrb[228].mxu0 }
 0x4c9   : > { %v11772_v59 = vpop.f32.mrb[228].mxu1  ;;  %v11679_v20 = vpop.f32.mrb[229].mxu0 }
 0x4ca   : > { %v11680_v49 = vadd.f32 %v11679_v20, %v11678_v2  ;;  %v11773_v57 = vpop.f32.mrb[229].mxu1  ;;  %v11681_v37 = vpop.f32.mrb[230].mxu0 }
 0x4cb   : > { %v11774_v40 = vadd.f32 %v11773_v57, %v11772_v59  ;;  %v11775_v63 = vpop.f32.mrb[230].mxu1  ;;  %v11682_v38 = vpop.f32.mrb[231].mxu0 }
 0x4cc   : > { %v9051_v54 = vadd.f32 %v11680_v49, %v15637_v24  ;;  %v11683_v56 = vadd.f32 %v11682_v38, %v11681_v37  ;;  %v11776_v14 = vpop.f32.mrb[231].mxu1 }
 0x4cd   : > { %v11777_v51 = vadd.f32 %v11776_v14, %v11775_v63 }
 0x4ce   : > { %v15712_v21 = vadd.f32 %v11774_v40, %v9051_v54  ;;  %v9054_v28 = vadd.f32 %v11683_v56, %v15640_v41 }
 0x4d0   : > { %v15715_v3 = vadd.f32 %v11777_v51, %v9054_v28  ;;  %v11684_v6 = vpop.f32.mrb[232].mxu0 }
 0x4d1   : > { %v11778_v30 = vpop.f32.mrb[232].mxu1  ;;  %v11685_v22 = vpop.f32.mrb[233].mxu0 }
 0x4d2   : > { %v11686_v19 = vadd.f32 %v11685_v22, %v11684_v6  ;;  %v11779_v62 = vpop.f32.mrb[233].mxu1  ;;  %v11687_v34 = vpop.f32.mrb[234].mxu0 }
 0x4d3   : > { %v11780_v11 = vadd.f32 %v11779_v62, %v11778_v30  ;;  %v11781_v36 = vpop.f32.mrb[234].mxu1  ;;  %v11688_v39 = vpop.f32.mrb[235].mxu0 }
 0x4d4   : > { %v9059_v24 = vadd.f32 %v11686_v19, %v15643_v53  ;;  %v11689_v12 = vadd.f32 %v11688_v39, %v11687_v34  ;;  %v11782_v45 = vpop.f32.mrb[235].mxu1 }
 0x4d5   : > { %v11783_v60 = vadd.f32 %v11782_v45, %v11781_v36 }
 0x4d6   : > { %v15718_v44 = vadd.f32 %v11780_v11, %v9059_v24  ;;  %v9062_v41 = vadd.f32 %v11689_v12, %v15646_v48 }
 0x4d8   : > { %v15721_v18 = vadd.f32 %v11783_v60, %v9062_v41  ;;  %v11690_v29 = vpop.f32.mrb[236].mxu0 }
 0x4d9   : > { %v11784_v55 = vpop.f32.mrb[236].mxu1  ;;  %v11691_v15 = vpop.f32.mrb[237].mxu0 }
 0x4da   : > { %v11692_v50 = vadd.f32 %v11691_v15, %v11690_v29  ;;  %v11785_v42 = vpop.f32.mrb[237].mxu1  ;;  %v11693_v33 = vpop.f32.mrb[238].mxu0 }
 0x4db   : > { %v11786_v26 = vadd.f32 %v11785_v42, %v11784_v55  ;;  %v11787_v8 = vpop.f32.mrb[238].mxu1  ;;  %v11694_v58 = vpop.f32.mrb[239].mxu0 }
 0x4dc   : > { %v9067_v53 = vadd.f32 %v11692_v50, %v15649_v27  ;;  %v11695_v2 = vadd.f32 %v11694_v58, %v11693_v33  ;;  %v11788_v59 = vpop.f32.mrb[239].mxu1 }
 0x4dd   : > { %v11789_v20 = vadd.f32 %v11788_v59, %v11787_v8 }
 0x4de   : > { %v15724_v49 = vadd.f32 %v11786_v26, %v9067_v53  ;;  %v9070_v48 = vadd.f32 %v11695_v2, %v15652_v13 }
 0x4e0   : > { %v15727_v57 = vadd.f32 %v11789_v20, %v9070_v48  ;;  %v11696_v37 = vpop.f32.mrb[240].mxu0 }
 0x4e1   : > { %v11790_v40 = vpop.f32.mrb[240].mxu1  ;;  %v11697_v63 = vpop.f32.mrb[241].mxu0 }
 0x4e2   : > { %v11698_v38 = vadd.f32 %v11697_v63, %v11696_v37  ;;  %v11791_v54 = vpop.f32.mrb[241].mxu1  ;;  %v11699_v56 = vpop.f32.mrb[242].mxu0 }
 0x4e3   : > { %v11792_v14 = vadd.f32 %v11791_v54, %v11790_v40  ;;  %v11793_v51 = vpop.f32.mrb[242].mxu1  ;;  %v11700_v28 = vpop.f32.mrb[243].mxu0 }
 0x4e4   : > { %v9075_v27 = vadd.f32 %v11698_v38, %v15655_v35  ;;  %v11701_v6 = vadd.f32 %v11700_v28, %v11699_v56  ;;  %v11794_v30 = vpop.f32.mrb[243].mxu1 }
 0x4e5   : > { %v11795_v22 = vadd.f32 %v11794_v30, %v11793_v51 }
 0x4e6   : > { %v15730_v19 = vadd.f32 %v11792_v14, %v9075_v27  ;;  %v9078_v13 = vadd.f32 %v11701_v6, %v15658_v47 }
 0x4e8   : > { %v15733_v62 = vadd.f32 %v11795_v22, %v9078_v13  ;;  %v11702_v34 = vpop.f32.mrb[244].mxu0 }
 0x4e9   : > { %v11796_v11 = vpop.f32.mrb[244].mxu1  ;;  %v11703_v36 = vpop.f32.mrb[245].mxu0 }
 0x4ea   : > { %v11704_v39 = vadd.f32 %v11703_v36, %v11702_v34  ;;  %v11797_v24 = vpop.f32.mrb[245].mxu1  ;;  %v11705_v12 = vpop.f32.mrb[246].mxu0 }
 0x4eb   : > { %v11798_v45 = vadd.f32 %v11797_v24, %v11796_v11  ;;  %v11799_v60 = vpop.f32.mrb[246].mxu1  ;;  %v11706_v41 = vpop.f32.mrb[247].mxu0 }
 0x4ec   : > { %v9083_v35 = vadd.f32 %v11704_v39, %v15661_v46  ;;  %v11707_v29 = vadd.f32 %v11706_v41, %v11705_v12  ;;  %v11800_v55 = vpop.f32.mrb[247].mxu1 }
 0x4ed   : > { %v11801_v15 = vadd.f32 %v11800_v55, %v11799_v60 }
 0x4ee   : > { %v15736_v50 = vadd.f32 %v11798_v45, %v9083_v35  ;;  %v9086_v47 = vadd.f32 %v11707_v29, %v15664_v25 }
 0x4f0   : > { %v15739_v42 = vadd.f32 %v11801_v15, %v9086_v47  ;;  %v11708_v33 = vpop.f32.mrb[248].mxu0 }
 0x4f1   : > { %v11802_v26 = vpop.f32.mrb[248].mxu1  ;;  %v11709_v8 = vpop.f32.mrb[249].mxu0 }
 0x4f2   : > { %v11710_v58 = vadd.f32 %v11709_v8, %v11708_v33  ;;  %v11803_v53 = vpop.f32.mrb[249].mxu1  ;;  %v11711_v2 = vpop.f32.mrb[250].mxu0 }
 0x4f3   : > { %v11804_v59 = vadd.f32 %v11803_v53, %v11802_v26  ;;  %v11805_v20 = vpop.f32.mrb[250].mxu1  ;;  %v11712_v48 = vpop.f32.mrb[251].mxu0 }
 0x4f4   : > { %v9091_v46 = vadd.f32 %v11710_v58, %v15667_v0  ;;  %v11713_v37 = vadd.f32 %v11712_v48, %v11711_v2  ;;  %v11806_v40 = vpop.f32.mrb[251].mxu1 }
 0x4f5   : > { %v11807_v63 = vadd.f32 %v11806_v40, %v11805_v20 }
 0x4f6   : > { %v15742_v38 = vadd.f32 %v11804_v59, %v9091_v46  ;;  %v9094_v25 = vadd.f32 %v11713_v37, %v15670_v61 }
 0x4f8   : > { %v15745_v54 = vadd.f32 %v11807_v63, %v9094_v25  ;;  %v11714_v56 = vpop.f32.mrb[252].mxu0 }
 0x4f9   : > { %v11808_v14 = vpop.f32.mrb[252].mxu1  ;;  %v11715_v51 = vpop.f32.mrb[253].mxu0 }
 0x4fa   : > { %v11716_v28 = vadd.f32 %v11715_v51, %v11714_v56  ;;  %v11809_v27 = vpop.f32.mrb[253].mxu1  ;;  %v11717_v6 = vpop.f32.mrb[254].mxu0 }
 0x4fb   : > { %v11810_v30 = vadd.f32 %v11809_v27, %v11808_v14  ;;  %v11811_v22 = vpop.f32.mrb[254].mxu1  ;;  %v11718_v13 = vpop.f32.mrb[255].mxu0 }
 0x4fc   : > { %v9099_v0 = vadd.f32 %v11716_v28, %v15673_v43  ;;  %v11719_v34 = vadd.f32 %v11718_v13, %v11717_v6  ;;  %v11812_v11 = vpop.f32.mrb[255].mxu1 }
 0x4fd   : > { %v11813_v36 = vadd.f32 %v11812_v11, %v11811_v22 }
 0x4fe   : > { %v15748_v39 = vadd.f32 %v11810_v30, %v9099_v0  ;;  %v9102_v61 = vadd.f32 %v11719_v34, %v15676_v17 }
 0x500   : > { %v15751_v24 = vadd.f32 %v11813_v36, %v9102_v61  ;;  %v11720_v12 = vpop.f32.mrb[0].mxu0 }
 0x501   : > { %v11814_v45 = vpop.f32.mrb[0].mxu1  ;;  %v11721_v60 = vpop.f32.mrb[1].mxu0 }
 0x502   : > { %v11722_v41 = vadd.f32 %v11721_v60, %v11720_v12  ;;  %v11815_v35 = vpop.f32.mrb[1].mxu1  ;;  %v11723_v29 = vpop.f32.mrb[2].mxu0 }
 0x503   : > { %v11816_v55 = vadd.f32 %v11815_v35, %v11814_v45  ;;  %v11817_v15 = vpop.f32.mrb[2].mxu1  ;;  %v11724_v47 = vpop.f32.mrb[3].mxu0 }
 0x504   : > { %v9107_v43 = vadd.f32 %v11722_v41, %v15679_v5  ;;  %v11818_v33 = vpop.f32.mrb[3].mxu1 }
 0x506   : > { %v15754_v26 = vadd.f32 %v11816_v55, %v9107_v43 }
 0x508   : > { %v11836_v8 = vpop.f32.mrb[4].mxu0 }
 0x509   : > { %v11930_v58 = vpop.f32.mrb[4].mxu1  ;;  %v11837_v17 = vpop.f32.mrb[5].mxu0 }
 0x50a   : > { %v11838_v53 = vadd.f32 %v11837_v17, %v11836_v8  ;;  %v11931_v2 = vpop.f32.mrb[5].mxu1  ;;  %v11839_v59 = vpop.f32.mrb[6].mxu0 }
 0x50b   : > { %v11932_v20 = vadd.f32 %v11931_v2, %v11930_v58  ;;  %v11933_v48 = vpop.f32.mrb[6].mxu1  ;;  %v11840_v46 = vpop.f32.mrb[7].mxu0 }
 0x50c   : > { %v9283_v37 = vadd.f32 %v11838_v53, %v15682_v7  ;;  %v11841_v40 = vadd.f32 %v11840_v46, %v11839_v59  ;;  %v11934_v63 = vpop.f32.mrb[7].mxu1 }
 0x50d   : > { %v11935_v25 = vadd.f32 %v11934_v63, %v11933_v48 }
 0x50e   : > { %v9419_v5 = vadd.f32 %v11932_v20, %v9283_v37  ;;  %v9286_v56 = vadd.f32 %v11841_v40, %v15685_v4 }
 0x510   : > { %9520 = vst [vmem:[%s13211_s4] sm:$0xff] %v9419_v5  ;;  %v9422_v14 = vadd.f32 %v11935_v25, %v9286_v56  ;;  %v11842_v51 = vpop.f32.mrb[8].mxu0 }
 0x511   : > { %v11936_v28 = vpop.f32.mrb[8].mxu1  ;;  %v11843_v27 = vpop.f32.mrb[9].mxu0 }
 0x512   : > { %9521 = vst [vmem:[%s13211_s4 + $0x8] sm:$0xff] %v9422_v14  ;;  %v11844_v6 = vadd.f32 %v11843_v27, %v11842_v51  ;;  %v11937_v30 = vpop.f32.mrb[9].mxu1  ;;  %v11845_v22 = vpop.f32.mrb[10].mxu0 }
 0x513   : > { %v11938_v13 = vadd.f32 %v11937_v30, %v11936_v28  ;;  %v11939_v0 = vpop.f32.mrb[10].mxu1  ;;  %v11846_v7 = vpop.f32.mrb[11].mxu0 }
 0x514   : > { %v9291_v34 = vadd.f32 %v11844_v6, %v15688_v52  ;;  %v11847_v11 = vadd.f32 %v11846_v7, %v11845_v22  ;;  %v11940_v36 = vpop.f32.mrb[11].mxu1 }
 0x515   : > { %v11941_v61 = vadd.f32 %v11940_v36, %v11939_v0 }
 0x516   : > { %v9427_v4 = vadd.f32 %v11938_v13, %v9291_v34  ;;  %v9294_v12 = vadd.f32 %v11847_v11, %v15691_v16 }
 0x518   : > { %9522 = vst [vmem:[%s13211_s4 + $0x10] sm:$0xff] %v9427_v4  ;;  %v9430_v45 = vadd.f32 %v11941_v61, %v9294_v12  ;;  %v11848_v60 = vpop.f32.mrb[12].mxu0 }
 0x519   : > { %v11942_v41 = vpop.f32.mrb[12].mxu1  ;;  %v11849_v35 = vpop.f32.mrb[13].mxu0 }
 0x51a   : > { %9523 = vst [vmem:[%s13211_s4 + $0x18] sm:$0xff] %v9430_v45  ;;  %v11850_v29 = vadd.f32 %v11849_v35, %v11848_v60  ;;  %v11943_v55 = vpop.f32.mrb[13].mxu1  ;;  %v11851_v15 = vpop.f32.mrb[14].mxu0 }
 0x51b   : > { %v11944_v47 = vadd.f32 %v11943_v55, %v11942_v41  ;;  %v11945_v43 = vpop.f32.mrb[14].mxu1  ;;  %v11852_v52 = vpop.f32.mrb[15].mxu0 }
 0x51c   : > { %v9299_v33 = vadd.f32 %v11850_v29, %v15694_v9  ;;  %v11853_v8 = vadd.f32 %v11852_v52, %v11851_v15  ;;  %v11946_v58 = vpop.f32.mrb[15].mxu1 }
 0x51d   : > { %v11947_v17 = vadd.f32 %v11946_v58, %v11945_v43 }
 0x51e   : > { %v9435_v16 = vadd.f32 %v11944_v47, %v9299_v33  ;;  %v9302_v53 = vadd.f32 %v11853_v8, %v15697_v31 }
 0x520   : > { %9524 = vst [vmem:[%s13211_s4 + $0x20] sm:$0xff] %v9435_v16  ;;  %v9438_v2 = vadd.f32 %v11947_v17, %v9302_v53  ;;  %v11854_v59 = vpop.f32.mrb[16].mxu0 }
 0x521   : > { %v11948_v20 = vpop.f32.mrb[16].mxu1  ;;  %v11855_v48 = vpop.f32.mrb[17].mxu0 }
 0x522   : > { %9525 = vst [vmem:[%s13211_s4 + $0x28] sm:$0xff] %v9438_v2  ;;  %v11856_v46 = vadd.f32 %v11855_v48, %v11854_v59  ;;  %v11949_v37 = vpop.f32.mrb[17].mxu1  ;;  %v11857_v40 = vpop.f32.mrb[18].mxu0 }
 0x523   : > { %v11950_v63 = vadd.f32 %v11949_v37, %v11948_v20  ;;  %v11951_v25 = vpop.f32.mrb[18].mxu1  ;;  %v11858_v9 = vpop.f32.mrb[19].mxu0 }
 0x524   : > { %v9307_v5 = vadd.f32 %v11856_v46, %v15700_v1  ;;  %v11859_v56 = vadd.f32 %v11858_v9, %v11857_v40  ;;  %v11952_v14 = vpop.f32.mrb[19].mxu1 }
 0x525   : > { %v11953_v51 = vadd.f32 %v11952_v14, %v11951_v25 }
 0x526   : > { %v9443_v31 = vadd.f32 %v11950_v63, %v9307_v5  ;;  %v9310_v28 = vadd.f32 %v11859_v56, %v15703_v32 }
 0x528   : > { %9526 = vst [vmem:[%s13211_s4 + $0x30] sm:$0xff] %v9443_v31  ;;  %v9446_v27 = vadd.f32 %v11953_v51, %v9310_v28  ;;  %v11860_v6 = vpop.f32.mrb[20].mxu0 }
 0x529   : > { %v11954_v30 = vpop.f32.mrb[20].mxu1  ;;  %v11861_v22 = vpop.f32.mrb[21].mxu0 }
 0x52a   : > { %9527 = vst [vmem:[%s13211_s4 + $0x38] sm:$0xff] %v9446_v27  ;;  %v11862_v13 = vadd.f32 %v11861_v22, %v11860_v6  ;;  %v11955_v0 = vpop.f32.mrb[21].mxu1  ;;  %v11863_v7 = vpop.f32.mrb[22].mxu0 }
 0x52b   : > { %v11956_v34 = vadd.f32 %v11955_v0, %v11954_v30  ;;  %v11957_v11 = vpop.f32.mrb[22].mxu1  ;;  %v11864_v1 = vpop.f32.mrb[23].mxu0 }
 0x52c   : > { %v9315_v36 = vadd.f32 %v11862_v13, %v15706_v10  ;;  %v11865_v61 = vadd.f32 %v11864_v1, %v11863_v7  ;;  %v11958_v4 = vpop.f32.mrb[23].mxu1 }
 0x52d   : > { %v11959_v12 = vadd.f32 %v11958_v4, %v11957_v11 }
 0x52e   : > { %v9451_v32 = vadd.f32 %v11956_v34, %v9315_v36  ;;  %v9318_v45 = vadd.f32 %v11865_v61, %v15709_v23 }
 0x530   : > { %9528 = vst [vmem:[%s13211_s4 + $0x40] sm:$0xff] %v9451_v32  ;;  %v9454_v60 = vadd.f32 %v11959_v12, %v9318_v45  ;;  %v11866_v41 = vpop.f32.mrb[24].mxu0 }
 0x531   : > { %v11960_v35 = vpop.f32.mrb[24].mxu1  ;;  %v11867_v29 = vpop.f32.mrb[25].mxu0 }
 0x532   : > { %9529 = vst [vmem:[%s13211_s4 + $0x48] sm:$0xff] %v9454_v60  ;;  %v11868_v55 = vadd.f32 %v11867_v29, %v11866_v41  ;;  %v11961_v15 = vpop.f32.mrb[25].mxu1  ;;  %v11869_v47 = vpop.f32.mrb[26].mxu0 }
 0x533   : > { %v11962_v43 = vadd.f32 %v11961_v15, %v11960_v35  ;;  %v11963_v52 = vpop.f32.mrb[26].mxu1  ;;  %v11870_v10 = vpop.f32.mrb[27].mxu0 }
 0x534   : > { %v9323_v33 = vadd.f32 %v11868_v55, %v15712_v21  ;;  %v11871_v8 = vadd.f32 %v11870_v10, %v11869_v47  ;;  %v11964_v58 = vpop.f32.mrb[27].mxu1 }
 0x535   : > { %v11965_v17 = vadd.f32 %v11964_v58, %v11963_v52 }
 0x536   : > { %v9459_v23 = vadd.f32 %v11962_v43, %v9323_v33  ;;  %v9326_v16 = vadd.f32 %v11871_v8, %v15715_v3 }
 0x538   : > { %9530 = vst [vmem:[%s13211_s4 + $0x50] sm:$0xff] %v9459_v23  ;;  %v9462_v53 = vadd.f32 %v11965_v17, %v9326_v16  ;;  %v11872_v2 = vpop.f32.mrb[28].mxu0 }
 0x539   : > { %v11966_v59 = vpop.f32.mrb[28].mxu1  ;;  %v11873_v20 = vpop.f32.mrb[29].mxu0 }
 0x53a   : > { %9531 = vst [vmem:[%s13211_s4 + $0x58] sm:$0xff] %v9462_v53  ;;  %v11874_v48 = vadd.f32 %v11873_v20, %v11872_v2  ;;  %v11967_v46 = vpop.f32.mrb[29].mxu1  ;;  %v11875_v37 = vpop.f32.mrb[30].mxu0 }
 0x53b   : > { %v11968_v40 = vadd.f32 %v11967_v46, %v11966_v59  ;;  %v11969_v63 = vpop.f32.mrb[30].mxu1  ;;  %v11876_v21 = vpop.f32.mrb[31].mxu0 }
 0x53c   : > { %v9331_v25 = vadd.f32 %v11874_v48, %v15718_v44  ;;  %v11877_v9 = vadd.f32 %v11876_v21, %v11875_v37  ;;  %v11970_v5 = vpop.f32.mrb[31].mxu1 }
 0x53d   : > { %v11971_v56 = vadd.f32 %v11970_v5, %v11969_v63 }
 0x53e   : > { %v9467_v3 = vadd.f32 %v11968_v40, %v9331_v25  ;;  %v9334_v14 = vadd.f32 %v11877_v9, %v15721_v18 }
 0x540   : > { %9532 = vst [vmem:[%s13211_s4 + $0x60] sm:$0xff] %v9467_v3  ;;  %v9470_v51 = vadd.f32 %v11971_v56, %v9334_v14  ;;  %v11878_v31 = vpop.f32.mrb[32].mxu0 }
 0x541   : > { %v11972_v28 = vpop.f32.mrb[32].mxu1  ;;  %v11879_v27 = vpop.f32.mrb[33].mxu0 }
 0x542   : > { %9533 = vst [vmem:[%s13211_s4 + $0x68] sm:$0xff] %v9470_v51  ;;  %v11880_v6 = vadd.f32 %v11879_v27, %v11878_v31  ;;  %v11973_v30 = vpop.f32.mrb[33].mxu1  ;;  %v11881_v22 = vpop.f32.mrb[34].mxu0 }
 0x543   : > { %v11974_v13 = vadd.f32 %v11973_v30, %v11972_v28  ;;  %v11975_v0 = vpop.f32.mrb[34].mxu1  ;;  %v11882_v44 = vpop.f32.mrb[35].mxu0 }
 0x544   : > { %v9339_v7 = vadd.f32 %v11880_v6, %v15724_v49  ;;  %v11883_v34 = vadd.f32 %v11882_v44, %v11881_v22  ;;  %v11976_v11 = vpop.f32.mrb[35].mxu1 }
 0x545   : > { %v11977_v1 = vadd.f32 %v11976_v11, %v11975_v0 }
 0x546   : > { %v9475_v18 = vadd.f32 %v11974_v13, %v9339_v7  ;;  %v9342_v36 = vadd.f32 %v11883_v34, %v15727_v57 }
 0x548   : > { %9534 = vst [vmem:[%s13211_s4 + $0x70] sm:$0xff] %v9475_v18  ;;  %v9478_v61 = vadd.f32 %v11977_v1, %v9342_v36  ;;  %v11884_v4 = vpop.f32.mrb[36].mxu0 }
 0x549   : > { %v11978_v12 = vpop.f32.mrb[36].mxu1  ;;  %v11885_v32 = vpop.f32.mrb[37].mxu0 }
 0x54a   : > { %9535 = vst [vmem:[%s13211_s4 + $0x78] sm:$0xff] %v9478_v61  ;;  %v11886_v45 = vadd.f32 %v11885_v32, %v11884_v4  ;;  %v11979_v60 = vpop.f32.mrb[37].mxu1  ;;  %v11887_v41 = vpop.f32.mrb[38].mxu0 }
 0x54b   : > { %v11980_v35 = vadd.f32 %v11979_v60, %v11978_v12  ;;  %v11981_v29 = vpop.f32.mrb[38].mxu1  ;;  %v11888_v49 = vpop.f32.mrb[39].mxu0 }
 0x54c   : > { %v9347_v55 = vadd.f32 %v11886_v45, %v15730_v19  ;;  %v11889_v15 = vadd.f32 %v11888_v49, %v11887_v41  ;;  %v11982_v47 = vpop.f32.mrb[39].mxu1 }
 0x54d   : > { %v11983_v43 = vadd.f32 %v11982_v47, %v11981_v29 }
 0x54e   : > { %v9483_v57 = vadd.f32 %v11980_v35, %v9347_v55  ;;  %v9350_v52 = vadd.f32 %v11889_v15, %v15733_v62 }
 0x550   : > { %9536 = vst [vmem:[%s13211_s4 + $0x80] sm:$0xff] %v9483_v57  ;;  %v9486_v10 = vadd.f32 %v11983_v43, %v9350_v52  ;;  %v11890_v33 = vpop.f32.mrb[40].mxu0  ;;  %v9633_v52 = vld [vmem:[%s13211_s4 + $0x8] sm:$0xff] (%p12406_p6) }
 0x551   : > { %v11984_v8 = vpop.f32.mrb[40].mxu1  ;;  %v11891_v58 = vpop.f32.mrb[41].mxu0  ;;  %9634 = vst [vmem:[%s15815_s26 + $0x30] sm:$0xff] (%p12406_p6), %v9633_v52 }
 0x552   : > { %9537 = vst [vmem:[%s13211_s4 + $0x88] sm:$0xff] %v9486_v10  ;;  %v11892_v17 = vadd.f32 %v11891_v58, %v11890_v33  ;;  %v11985_v23 = vpop.f32.mrb[41].mxu1  ;;  %v11893_v16 = vpop.f32.mrb[42].mxu0  ;;  %v9637_v10 = vld [vmem:[%s13211_s4 + $0x18] sm:$0xff] (%p12406_p6)  ;;  %v9639_v33 = vld [vmem:[%s13211_s4 + $0x20] sm:$0xff] (%p12406_p6)  ;;  %v9643_v58 = vld [vmem:[%s13211_s4 + $0x30] sm:$0xff] (%p12406_p6) }
 0x553   : > { %v11986_v53 = vadd.f32 %v11985_v23, %v11984_v8  ;;  %v11987_v2 = vpop.f32.mrb[42].mxu1  ;;  %v11894_v19 = vpop.f32.mrb[43].mxu0  ;;  %v9641_v8 = vld [vmem:[%s13211_s4 + $0x28] sm:$0xff] (%p12406_p6)  ;;  %9638 = vst [vmem:[%s15815_s26 + $0x90] sm:$0xff] (%p12406_p6), %v9637_v10  ;;  %9640 = vst [vmem:[%s15815_s26 + $0xc0] sm:$0xff] (%p12406_p6), %v9639_v33  ;;  %v9647_v23 = vld [vmem:[%s13211_s4 + $0x40] sm:$0xff] (%p12406_p6) }
 0x554   : > { %v9355_v59 = vadd.f32 %v11892_v17, %v15736_v50  ;;  %v11895_v20 = vadd.f32 %v11894_v19, %v11893_v16  ;;  %v11988_v48 = vpop.f32.mrb[43].mxu1  ;;  %9642 = vst [vmem:[%s15815_s26 + $0xf0] sm:$0xff] (%p12406_p6), %v9641_v8  ;;  %v9645_v17 = vld [vmem:[%s13211_s4 + $0x38] sm:$0xff] (%p12406_p6)  ;;  %9644 = vst [vmem:[%s15815_s26 + $0x120] sm:$0xff] (%p12406_p6), %v9643_v58  ;;  %v9649_v16 = vld [vmem:[%s13211_s4 + $0x48] sm:$0xff] (%p12406_p6) }
 0x555   : > { %v11989_v46 = vadd.f32 %v11988_v48, %v11987_v2  ;;  %9646 = vst [vmem:[%s15815_s26 + $0x150] sm:$0xff] (%p12406_p6), %v9645_v17  ;;  %9648 = vst [vmem:[%s15815_s26 + $0x180] sm:$0xff] (%p12406_p6), %v9647_v23  ;;  %v9653_v2 = vld [vmem:[%s13211_s4 + $0x58] sm:$0xff] (%p12406_p6)  ;;  %v9655_v19 = vld [vmem:[%s13211_s4 + $0x60] sm:$0xff] (%p12406_p6) }
 0x556   : > { %v9491_v62 = vadd.f32 %v11986_v53, %v9355_v59  ;;  %v9358_v37 = vadd.f32 %v11895_v20, %v15739_v42  ;;  %v9651_v53 = vld [vmem:[%s13211_s4 + $0x50] sm:$0xff] (%p12406_p6)  ;;  %9650 = vst [vmem:[%s15815_s26 + $0x1b0] sm:$0xff] (%p12406_p6), %v9649_v16  ;;  %9654 = vst [vmem:[%s15815_s26 + $0x210] sm:$0xff] (%p12406_p6), %v9653_v2  ;;  %v9657_v59 = vld [vmem:[%s13211_s4 + $0x68] sm:$0xff] (%p12406_p6) }
 0x557   : > { %9652 = vst [vmem:[%s15815_s26 + $0x1e0] sm:$0xff] (%p12406_p6), %v9651_v53  ;;  %v9659_v20 = vld [vmem:[%s13211_s4 + $0x70] sm:$0xff] (%p12406_p6)  ;;  %9656 = vst [vmem:[%s15815_s26 + $0x240] sm:$0xff] (%p12406_p6), %v9655_v19  ;;  %v9661_v48 = vld [vmem:[%s13211_s4 + $0x78] sm:$0xff] (%p12406_p6) }
 0x558   : > { %9538 = vst [vmem:[%s13211_s4 + $0x90] sm:$0xff] %v9491_v62  ;;  %v9494_v40 = vadd.f32 %v11989_v46, %v9358_v37  ;;  %v11896_v63 = vpop.f32.mrb[44].mxu0  ;;  %9658 = vst [vmem:[%s15815_s26 + $0x270] sm:$0xff] (%p12406_p6), %v9657_v59  ;;  %v9663_v46 = vld [vmem:[%s13211_s4 + $0x80] sm:$0xff] (%p12406_p6) }
 0x559   : > { %v11990_v21 = vpop.f32.mrb[44].mxu1  ;;  %v11897_v25 = vpop.f32.mrb[45].mxu0  ;;  %9660 = vst [vmem:[%s15815_s26 + $0x2a0] sm:$0xff] (%p12406_p6), %v9659_v20  ;;  %v9665_v62 = vld [vmem:[%s13211_s4 + $0x88] sm:$0xff] (%p12406_p6)  ;;  %9662 = vst [vmem:[%s15815_s26 + $0x2d0] sm:$0xff] (%p12406_p6), %v9661_v48 }
 0x55a   : > { %9539 = vst [vmem:[%s13211_s4 + $0x98] sm:$0xff] %v9494_v40  ;;  %v11898_v9 = vadd.f32 %v11897_v25, %v11896_v63  ;;  %v11991_v5 = vpop.f32.mrb[45].mxu1  ;;  %v11899_v56 = vpop.f32.mrb[46].mxu0  ;;  %9664 = vst [vmem:[%s15815_s26 + $0x300] sm:$0xff] (%p12406_p6), %v9663_v46 }
 0x55b   : > { %v11992_v3 = vadd.f32 %v11991_v5, %v11990_v21  ;;  %v11993_v14 = vpop.f32.mrb[46].mxu1  ;;  %v11900_v50 = vpop.f32.mrb[47].mxu0  ;;  %9666 = vst [vmem:[%s15815_s26 + $0x330] sm:$0xff] (%p12406_p6), %v9665_v62 }
 0x55c   : > { %v9363_v51 = vadd.f32 %v11898_v9, %v15742_v38  ;;  %v11901_v31 = vadd.f32 %v11900_v50, %v11899_v56  ;;  %v11994_v28 = vpop.f32.mrb[47].mxu1 }
 0x55d   : > { %v11995_v27 = vadd.f32 %v11994_v28, %v11993_v14 }
 0x55e   : > { %v9499_v42 = vadd.f32 %v11992_v3, %v9363_v51  ;;  %v9366_v6 = vadd.f32 %v11901_v31, %v15745_v54 }
 0x55f   : > { %v9667_v37 = vld [vmem:[%s13211_s4 + $0x90] sm:$0xff] (%p12406_p6) }
 0x560   : > { %9540 = vst [vmem:[%s13211_s4 + $0xa0] sm:$0xff] %v9499_v42  ;;  %v9502_v30 = vadd.f32 %v11995_v27, %v9366_v6  ;;  %v11902_v22 = vpop.f32.mrb[48].mxu0  ;;  %9668 = vst [vmem:[%s15815_s26 + $0x360] sm:$0xff] (%p12406_p6), %v9667_v37 }
 0x561   : > { %v11996_v13 = vpop.f32.mrb[48].mxu1  ;;  %v11903_v0 = vpop.f32.mrb[49].mxu0  ;;  %v9669_v40 = vld [vmem:[%s13211_s4 + $0x98] sm:$0xff] (%p12406_p6) }
 0x562   : > { %9541 = vst [vmem:[%s13211_s4 + $0xa8] sm:$0xff] %v9502_v30  ;;  %v11904_v44 = vadd.f32 %v11903_v0, %v11902_v22  ;;  %v11997_v7 = vpop.f32.mrb[49].mxu1  ;;  %v11905_v34 = vpop.f32.mrb[50].mxu0  ;;  %9670 = vst [vmem:[%s15815_s26 + $0x390] sm:$0xff] (%p12406_p6), %v9669_v40 }
 0x563   : > { %v11998_v11 = vadd.f32 %v11997_v7, %v11996_v13  ;;  %v11999_v1 = vpop.f32.mrb[50].mxu1  ;;  %v11906_v38 = vpop.f32.mrb[51].mxu0 }
 0x564   : > { %v9371_v18 = vadd.f32 %v11904_v44, %v15748_v39  ;;  %v11907_v36 = vadd.f32 %v11906_v38, %v11905_v34  ;;  %v12000_v61 = vpop.f32.mrb[51].mxu1 }
 0x565   : > { %v12001_v4 = vadd.f32 %v12000_v61, %v11999_v1 }
 0x566   : > { %v9507_v54 = vadd.f32 %v11998_v11, %v9371_v18  ;;  %v9374_v12 = vadd.f32 %v11907_v36, %v15751_v24  ;;  %v9631_v24 = vld [vmem:[%s13211_s4] sm:$0xff] (%p12406_p6) }
 0x567   : > { %9632 = vst [vmem:[%s15815_s26] sm:$0xff] (%p12406_p6), %v9631_v24  ;;  %v9671_v63 = vld [vmem:[%s13211_s4 + $0xa0] sm:$0xff] (%p12406_p6) }
 0x568   : > { %9542 = vst [vmem:[%s13211_s4 + $0xb0] sm:$0xff] %v9507_v54  ;;  %v9510_v32 = vadd.f32 %v12001_v4, %v9374_v12  ;;  %v11908_v45 = vpop.f32.mrb[52].mxu0  ;;  %9672 = vst [vmem:[%s15815_s26 + $0x3c0] sm:$0xff] (%p12406_p6), %v9671_v63 }
 0x569   : > { %v12002_v60 = vpop.f32.mrb[52].mxu1  ;;  %v11909_v41 = vpop.f32.mrb[53].mxu0  ;;  %v9673_v21 = vld [vmem:[%s13211_s4 + $0xa8] sm:$0xff] (%p12406_p6) }
 0x56a   : > { %9543 = vst [vmem:[%s13211_s4 + $0xb8] sm:$0xff] %v9510_v32  ;;  %v11910_v35 = vadd.f32 %v11909_v41, %v11908_v45  ;;  %v12003_v29 = vpop.f32.mrb[53].mxu1  ;;  %v11911_v49 = vpop.f32.mrb[54].mxu0  ;;  %9551 = sbr.rel (!%p12406_p6) target bundleno = 1401 (0x579), region = 81  ;;  %9674 = vst [vmem:[%s15815_s26 + $0x3f0] sm:$0xff] (%p12406_p6), %v9673_v21 }
 0x56b   : > { %v12004_v55 = vadd.f32 %v12003_v29, %v12002_v60  ;;  %v12005_v15 = vpop.f32.mrb[54].mxu1  ;;  %v11912_v47 = vpop.f32.mrb[55].mxu0 }
 0x56c   : > { %v9379_v39 = vadd.f32 %v11910_v35, %v15754_v26  ;;  %v12006_v43 = vpop.f32.mrb[55].mxu1  ;;  %v9635_v26 = vld [vmem:[%s13211_s4 + $0x10] sm:$0xff] (%p12406_p6) }
 0x56d   : > { %9636 = vst [vmem:[%s15815_s26 + $0x60] sm:$0xff] (%p12406_p6), %v9635_v26 }
 0x56e   : > { %v9515_v57 = vadd.f32 %v12004_v55, %v9379_v39 }
 0x56f   : > { %v9675_v25 = vld [vmem:[%s13211_s4 + $0xb0] sm:$0xff] (%p12406_p6) }
 0x570   : > { %9544 = vst [vmem:[%s13211_s4 + $0xc0] sm:$0xf] %v9515_v57  ;;  %9676 = vst [vmem:[%s15815_s26 + $0x420] sm:$0xff] (%p12406_p6), %v9675_v25 }
 0x571   : > { %v9677_v9 = vld [vmem:[%s13211_s4 + $0xb8] sm:$0xff] }
 0x572   : > { %9678 = vst [vmem:[%s15815_s26 + $0x450] sm:$0xff] %v9677_v9 }
 0x577   : > { %v9679_v5 = vld [vmem:[%s13211_s4 + $0xc0] sm:$0xff] }
 0x578   : > { %9680 = vst [vmem:[%s15815_s26 + $0x480] sm:$0xff] %v9679_v5 }
 0x579 PF: > { %s13_s18 = sadd.s32 1, %s12337_s18   ;;  %s15890_s12 = smov %s12317_s13 }
 0x57a   : > { %p10_p0 = scmp.ge.s32.totalorder %s13_s18, 8   ;;  %s15891_s13 = smov %s12415_s29 }
 0x57b   : > { %s15892_s14 = smov %s12329_s16  ;;  %s15893_s15 = smov %s12333_s17 }
 0x57c   : > { %s15894_s16 = smov %s15897_s19  ;;  %s15895_s17 = smov %s15901_s20 }
 0x57d   :  { %12 = sbr.rel (!%p10_p0) target bundleno = 4 (0x4), region = 153 }

</bundles_post_ra>
